<compile_context>
chip_gen: v5e
topology: v5e:2x2
jax: 0.10.0
libtpu: 0.0.40
codegen_flags: <defaults>
</compile_context>

<pallas_src>
import functools

import jax
import jax.numpy as jnp
from jax import lax
from jax.experimental import pallas as pl
from jax.experimental.pallas import tpu as pltpu


# ----------------------------------------------------------------------------
# Small helpers
# ----------------------------------------------------------------------------
def _round_up(v, m):
    return ((v + m - 1) // m) * m


def _pick_tile(dim, cap):
    """Largest power-of-two-ish row tile <= cap that divides dim (else dim)."""
    if dim <= cap:
        return dim
    t = cap
    while t >= 8:
        if dim % t == 0:
            return t
        t //= 2
    return dim


def _padded_bytes(shape, dtype):
    """VMEM bytes of a buffer including (sublane, lane) layout padding."""
    itemsize = jnp.dtype(dtype).itemsize
    dims = list(shape)
    if len(dims) >= 1:
        dims[-1] = _round_up(dims[-1], 128)
    if len(dims) >= 2:
        sub = 8 * max(1, 4 // itemsize)          # 8 for f32, 16 for bf16
        dims[-2] = _round_up(dims[-2], sub)
    total = itemsize
    for d in dims:
        total *= d
    return total


def _tpu_generation():
    try:
        kind = jax.devices()[0].device_kind.lower()
        for g in (7, 6, 5, 4, 3, 2):
            if f"v{g}" in kind:
                return g
    except Exception:
        pass
    return 6


def _vmem_capacity_bytes():
    try:
        cap = int(pltpu.get_tpu_info().vmem_capacity_bytes)
        if cap > 0:
            return cap
    except Exception:
        pass
    return 128 * 2**20


# ----------------------------------------------------------------------------
# Fused conv (+bias, +ReLU, +optional 2x2 max-pool) kernel
# ----------------------------------------------------------------------------
def _make_conv_kernel(*, tile_h, W, khw, apply_relu, fuse_pool):
    halo_rows = tile_h + khw - 1

    def kernel(x_ref, w_ref, b_ref, o_ref):
        # x_ref: (1, H+khw-1, W+khw-1, cin) bf16, resident across co/h axes
        # w_ref: (khw*khw, cin, co_t)       bf16
        # b_ref: (1, co_t)                  f32
        # o_ref: (1, th(/2), W(/2), co_t)   bf16
        h_idx = pl.program_id(2)
        row0 = pl.multiple_of(h_idx * tile_h, tile_h)

        acc = None
        for dw in range(khw):
            # One contiguous (rows+halo, W, cin) slab per dw tap; the dh taps
            # are cheap static leading-dim slices of the same slab.
            xs = x_ref[0, pl.ds(row0, halo_rows), pl.ds(dw, W), :]
            for dh in range(khw):
                lhs = xs if khw == 1 else xs[dh:dh + tile_h]     # (th, W, cin)
                part = lax.dot_general(                           # MXU, f32 acc
                    lhs, w_ref[khw * dh + dw],
                    dimension_numbers=(((2,), (0,)), ((), ())),
                    preferred_element_type=jnp.float32)
                acc = part if acc is None else acc + part

        acc = acc + b_ref[...]                     # (1, co_t) broadcast
        if apply_relu:
            acc = jnp.maximum(acc, 0.0)

        y = acc.astype(o_ref.dtype)                # bf16 before pool (monotone)
        if fuse_pool:
            th2, w2 = tile_h // 2, W // 2
            co_t = y.shape[-1]
            y = jnp.max(y.reshape(th2, 2, W, co_t), axis=1)          # rows
            y = jnp.max(y[:, :2 * w2, :].reshape(th2, w2, 2, co_t),  # cols
                        axis=2)
        o_ref[0] = y

    return kernel


def _conv_call(xp, w9, b, *, khw, apply_relu, fuse_pool):
    """xp: (N, H+khw-1, W+khw-1, cin) bf16; w9: (khw*khw, cin, cout) bf16."""
    N, Hp, Wp, cin = xp.shape
    H, W = Hp - (khw - 1), Wp - (khw - 1)
    ntap = khw * khw
    cout = w9.shape[-1]

    gen = _tpu_generation()
    co_t = 256 if (cout % 256 == 0 and gen >= 6) else min(128, cout)
    n_co = cout // co_t

    tile_h = _pick_tile(H, 32)
    if fuse_pool and tile_h % 2 != 0:
        tile_h = H                                  # VGG dims are even at pools
    n_h = H // tile_h

    if fuse_pool:
        h_out, w_out, th_out = H // 2, W // 2, tile_h // 2
    else:
        h_out, w_out, th_out = H, W, tile_h

    kernel = _make_conv_kernel(tile_h=tile_h, W=W, khw=khw,
                               apply_relu=apply_relu, fuse_pool=fuse_pool)

    # Layout-padding-aware VMEM budget; cap at 0.75 * physical VMEM.
    in_blk = _padded_bytes((Hp, Wp, cin), jnp.bfloat16)
    w_blk = _padded_bytes((ntap, cin, co_t), jnp.bfloat16)
    b_blk = _padded_bytes((1, co_t), jnp.float32)
    out_blk = _padded_bytes((th_out, w_out, co_t), jnp.bfloat16)
    acc_blk = _padded_bytes((tile_h, W, co_t), jnp.float32)
    est = 2 * (in_blk + w_blk + b_blk + out_blk) + 2 * acc_blk
    cap = _vmem_capacity_bytes()
    vmem_limit = int(min(int(0.75 * cap), max(32 * 2**20, 3 * est)))

    flops = 2 * N * H * W * ntap * cin * cout
    bytes_accessed = (N * Hp * Wp * cin * 2
                      + N * n_co * ntap * cin * co_t * 2
                      + N * h_out * w_out * cout * 2 + cout * 4)

    b2 = b.reshape(1, cout).astype(jnp.float32)

    return pl.pallas_call(
        kernel,
        out_shape=jax.ShapeDtypeStruct((N, h_out, w_out, cout), jnp.bfloat16),
        grid=(N, n_co, n_h),
        in_specs=[
            pl.BlockSpec((1, Hp, Wp, cin), lambda n, co, h: (n, 0, 0, 0)),
            pl.BlockSpec((ntap, cin, co_t), lambda n, co, h: (0, 0, co)),
            pl.BlockSpec((1, co_t), lambda n, co, h: (0, co)),
        ],
        out_specs=pl.BlockSpec((1, th_out, w_out, co_t),
                               lambda n, co, h: (n, h, 0, co)),
        compiler_params=pltpu.CompilerParams(
            dimension_semantics=("parallel", "parallel", "parallel"),
            vmem_limit_bytes=vmem_limit),
        cost_estimate=pl.CostEstimate(flops=flops, transcendentals=0,
                                      bytes_accessed=bytes_accessed),
    )(xp, w9, b2)


def _im2col_3x3(x):
    """(N,H,W,C) -> (N,H,W,9C) SAME-padded 3x3 patches (XLA side)."""
    N, H, W, C = x.shape
    xp = jnp.pad(x, ((0, 0), (1, 1), (1, 1), (0, 0)))
    cols = [xp[:, dh:dh + H, dw:dw + W, :] for dh in range(3) for dw in range(3)]
    return jnp.concatenate(cols, axis=-1)


def conv_layer(x, w, b, *, apply_relu, fuse_pool):
    """x: (N,H,W,Cin) bf16 NHWC; w: (3,3,Cin_w,Cout) f32 HWIO; b: (Cout,) f32."""
    cin_w, cout = w.shape[2], w.shape[3]
    if cin_w <= 8:
        # First VGG conv (cin=3): im2col so the kernel does ONE K=27(->32)
        # matmul instead of nine K=8 matmuls with a 16x lane-padded input.
        patches = _im2col_3x3(x[..., :cin_w])
        k = patches.shape[-1]
        k_pad = _round_up(k, 32)
        if k_pad != k:
            patches = jnp.pad(patches, ((0, 0), (0, 0), (0, 0), (0, k_pad - k)))
        wk = w.reshape(9 * cin_w, cout)
        wk = jnp.pad(wk, ((0, k_pad - k), (0, 0)))[None]        # (1, k_pad, cout)
        return _conv_call(patches.astype(jnp.bfloat16), wk.astype(jnp.bfloat16),
                          b, khw=1, apply_relu=apply_relu, fuse_pool=fuse_pool)

    cin = x.shape[-1]
    if cin_w != cin:
        w = jnp.pad(w, ((0, 0), (0, 0), (0, cin - cin_w), (0, 0)))
    w9 = w.reshape(9, cin, cout).astype(jnp.bfloat16)
    xp = jnp.pad(x, ((0, 0), (1, 1), (1, 1), (0, 0)))            # SAME padding
    return _conv_call(xp, w9, b, khw=3,
                      apply_relu=apply_relu, fuse_pool=fuse_pool)


# ----------------------------------------------------------------------------
# Standalone ReLU / 2x2 max-pool kernels (only used when a tap prevents fusion)
# ----------------------------------------------------------------------------
def _relu_kernel(x_ref, o_ref):
    o_ref[...] = jnp.maximum(x_ref[...], 0).astype(o_ref.dtype)


def relu(x):
    N, H, W, C = x.shape
    tile_h = _pick_tile(H, 128)
    n_h = H // tile_h
    blk = _padded_bytes((tile_h, W, C), x.dtype)
    vmem_limit = int(min(int(0.75 * _vmem_capacity_bytes()),
                         max(16 * 2**20, 6 * blk)))
    return pl.pallas_call(
        _relu_kernel,
        out_shape=jax.ShapeDtypeStruct(x.shape, x.dtype),
        grid=(N, n_h),
        in_specs=[pl.BlockSpec((1, tile_h, W, C), lambda n, h: (n, h, 0, 0))],
        out_specs=pl.BlockSpec((1, tile_h, W, C), lambda n, h: (n, h, 0, 0)),
        compiler_params=pltpu.CompilerParams(
            dimension_semantics=("parallel", "parallel"),
            vmem_limit_bytes=vmem_limit),
    )(x)


def _maxpool_kernel(x_ref, o_ref):
    th2, w2, c = o_ref.shape[1], o_ref.shape[2], o_ref.shape[3]
    v = x_ref[0]                                           # (2*th2, W, C)
    v = jnp.max(v.reshape(th2, 2, v.shape[1], c), axis=1)          # rows
    v = jnp.max(v[:, :2 * w2, :].reshape(th2, w2, 2, c), axis=2)   # cols
    o_ref[0] = v.astype(o_ref.dtype)


def maxpool2x2(x):
    # Floor-mode 2x2/2 pooling (drops last row/col for odd dims), like PyTorch.
    N, H, W, C = x.shape
    H2, W2 = H // 2, W // 2
    th2 = _pick_tile(H2, 64)
    n_h = H2 // th2
    blk = _padded_bytes((2 * th2, W, C), x.dtype)
    vmem_limit = int(min(int(0.75 * _vmem_capacity_bytes()),
                         max(16 * 2**20, 6 * blk)))
    return pl.pallas_call(
        _maxpool_kernel,
        out_shape=jax.ShapeDtypeStruct((N, H2, W2, C), x.dtype),
        grid=(N, n_h),
        in_specs=[pl.BlockSpec((1, 2 * th2, W, C), lambda n, h: (n, h, 0, 0))],
        out_specs=pl.BlockSpec((1, th2, W2, C), lambda n, h: (n, h, 0, 0)),
        compiler_params=pltpu.CompilerParams(
            dimension_semantics=("parallel", "parallel"),
            vmem_limit_bytes=vmem_limit),
    )(x)


# ----------------------------------------------------------------------------
# VGG16 "features" construction (synthetic deterministic weights)
# ----------------------------------------------------------------------------
VGG16_CFG = [64, 64, 'M', 128, 128, 'M', 256, 256, 256, 'M',
             512, 512, 512, 'M', 512, 512, 512, 'M']

IMAGENET_MEAN = jnp.array([0.485, 0.456, 0.406], jnp.float32)
IMAGENET_STD = jnp.array([0.229, 0.224, 0.225], jnp.float32)


def build_vgg16_features(key, num_layers):
    layers = []
    in_c = 3
    for v in VGG16_CFG:
        if v == 'M':
            layers.append(('maxpool', None))
        else:
            layers.append(('conv', (in_c, v)))
            layers.append(('relu', None))
            in_c = v
    layers = layers[:num_layers]

    params = []
    for (ltype, meta) in layers:
        if ltype == 'conv':
            cin, cout = meta
            key, k1, k2 = jax.random.split(key, 3)
            w = jax.random.normal(k1, (3, 3, cin, cout), jnp.float32) * 0.05
            b = jax.random.normal(k2, (cout,), jnp.float32) * 0.01
            params.append((w, b))
        else:
            params.append(None)
    return layers, params


# ----------------------------------------------------------------------------
# PerceptualVGG forward (fused Pallas path)
# ----------------------------------------------------------------------------
def perceptual_vgg_forward(x_nchw, layers, params, layer_name_list,
                           use_input_norm=True):
    """x_nchw: (N, 3, H, W) float32 -> dict[name] = feature map (NCHW, f32)."""
    x = jnp.transpose(x_nchw, (0, 2, 3, 1)).astype(jnp.float32)     # NHWC
    if use_input_norm:
        x = (x - IMAGENET_MEAN) * (1.0 / IMAGENET_STD)
    x = x.astype(jnp.bfloat16)                                       # bf16 acts

    def tap(v):
        return jnp.transpose(v, (0, 3, 1, 2)).astype(jnp.float32)    # NCHW, f32

    outputs = {}
    idx, L = 0, len(layers)
    while idx < L:
        ltype, _ = layers[idx]
        if ltype == 'conv':
            w, b = params[idx]
            fuse_relu = (idx + 1 < L and layers[idx + 1][0] == 'relu'
                         and str(idx) not in layer_name_list)
            fuse_pool = (fuse_relu and idx + 2 < L
                         and layers[idx + 2][0] == 'maxpool'
                         and str(idx + 1) not in layer_name_list)
            x = conv_layer(x, w, b, apply_relu=fuse_relu, fuse_pool=fuse_pool)
            last = idx + int(fuse_relu) + int(fuse_pool)
            if str(last) in layer_name_list:
                outputs[str(last)] = tap(x)
            idx = last + 1
        elif ltype == 'relu':
            x = relu(x)
            if str(idx) in layer_name_list:
                outputs[str(idx)] = tap(x)
            idx += 1
        else:  # maxpool (pre-pool activation was tapped, so it was not fused)
            x = maxpool2x2(x)
            if str(idx) in layer_name_list:
                outputs[str(idx)] = tap(x)
            idx += 1
    return outputs


# ----------------------------------------------------------------------------
# Plain-JAX reference (correctness check only; f32, HIGHEST precision)
# ----------------------------------------------------------------------------
def reference_forward(x_nchw, layers, params, layer_name_list,
                      use_input_norm=True):
    mean = IMAGENET_MEAN.reshape(1, 3, 1, 1)
    std = IMAGENET_STD.reshape(1, 3, 1, 1)
    x = (x_nchw - mean) / std if use_input_norm else x_nchw
    x = jnp.transpose(x, (0, 2, 3, 1))
    out = {}
    for idx, (ltype, _) in enumerate(layers):
        if ltype == 'conv':
            w, b = params[idx]
            x = lax.conv_general_dilated(
                x, w, (1, 1), 'SAME',
                dimension_numbers=('NHWC', 'HWIO', 'NHWC'),
                precision=lax.Precision.HIGHEST) + b
        elif ltype == 'relu':
            x = jnp.maximum(x, 0.0)
        else:
            x = lax.reduce_window(x, -jnp.inf, lax.max,
                                  (1, 2, 2, 1), (1, 2, 2, 1), 'VALID')
        if str(idx) in layer_name_list:
            out[str(idx)] = jnp.transpose(x, (0, 3, 1, 2))
    return out


# ----------------------------------------------------------------------------
if __name__ == "__main__":
    key = jax.random.PRNGKey(0)
    x = jax.random.normal(key, (2, 3, 16, 16), jnp.float32)

    # Exercises: im2col first conv+relu, plain conv (tapped pre-ReLU),
    # standalone relu, standalone maxpool, fused conv+relu, fused
    # conv+relu+pool, and the 256-channel (co_t=256) conv.
    layer_name_list = ['2', '3', '4', '11']
    num_layers = max(map(int, layer_name_list)) + 1
    layers, params = build_vgg16_features(jax.random.PRNGKey(42), num_layers)

    fwd = jax.jit(functools.partial(perceptual_vgg_forward,
                                    layers=layers, params=params,
                                    layer_name_list=layer_name_list,
                                    use_input_norm=True))
    out = jax.block_until_ready(fwd(x))

    # Correctness check against the f32 reference (bf16 activations/weights in
    # the Pallas path -> relative tolerance).
    ref = reference_forward(x, layers, params, layer_name_list,
                            use_input_norm=True)
    for name in layer_name_list:
        o, r = out[name], ref[name]
        assert o.shape == r.shape, (name, o.shape, r.shape)
        scale = float(jnp.max(jnp.abs(r)))
        err = float(jnp.max(jnp.abs(o.astype(jnp.float32) - r)))
        assert err <= 5e-2 * scale + 5e-2, (name, err, scale)

    print("KERNEL_OK")
</pallas_src>

<mosaic_0001>
module attributes {stable_mosaic.version = 11 : i64} {
  func.func @kernel(%arg0: i32, %arg1: i32, %arg2: i32, %arg3: memref<1x16x16x32xbf16, #tpu.memory_space<vmem>>, %arg4: memref<1x32x64xbf16, #tpu.memory_space<vmem>>, %arg5: memref<1x64xf32, #tpu.memory_space<vmem>>, %arg6: memref<1x16x16x64xbf16, #tpu.memory_space<vmem>>) attributes {dimension_semantics = [#tpu.dimension_semantics<parallel>, #tpu.dimension_semantics<parallel>, #tpu.dimension_semantics<parallel>], iteration_bounds = array<i64: 2, 1, 1>, scalar_prefetch = 0 : i64, scratch_operands = 0 : i64, tpu.core_type = #tpu.core_type<tc>, window_params = [{transform_indices = @transform_0, window_bounds = array<i64: 1, 16, 16, 32>}, {transform_indices = @transform_1, window_bounds = array<i64: 1, 32, 64>}, {transform_indices = @transform_2, window_bounds = array<i64: 1, 64>}, {transform_indices = @transform_3, window_bounds = array<i64: 1, 16, 16, 64>}]} {
    %c16_i32 = arith.constant 16 : i32
    %0 = arith.muli %arg2, %c16_i32 : i32
    %1 = tpu.assume_multiple %0, 16 : i32
    %c0 = arith.constant 0 : index
    %2 = arith.index_cast %1 : i32 to index
    %c0_0 = arith.constant 0 : index
    %c0_1 = arith.constant 0 : index
    %3 = vector.load %arg3[%c0, %2, %c0_0, %c0_1] : memref<1x16x16x32xbf16, #tpu.memory_space<vmem>>, vector<1x16x16x32xbf16>
    %4 = vector.shape_cast %3 : vector<1x16x16x32xbf16> to vector<16x16x32xbf16>
    %c0_2 = arith.constant 0 : index
    %c0_3 = arith.constant 0 : index
    %c0_4 = arith.constant 0 : index
    %5 = vector.load %arg4[%c0_2, %c0_3, %c0_4] : memref<1x32x64xbf16, #tpu.memory_space<vmem>>, vector<1x32x64xbf16>
    %6 = vector.shape_cast %5 : vector<1x32x64xbf16> to vector<32x64xbf16>
    %cst = arith.constant dense<0.000000e+00> : vector<16x16x64xf32>
    %7 = tpu.matmul %4, %6, %cst {dimension_numbers = #tpu.dot_dimension_numbers<[2], [0], [0, 1], [1], [0, 0, 0, 1, 1, 1], [], []>} : vector<16x16x32xbf16>, vector<32x64xbf16>, vector<16x16x64xf32> -> vector<16x16x64xf32>
    %c0_5 = arith.constant 0 : index
    %c0_6 = arith.constant 0 : index
    %8 = vector.load %arg5[%c0_5, %c0_6] : memref<1x64xf32, #tpu.memory_space<vmem>>, vector<1x64xf32>
    %9 = vector.shape_cast %8 : vector<1x64xf32> to vector<1x1x64xf32>
    %10 = vector.broadcast %9 : vector<1x1x64xf32> to vector<16x16x64xf32>
    %11 = arith.addf %7, %10 : vector<16x16x64xf32>
    %cst_7 = arith.constant 0.000000e+00 : f32
    %12 = vector.broadcast %cst_7 : f32 to vector<16x16x64xf32>
    %13 = arith.maximumf %11, %12 : vector<16x16x64xf32>
    %14 = arith.truncf %13 : vector<16x16x64xf32> to vector<16x16x64xbf16>
    %c0_8 = arith.constant 0 : index
    %c0_9 = arith.constant 0 : index
    %c0_10 = arith.constant 0 : index
    %c0_11 = arith.constant 0 : index
    %15 = vector.load %arg6[%c0_8, %c0_9, %c0_10, %c0_11] : memref<1x16x16x64xbf16, #tpu.memory_space<vmem>>, vector<1x16x16x64xbf16>
    %16 = vector.shape_cast %15 : vector<1x16x16x64xbf16> to vector<16x16x64xbf16>
    %17 = vector.shape_cast %14 : vector<16x16x64xbf16> to vector<1x16x16x64xbf16>
    tpu.vector_store %arg6[%c0_8, %c0_9, %c0_10, %c0_11], %17 {strides = array<i32>} : memref<1x16x16x64xbf16, #tpu.memory_space<vmem>>, vector<1x16x16x64xbf16>,
    return
  }
  func.func @transform_0(%arg0: i32, %arg1: i32, %arg2: i32) -> (i32, i32, i32, i32) {
    %c0_i32 = arith.constant 0 : i32
    %c0_i32_0 = arith.constant 0 : i32
    %c0_i32_1 = arith.constant 0 : i32
    %c0_i32_2 = arith.constant 0 : i32
    return %arg0, %c0_i32, %c0_i32_0, %c0_i32_1 : i32, i32, i32, i32
  }
  func.func @transform_1(%arg0: i32, %arg1: i32, %arg2: i32) -> (i32, i32, i32) {
    %c0_i32 = arith.constant 0 : i32
    %c0_i32_0 = arith.constant 0 : i32
    %c0_i32_1 = arith.constant 0 : i32
    return %c0_i32, %c0_i32_0, %arg1 : i32, i32, i32
  }
  func.func @transform_2(%arg0: i32, %arg1: i32, %arg2: i32) -> (i32, i32) {
    %c0_i32 = arith.constant 0 : i32
    %c0_i32_0 = arith.constant 0 : i32
    return %c0_i32, %arg1 : i32, i32
  }
  func.func @transform_3(%arg0: i32, %arg1: i32, %arg2: i32) -> (i32, i32, i32, i32) {
    %c0_i32 = arith.constant 0 : i32
    %c0_i32_0 = arith.constant 0 : i32
    return %arg0, %arg2, %c0_i32, %arg1 : i32, i32, i32, i32
  }
}

module attributes {stable_mosaic.version = 11 : i64} {
  func.func @_relu_kernel(%arg0: i32, %arg1: i32, %arg2: memref<1x16x16x64xbf16, #tpu.memory_space<vmem>>, %arg3: memref<1x16x16x64xbf16, #tpu.memory_space<vmem>>) attributes {dimension_semantics = [#tpu.dimension_semantics<parallel>, #tpu.dimension_semantics<parallel>], iteration_bounds = array<i64: 2, 1>, scalar_prefetch = 0 : i64, scratch_operands = 0 : i64, tpu.core_type = #tpu.core_type<tc>, window_params = [{transform_indices = @transform_0, window_bounds = array<i64: 1, 16, 16, 64>}, {transform_indices = @transform_1, window_bounds = array<i64: 1, 16, 16, 64>}]} {
    %c0 = arith.constant 0 : index
    %c0_0 = arith.constant 0 : index
    %c0_1 = arith.constant 0 : index
    %c0_2 = arith.constant 0 : index
    %0 = vector.load %arg2[%c0, %c0_0, %c0_1, %c0_2] : memref<1x16x16x64xbf16, #tpu.memory_space<vmem>>, vector<1x16x16x64xbf16>
    %cst = arith.constant 0.000000e+00 : bf16
    %1 = vector.broadcast %cst : bf16 to vector<1x16x16x64xbf16>
    %2 = arith.maximumf %0, %1 : vector<1x16x16x64xbf16>
    %c0_3 = arith.constant 0 : index
    %c0_4 = arith.constant 0 : index
    %c0_5 = arith.constant 0 : index
    %c0_6 = arith.constant 0 : index
    %3 = vector.load %arg3[%c0_3, %c0_4, %c0_5, %c0_6] : memref<1x16x16x64xbf16, #tpu.memory_space<vmem>>, vector<1x16x16x64xbf16>
    tpu.vector_store %arg3[%c0_3, %c0_4, %c0_5, %c0_6], %2 {strides = array<i32>} : memref<1x16x16x64xbf16, #tpu.memory_space<vmem>>, vector<1x16x16x64xbf16>,
    return
  }
  func.func @transform_0(%arg0: i32, %arg1: i32) -> (i32, i32, i32, i32) {
    %c0_i32 = arith.constant 0 : i32
    %c0_i32_0 = arith.constant 0 : i32
    %c0_i32_1 = arith.constant 0 : i32
    return %arg0, %arg1, %c0_i32, %c0_i32_0 : i32, i32, i32, i32
  }
  func.func @transform_1(%arg0: i32, %arg1: i32) -> (i32, i32, i32, i32) {
    %c0_i32 = arith.constant 0 : i32
    %c0_i32_0 = arith.constant 0 : i32
    %c0_i32_1 = arith.constant 0 : i32
    return %arg0, %arg1, %c0_i32, %c0_i32_0 : i32, i32, i32, i32
  }
}

module attributes {stable_mosaic.version = 11 : i64} {
  func.func @_maxpool_kernel(%arg0: i32, %arg1: i32, %arg2: memref<1x16x16x64xbf16, #tpu.memory_space<vmem>>, %arg3: memref<1x8x8x64xbf16, #tpu.memory_space<vmem>>) attributes {dimension_semantics = [#tpu.dimension_semantics<parallel>, #tpu.dimension_semantics<parallel>], iteration_bounds = array<i64: 2, 1>, scalar_prefetch = 0 : i64, scratch_operands = 0 : i64, tpu.core_type = #tpu.core_type<tc>, window_params = [{transform_indices = @transform_0, window_bounds = array<i64: 1, 16, 16, 64>}, {transform_indices = @transform_1, window_bounds = array<i64: 1, 8, 8, 64>}]} {
    %c0 = arith.constant 0 : index
    %c0_0 = arith.constant 0 : index
    %c0_1 = arith.constant 0 : index
    %c0_2 = arith.constant 0 : index
    %0 = vector.load %arg2[%c0, %c0_0, %c0_1, %c0_2] : memref<1x16x16x64xbf16, #tpu.memory_space<vmem>>, vector<1x16x16x64xbf16>
    %1 = vector.shape_cast %0 : vector<1x16x16x64xbf16> to vector<16x16x64xbf16>
    %2 = vector.shape_cast %1 : vector<16x16x64xbf16> to vector<8x2x16x64xbf16>
    %cst = arith.constant dense<0xFF80> : vector<8x16x64xbf16>
    %3 = vector.multi_reduction <maximumf>, %2, %cst [1] : vector<8x2x16x64xbf16> to vector<8x16x64xbf16>
    %4 = vector.shape_cast %3 : vector<8x16x64xbf16> to vector<8x8x2x64xbf16>
    %cst_3 = arith.constant dense<0xFF80> : vector<8x8x64xbf16>
    %5 = vector.multi_reduction <maximumf>, %4, %cst_3 [2] : vector<8x8x2x64xbf16> to vector<8x8x64xbf16>
    %c0_4 = arith.constant 0 : index
    %c0_5 = arith.constant 0 : index
    %c0_6 = arith.constant 0 : index
    %c0_7 = arith.constant 0 : index
    %6 = vector.load %arg3[%c0_4, %c0_5, %c0_6, %c0_7] : memref<1x8x8x64xbf16, #tpu.memory_space<vmem>>, vector<1x8x8x64xbf16>
    %7 = vector.shape_cast %6 : vector<1x8x8x64xbf16> to vector<8x8x64xbf16>
    %8 = vector.shape_cast %5 : vector<8x8x64xbf16> to vector<1x8x8x64xbf16>
    tpu.vector_store %arg3[%c0_4, %c0_5, %c0_6, %c0_7], %8 {strides = array<i32>} : memref<1x8x8x64xbf16, #tpu.memory_space<vmem>>, vector<1x8x8x64xbf16>,
    return
  }
  func.func @transform_0(%arg0: i32, %arg1: i32) -> (i32, i32, i32, i32) {
    %c0_i32 = arith.constant 0 : i32
    %c0_i32_0 = arith.constant 0 : i32
    %c0_i32_1 = arith.constant 0 : i32
    return %arg0, %arg1, %c0_i32, %c0_i32_0 : i32, i32, i32, i32
  }
  func.func @transform_1(%arg0: i32, %arg1: i32) -> (i32, i32, i32, i32) {
    %c0_i32 = arith.constant 0 : i32
    %c0_i32_0 = arith.constant 0 : i32
    %c0_i32_1 = arith.constant 0 : i32
    return %arg0, %arg1, %c0_i32, %c0_i32_0 : i32, i32, i32, i32
  }
}

module attributes {stable_mosaic.version = 11 : i64} {
  func.func @kernel(%arg0: i32, %arg1: i32, %arg2: i32, %arg3: memref<1x18x18x64xbf16, #tpu.memory_space<vmem>>, %arg4: memref<9x64x64xbf16, #tpu.memory_space<vmem>>, %arg5: memref<1x64xf32, #tpu.memory_space<vmem>>, %arg6: memref<1x16x16x64xbf16, #tpu.memory_space<vmem>>) attributes {dimension_semantics = [#tpu.dimension_semantics<parallel>, #tpu.dimension_semantics<parallel>, #tpu.dimension_semantics<parallel>], iteration_bounds = array<i64: 2, 1, 1>, scalar_prefetch = 0 : i64, scratch_operands = 0 : i64, tpu.core_type = #tpu.core_type<tc>, window_params = [{transform_indices = @transform_0, window_bounds = array<i64: 1, 18, 18, 64>}, {transform_indices = @transform_1, window_bounds = array<i64: 9, 64, 64>}, {transform_indices = @transform_2, window_bounds = array<i64: 1, 64>}, {transform_indices = @transform_3, window_bounds = array<i64: 1, 16, 16, 64>}]} {
    %c16_i32 = arith.constant 16 : i32
    %0 = arith.muli %arg2, %c16_i32 : i32
    %1 = tpu.assume_multiple %0, 16 : i32
    %c0 = arith.constant 0 : index
    %2 = arith.index_cast %1 : i32 to index
    %c0_0 = arith.constant 0 : index
    %c0_1 = arith.constant 0 : index
    %3 = vector.load %arg3[%c0, %2, %c0_0, %c0_1] : memref<1x18x18x64xbf16, #tpu.memory_space<vmem>>, vector<1x18x16x64xbf16>
    %4 = vector.shape_cast %3 : vector<1x18x16x64xbf16> to vector<18x16x64xbf16>
    %5 = vector.extract_strided_slice %4 {offsets = [0, 0, 0], sizes = [16, 16, 64], strides = [1, 1, 1]} : vector<18x16x64xbf16> to vector<16x16x64xbf16>
    %c0_2 = arith.constant 0 : index
    %c0_3 = arith.constant 0 : index
    %c0_4 = arith.constant 0 : index
    %6 = vector.load %arg4[%c0_2, %c0_3, %c0_4] : memref<9x64x64xbf16, #tpu.memory_space<vmem>>, vector<1x64x64xbf16>
    %7 = vector.shape_cast %6 : vector<1x64x64xbf16> to vector<64x64xbf16>
    %cst = arith.constant dense<0.000000e+00> : vector<16x16x64xf32>
    %8 = tpu.matmul %5, %7, %cst {dimension_numbers = #tpu.dot_dimension_numbers<[2], [0], [0, 1], [1], [0, 0, 0, 1, 1, 1], [], []>} : vector<16x16x64xbf16>, vector<64x64xbf16>, vector<16x16x64xf32> -> vector<16x16x64xf32>
    %9 = vector.extract_strided_slice %4 {offsets = [1, 0, 0], sizes = [16, 16, 64], strides = [1, 1, 1]} : vector<18x16x64xbf16> to vector<16x16x64xbf16>
    %c3 = arith.constant 3 : index
    %c0_5 = arith.constant 0 : index
    %c0_6 = arith.constant 0 : index
    %10 = vector.load %arg4[%c3, %c0_5, %c0_6] : memref<9x64x64xbf16, #tpu.memory_space<vmem>>, vector<1x64x64xbf16>
    %11 = vector.shape_cast %10 : vector<1x64x64xbf16> to vector<64x64xbf16>
    %cst_7 = arith.constant dense<0.000000e+00> : vector<16x16x64xf32>
    %12 = tpu.matmul %9, %11, %cst_7 {dimension_numbers = #tpu.dot_dimension_numbers<[2], [0], [0, 1], [1], [0, 0, 0, 1, 1, 1], [], []>} : vector<16x16x64xbf16>, vector<64x64xbf16>, vector<16x16x64xf32> -> vector<16x16x64xf32>
    %13 = arith.addf %8, %12 : vector<16x16x64xf32>
    %14 = vector.extract_strided_slice %4 {offsets = [2, 0, 0], sizes = [16, 16, 64], strides = [1, 1, 1]} : vector<18x16x64xbf16> to vector<16x16x64xbf16>
    %c6 = arith.constant 6 : index
    %c0_8 = arith.constant 0 : index
    %c0_9 = arith.constant 0 : index
    %15 = vector.load %arg4[%c6, %c0_8, %c0_9] : memref<9x64x64xbf16, #tpu.memory_space<vmem>>, vector<1x64x64xbf16>
    %16 = vector.shape_cast %15 : vector<1x64x64xbf16> to vector<64x64xbf16>
    %cst_10 = arith.constant dense<0.000000e+00> : vector<16x16x64xf32>
    %17 = tpu.matmul %14, %16, %cst_10 {dimension_numbers = #tpu.dot_dimension_numbers<[2], [0], [0, 1], [1], [0, 0, 0, 1, 1, 1], [], []>} : vector<16x16x64xbf16>, vector<64x64xbf16>, vector<16x16x64xf32> -> vector<16x16x64xf32>
    %18 = arith.addf %13, %17 : vector<16x16x64xf32>
    %c0_11 = arith.constant 0 : index
    %19 = arith.index_cast %1 : i32 to index
    %c1 = arith.constant 1 : index
    %c0_12 = arith.constant 0 : index
    %20 = vector.load %arg3[%c0_11, %19, %c1, %c0_12] : memref<1x18x18x64xbf16, #tpu.memory_space<vmem>>, vector<1x18x16x64xbf16>
    %21 = vector.shape_cast %20 : vector<1x18x16x64xbf16> to vector<18x16x64xbf16>
    %22 = vector.extract_strided_slice %21 {offsets = [0, 0, 0], sizes = [16, 16, 64], strides = [1, 1, 1]} : vector<18x16x64xbf16> to vector<16x16x64xbf16>
    %c1_13 = arith.constant 1 : index
    %c0_14 = arith.constant 0 : index
    %c0_15 = arith.constant 0 : index
    %23 = vector.load %arg4[%c1_13, %c0_14, %c0_15] : memref<9x64x64xbf16, #tpu.memory_space<vmem>>, vector<1x64x64xbf16>
    %24 = vector.shape_cast %23 : vector<1x64x64xbf16> to vector<64x64xbf16>
    %cst_16 = arith.constant dense<0.000000e+00> : vector<16x16x64xf32>
    %25 = tpu.matmul %22, %24, %cst_16 {dimension_numbers = #tpu.dot_dimension_numbers<[2], [0], [0, 1], [1], [0, 0, 0, 1, 1, 1], [], []>} : vector<16x16x64xbf16>, vector<64x64xbf16>, vector<16x16x64xf32> -> vector<16x16x64xf32>
    %26 = arith.addf %18, %25 : vector<16x16x64xf32>
    %27 = vector.extract_strided_slice %21 {offsets = [1, 0, 0], sizes = [16, 16, 64], strides = [1, 1, 1]} : vector<18x16x64xbf16> to vector<16x16x64xbf16>
    %c4 = arith.constant 4 : index
    %c0_17 = arith.constant 0 : index
    %c0_18 = arith.constant 0 : index
    %28 = vector.load %arg4[%c4, %c0_17, %c0_18] : memref<9x64x64xbf16, #tpu.memory_space<vmem>>, vector<1x64x64xbf16>
    %29 = vector.shape_cast %28 : vector<1x64x64xbf16> to vector<64x64xbf16>
    %cst_19 = arith.constant dense<0.000000e+00> : vector<16x16x64xf32>
    %30 = tpu.matmul %27, %29, %cst_19 {dimension_numbers = #tpu.dot_dimension_numbers<[2], [0], [0, 1], [1], [0, 0, 0, 1, 1, 1], [], []>} : vector<16x16x64xbf16>, vector<64x64xbf16>, vector<16x16x64xf32> -> vector<16x16x64xf32>
    %31 = arith.addf %26, %30 : vector<16x16x64xf32>
    %32 = vector.extract_strided_slice %21 {offsets = [2, 0, 0], sizes = [16, 16, 64], strides = [1, 1, 1]} : vector<18x16x64xbf16> to vector<16x16x64xbf16>
    %c7 = arith.constant 7 : index
    %c0_20 = arith.constant 0 : index
    %c0_21 = arith.constant 0 : index
    %33 = vector.load %arg4[%c7, %c0_20, %c0_21] : memref<9x64x64xbf16, #tpu.memory_space<vmem>>, vector<1x64x64xbf16>
    %34 = vector.shape_cast %33 : vector<1x64x64xbf16> to vector<64x64xbf16>
    %cst_22 = arith.constant dense<0.000000e+00> : vector<16x16x64xf32>
    %35 = tpu.matmul %32, %34, %cst_22 {dimension_numbers = #tpu.dot_dimension_numbers<[2], [0], [0, 1], [1], [0, 0, 0, 1, 1, 1], [], []>} : vector<16x16x64xbf16>, vector<64x64xbf16>, vector<16x16x64xf32> -> vector<16x16x64xf32>
    %36 = arith.addf %31, %35 : vector<16x16x64xf32>
    %c0_23 = arith.constant 0 : index
    %37 = arith.index_cast %1 : i32 to index
    %c2 = arith.constant 2 : index
    %c0_24 = arith.constant 0 : index
    %38 = vector.load %arg3[%c0_23, %37, %c2, %c0_24] : memref<1x18x18x64xbf16, #tpu.memory_space<vmem>>, vector<1x18x16x64xbf16>
    %39 = vector.shape_cast %38 : vector<1x18x16x64xbf16> to vector<18x16x64xbf16>
    %40 = vector.extract_strided_slice %39 {offsets = [0, 0, 0], sizes = [16, 16, 64], strides = [1, 1, 1]} : vector<18x16x64xbf16> to vector<16x16x64xbf16>
    %c2_25 = arith.constant 2 : index
    %c0_26 = arith.constant 0 : index
    %c0_27 = arith.constant 0 : index
    %41 = vector.load %arg4[%c2_25, %c0_26, %c0_27] : memref<9x64x64xbf16, #tpu.memory_space<vmem>>, vector<1x64x64xbf16>
    %42 = vector.shape_cast %41 : vector<1x64x64xbf16> to vector<64x64xbf16>
    %cst_28 = arith.constant dense<0.000000e+00> : vector<16x16x64xf32>
    %43 = tpu.matmul %40, %42, %cst_28 {dimension_numbers = #tpu.dot_dimension_numbers<[2], [0], [0, 1], [1], [0, 0, 0, 1, 1, 1], [], []>} : vector<16x16x64xbf16>, vector<64x64xbf16>, vector<16x16x64xf32> -> vector<16x16x64xf32>
    %44 = arith.addf %36, %43 : vector<16x16x64xf32>
    %45 = vector.extract_strided_slice %39 {offsets = [1, 0, 0], sizes = [16, 16, 64], strides = [1, 1, 1]} : vector<18x16x64xbf16> to vector<16x16x64xbf16>
    %c5 = arith.constant 5 : index
    %c0_29 = arith.constant 0 : index
    %c0_30 = arith.constant 0 : index
    %46 = vector.load %arg4[%c5, %c0_29, %c0_30] : memref<9x64x64xbf16, #tpu.memory_space<vmem>>, vector<1x64x64xbf16>
    %47 = vector.shape_cast %46 : vector<1x64x64xbf16> to vector<64x64xbf16>
    %cst_31 = arith.constant dense<0.000000e+00> : vector<16x16x64xf32>
    %48 = tpu.matmul %45, %47, %cst_31 {dimension_numbers = #tpu.dot_dimension_numbers<[2], [0], [0, 1], [1], [0, 0, 0, 1, 1, 1], [], []>} : vector<16x16x64xbf16>, vector<64x64xbf16>, vector<16x16x64xf32> -> vector<16x16x64xf32>
    %49 = arith.addf %44, %48 : vector<16x16x64xf32>
    %50 = vector.extract_strided_slice %39 {offsets = [2, 0, 0], sizes = [16, 16, 64], strides = [1, 1, 1]} : vector<18x16x64xbf16> to vector<16x16x64xbf16>
    %c8 = arith.constant 8 : index
    %c0_32 = arith.constant 0 : index
    %c0_33 = arith.constant 0 : index
    %51 = vector.load %arg4[%c8, %c0_32, %c0_33] : memref<9x64x64xbf16, #tpu.memory_space<vmem>>, vector<1x64x64xbf16>
    %52 = vector.shape_cast %51 : vector<1x64x64xbf16> to vector<64x64xbf16>
    %cst_34 = arith.constant dense<0.000000e+00> : vector<16x16x64xf32>
    %53 = tpu.matmul %50, %52, %cst_34 {dimension_numbers = #tpu.dot_dimension_numbers<[2], [0], [0, 1], [1], [0, 0, 0, 1, 1, 1], [], []>} : vector<16x16x64xbf16>, vector<64x64xbf16>, vector<16x16x64xf32> -> vector<16x16x64xf32>
    %54 = arith.addf %49, %53 : vector<16x16x64xf32>
    %c0_35 = arith.constant 0 : index
    %c0_36 = arith.constant 0 : index
    %55 = vector.load %arg5[%c0_35, %c0_36] : memref<1x64xf32, #tpu.memory_space<vmem>>, vector<1x64xf32>
    %56 = vector.shape_cast %55 : vector<1x64xf32> to vector<1x1x64xf32>
    %57 = vector.broadcast %56 : vector<1x1x64xf32> to vector<16x16x64xf32>
    %58 = arith.addf %54, %57 : vector<16x16x64xf32>
    %59 = arith.truncf %58 : vector<16x16x64xf32> to vector<16x16x64xbf16>
    %c0_37 = arith.constant 0 : index
    %c0_38 = arith.constant 0 : index
    %c0_39 = arith.constant 0 : index
    %c0_40 = arith.constant 0 : index
    %60 = vector.load %arg6[%c0_37, %c0_38, %c0_39, %c0_40] : memref<1x16x16x64xbf16, #tpu.memory_space<vmem>>, vector<1x16x16x64xbf16>
    %61 = vector.shape_cast %60 : vector<1x16x16x64xbf16> to vector<16x16x64xbf16>
    %62 = vector.shape_cast %59 : vector<16x16x64xbf16> to vector<1x16x16x64xbf16>
    tpu.vector_store %arg6[%c0_37, %c0_38, %c0_39, %c0_40], %62 {strides = array<i32>} : memref<1x16x16x64xbf16, #tpu.memory_space<vmem>>, vector<1x16x16x64xbf16>,
    return
  }
  func.func @transform_0(%arg0: i32, %arg1: i32, %arg2: i32) -> (i32, i32, i32, i32) {
    %c0_i32 = arith.constant 0 : i32
    %c0_i32_0 = arith.constant 0 : i32
    %c0_i32_1 = arith.constant 0 : i32
    %c0_i32_2 = arith.constant 0 : i32
    return %arg0, %c0_i32, %c0_i32_0, %c0_i32_1 : i32, i32, i32, i32
  }
  func.func @transform_1(%arg0: i32, %arg1: i32, %arg2: i32) -> (i32, i32, i32) {
    %c0_i32 = arith.constant 0 : i32
    %c0_i32_0 = arith.constant 0 : i32
    %c0_i32_1 = arith.constant 0 : i32
    return %c0_i32, %c0_i32_0, %arg1 : i32, i32, i32
  }
  func.func @transform_2(%arg0: i32, %arg1: i32, %arg2: i32) -> (i32, i32) {
    %c0_i32 = arith.constant 0 : i32
    %c0_i32_0 = arith.constant 0 : i32
    return %c0_i32, %arg1 : i32, i32
  }
  func.func @transform_3(%arg0: i32, %arg1: i32, %arg2: i32) -> (i32, i32, i32, i32) {
    %c0_i32 = arith.constant 0 : i32
    %c0_i32_0 = arith.constant 0 : i32
    return %arg0, %arg2, %c0_i32, %arg1 : i32, i32, i32, i32
  }
}

module attributes {stable_mosaic.version = 11 : i64} {
  func.func @kernel(%arg0: i32, %arg1: i32, %arg2: i32, %arg3: memref<1x10x10x64xbf16, #tpu.memory_space<vmem>>, %arg4: memref<9x64x128xbf16, #tpu.memory_space<vmem>>, %arg5: memref<1x128xf32, #tpu.memory_space<vmem>>, %arg6: memref<1x8x8x128xbf16, #tpu.memory_space<vmem>>) attributes {dimension_semantics = [#tpu.dimension_semantics<parallel>, #tpu.dimension_semantics<parallel>, #tpu.dimension_semantics<parallel>], iteration_bounds = array<i64: 2, 1, 1>, scalar_prefetch = 0 : i64, scratch_operands = 0 : i64, tpu.core_type = #tpu.core_type<tc>, window_params = [{transform_indices = @transform_0, window_bounds = array<i64: 1, 10, 10, 64>}, {transform_indices = @transform_1, window_bounds = array<i64: 9, 64, 128>}, {transform_indices = @transform_2, window_bounds = array<i64: 1, 128>}, {transform_indices = @transform_3, window_bounds = array<i64: 1, 8, 8, 128>}]} {
    %c8_i32 = arith.constant 8 : i32
    %0 = arith.muli %arg2, %c8_i32 : i32
    %1 = tpu.assume_multiple %0, 8 : i32
    %c0 = arith.constant 0 : index
    %2 = arith.index_cast %1 : i32 to index
    %c0_0 = arith.constant 0 : index
    %c0_1 = arith.constant 0 : index
    %3 = vector.load %arg3[%c0, %2, %c0_0, %c0_1] : memref<1x10x10x64xbf16, #tpu.memory_space<vmem>>, vector<1x10x8x64xbf16>
    %4 = vector.shape_cast %3 : vector<1x10x8x64xbf16> to vector<10x8x64xbf16>
    %5 = vector.extract_strided_slice %4 {offsets = [0, 0, 0], sizes = [8, 8, 64], strides = [1, 1, 1]} : vector<10x8x64xbf16> to vector<8x8x64xbf16>
    %c0_2 = arith.constant 0 : index
    %c0_3 = arith.constant 0 : index
    %c0_4 = arith.constant 0 : index
    %6 = vector.load %arg4[%c0_2, %c0_3, %c0_4] : memref<9x64x128xbf16, #tpu.memory_space<vmem>>, vector<1x64x128xbf16>
    %7 = vector.shape_cast %6 : vector<1x64x128xbf16> to vector<64x128xbf16>
    %cst = arith.constant dense<0.000000e+00> : vector<8x8x128xf32>
    %8 = tpu.matmul %5, %7, %cst {dimension_numbers = #tpu.dot_dimension_numbers<[2], [0], [0, 1], [1], [0, 0, 0, 1, 1, 1], [], []>} : vector<8x8x64xbf16>, vector<64x128xbf16>, vector<8x8x128xf32> -> vector<8x8x128xf32>
    %9 = vector.extract_strided_slice %4 {offsets = [1, 0, 0], sizes = [8, 8, 64], strides = [1, 1, 1]} : vector<10x8x64xbf16> to vector<8x8x64xbf16>
    %c3 = arith.constant 3 : index
    %c0_5 = arith.constant 0 : index
    %c0_6 = arith.constant 0 : index
    %10 = vector.load %arg4[%c3, %c0_5, %c0_6] : memref<9x64x128xbf16, #tpu.memory_space<vmem>>, vector<1x64x128xbf16>
    %11 = vector.shape_cast %10 : vector<1x64x128xbf16> to vector<64x128xbf16>
    %cst_7 = arith.constant dense<0.000000e+00> : vector<8x8x128xf32>
    %12 = tpu.matmul %9, %11, %cst_7 {dimension_numbers = #tpu.dot_dimension_numbers<[2], [0], [0, 1], [1], [0, 0, 0, 1, 1, 1], [], []>} : vector<8x8x64xbf16>, vector<64x128xbf16>, vector<8x8x128xf32> -> vector<8x8x128xf32>
    %13 = arith.addf %8, %12 : vector<8x8x128xf32>
    %14 = vector.extract_strided_slice %4 {offsets = [2, 0, 0], sizes = [8, 8, 64], strides = [1, 1, 1]} : vector<10x8x64xbf16> to vector<8x8x64xbf16>
    %c6 = arith.constant 6 : index
    %c0_8 = arith.constant 0 : index
    %c0_9 = arith.constant 0 : index
    %15 = vector.load %arg4[%c6, %c0_8, %c0_9] : memref<9x64x128xbf16, #tpu.memory_space<vmem>>, vector<1x64x128xbf16>
    %16 = vector.shape_cast %15 : vector<1x64x128xbf16> to vector<64x128xbf16>
    %cst_10 = arith.constant dense<0.000000e+00> : vector<8x8x128xf32>
    %17 = tpu.matmul %14, %16, %cst_10 {dimension_numbers = #tpu.dot_dimension_numbers<[2], [0], [0, 1], [1], [0, 0, 0, 1, 1, 1], [], []>} : vector<8x8x64xbf16>, vector<64x128xbf16>, vector<8x8x128xf32> -> vector<8x8x128xf32>
    %18 = arith.addf %13, %17 : vector<8x8x128xf32>
    %c0_11 = arith.constant 0 : index
    %19 = arith.index_cast %1 : i32 to index
    %c1 = arith.constant 1 : index
    %c0_12 = arith.constant 0 : index
    %20 = vector.load %arg3[%c0_11, %19, %c1, %c0_12] : memref<1x10x10x64xbf16, #tpu.memory_space<vmem>>, vector<1x10x8x64xbf16>
    %21 = vector.shape_cast %20 : vector<1x10x8x64xbf16> to vector<10x8x64xbf16>
    %22 = vector.extract_strided_slice %21 {offsets = [0, 0, 0], sizes = [8, 8, 64], strides = [1, 1, 1]} : vector<10x8x64xbf16> to vector<8x8x64xbf16>
    %c1_13 = arith.constant 1 : index
    %c0_14 = arith.constant 0 : index
    %c0_15 = arith.constant 0 : index
    %23 = vector.load %arg4[%c1_13, %c0_14, %c0_15] : memref<9x64x128xbf16, #tpu.memory_space<vmem>>, vector<1x64x128xbf16>
    %24 = vector.shape_cast %23 : vector<1x64x128xbf16> to vector<64x128xbf16>
    %cst_16 = arith.constant dense<0.000000e+00> : vector<8x8x128xf32>
    %25 = tpu.matmul %22, %24, %cst_16 {dimension_numbers = #tpu.dot_dimension_numbers<[2], [0], [0, 1], [1], [0, 0, 0, 1, 1, 1], [], []>} : vector<8x8x64xbf16>, vector<64x128xbf16>, vector<8x8x128xf32> -> vector<8x8x128xf32>
    %26 = arith.addf %18, %25 : vector<8x8x128xf32>
    %27 = vector.extract_strided_slice %21 {offsets = [1, 0, 0], sizes = [8, 8, 64], strides = [1, 1, 1]} : vector<10x8x64xbf16> to vector<8x8x64xbf16>
    %c4 = arith.constant 4 : index
    %c0_17 = arith.constant 0 : index
    %c0_18 = arith.constant 0 : index
    %28 = vector.load %arg4[%c4, %c0_17, %c0_18] : memref<9x64x128xbf16, #tpu.memory_space<vmem>>, vector<1x64x128xbf16>
    %29 = vector.shape_cast %28 : vector<1x64x128xbf16> to vector<64x128xbf16>
    %cst_19 = arith.constant dense<0.000000e+00> : vector<8x8x128xf32>
    %30 = tpu.matmul %27, %29, %cst_19 {dimension_numbers = #tpu.dot_dimension_numbers<[2], [0], [0, 1], [1], [0, 0, 0, 1, 1, 1], [], []>} : vector<8x8x64xbf16>, vector<64x128xbf16>, vector<8x8x128xf32> -> vector<8x8x128xf32>
    %31 = arith.addf %26, %30 : vector<8x8x128xf32>
    %32 = vector.extract_strided_slice %21 {offsets = [2, 0, 0], sizes = [8, 8, 64], strides = [1, 1, 1]} : vector<10x8x64xbf16> to vector<8x8x64xbf16>
    %c7 = arith.constant 7 : index
    %c0_20 = arith.constant 0 : index
    %c0_21 = arith.constant 0 : index
    %33 = vector.load %arg4[%c7, %c0_20, %c0_21] : memref<9x64x128xbf16, #tpu.memory_space<vmem>>, vector<1x64x128xbf16>
    %34 = vector.shape_cast %33 : vector<1x64x128xbf16> to vector<64x128xbf16>
    %cst_22 = arith.constant dense<0.000000e+00> : vector<8x8x128xf32>
    %35 = tpu.matmul %32, %34, %cst_22 {dimension_numbers = #tpu.dot_dimension_numbers<[2], [0], [0, 1], [1], [0, 0, 0, 1, 1, 1], [], []>} : vector<8x8x64xbf16>, vector<64x128xbf16>, vector<8x8x128xf32> -> vector<8x8x128xf32>
    %36 = arith.addf %31, %35 : vector<8x8x128xf32>
    %c0_23 = arith.constant 0 : index
    %37 = arith.index_cast %1 : i32 to index
    %c2 = arith.constant 2 : index
    %c0_24 = arith.constant 0 : index
    %38 = vector.load %arg3[%c0_23, %37, %c2, %c0_24] : memref<1x10x10x64xbf16, #tpu.memory_space<vmem>>, vector<1x10x8x64xbf16>
    %39 = vector.shape_cast %38 : vector<1x10x8x64xbf16> to vector<10x8x64xbf16>
    %40 = vector.extract_strided_slice %39 {offsets = [0, 0, 0], sizes = [8, 8, 64], strides = [1, 1, 1]} : vector<10x8x64xbf16> to vector<8x8x64xbf16>
    %c2_25 = arith.constant 2 : index
    %c0_26 = arith.constant 0 : index
    %c0_27 = arith.constant 0 : index
    %41 = vector.load %arg4[%c2_25, %c0_26, %c0_27] : memref<9x64x128xbf16, #tpu.memory_space<vmem>>, vector<1x64x128xbf16>
    %42 = vector.shape_cast %41 : vector<1x64x128xbf16> to vector<64x128xbf16>
    %cst_28 = arith.constant dense<0.000000e+00> : vector<8x8x128xf32>
    %43 = tpu.matmul %40, %42, %cst_28 {dimension_numbers = #tpu.dot_dimension_numbers<[2], [0], [0, 1], [1], [0, 0, 0, 1, 1, 1], [], []>} : vector<8x8x64xbf16>, vector<64x128xbf16>, vector<8x8x128xf32> -> vector<8x8x128xf32>
    %44 = arith.addf %36, %43 : vector<8x8x128xf32>
    %45 = vector.extract_strided_slice %39 {offsets = [1, 0, 0], sizes = [8, 8, 64], strides = [1, 1, 1]} : vector<10x8x64xbf16> to vector<8x8x64xbf16>
    %c5 = arith.constant 5 : index
    %c0_29 = arith.constant 0 : index
    %c0_30 = arith.constant 0 : index
    %46 = vector.load %arg4[%c5, %c0_29, %c0_30] : memref<9x64x128xbf16, #tpu.memory_space<vmem>>, vector<1x64x128xbf16>
    %47 = vector.shape_cast %46 : vector<1x64x128xbf16> to vector<64x128xbf16>
    %cst_31 = arith.constant dense<0.000000e+00> : vector<8x8x128xf32>
    %48 = tpu.matmul %45, %47, %cst_31 {dimension_numbers = #tpu.dot_dimension_numbers<[2], [0], [0, 1], [1], [0, 0, 0, 1, 1, 1], [], []>} : vector<8x8x64xbf16>, vector<64x128xbf16>, vector<8x8x128xf32> -> vector<8x8x128xf32>
    %49 = arith.addf %44, %48 : vector<8x8x128xf32>
    %50 = vector.extract_strided_slice %39 {offsets = [2, 0, 0], sizes = [8, 8, 64], strides = [1, 1, 1]} : vector<10x8x64xbf16> to vector<8x8x64xbf16>
    %c8 = arith.constant 8 : index
    %c0_32 = arith.constant 0 : index
    %c0_33 = arith.constant 0 : index
    %51 = vector.load %arg4[%c8, %c0_32, %c0_33] : memref<9x64x128xbf16, #tpu.memory_space<vmem>>, vector<1x64x128xbf16>
    %52 = vector.shape_cast %51 : vector<1x64x128xbf16> to vector<64x128xbf16>
    %cst_34 = arith.constant dense<0.000000e+00> : vector<8x8x128xf32>
    %53 = tpu.matmul %50, %52, %cst_34 {dimension_numbers = #tpu.dot_dimension_numbers<[2], [0], [0, 1], [1], [0, 0, 0, 1, 1, 1], [], []>} : vector<8x8x64xbf16>, vector<64x128xbf16>, vector<8x8x128xf32> -> vector<8x8x128xf32>
    %54 = arith.addf %49, %53 : vector<8x8x128xf32>
    %c0_35 = arith.constant 0 : index
    %c0_36 = arith.constant 0 : index
    %55 = vector.load %arg5[%c0_35, %c0_36] : memref<1x128xf32, #tpu.memory_space<vmem>>, vector<1x128xf32>
    %56 = vector.shape_cast %55 : vector<1x128xf32> to vector<1x1x128xf32>
    %57 = vector.broadcast %56 : vector<1x1x128xf32> to vector<8x8x128xf32>
    %58 = arith.addf %54, %57 : vector<8x8x128xf32>
    %cst_37 = arith.constant 0.000000e+00 : f32
    %59 = vector.broadcast %cst_37 : f32 to vector<8x8x128xf32>
    %60 = arith.maximumf %58, %59 : vector<8x8x128xf32>
    %61 = arith.truncf %60 : vector<8x8x128xf32> to vector<8x8x128xbf16>
    %c0_38 = arith.constant 0 : index
    %c0_39 = arith.constant 0 : index
    %c0_40 = arith.constant 0 : index
    %c0_41 = arith.constant 0 : index
    %62 = vector.load %arg6[%c0_38, %c0_39, %c0_40, %c0_41] : memref<1x8x8x128xbf16, #tpu.memory_space<vmem>>, vector<1x8x8x128xbf16>
    %63 = vector.shape_cast %62 : vector<1x8x8x128xbf16> to vector<8x8x128xbf16>
    %64 = vector.shape_cast %61 : vector<8x8x128xbf16> to vector<1x8x8x128xbf16>
    tpu.vector_store %arg6[%c0_38, %c0_39, %c0_40, %c0_41], %64 {strides = array<i32>} : memref<1x8x8x128xbf16, #tpu.memory_space<vmem>>, vector<1x8x8x128xbf16>,
    return
  }
  func.func @transform_0(%arg0: i32, %arg1: i32, %arg2: i32) -> (i32, i32, i32, i32) {
    %c0_i32 = arith.constant 0 : i32
    %c0_i32_0 = arith.constant 0 : i32
    %c0_i32_1 = arith.constant 0 : i32
    %c0_i32_2 = arith.constant 0 : i32
    return %arg0, %c0_i32, %c0_i32_0, %c0_i32_1 : i32, i32, i32, i32
  }
  func.func @transform_1(%arg0: i32, %arg1: i32, %arg2: i32) -> (i32, i32, i32) {
    %c0_i32 = arith.constant 0 : i32
    %c0_i32_0 = arith.constant 0 : i32
    %c0_i32_1 = arith.constant 0 : i32
    return %c0_i32, %c0_i32_0, %arg1 : i32, i32, i32
  }
  func.func @transform_2(%arg0: i32, %arg1: i32, %arg2: i32) -> (i32, i32) {
    %c0_i32 = arith.constant 0 : i32
    %c0_i32_0 = arith.constant 0 : i32
    return %c0_i32, %arg1 : i32, i32
  }
  func.func @transform_3(%arg0: i32, %arg1: i32, %arg2: i32) -> (i32, i32, i32, i32) {
    %c0_i32 = arith.constant 0 : i32
    %c0_i32_0 = arith.constant 0 : i32
    return %arg0, %arg2, %c0_i32, %arg1 : i32, i32, i32, i32
  }
}

module attributes {stable_mosaic.version = 11 : i64} {
  func.func @kernel(%arg0: i32, %arg1: i32, %arg2: i32, %arg3: memref<1x10x10x128xbf16, #tpu.memory_space<vmem>>, %arg4: memref<9x128x128xbf16, #tpu.memory_space<vmem>>, %arg5: memref<1x128xf32, #tpu.memory_space<vmem>>, %arg6: memref<1x4x4x128xbf16, #tpu.memory_space<vmem>>) attributes {dimension_semantics = [#tpu.dimension_semantics<parallel>, #tpu.dimension_semantics<parallel>, #tpu.dimension_semantics<parallel>], iteration_bounds = array<i64: 2, 1, 1>, scalar_prefetch = 0 : i64, scratch_operands = 0 : i64, tpu.core_type = #tpu.core_type<tc>, window_params = [{transform_indices = @transform_0, window_bounds = array<i64: 1, 10, 10, 128>}, {transform_indices = @transform_1, window_bounds = array<i64: 9, 128, 128>}, {transform_indices = @transform_2, window_bounds = array<i64: 1, 128>}, {transform_indices = @transform_3, window_bounds = array<i64: 1, 4, 4, 128>}]} {
    %c8_i32 = arith.constant 8 : i32
    %0 = arith.muli %arg2, %c8_i32 : i32
    %1 = tpu.assume_multiple %0, 8 : i32
    %c0 = arith.constant 0 : index
    %2 = arith.index_cast %1 : i32 to index
    %c0_0 = arith.constant 0 : index
    %c0_1 = arith.constant 0 : index
    %3 = vector.load %arg3[%c0, %2, %c0_0, %c0_1] : memref<1x10x10x128xbf16, #tpu.memory_space<vmem>>, vector<1x10x8x128xbf16>
    %4 = vector.shape_cast %3 : vector<1x10x8x128xbf16> to vector<10x8x128xbf16>
    %5 = vector.extract_strided_slice %4 {offsets = [0, 0, 0], sizes = [8, 8, 128], strides = [1, 1, 1]} : vector<10x8x128xbf16> to vector<8x8x128xbf16>
    %c0_2 = arith.constant 0 : index
    %c0_3 = arith.constant 0 : index
    %c0_4 = arith.constant 0 : index
    %6 = vector.load %arg4[%c0_2, %c0_3, %c0_4] : memref<9x128x128xbf16, #tpu.memory_space<vmem>>, vector<1x128x128xbf16>
    %7 = vector.shape_cast %6 : vector<1x128x128xbf16> to vector<128x128xbf16>
    %cst = arith.constant dense<0.000000e+00> : vector<8x8x128xf32>
    %8 = tpu.matmul %5, %7, %cst {dimension_numbers = #tpu.dot_dimension_numbers<[2], [0], [0, 1], [1], [0, 0, 0, 1, 1, 1], [], []>} : vector<8x8x128xbf16>, vector<128x128xbf16>, vector<8x8x128xf32> -> vector<8x8x128xf32>
    %9 = vector.extract_strided_slice %4 {offsets = [1, 0, 0], sizes = [8, 8, 128], strides = [1, 1, 1]} : vector<10x8x128xbf16> to vector<8x8x128xbf16>
    %c3 = arith.constant 3 : index
    %c0_5 = arith.constant 0 : index
    %c0_6 = arith.constant 0 : index
    %10 = vector.load %arg4[%c3, %c0_5, %c0_6] : memref<9x128x128xbf16, #tpu.memory_space<vmem>>, vector<1x128x128xbf16>
    %11 = vector.shape_cast %10 : vector<1x128x128xbf16> to vector<128x128xbf16>
    %cst_7 = arith.constant dense<0.000000e+00> : vector<8x8x128xf32>
    %12 = tpu.matmul %9, %11, %cst_7 {dimension_numbers = #tpu.dot_dimension_numbers<[2], [0], [0, 1], [1], [0, 0, 0, 1, 1, 1], [], []>} : vector<8x8x128xbf16>, vector<128x128xbf16>, vector<8x8x128xf32> -> vector<8x8x128xf32>
    %13 = arith.addf %8, %12 : vector<8x8x128xf32>
    %14 = vector.extract_strided_slice %4 {offsets = [2, 0, 0], sizes = [8, 8, 128], strides = [1, 1, 1]} : vector<10x8x128xbf16> to vector<8x8x128xbf16>
    %c6 = arith.constant 6 : index
    %c0_8 = arith.constant 0 : index
    %c0_9 = arith.constant 0 : index
    %15 = vector.load %arg4[%c6, %c0_8, %c0_9] : memref<9x128x128xbf16, #tpu.memory_space<vmem>>, vector<1x128x128xbf16>
    %16 = vector.shape_cast %15 : vector<1x128x128xbf16> to vector<128x128xbf16>
    %cst_10 = arith.constant dense<0.000000e+00> : vector<8x8x128xf32>
    %17 = tpu.matmul %14, %16, %cst_10 {dimension_numbers = #tpu.dot_dimension_numbers<[2], [0], [0, 1], [1], [0, 0, 0, 1, 1, 1], [], []>} : vector<8x8x128xbf16>, vector<128x128xbf16>, vector<8x8x128xf32> -> vector<8x8x128xf32>
    %18 = arith.addf %13, %17 : vector<8x8x128xf32>
    %c0_11 = arith.constant 0 : index
    %19 = arith.index_cast %1 : i32 to index
    %c1 = arith.constant 1 : index
    %c0_12 = arith.constant 0 : index
    %20 = vector.load %arg3[%c0_11, %19, %c1, %c0_12] : memref<1x10x10x128xbf16, #tpu.memory_space<vmem>>, vector<1x10x8x128xbf16>
    %21 = vector.shape_cast %20 : vector<1x10x8x128xbf16> to vector<10x8x128xbf16>
    %22 = vector.extract_strided_slice %21 {offsets = [0, 0, 0], sizes = [8, 8, 128], strides = [1, 1, 1]} : vector<10x8x128xbf16> to vector<8x8x128xbf16>
    %c1_13 = arith.constant 1 : index
    %c0_14 = arith.constant 0 : index
    %c0_15 = arith.constant 0 : index
    %23 = vector.load %arg4[%c1_13, %c0_14, %c0_15] : memref<9x128x128xbf16, #tpu.memory_space<vmem>>, vector<1x128x128xbf16>
    %24 = vector.shape_cast %23 : vector<1x128x128xbf16> to vector<128x128xbf16>
    %cst_16 = arith.constant dense<0.000000e+00> : vector<8x8x128xf32>
    %25 = tpu.matmul %22, %24, %cst_16 {dimension_numbers = #tpu.dot_dimension_numbers<[2], [0], [0, 1], [1], [0, 0, 0, 1, 1, 1], [], []>} : vector<8x8x128xbf16>, vector<128x128xbf16>, vector<8x8x128xf32> -> vector<8x8x128xf32>
    %26 = arith.addf %18, %25 : vector<8x8x128xf32>
    %27 = vector.extract_strided_slice %21 {offsets = [1, 0, 0], sizes = [8, 8, 128], strides = [1, 1, 1]} : vector<10x8x128xbf16> to vector<8x8x128xbf16>
    %c4 = arith.constant 4 : index
    %c0_17 = arith.constant 0 : index
    %c0_18 = arith.constant 0 : index
    %28 = vector.load %arg4[%c4, %c0_17, %c0_18] : memref<9x128x128xbf16, #tpu.memory_space<vmem>>, vector<1x128x128xbf16>
    %29 = vector.shape_cast %28 : vector<1x128x128xbf16> to vector<128x128xbf16>
    %cst_19 = arith.constant dense<0.000000e+00> : vector<8x8x128xf32>
    %30 = tpu.matmul %27, %29, %cst_19 {dimension_numbers = #tpu.dot_dimension_numbers<[2], [0], [0, 1], [1], [0, 0, 0, 1, 1, 1], [], []>} : vector<8x8x128xbf16>, vector<128x128xbf16>, vector<8x8x128xf32> -> vector<8x8x128xf32>
    %31 = arith.addf %26, %30 : vector<8x8x128xf32>
    %32 = vector.extract_strided_slice %21 {offsets = [2, 0, 0], sizes = [8, 8, 128], strides = [1, 1, 1]} : vector<10x8x128xbf16> to vector<8x8x128xbf16>
    %c7 = arith.constant 7 : index
    %c0_20 = arith.constant 0 : index
    %c0_21 = arith.constant 0 : index
    %33 = vector.load %arg4[%c7, %c0_20, %c0_21] : memref<9x128x128xbf16, #tpu.memory_space<vmem>>, vector<1x128x128xbf16>
    %34 = vector.shape_cast %33 : vector<1x128x128xbf16> to vector<128x128xbf16>
    %cst_22 = arith.constant dense<0.000000e+00> : vector<8x8x128xf32>
    %35 = tpu.matmul %32, %34, %cst_22 {dimension_numbers = #tpu.dot_dimension_numbers<[2], [0], [0, 1], [1], [0, 0, 0, 1, 1, 1], [], []>} : vector<8x8x128xbf16>, vector<128x128xbf16>, vector<8x8x128xf32> -> vector<8x8x128xf32>
    %36 = arith.addf %31, %35 : vector<8x8x128xf32>
    %c0_23 = arith.constant 0 : index
    %37 = arith.index_cast %1 : i32 to index
    %c2 = arith.constant 2 : index
    %c0_24 = arith.constant 0 : index
    %38 = vector.load %arg3[%c0_23, %37, %c2, %c0_24] : memref<1x10x10x128xbf16, #tpu.memory_space<vmem>>, vector<1x10x8x128xbf16>
    %39 = vector.shape_cast %38 : vector<1x10x8x128xbf16> to vector<10x8x128xbf16>
    %40 = vector.extract_strided_slice %39 {offsets = [0, 0, 0], sizes = [8, 8, 128], strides = [1, 1, 1]} : vector<10x8x128xbf16> to vector<8x8x128xbf16>
    %c2_25 = arith.constant 2 : index
    %c0_26 = arith.constant 0 : index
    %c0_27 = arith.constant 0 : index
    %41 = vector.load %arg4[%c2_25, %c0_26, %c0_27] : memref<9x128x128xbf16, #tpu.memory_space<vmem>>, vector<1x128x128xbf16>
    %42 = vector.shape_cast %41 : vector<1x128x128xbf16> to vector<128x128xbf16>
    %cst_28 = arith.constant dense<0.000000e+00> : vector<8x8x128xf32>
    %43 = tpu.matmul %40, %42, %cst_28 {dimension_numbers = #tpu.dot_dimension_numbers<[2], [0], [0, 1], [1], [0, 0, 0, 1, 1, 1], [], []>} : vector<8x8x128xbf16>, vector<128x128xbf16>, vector<8x8x128xf32> -> vector<8x8x128xf32>
    %44 = arith.addf %36, %43 : vector<8x8x128xf32>
    %45 = vector.extract_strided_slice %39 {offsets = [1, 0, 0], sizes = [8, 8, 128], strides = [1, 1, 1]} : vector<10x8x128xbf16> to vector<8x8x128xbf16>
    %c5 = arith.constant 5 : index
    %c0_29 = arith.constant 0 : index
    %c0_30 = arith.constant 0 : index
    %46 = vector.load %arg4[%c5, %c0_29, %c0_30] : memref<9x128x128xbf16, #tpu.memory_space<vmem>>, vector<1x128x128xbf16>
    %47 = vector.shape_cast %46 : vector<1x128x128xbf16> to vector<128x128xbf16>
    %cst_31 = arith.constant dense<0.000000e+00> : vector<8x8x128xf32>
    %48 = tpu.matmul %45, %47, %cst_31 {dimension_numbers = #tpu.dot_dimension_numbers<[2], [0], [0, 1], [1], [0, 0, 0, 1, 1, 1], [], []>} : vector<8x8x128xbf16>, vector<128x128xbf16>, vector<8x8x128xf32> -> vector<8x8x128xf32>
    %49 = arith.addf %44, %48 : vector<8x8x128xf32>
    %50 = vector.extract_strided_slice %39 {offsets = [2, 0, 0], sizes = [8, 8, 128], strides = [1, 1, 1]} : vector<10x8x128xbf16> to vector<8x8x128xbf16>
    %c8 = arith.constant 8 : index
    %c0_32 = arith.constant 0 : index
    %c0_33 = arith.constant 0 : index
    %51 = vector.load %arg4[%c8, %c0_32, %c0_33] : memref<9x128x128xbf16, #tpu.memory_space<vmem>>, vector<1x128x128xbf16>
    %52 = vector.shape_cast %51 : vector<1x128x128xbf16> to vector<128x128xbf16>
    %cst_34 = arith.constant dense<0.000000e+00> : vector<8x8x128xf32>
    %53 = tpu.matmul %50, %52, %cst_34 {dimension_numbers = #tpu.dot_dimension_numbers<[2], [0], [0, 1], [1], [0, 0, 0, 1, 1, 1], [], []>} : vector<8x8x128xbf16>, vector<128x128xbf16>, vector<8x8x128xf32> -> vector<8x8x128xf32>
    %54 = arith.addf %49, %53 : vector<8x8x128xf32>
    %c0_35 = arith.constant 0 : index
    %c0_36 = arith.constant 0 : index
    %55 = vector.load %arg5[%c0_35, %c0_36] : memref<1x128xf32, #tpu.memory_space<vmem>>, vector<1x128xf32>
    %56 = vector.shape_cast %55 : vector<1x128xf32> to vector<1x1x128xf32>
    %57 = vector.broadcast %56 : vector<1x1x128xf32> to vector<8x8x128xf32>
    %58 = arith.addf %54, %57 : vector<8x8x128xf32>
    %cst_37 = arith.constant 0.000000e+00 : f32
    %59 = vector.broadcast %cst_37 : f32 to vector<8x8x128xf32>
    %60 = arith.maximumf %58, %59 : vector<8x8x128xf32>
    %61 = arith.truncf %60 : vector<8x8x128xf32> to vector<8x8x128xbf16>
    %62 = vector.shape_cast %61 : vector<8x8x128xbf16> to vector<4x2x8x128xbf16>
    %cst_38 = arith.constant dense<0xFF80> : vector<4x8x128xbf16>
    %63 = vector.multi_reduction <maximumf>, %62, %cst_38 [1] : vector<4x2x8x128xbf16> to vector<4x8x128xbf16>
    %64 = vector.shape_cast %63 : vector<4x8x128xbf16> to vector<4x4x2x128xbf16>
    %cst_39 = arith.constant dense<0xFF80> : vector<4x4x128xbf16>
    %65 = vector.multi_reduction <maximumf>, %64, %cst_39 [2] : vector<4x4x2x128xbf16> to vector<4x4x128xbf16>
    %c0_40 = arith.constant 0 : index
    %c0_41 = arith.constant 0 : index
    %c0_42 = arith.constant 0 : index
    %c0_43 = arith.constant 0 : index
    %66 = vector.load %arg6[%c0_40, %c0_41, %c0_42, %c0_43] : memref<1x4x4x128xbf16, #tpu.memory_space<vmem>>, vector<1x4x4x128xbf16>
    %67 = vector.shape_cast %66 : vector<1x4x4x128xbf16> to vector<4x4x128xbf16>
    %68 = vector.shape_cast %65 : vector<4x4x128xbf16> to vector<1x4x4x128xbf16>
    tpu.vector_store %arg6[%c0_40, %c0_41, %c0_42, %c0_43], %68 {strides = array<i32>} : memref<1x4x4x128xbf16, #tpu.memory_space<vmem>>, vector<1x4x4x128xbf16>,
    return
  }
  func.func @transform_0(%arg0: i32, %arg1: i32, %arg2: i32) -> (i32, i32, i32, i32) {
    %c0_i32 = arith.constant 0 : i32
    %c0_i32_0 = arith.constant 0 : i32
    %c0_i32_1 = arith.constant 0 : i32
    %c0_i32_2 = arith.constant 0 : i32
    return %arg0, %c0_i32, %c0_i32_0, %c0_i32_1 : i32, i32, i32, i32
  }
  func.func @transform_1(%arg0: i32, %arg1: i32, %arg2: i32) -> (i32, i32, i32) {
    %c0_i32 = arith.constant 0 : i32
    %c0_i32_0 = arith.constant 0 : i32
    %c0_i32_1 = arith.constant 0 : i32
    return %c0_i32, %c0_i32_0, %arg1 : i32, i32, i32
  }
  func.func @transform_2(%arg0: i32, %arg1: i32, %arg2: i32) -> (i32, i32) {
    %c0_i32 = arith.constant 0 : i32
    %c0_i32_0 = arith.constant 0 : i32
    return %c0_i32, %arg1 : i32, i32
  }
  func.func @transform_3(%arg0: i32, %arg1: i32, %arg2: i32) -> (i32, i32, i32, i32) {
    %c0_i32 = arith.constant 0 : i32
    %c0_i32_0 = arith.constant 0 : i32
    return %arg0, %arg2, %c0_i32, %arg1 : i32, i32, i32, i32
  }
}

module attributes {stable_mosaic.version = 11 : i64} {
  func.func @kernel(%arg0: i32, %arg1: i32, %arg2: i32, %arg3: memref<1x6x6x128xbf16, #tpu.memory_space<vmem>>, %arg4: memref<9x128x256xbf16, #tpu.memory_space<vmem>>, %arg5: memref<1x256xf32, #tpu.memory_space<vmem>>, %arg6: memref<1x4x4x256xbf16, #tpu.memory_space<vmem>>) attributes {dimension_semantics = [#tpu.dimension_semantics<parallel>, #tpu.dimension_semantics<parallel>, #tpu.dimension_semantics<parallel>], iteration_bounds = array<i64: 2, 1, 1>, scalar_prefetch = 0 : i64, scratch_operands = 0 : i64, tpu.core_type = #tpu.core_type<tc>, window_params = [{transform_indices = @transform_0, window_bounds = array<i64: 1, 6, 6, 128>}, {transform_indices = @transform_1, window_bounds = array<i64: 9, 128, 256>}, {transform_indices = @transform_2, window_bounds = array<i64: 1, 256>}, {transform_indices = @transform_3, window_bounds = array<i64: 1, 4, 4, 256>}]} {
    %c4_i32 = arith.constant 4 : i32
    %0 = arith.muli %arg2, %c4_i32 : i32
    %1 = tpu.assume_multiple %0, 4 : i32
    %c0 = arith.constant 0 : index
    %2 = arith.index_cast %1 : i32 to index
    %c0_0 = arith.constant 0 : index
    %c0_1 = arith.constant 0 : index
    %3 = vector.load %arg3[%c0, %2, %c0_0, %c0_1] : memref<1x6x6x128xbf16, #tpu.memory_space<vmem>>, vector<1x6x4x128xbf16>
    %4 = vector.shape_cast %3 : vector<1x6x4x128xbf16> to vector<6x4x128xbf16>
    %5 = vector.extract_strided_slice %4 {offsets = [0, 0, 0], sizes = [4, 4, 128], strides = [1, 1, 1]} : vector<6x4x128xbf16> to vector<4x4x128xbf16>
    %c0_2 = arith.constant 0 : index
    %c0_3 = arith.constant 0 : index
    %c0_4 = arith.constant 0 : index
    %6 = vector.load %arg4[%c0_2, %c0_3, %c0_4] : memref<9x128x256xbf16, #tpu.memory_space<vmem>>, vector<1x128x256xbf16>
    %7 = vector.shape_cast %6 : vector<1x128x256xbf16> to vector<128x256xbf16>
    %cst = arith.constant dense<0.000000e+00> : vector<4x4x256xf32>
    %8 = tpu.matmul %5, %7, %cst {dimension_numbers = #tpu.dot_dimension_numbers<[2], [0], [0, 1], [1], [0, 0, 0, 1, 1, 1], [], []>} : vector<4x4x128xbf16>, vector<128x256xbf16>, vector<4x4x256xf32> -> vector<4x4x256xf32>
    %9 = vector.extract_strided_slice %4 {offsets = [1, 0, 0], sizes = [4, 4, 128], strides = [1, 1, 1]} : vector<6x4x128xbf16> to vector<4x4x128xbf16>
    %c3 = arith.constant 3 : index
    %c0_5 = arith.constant 0 : index
    %c0_6 = arith.constant 0 : index
    %10 = vector.load %arg4[%c3, %c0_5, %c0_6] : memref<9x128x256xbf16, #tpu.memory_space<vmem>>, vector<1x128x256xbf16>
    %11 = vector.shape_cast %10 : vector<1x128x256xbf16> to vector<128x256xbf16>
    %cst_7 = arith.constant dense<0.000000e+00> : vector<4x4x256xf32>
    %12 = tpu.matmul %9, %11, %cst_7 {dimension_numbers = #tpu.dot_dimension_numbers<[2], [0], [0, 1], [1], [0, 0, 0, 1, 1, 1], [], []>} : vector<4x4x128xbf16>, vector<128x256xbf16>, vector<4x4x256xf32> -> vector<4x4x256xf32>
    %13 = arith.addf %8, %12 : vector<4x4x256xf32>
    %14 = vector.extract_strided_slice %4 {offsets = [2, 0, 0], sizes = [4, 4, 128], strides = [1, 1, 1]} : vector<6x4x128xbf16> to vector<4x4x128xbf16>
    %c6 = arith.constant 6 : index
    %c0_8 = arith.constant 0 : index
    %c0_9 = arith.constant 0 : index
    %15 = vector.load %arg4[%c6, %c0_8, %c0_9] : memref<9x128x256xbf16, #tpu.memory_space<vmem>>, vector<1x128x256xbf16>
    %16 = vector.shape_cast %15 : vector<1x128x256xbf16> to vector<128x256xbf16>
    %cst_10 = arith.constant dense<0.000000e+00> : vector<4x4x256xf32>
    %17 = tpu.matmul %14, %16, %cst_10 {dimension_numbers = #tpu.dot_dimension_numbers<[2], [0], [0, 1], [1], [0, 0, 0, 1, 1, 1], [], []>} : vector<4x4x128xbf16>, vector<128x256xbf16>, vector<4x4x256xf32> -> vector<4x4x256xf32>
    %18 = arith.addf %13, %17 : vector<4x4x256xf32>
    %c0_11 = arith.constant 0 : index
    %19 = arith.index_cast %1 : i32 to index
    %c1 = arith.constant 1 : index
    %c0_12 = arith.constant 0 : index
    %20 = vector.load %arg3[%c0_11, %19, %c1, %c0_12] : memref<1x6x6x128xbf16, #tpu.memory_space<vmem>>, vector<1x6x4x128xbf16>
    %21 = vector.shape_cast %20 : vector<1x6x4x128xbf16> to vector<6x4x128xbf16>
    %22 = vector.extract_strided_slice %21 {offsets = [0, 0, 0], sizes = [4, 4, 128], strides = [1, 1, 1]} : vector<6x4x128xbf16> to vector<4x4x128xbf16>
    %c1_13 = arith.constant 1 : index
    %c0_14 = arith.constant 0 : index
    %c0_15 = arith.constant 0 : index
    %23 = vector.load %arg4[%c1_13, %c0_14, %c0_15] : memref<9x128x256xbf16, #tpu.memory_space<vmem>>, vector<1x128x256xbf16>
    %24 = vector.shape_cast %23 : vector<1x128x256xbf16> to vector<128x256xbf16>
    %cst_16 = arith.constant dense<0.000000e+00> : vector<4x4x256xf32>
    %25 = tpu.matmul %22, %24, %cst_16 {dimension_numbers = #tpu.dot_dimension_numbers<[2], [0], [0, 1], [1], [0, 0, 0, 1, 1, 1], [], []>} : vector<4x4x128xbf16>, vector<128x256xbf16>, vector<4x4x256xf32> -> vector<4x4x256xf32>
    %26 = arith.addf %18, %25 : vector<4x4x256xf32>
    %27 = vector.extract_strided_slice %21 {offsets = [1, 0, 0], sizes = [4, 4, 128], strides = [1, 1, 1]} : vector<6x4x128xbf16> to vector<4x4x128xbf16>
    %c4 = arith.constant 4 : index
    %c0_17 = arith.constant 0 : index
    %c0_18 = arith.constant 0 : index
    %28 = vector.load %arg4[%c4, %c0_17, %c0_18] : memref<9x128x256xbf16, #tpu.memory_space<vmem>>, vector<1x128x256xbf16>
    %29 = vector.shape_cast %28 : vector<1x128x256xbf16> to vector<128x256xbf16>
    %cst_19 = arith.constant dense<0.000000e+00> : vector<4x4x256xf32>
    %30 = tpu.matmul %27, %29, %cst_19 {dimension_numbers = #tpu.dot_dimension_numbers<[2], [0], [0, 1], [1], [0, 0, 0, 1, 1, 1], [], []>} : vector<4x4x128xbf16>, vector<128x256xbf16>, vector<4x4x256xf32> -> vector<4x4x256xf32>
    %31 = arith.addf %26, %30 : vector<4x4x256xf32>
    %32 = vector.extract_strided_slice %21 {offsets = [2, 0, 0], sizes = [4, 4, 128], strides = [1, 1, 1]} : vector<6x4x128xbf16> to vector<4x4x128xbf16>
    %c7 = arith.constant 7 : index
    %c0_20 = arith.constant 0 : index
    %c0_21 = arith.constant 0 : index
    %33 = vector.load %arg4[%c7, %c0_20, %c0_21] : memref<9x128x256xbf16, #tpu.memory_space<vmem>>, vector<1x128x256xbf16>
    %34 = vector.shape_cast %33 : vector<1x128x256xbf16> to vector<128x256xbf16>
    %cst_22 = arith.constant dense<0.000000e+00> : vector<4x4x256xf32>
    %35 = tpu.matmul %32, %34, %cst_22 {dimension_numbers = #tpu.dot_dimension_numbers<[2], [0], [0, 1], [1], [0, 0, 0, 1, 1, 1], [], []>} : vector<4x4x128xbf16>, vector<128x256xbf16>, vector<4x4x256xf32> -> vector<4x4x256xf32>
    %36 = arith.addf %31, %35 : vector<4x4x256xf32>
    %c0_23 = arith.constant 0 : index
    %37 = arith.index_cast %1 : i32 to index
    %c2 = arith.constant 2 : index
    %c0_24 = arith.constant 0 : index
    %38 = vector.load %arg3[%c0_23, %37, %c2, %c0_24] : memref<1x6x6x128xbf16, #tpu.memory_space<vmem>>, vector<1x6x4x128xbf16>
    %39 = vector.shape_cast %38 : vector<1x6x4x128xbf16> to vector<6x4x128xbf16>
    %40 = vector.extract_strided_slice %39 {offsets = [0, 0, 0], sizes = [4, 4, 128], strides = [1, 1, 1]} : vector<6x4x128xbf16> to vector<4x4x128xbf16>
    %c2_25 = arith.constant 2 : index
    %c0_26 = arith.constant 0 : index
    %c0_27 = arith.constant 0 : index
    %41 = vector.load %arg4[%c2_25, %c0_26, %c0_27] : memref<9x128x256xbf16, #tpu.memory_space<vmem>>, vector<1x128x256xbf16>
    %42 = vector.shape_cast %41 : vector<1x128x256xbf16> to vector<128x256xbf16>
    %cst_28 = arith.constant dense<0.000000e+00> : vector<4x4x256xf32>
    %43 = tpu.matmul %40, %42, %cst_28 {dimension_numbers = #tpu.dot_dimension_numbers<[2], [0], [0, 1], [1], [0, 0, 0, 1, 1, 1], [], []>} : vector<4x4x128xbf16>, vector<128x256xbf16>, vector<4x4x256xf32> -> vector<4x4x256xf32>
    %44 = arith.addf %36, %43 : vector<4x4x256xf32>
    %45 = vector.extract_strided_slice %39 {offsets = [1, 0, 0], sizes = [4, 4, 128], strides = [1, 1, 1]} : vector<6x4x128xbf16> to vector<4x4x128xbf16>
    %c5 = arith.constant 5 : index
    %c0_29 = arith.constant 0 : index
    %c0_30 = arith.constant 0 : index
    %46 = vector.load %arg4[%c5, %c0_29, %c0_30] : memref<9x128x256xbf16, #tpu.memory_space<vmem>>, vector<1x128x256xbf16>
    %47 = vector.shape_cast %46 : vector<1x128x256xbf16> to vector<128x256xbf16>
    %cst_31 = arith.constant dense<0.000000e+00> : vector<4x4x256xf32>
    %48 = tpu.matmul %45, %47, %cst_31 {dimension_numbers = #tpu.dot_dimension_numbers<[2], [0], [0, 1], [1], [0, 0, 0, 1, 1, 1], [], []>} : vector<4x4x128xbf16>, vector<128x256xbf16>, vector<4x4x256xf32> -> vector<4x4x256xf32>
    %49 = arith.addf %44, %48 : vector<4x4x256xf32>
    %50 = vector.extract_strided_slice %39 {offsets = [2, 0, 0], sizes = [4, 4, 128], strides = [1, 1, 1]} : vector<6x4x128xbf16> to vector<4x4x128xbf16>
    %c8 = arith.constant 8 : index
    %c0_32 = arith.constant 0 : index
    %c0_33 = arith.constant 0 : index
    %51 = vector.load %arg4[%c8, %c0_32, %c0_33] : memref<9x128x256xbf16, #tpu.memory_space<vmem>>, vector<1x128x256xbf16>
    %52 = vector.shape_cast %51 : vector<1x128x256xbf16> to vector<128x256xbf16>
    %cst_34 = arith.constant dense<0.000000e+00> : vector<4x4x256xf32>
    %53 = tpu.matmul %50, %52, %cst_34 {dimension_numbers = #tpu.dot_dimension_numbers<[2], [0], [0, 1], [1], [0, 0, 0, 1, 1, 1], [], []>} : vector<4x4x128xbf16>, vector<128x256xbf16>, vector<4x4x256xf32> -> vector<4x4x256xf32>
    %54 = arith.addf %49, %53 : vector<4x4x256xf32>
    %c0_35 = arith.constant 0 : index
    %c0_36 = arith.constant 0 : index
    %55 = vector.load %arg5[%c0_35, %c0_36] : memref<1x256xf32, #tpu.memory_space<vmem>>, vector<1x256xf32>
    %56 = vector.shape_cast %55 : vector<1x256xf32> to vector<1x1x256xf32>
    %57 = vector.broadcast %56 : vector<1x1x256xf32> to vector<4x4x256xf32>
    %58 = arith.addf %54, %57 : vector<4x4x256xf32>
    %cst_37 = arith.constant 0.000000e+00 : f32
    %59 = vector.broadcast %cst_37 : f32 to vector<4x4x256xf32>
    %60 = arith.maximumf %58, %59 : vector<4x4x256xf32>
    %61 = arith.truncf %60 : vector<4x4x256xf32> to vector<4x4x256xbf16>
    %c0_38 = arith.constant 0 : index
    %c0_39 = arith.constant 0 : index
    %c0_40 = arith.constant 0 : index
    %c0_41 = arith.constant 0 : index
    %62 = vector.load %arg6[%c0_38, %c0_39, %c0_40, %c0_41] : memref<1x4x4x256xbf16, #tpu.memory_space<vmem>>, vector<1x4x4x256xbf16>
    %63 = vector.shape_cast %62 : vector<1x4x4x256xbf16> to vector<4x4x256xbf16>
    %64 = vector.shape_cast %61 : vector<4x4x256xbf16> to vector<1x4x4x256xbf16>
    tpu.vector_store %arg6[%c0_38, %c0_39, %c0_40, %c0_41], %64 {strides = array<i32>} : memref<1x4x4x256xbf16, #tpu.memory_space<vmem>>, vector<1x4x4x256xbf16>,
    return
  }
  func.func @transform_0(%arg0: i32, %arg1: i32, %arg2: i32) -> (i32, i32, i32, i32) {
    %c0_i32 = arith.constant 0 : i32
    %c0_i32_0 = arith.constant 0 : i32
    %c0_i32_1 = arith.constant 0 : i32
    %c0_i32_2 = arith.constant 0 : i32
    return %arg0, %c0_i32, %c0_i32_0, %c0_i32_1 : i32, i32, i32, i32
  }
  func.func @transform_1(%arg0: i32, %arg1: i32, %arg2: i32) -> (i32, i32, i32) {
    %c0_i32 = arith.constant 0 : i32
    %c0_i32_0 = arith.constant 0 : i32
    %c0_i32_1 = arith.constant 0 : i32
    return %c0_i32, %c0_i32_0, %arg1 : i32, i32, i32
  }
  func.func @transform_2(%arg0: i32, %arg1: i32, %arg2: i32) -> (i32, i32) {
    %c0_i32 = arith.constant 0 : i32
    %c0_i32_0 = arith.constant 0 : i32
    return %c0_i32, %arg1 : i32, i32
  }
  func.func @transform_3(%arg0: i32, %arg1: i32, %arg2: i32) -> (i32, i32, i32, i32) {
    %c0_i32 = arith.constant 0 : i32
    %c0_i32_0 = arith.constant 0 : i32
    return %arg0, %arg2, %c0_i32, %arg1 : i32, i32, i32, i32
  }
}

</mosaic_0001>

<bundles_post_ra>
// kernel: perceptual_vgg_forward.7
= control target key start
LH: loop header
LB: loop body
LE: loop exit
PB: predicated region body
PF: predicated region fallthrough
CT: control target
= control target key end

     0   :  { %s939_s12 = smov 0   ;;  %s941_s13 = smov 0   ;;  %s1122_s0 = inlined_call_operand.vmem [shape: bf16[2,16,16,32], index: 0, kind: input, shape index: {}]   ;;  %s1123_s1 = inlined_call_operand.vmem [shape: bf16[1,32,64], index: 1, kind: input, shape index: {}]   ;;  %s1124_s2 = inlined_call_operand.vmem [shape: f32[1,64], index: 2, kind: input, shape index: {}]   ;;  %s1125_s3 = inlined_call_operand.vmem [shape: bf16[2,16,16,64], index: 3, kind: output, shape index: {}]  }
   0x1   :  { %s943_s14 = smov 0  }
   0x2 LB: > { %s32_s15 = sadd.s32 1, %s913_s13  ;;  %p749_p0 = scmp.ge.s32.totalorder %s917_s14, 1  ;;  %s917_s14 = sphi %s943_s14, %s13_s14   ;;  %s913_s13 = sphi %s941_s13, %s1127_s13   ;;  %s909_s12 = sphi %s939_s12, %s1126_s12  }
   0x3   : > { %p34_p1 = scmp.ge.s32.totalorder %s32_s15, 2  ;;  %p177_p2 = scmp.lt.s32.totalorder %s917_s14, 3 }
   0x5   : > { %s1129_s15 = smov (%p34_p1, %s32_s15), 0  ;;  %p178_p3 = pnand %p749_p0, %p177_p2 }
   0x6   : > { %p216_p4 = scmp.lt.s32.totalorder (!%p178_p3), %s909_s12, 1 }
   0x7   : > { %181 = sbr.rel (%p178_p3) target bundleno = 217 (0xd9), region = 32 }
   0xc   : > { %v863_v0 = vld [vmem:[%s1123_s1 + $0x8] sm:$0xff]  ;;  %v862_v1 = vld [vmem:[%s1123_s1] sm:$0xff]  ;;  %s1131_s12 = smov (!%p216_p4, %s909_s12), 1  ;;  %vm379_vm0 = vcmask 261120   ;;  %vm581_vm1 = vcmask 519168  }
   0xd   : > { %434 = vmatpush.bf16.msra.mxu0 %v863_v0  ;;  %864 = vmatpush.bf16.msra.mxu1 %v863_v0  ;;  %s844_s20 = sshll.u32 %s1131_s12, 7  ;;  %v1008_v18 = vld [vmem:[%s1124_s2] ss:$0 sm:$0xff] }
   0xe   : > { %865 = vmatpush.bf16.msra.mxu2 %v863_v0  ;;  %866 = vmatpush.bf16.msra.mxu3 %v863_v0  ;;  %s971_s23 = scalar_lea.vmem %s1122_s0, %s844_s20  ;;  %s1017_s28 = scalar_lea.vmem %s1125_s3, %s844_s20 }
   0xf   : > { %v846_v2 = vld [vmem:[%s971_s23] sm:$0xff]  ;;  %v847_v6 = vld [vmem:[%s971_s23 + $0x8] sm:$0xff]  ;;  %v848_v10 = vld [vmem:[%s971_s23 + $0x10] sm:$0xff] }
  0x10   : > { %v850_v3 = vld [vmem:[%s971_s23 + $0x20] sm:$0xff]  ;;  %v851_v7 = vld [vmem:[%s971_s23 + $0x28] sm:$0xff]  ;;  %v852_v11 = vld [vmem:[%s971_s23 + $0x30] sm:$0xff] }
  0x11   : > { %435 = vmatpush.bf16.msra.mxu0 %v862_v1  ;;  %867 = vmatpush.bf16.msra.mxu1 %v862_v1  ;;  %v854_v4 = vld [vmem:[%s971_s23 + $0x40] sm:$0xff]  ;;  %v855_v8 = vld [vmem:[%s971_s23 + $0x48] sm:$0xff]  ;;  %v856_v12 = vld [vmem:[%s971_s23 + $0x50] sm:$0xff] }
  0x12   : > { %868 = vmatpush.bf16.msra.mxu2 %v862_v1  ;;  %869 = vmatpush.bf16.msra.mxu3 %v862_v1  ;;  %v858_v5 = vld [vmem:[%s971_s23 + $0x60] sm:$0xff]  ;;  %v859_v9 = vld [vmem:[%s971_s23 + $0x68] sm:$0xff]  ;;  %v860_v13 = vld [vmem:[%s971_s23 + $0x70] sm:$0xff] }
  0x13   : > { %v849_v14 = vld [vmem:[%s971_s23 + $0x18] sm:$0xff] }
  0x14   : > { %826 = vmatmul.msk.bf16.vlgmr.msra.gmra.mxu0 %vm379_vm0, %v846_v2  ;;  %830 = vmatmul.msk.bf16.vlgmr.msra.gmra.mxu1 %vm379_vm0, %v850_v3  ;;  %v853_v15 = vld [vmem:[%s971_s23 + $0x38] sm:$0xff] }
  0x15   : > { %834 = vmatmul.msk.bf16.vlgmr.msra.gmra.mxu2 %vm379_vm0, %v854_v4  ;;  %838 = vmatmul.msk.bf16.vlgmr.msra.gmra.mxu3 %vm379_vm0, %v858_v5  ;;  %v857_v16 = vld [vmem:[%s971_s23 + $0x58] sm:$0xff] }
  0x16   : > { %v861_v17 = vld [vmem:[%s971_s23 + $0x78] sm:$0xff] }
  0x24   : > { %827 = vmatmul.msk.bf16.gmra.mxu0 %vm379_vm0, %v847_v6  ;;  %831 = vmatmul.msk.bf16.gmra.mxu1 %vm379_vm0, %v851_v7 }
  0x25   : > { %835 = vmatmul.msk.bf16.gmra.mxu2 %vm379_vm0, %v855_v8  ;;  %839 = vmatmul.msk.bf16.gmra.mxu3 %vm379_vm0, %v859_v9 }
  0x34   : > { %828 = vmatmul.msk.bf16.gmra.mxu0 %vm379_vm0, %v848_v10  ;;  %832 = vmatmul.msk.bf16.gmra.mxu1 %vm379_vm0, %v852_v11 }
  0x35   : > { %836 = vmatmul.msk.bf16.gmra.mxu2 %vm379_vm0, %v856_v12  ;;  %840 = vmatmul.msk.bf16.gmra.mxu3 %vm379_vm0, %v860_v13 }
  0x44   : > { %829 = vmatmul.msk.bf16.gmra.mxu0 %vm379_vm0, %v849_v14  ;;  %833 = vmatmul.msk.bf16.gmra.mxu1 %vm379_vm0, %v853_v15 }
  0x45   : > { %837 = vmatmul.msk.bf16.gmra.mxu2 %vm379_vm0, %v857_v16  ;;  %841 = vmatmul.msk.bf16.gmra.mxu3 %vm379_vm0, %v861_v17 }
  0x91   : > { %v437_v19 = vpop.f32.mrf.mxu0  ;;  %v457_v20 = vpop.f32.mrf.mxu1 }
  0x92   : > { %v438_v21 = vadd.f32 %v1008_v18, %v437_v19  ;;  %v458_v22 = vadd.f32 %v1008_v18, %v457_v20 }
  0x94   : > { %v517_v23 = vmax.f32 %v438_v21, 0.0  ;;  %v525_v24 = vmax.f32 %v458_v22, 0.0 }
  0x96   : > { %v549_v25 = vpack.c.bf16 %v517_v23, %v517_v23  ;;  %v557_v26 = vpack.c.bf16 %v525_v24, %v525_v24 }
  0x98   : > { %582 = vst.msk [vmem:[%s1017_s28] sm:$0xf] %vm581_vm1, %v549_v25  ;;  %v477_v27 = vpop.f32.mrf.mxu2  ;;  %v497_v28 = vpop.f32.mrf.mxu3 }
  0x99   : > { %590 = vst.msk [vmem:[%s1017_s28 + $0x20] sm:$0xf] %vm581_vm1, %v557_v26  ;;  %v478_v29 = vadd.f32 %v1008_v18, %v477_v27  ;;  %v498_v30 = vadd.f32 %v1008_v18, %v497_v28  ;;  %v439_v31 = vpop.f32.mrf.mxu0  ;;  %v459_v32 = vpop.f32.mrf.mxu1 }
  0x9a   : > { %v440_v33 = vadd.f32 %v1008_v18, %v439_v31  ;;  %v460_v34 = vadd.f32 %v1008_v18, %v459_v32 }
  0x9b   : > { %v533_v35 = vmax.f32 %v478_v29, 0.0  ;;  %v541_v36 = vmax.f32 %v498_v30, 0.0 }
  0x9c   : > { %v518_v37 = vmax.f32 %v440_v33, 0.0  ;;  %v526_v38 = vmax.f32 %v460_v34, 0.0 }
  0x9d   : > { %v565_v39 = vpack.c.bf16 %v533_v35, %v533_v35  ;;  %v573_v40 = vpack.c.bf16 %v541_v36, %v541_v36 }
  0x9e   : > { %v550_v41 = vpack.c.bf16 %v518_v37, %v518_v37  ;;  %v558_v42 = vpack.c.bf16 %v526_v38, %v526_v38 }
  0x9f   : > { %598 = vst.msk [vmem:[%s1017_s28 + $0x40] sm:$0xf] %vm581_vm1, %v565_v39 }
  0xa0   : > { %606 = vst.msk [vmem:[%s1017_s28 + $0x60] sm:$0xf] %vm581_vm1, %v573_v40  ;;  %v479_v43 = vpop.f32.mrf.mxu2  ;;  %v499_v44 = vpop.f32.mrf.mxu3 }
  0xa1   : > { %583 = vst.msk [vmem:[%s1017_s28 + $0x4] sm:$0xf] %vm581_vm1, %v550_v41  ;;  %v480_v45 = vadd.f32 %v1008_v18, %v479_v43  ;;  %v500_v46 = vadd.f32 %v1008_v18, %v499_v44  ;;  %v442_v47 = vpop.f32.mrf.mxu0  ;;  %v462_v48 = vpop.f32.mrf.mxu1 }
  0xa2   : > { %591 = vst.msk [vmem:[%s1017_s28 + $0x24] sm:$0xf] %vm581_vm1, %v558_v42  ;;  %v443_v49 = vadd.f32 %v1008_v18, %v442_v47  ;;  %v463_v50 = vadd.f32 %v1008_v18, %v462_v48 }
  0xa3   : > { %v534_v51 = vmax.f32 %v480_v45, 0.0  ;;  %v542_v52 = vmax.f32 %v500_v46, 0.0 }
  0xa4   : > { %v519_v53 = vmax.f32 %v443_v49, 0.0  ;;  %v527_v54 = vmax.f32 %v463_v50, 0.0 }
  0xa5   : > { %v566_v55 = vpack.c.bf16 %v534_v51, %v534_v51  ;;  %v574_v56 = vpack.c.bf16 %v542_v52, %v542_v52 }
  0xa6   : > { %v551_v57 = vpack.c.bf16 %v519_v53, %v519_v53  ;;  %v559_v58 = vpack.c.bf16 %v527_v54, %v527_v54 }
  0xa7   : > { %599 = vst.msk [vmem:[%s1017_s28 + $0x44] sm:$0xf] %vm581_vm1, %v566_v55 }
  0xa8   : > { %607 = vst.msk [vmem:[%s1017_s28 + $0x64] sm:$0xf] %vm581_vm1, %v574_v56  ;;  %v482_v59 = vpop.f32.mrf.mxu2  ;;  %v502_v60 = vpop.f32.mrf.mxu3 }
  0xa9   : > { %584 = vst.msk [vmem:[%s1017_s28 + $0x8] sm:$0xf] %vm581_vm1, %v551_v57  ;;  %v483_v61 = vadd.f32 %v1008_v18, %v482_v59  ;;  %v503_v62 = vadd.f32 %v1008_v18, %v502_v60  ;;  %v444_v63 = vpop.f32.mrf.mxu0  ;;  %v464_v0 = vpop.f32.mrf.mxu1 }
  0xaa   : > { %592 = vst.msk [vmem:[%s1017_s28 + $0x28] sm:$0xf] %vm581_vm1, %v559_v58  ;;  %v445_v1 = vadd.f32 %v1008_v18, %v444_v63  ;;  %v465_v2 = vadd.f32 %v1008_v18, %v464_v0 }
  0xab   : > { %v535_v3 = vmax.f32 %v483_v61, 0.0  ;;  %v543_v4 = vmax.f32 %v503_v62, 0.0 }
  0xac   : > { %v520_v5 = vmax.f32 %v445_v1, 0.0  ;;  %v528_v6 = vmax.f32 %v465_v2, 0.0 }
  0xad   : > { %v567_v7 = vpack.c.bf16 %v535_v3, %v535_v3  ;;  %v575_v8 = vpack.c.bf16 %v543_v4, %v543_v4 }
  0xae   : > { %v552_v9 = vpack.c.bf16 %v520_v5, %v520_v5  ;;  %v560_v10 = vpack.c.bf16 %v528_v6, %v528_v6 }
  0xaf   : > { %600 = vst.msk [vmem:[%s1017_s28 + $0x48] sm:$0xf] %vm581_vm1, %v567_v7 }
  0xb0   : > { %608 = vst.msk [vmem:[%s1017_s28 + $0x68] sm:$0xf] %vm581_vm1, %v575_v8  ;;  %v484_v11 = vpop.f32.mrf.mxu2  ;;  %v504_v12 = vpop.f32.mrf.mxu3 }
  0xb1   : > { %585 = vst.msk [vmem:[%s1017_s28 + $0xc] sm:$0xf] %vm581_vm1, %v552_v9  ;;  %v485_v13 = vadd.f32 %v1008_v18, %v484_v11  ;;  %v505_v14 = vadd.f32 %v1008_v18, %v504_v12  ;;  %v447_v15 = vpop.f32.mrf.mxu0  ;;  %v467_v16 = vpop.f32.mrf.mxu1 }
  0xb2   : > { %593 = vst.msk [vmem:[%s1017_s28 + $0x2c] sm:$0xf] %vm581_vm1, %v560_v10  ;;  %v448_v17 = vadd.f32 %v1008_v18, %v447_v15  ;;  %v468_v19 = vadd.f32 %v1008_v18, %v467_v16 }
  0xb3   : > { %v536_v20 = vmax.f32 %v485_v13, 0.0  ;;  %v544_v21 = vmax.f32 %v505_v14, 0.0 }
  0xb4   : > { %v521_v22 = vmax.f32 %v448_v17, 0.0  ;;  %v529_v23 = vmax.f32 %v468_v19, 0.0 }
  0xb5   : > { %v568_v24 = vpack.c.bf16 %v536_v20, %v536_v20  ;;  %v576_v25 = vpack.c.bf16 %v544_v21, %v544_v21 }
  0xb6   : > { %v553_v26 = vpack.c.bf16 %v521_v22, %v521_v22  ;;  %v561_v27 = vpack.c.bf16 %v529_v23, %v529_v23 }
  0xb7   : > { %601 = vst.msk [vmem:[%s1017_s28 + $0x4c] sm:$0xf] %vm581_vm1, %v568_v24 }
  0xb8   : > { %609 = vst.msk [vmem:[%s1017_s28 + $0x6c] sm:$0xf] %vm581_vm1, %v576_v25  ;;  %v487_v28 = vpop.f32.mrf.mxu2  ;;  %v507_v29 = vpop.f32.mrf.mxu3 }
  0xb9   : > { %586 = vst.msk [vmem:[%s1017_s28 + $0x10] sm:$0xf] %vm581_vm1, %v553_v26  ;;  %v488_v30 = vadd.f32 %v1008_v18, %v487_v28  ;;  %v508_v31 = vadd.f32 %v1008_v18, %v507_v29  ;;  %v449_v32 = vpop.f32.mrf.mxu0  ;;  %v469_v33 = vpop.f32.mrf.mxu1 }
  0xba   : > { %594 = vst.msk [vmem:[%s1017_s28 + $0x30] sm:$0xf] %vm581_vm1, %v561_v27  ;;  %v450_v34 = vadd.f32 %v1008_v18, %v449_v32  ;;  %v470_v35 = vadd.f32 %v1008_v18, %v469_v33 }
  0xbb   : > { %v537_v36 = vmax.f32 %v488_v30, 0.0  ;;  %v545_v37 = vmax.f32 %v508_v31, 0.0 }
  0xbc   : > { %v522_v38 = vmax.f32 %v450_v34, 0.0  ;;  %v530_v39 = vmax.f32 %v470_v35, 0.0 }
  0xbd   : > { %v569_v40 = vpack.c.bf16 %v537_v36, %v537_v36  ;;  %v577_v41 = vpack.c.bf16 %v545_v37, %v545_v37 }
  0xbe   : > { %v554_v42 = vpack.c.bf16 %v522_v38, %v522_v38  ;;  %v562_v43 = vpack.c.bf16 %v530_v39, %v530_v39 }
  0xbf   : > { %602 = vst.msk [vmem:[%s1017_s28 + $0x50] sm:$0xf] %vm581_vm1, %v569_v40 }
  0xc0   : > { %610 = vst.msk [vmem:[%s1017_s28 + $0x70] sm:$0xf] %vm581_vm1, %v577_v41  ;;  %v489_v44 = vpop.f32.mrf.mxu2  ;;  %v509_v45 = vpop.f32.mrf.mxu3 }
  0xc1   : > { %587 = vst.msk [vmem:[%s1017_s28 + $0x14] sm:$0xf] %vm581_vm1, %v554_v42  ;;  %v490_v46 = vadd.f32 %v1008_v18, %v489_v44  ;;  %v510_v47 = vadd.f32 %v1008_v18, %v509_v45  ;;  %v452_v48 = vpop.f32.mrf.mxu0  ;;  %v472_v49 = vpop.f32.mrf.mxu1 }
  0xc2   : > { %595 = vst.msk [vmem:[%s1017_s28 + $0x34] sm:$0xf] %vm581_vm1, %v562_v43  ;;  %v453_v50 = vadd.f32 %v1008_v18, %v452_v48  ;;  %v473_v51 = vadd.f32 %v1008_v18, %v472_v49 }
  0xc3   : > { %v538_v52 = vmax.f32 %v490_v46, 0.0  ;;  %v546_v53 = vmax.f32 %v510_v47, 0.0 }
  0xc4   : > { %v523_v54 = vmax.f32 %v453_v50, 0.0  ;;  %v531_v55 = vmax.f32 %v473_v51, 0.0 }
  0xc5   : > { %v570_v56 = vpack.c.bf16 %v538_v52, %v538_v52  ;;  %v578_v57 = vpack.c.bf16 %v546_v53, %v546_v53 }
  0xc6   : > { %v555_v58 = vpack.c.bf16 %v523_v54, %v523_v54  ;;  %v563_v59 = vpack.c.bf16 %v531_v55, %v531_v55 }
  0xc7   : > { %603 = vst.msk [vmem:[%s1017_s28 + $0x54] sm:$0xf] %vm581_vm1, %v570_v56 }
  0xc8   : > { %611 = vst.msk [vmem:[%s1017_s28 + $0x74] sm:$0xf] %vm581_vm1, %v578_v57  ;;  %v492_v60 = vpop.f32.mrf.mxu2  ;;  %v512_v61 = vpop.f32.mrf.mxu3 }
  0xc9   : > { %588 = vst.msk [vmem:[%s1017_s28 + $0x18] sm:$0xf] %vm581_vm1, %v555_v58  ;;  %v493_v62 = vadd.f32 %v1008_v18, %v492_v60  ;;  %v513_v63 = vadd.f32 %v1008_v18, %v512_v61  ;;  %v454_v0 = vpop.f32.mrf.mxu0  ;;  %v474_v1 = vpop.f32.mrf.mxu1 }
  0xca   : > { %596 = vst.msk [vmem:[%s1017_s28 + $0x38] sm:$0xf] %vm581_vm1, %v563_v59  ;;  %v455_v2 = vadd.f32 %v1008_v18, %v454_v0  ;;  %v475_v3 = vadd.f32 %v1008_v18, %v474_v1 }
  0xcb   : > { %v539_v4 = vmax.f32 %v493_v62, 0.0  ;;  %v547_v5 = vmax.f32 %v513_v63, 0.0 }
  0xcc   : > { %v524_v6 = vmax.f32 %v455_v2, 0.0  ;;  %v532_v7 = vmax.f32 %v475_v3, 0.0 }
  0xcd   : > { %v571_v8 = vpack.c.bf16 %v539_v4, %v539_v4  ;;  %v579_v9 = vpack.c.bf16 %v547_v5, %v547_v5 }
  0xce   : > { %v556_v10 = vpack.c.bf16 %v524_v6, %v524_v6  ;;  %v564_v11 = vpack.c.bf16 %v532_v7, %v532_v7 }
  0xcf   : > { %604 = vst.msk [vmem:[%s1017_s28 + $0x58] sm:$0xf] %vm581_vm1, %v571_v8 }
  0xd0   : > { %612 = vst.msk [vmem:[%s1017_s28 + $0x78] sm:$0xf] %vm581_vm1, %v579_v9  ;;  %v494_v12 = vpop.f32.mrf.mxu2  ;;  %v514_v13 = vpop.f32.mrf.mxu3 }
  0xd1   : > { %589 = vst.msk [vmem:[%s1017_s28 + $0x1c] sm:$0xf] %vm581_vm1, %v556_v10  ;;  %v495_v14 = vadd.f32 %v1008_v18, %v494_v12  ;;  %v515_v15 = vadd.f32 %v1008_v18, %v514_v13 }
  0xd2   : > { %597 = vst.msk [vmem:[%s1017_s28 + $0x3c] sm:$0xf] %vm581_vm1, %v564_v11 }
  0xd3   : > { %v540_v16 = vmax.f32 %v495_v14, 0.0  ;;  %v548_v17 = vmax.f32 %v515_v15, 0.0 }
  0xd5   : > { %v572_v19 = vpack.c.bf16 %v540_v16, %v540_v16  ;;  %v580_v20 = vpack.c.bf16 %v548_v17, %v548_v17 }
  0xd7   : > { %605 = vst.msk [vmem:[%s1017_s28 + $0x5c] sm:$0xf] %vm581_vm1, %v572_v19 }
  0xd8   : > { %613 = vst.msk [vmem:[%s1017_s28 + $0x7c] sm:$0xf] %vm581_vm1, %v580_v20 }
  0xd9 PF: > { %s13_s14 = sadd.s32 1, %s917_s14   ;;  %s1126_s12 = smov %s913_s13 }
  0xda   : > { %p10_p5 = scmp.ge.s32.totalorder %s13_s14, 4   ;;  %s1127_s13 = smov %s1129_s15 }
  0xdc   :  { %12 = sbr.rel (!%p10_p5) target bundleno = 2 (0x2), region = 69 }

// kernel: perceptual_vgg_forward.9
= control target key start
LH: loop header
LB: loop body
LE: loop exit
PB: predicated region body
PF: predicated region fallthrough
CT: control target
= control target key end

     0   :  { %s568_s6 = smov 0   ;;  %s570_s7 = smov 0   ;;  %s685_s0 = inlined_call_operand.vmem [shape: bf16[2,16,16,64], index: 0, kind: input, shape index: {}]   ;;  %s686_s1 = inlined_call_operand.vmem [shape: bf16[2,16,16,64], index: 1, kind: output, shape index: {}]  }
   0x1   :  { %s572_s8 = smov 0  }
   0x2 LB: > { %s23_s9 = sadd.s32 1, %s552_s7  ;;  %p422_p0 = scmp.ge.s32.totalorder %s556_s8, 1  ;;  %s556_s8 = sphi %s572_s8, %s11_s8   ;;  %s552_s7 = sphi %s570_s7, %s688_s7   ;;  %s548_s6 = sphi %s568_s6, %s687_s6  }
   0x3   : > { %p25_p1 = scmp.ge.s32.totalorder %s23_s9, 2  ;;  %p109_p2 = scmp.lt.s32.totalorder %s556_s8, 3 }
   0x5   : > { %s690_s9 = smov (%p25_p1, %s23_s9), 0  ;;  %p110_p3 = pnand %p422_p0, %p109_p2 }
   0x6   : > { %p140_p4 = scmp.lt.s32.totalorder (!%p110_p3), %s548_s6, 1 }
   0x7   : > { %113 = sbr.rel (%p110_p3) target bundleno = 54 (0x36), region = 24 }
   0xc   : > { %s692_s6 = smov (!%p140_p4, %s548_s6), 1  ;;  %vm289_vm0 = vcmask 519168  }
   0xd   : > { %s429_s10 = sshll.u32 %s692_s6, 7 }
   0xe   : > { %s589_s13 = scalar_lea.vmem %s685_s0, %s429_s10  ;;  %s598_s16 = scalar_lea.vmem %s686_s1, %s429_s10 }
   0xf   : > { %v432_v0 = vld [vmem:[%s589_s13] sm:$0xff]   ;;  %v495_v1 = vld [vmem:[%s589_s13 + $0x8] sm:$0xff]   ;;  %v496_v2 = vld [vmem:[%s589_s13 + $0x10] sm:$0xff]  }
  0x10   : > { %v433_v3 = vunpack.c.l.bf16 %v432_v0  ;;  %v434_v4 = vunpack.c.h.bf16 %v432_v0  ;;  %v437_v5 = vunpack.c.l.bf16 %v495_v1  ;;  %v438_v6 = vunpack.c.h.bf16 %v495_v1  ;;  %v497_v7 = vld [vmem:[%s589_s13 + $0x18] sm:$0xff]   ;;  %v498_v18 = vld [vmem:[%s589_s13 + $0x20] sm:$0xff]   ;;  %v499_v19 = vld [vmem:[%s589_s13 + $0x28] sm:$0xff]  }
  0x11   : > { %v441_v8 = vunpack.c.l.bf16 %v496_v2  ;;  %v442_v9 = vunpack.c.h.bf16 %v496_v2  ;;  %v445_v10 = vunpack.c.l.bf16 %v497_v7  ;;  %v446_v11 = vunpack.c.h.bf16 %v497_v7  ;;  %v500_v24 = vld [vmem:[%s589_s13 + $0x30] sm:$0xff]   ;;  %v501_v25 = vld [vmem:[%s589_s13 + $0x38] sm:$0xff]   ;;  %v502_v44 = vld [vmem:[%s589_s13 + $0x40] sm:$0xff]  }
  0x12   : > { %v225_v12 = vmax.f32 %v433_v3, 0.0  ;;  %v226_v13 = vmax.f32 %v434_v4, 0.0  ;;  %v227_v14 = vmax.f32 %v437_v5, 0.0  ;;  %v228_v15 = vmax.f32 %v438_v6, 0.0  ;;  %v503_v45 = vld [vmem:[%s589_s13 + $0x48] sm:$0xff]   ;;  %v504_v51 = vld [vmem:[%s589_s13 + $0x50] sm:$0xff]  }
  0x13   : > { %v229_v16 = vmax.f32 %v441_v8, 0.0  ;;  %v230_v17 = vmax.f32 %v442_v9, 0.0  ;;  %v231_v23 = vmax.f32 %v445_v10, 0.0  ;;  %v232_v28 = vmax.f32 %v446_v11, 0.0  ;;  %v505_v59 = vld [vmem:[%s589_s13 + $0x58] sm:$0xff]   ;;  %v506_v2 = vld [vmem:[%s589_s13 + $0x60] sm:$0xff]  }
  0x14   : > { %v257_v20 = vpack.c.bf16 %v225_v12, %v225_v12  ;;  %v258_v21 = vpack.c.bf16 %v226_v13, %v226_v13  ;;  %v259_v22 = vpack.c.bf16 %v227_v14, %v227_v14  ;;  %v260_v26 = vpack.c.bf16 %v228_v15, %v228_v15  ;;  %v507_v9 = vld [vmem:[%s589_s13 + $0x68] sm:$0xff]  }
  0x15   : > { %v261_v27 = vpack.c.bf16 %v229_v16, %v229_v16  ;;  %v449_v29 = vunpack.c.l.bf16 %v498_v18  ;;  %v450_v30 = vunpack.c.h.bf16 %v498_v18  ;;  %v453_v31 = vunpack.c.l.bf16 %v499_v19  ;;  %v508_v16 = vld [vmem:[%s589_s13 + $0x70] sm:$0xff]  }
  0x16   : > { %290 = vst.msk [vmem:[%s598_s16] sm:$0xf] %vm289_vm0, %v257_v20  ;;  %v454_v32 = vunpack.c.h.bf16 %v499_v19  ;;  %v262_v33 = vpack.c.bf16 %v230_v17, %v230_v17  ;;  %v457_v34 = vunpack.c.l.bf16 %v500_v24  ;;  %v458_v35 = vunpack.c.h.bf16 %v500_v24 }
  0x17   : > { %291 = vst.msk [vmem:[%s598_s16 + $0x4] sm:$0xf] %vm289_vm0, %v258_v21  ;;  %v461_v36 = vunpack.c.l.bf16 %v501_v25  ;;  %v263_v37 = vpack.c.bf16 %v231_v23, %v231_v23  ;;  %v233_v38 = vmax.f32 %v449_v29, 0.0  ;;  %v234_v39 = vmax.f32 %v450_v30, 0.0  ;;  %v509_v23 = vld [vmem:[%s589_s13 + $0x78] sm:$0xff]  }
  0x18   : > { %292 = vst.msk [vmem:[%s598_s16 + $0x8] sm:$0xf] %vm289_vm0, %v259_v22  ;;  %v235_v40 = vmax.f32 %v453_v31, 0.0  ;;  %v264_v41 = vpack.c.bf16 %v232_v28, %v232_v28  ;;  %v236_v42 = vmax.f32 %v454_v32, 0.0  ;;  %v462_v43 = vunpack.c.h.bf16 %v501_v25 }
  0x19   : > { %293 = vst.msk [vmem:[%s598_s16 + $0xc] sm:$0xf] %vm289_vm0, %v260_v26  ;;  %v265_v46 = vpack.c.bf16 %v233_v38, %v233_v38  ;;  %v237_v47 = vmax.f32 %v457_v34, 0.0  ;;  %v266_v48 = vpack.c.bf16 %v234_v39, %v234_v39  ;;  %v238_v49 = vmax.f32 %v458_v35, 0.0 }
  0x1a   : > { %294 = vst.msk [vmem:[%s598_s16 + $0x10] sm:$0xf] %vm289_vm0, %v261_v27  ;;  %v239_v50 = vmax.f32 %v461_v36, 0.0  ;;  %v267_v52 = vpack.c.bf16 %v235_v40, %v235_v40  ;;  %v465_v53 = vunpack.c.l.bf16 %v502_v44  ;;  %v466_v54 = vunpack.c.h.bf16 %v502_v44 }
  0x1b   : > { %295 = vst.msk [vmem:[%s598_s16 + $0x14] sm:$0xf] %vm289_vm0, %v262_v33  ;;  %v469_v55 = vunpack.c.l.bf16 %v503_v45  ;;  %v268_v56 = vpack.c.bf16 %v236_v42, %v236_v42  ;;  %v240_v57 = vmax.f32 %v462_v43, 0.0  ;;  %v470_v58 = vunpack.c.h.bf16 %v503_v45 }
  0x1c   : > { %296 = vst.msk [vmem:[%s598_s16 + $0x18] sm:$0xf] %vm289_vm0, %v263_v37  ;;  %v269_v60 = vpack.c.bf16 %v237_v47, %v237_v47  ;;  %v241_v61 = vmax.f32 %v465_v53, 0.0  ;;  %v473_v62 = vunpack.c.l.bf16 %v504_v51  ;;  %v270_v63 = vpack.c.bf16 %v238_v49, %v238_v49 }
  0x1d   : > { %297 = vst.msk [vmem:[%s598_s16 + $0x1c] sm:$0xf] %vm289_vm0, %v264_v41  ;;  %v242_v0 = vmax.f32 %v466_v54, 0.0  ;;  %v474_v1 = vunpack.c.h.bf16 %v504_v51  ;;  %v271_v3 = vpack.c.bf16 %v239_v50, %v239_v50  ;;  %v243_v4 = vmax.f32 %v469_v55, 0.0 }
  0x1e   : > { %298 = vst.msk [vmem:[%s598_s16 + $0x20] sm:$0xf] %vm289_vm0, %v265_v46  ;;  %v477_v5 = vunpack.c.l.bf16 %v505_v59  ;;  %v272_v6 = vpack.c.bf16 %v240_v57, %v240_v57  ;;  %v244_v7 = vmax.f32 %v470_v58, 0.0  ;;  %v478_v8 = vunpack.c.h.bf16 %v505_v59 }
  0x1f   : > { %299 = vst.msk [vmem:[%s598_s16 + $0x24] sm:$0xf] %vm289_vm0, %v266_v48  ;;  %v273_v10 = vpack.c.bf16 %v241_v61, %v241_v61  ;;  %v245_v11 = vmax.f32 %v473_v62, 0.0  ;;  %v481_v12 = vunpack.c.l.bf16 %v506_v2  ;;  %v274_v13 = vpack.c.bf16 %v242_v0, %v242_v0 }
  0x20   : > { %300 = vst.msk [vmem:[%s598_s16 + $0x28] sm:$0xf] %vm289_vm0, %v267_v52  ;;  %v246_v14 = vmax.f32 %v474_v1, 0.0  ;;  %v482_v15 = vunpack.c.h.bf16 %v506_v2  ;;  %v275_v17 = vpack.c.bf16 %v243_v4, %v243_v4  ;;  %v247_v18 = vmax.f32 %v477_v5, 0.0 }
  0x21   : > { %301 = vst.msk [vmem:[%s598_s16 + $0x2c] sm:$0xf] %vm289_vm0, %v268_v56  ;;  %v485_v19 = vunpack.c.l.bf16 %v507_v9  ;;  %v276_v20 = vpack.c.bf16 %v244_v7, %v244_v7  ;;  %v248_v21 = vmax.f32 %v478_v8, 0.0  ;;  %v486_v22 = vunpack.c.h.bf16 %v507_v9 }
  0x22   : > { %302 = vst.msk [vmem:[%s598_s16 + $0x30] sm:$0xf] %vm289_vm0, %v269_v60  ;;  %v277_v24 = vpack.c.bf16 %v245_v11, %v245_v11  ;;  %v249_v25 = vmax.f32 %v481_v12, 0.0  ;;  %v489_v26 = vunpack.c.l.bf16 %v508_v16  ;;  %v278_v27 = vpack.c.bf16 %v246_v14, %v246_v14 }
  0x23   : > { %303 = vst.msk [vmem:[%s598_s16 + $0x34] sm:$0xf] %vm289_vm0, %v270_v63  ;;  %v250_v28 = vmax.f32 %v482_v15, 0.0  ;;  %v490_v29 = vunpack.c.h.bf16 %v508_v16  ;;  %v279_v30 = vpack.c.bf16 %v247_v18, %v247_v18  ;;  %v251_v31 = vmax.f32 %v485_v19, 0.0 }
  0x24   : > { %304 = vst.msk [vmem:[%s598_s16 + $0x38] sm:$0xf] %vm289_vm0, %v271_v3  ;;  %v493_v32 = vunpack.c.l.bf16 %v509_v23  ;;  %v280_v33 = vpack.c.bf16 %v248_v21, %v248_v21  ;;  %v252_v34 = vmax.f32 %v486_v22, 0.0  ;;  %v494_v35 = vunpack.c.h.bf16 %v509_v23 }
  0x25   : > { %305 = vst.msk [vmem:[%s598_s16 + $0x3c] sm:$0xf] %vm289_vm0, %v272_v6  ;;  %v281_v36 = vpack.c.bf16 %v249_v25, %v249_v25  ;;  %v253_v37 = vmax.f32 %v489_v26, 0.0  ;;  %v282_v38 = vpack.c.bf16 %v250_v28, %v250_v28  ;;  %v254_v39 = vmax.f32 %v490_v29, 0.0 }
  0x26   : > { %306 = vst.msk [vmem:[%s598_s16 + $0x40] sm:$0xf] %vm289_vm0, %v273_v10  ;;  %v283_v40 = vpack.c.bf16 %v251_v31, %v251_v31  ;;  %v255_v41 = vmax.f32 %v493_v32, 0.0  ;;  %v284_v42 = vpack.c.bf16 %v252_v34, %v252_v34  ;;  %v256_v43 = vmax.f32 %v494_v35, 0.0 }
  0x27   : > { %307 = vst.msk [vmem:[%s598_s16 + $0x44] sm:$0xf] %vm289_vm0, %v274_v13  ;;  %v285_v44 = vpack.c.bf16 %v253_v37, %v253_v37  ;;  %v286_v45 = vpack.c.bf16 %v254_v39, %v254_v39 }
  0x28   : > { %308 = vst.msk [vmem:[%s598_s16 + $0x48] sm:$0xf] %vm289_vm0, %v275_v17  ;;  %v287_v46 = vpack.c.bf16 %v255_v41, %v255_v41  ;;  %v288_v47 = vpack.c.bf16 %v256_v43, %v256_v43 }
  0x29   : > { %309 = vst.msk [vmem:[%s598_s16 + $0x4c] sm:$0xf] %vm289_vm0, %v276_v20 }
  0x2a   : > { %310 = vst.msk [vmem:[%s598_s16 + $0x50] sm:$0xf] %vm289_vm0, %v277_v24 }
  0x2b   : > { %311 = vst.msk [vmem:[%s598_s16 + $0x54] sm:$0xf] %vm289_vm0, %v278_v27 }
  0x2c   : > { %312 = vst.msk [vmem:[%s598_s16 + $0x58] sm:$0xf] %vm289_vm0, %v279_v30 }
  0x2d   : > { %313 = vst.msk [vmem:[%s598_s16 + $0x5c] sm:$0xf] %vm289_vm0, %v280_v33 }
  0x2e   : > { %314 = vst.msk [vmem:[%s598_s16 + $0x60] sm:$0xf] %vm289_vm0, %v281_v36 }
  0x2f   : > { %315 = vst.msk [vmem:[%s598_s16 + $0x64] sm:$0xf] %vm289_vm0, %v282_v38 }
  0x30   : > { %316 = vst.msk [vmem:[%s598_s16 + $0x68] sm:$0xf] %vm289_vm0, %v283_v40 }
  0x31   : > { %317 = vst.msk [vmem:[%s598_s16 + $0x6c] sm:$0xf] %vm289_vm0, %v284_v42 }
  0x32   : > { %318 = vst.msk [vmem:[%s598_s16 + $0x70] sm:$0xf] %vm289_vm0, %v285_v44 }
  0x33   : > { %319 = vst.msk [vmem:[%s598_s16 + $0x74] sm:$0xf] %vm289_vm0, %v286_v45 }
  0x34   : > { %320 = vst.msk [vmem:[%s598_s16 + $0x78] sm:$0xf] %vm289_vm0, %v287_v46 }
  0x35   : > { %321 = vst.msk [vmem:[%s598_s16 + $0x7c] sm:$0xf] %vm289_vm0, %v288_v47 }
  0x36 PF: > { %s11_s8 = sadd.s32 1, %s556_s8   ;;  %s687_s6 = smov %s552_s7 }
  0x37   : > { %p8_p5 = scmp.ge.s32.totalorder %s11_s8, 4   ;;  %s688_s7 = smov %s690_s9 }
  0x39   :  { %10 = sbr.rel (!%p8_p5) target bundleno = 2 (0x2), region = 54 }

// kernel: perceptual_vgg_forward.10
= control target key start
LH: loop header
LB: loop body
LE: loop exit
PB: predicated region body
PF: predicated region fallthrough
CT: control target
= control target key end

     0   :  { %s1610_s6 = smov 0   ;;  %s1612_s7 = smov 0   ;;  %s2965_s0 = inlined_call_operand.vmem [shape: bf16[2,16,16,64], index: 0, kind: input, shape index: {}]   ;;  %s2966_s1 = inlined_call_operand.vmem [shape: bf16[2,8,8,64], index: 1, kind: output, shape index: {}]  }
   0x1   :  { %s1614_s8 = smov 0  }
   0x2 LB: > { %s23_s9 = sadd.s32 1, %s1594_s7  ;;  %p1464_p0 = scmp.ge.s32.totalorder %s1598_s8, 1  ;;  %s1598_s8 = sphi %s1614_s8, %s11_s8   ;;  %s1594_s7 = sphi %s1612_s7, %s3318_s7   ;;  %s1590_s6 = sphi %s1610_s6, %s3317_s6  }
   0x3   : > { %p25_p1 = scmp.ge.s32.totalorder %s23_s9, 2  ;;  %p109_p2 = scmp.lt.s32.totalorder %s1598_s8, 3 }
   0x5   : > { %s3320_s9 = smov (%p25_p1, %s23_s9), 0  ;;  %p110_p3 = pnand %p1464_p0, %p109_p2 }
   0x7   : > { %113 = sbr.rel (%p110_p3) target bundleno = 261 (0x105), region = 24 }
   0xc   : > { %p139_p4 = scmp.lt.s32.totalorder %s1590_s6, 1  ;;  %vm223_vm0 = vcmask 523264   ;;  %vm324_vm1 = vcmask 1041409   ;;  %vm328_vm2 = vcmask 1042434   ;;  %vm332_vm3 = vcmask 1043459  }
   0xd   : > { %vm320_vm4 = vcmask 1040384   ;;  %vm644_vm5 = vcmask 517120   ;;  %vm1288_vm6 = vcmask 1044484   ;;  %vm1290_vm7 = vcmask 1045509  }
   0xe   : > { %s3322_s6 = smov (!%p139_p4, %s1590_s6), 1  ;;  %vm1292_vm8 = vcmask 1046534   ;;  %vm1294_vm9 = vcmask 1047559   ;;  %vm1361_vm10 = vcmask 519168  }
   0xf   : > { %s1471_s10 = sshll.u32 %s3322_s6, 7  ;;  %s1472_s14 = sshll.u32 %s3322_s6, 5 }
  0x10   : > { %s1634_s13 = scalar_lea.vmem %s2965_s0, %s1471_s10  ;;  %s157_s17 = scalar_lea.vmem %s2966_s1, %s1472_s14 }
  0x11   : > { %v1474_v0 = vld [vmem:[%s1634_s13] sm:$0xff]   ;;  %v1537_v1 = vld [vmem:[%s1634_s13 + $0x8] sm:$0xff]   ;;  %v1538_v2 = vld [vmem:[%s1634_s13 + $0x10] sm:$0xff]  }
  0x12   : > { %v1539_v3 = vld [vmem:[%s1634_s13 + $0x18] sm:$0xff]   ;;  %v1540_v4 = vld [vmem:[%s1634_s13 + $0x20] sm:$0xff]   ;;  %v1475_v5 = vunpack.c.l.bf16 %v1474_v0  ;;  %v1541_v6 = vld [vmem:[%s1634_s13 + $0x28] sm:$0xff]   ;;  %v1476_v8 = vunpack.c.h.bf16 %v1474_v0  ;;  %v1479_v9 = vunpack.c.l.bf16 %v1537_v1  ;;  %v1480_v10 = vunpack.c.h.bf16 %v1537_v1 }
  0x13   : > { %v1643_v7 = vld [vmem:[%s1634_s13 + $0x30] sm:$0xff]   ;;  %v1483_v11 = vunpack.c.l.bf16 %v1538_v2  ;;  %v1543_v12 = vld [vmem:[%s1634_s13 + $0x38] sm:$0xff]   ;;  %v1544_v13 = vld [vmem:[%s1634_s13 + $0x40] sm:$0xff]   ;;  %v1484_v14 = vunpack.c.h.bf16 %v1538_v2  ;;  %v1487_v15 = vunpack.c.l.bf16 %v1539_v3  ;;  %v1488_v16 = vunpack.c.h.bf16 %v1539_v3 }
  0x14   : > { %v1491_v17 = vunpack.c.l.bf16 %v1540_v4  ;;  %v1545_v18 = vld [vmem:[%s1634_s13 + $0x48] sm:$0xff]   ;;  %v1546_v19 = vld [vmem:[%s1634_s13 + $0x50] sm:$0xff]   ;;  %v1492_v20 = vunpack.c.h.bf16 %v1540_v4  ;;  %v1495_v21 = vunpack.c.l.bf16 %v1541_v6  ;;  %v1496_v22 = vunpack.c.h.bf16 %v1541_v6  ;;  %v1547_v24 = vld [vmem:[%s1634_s13 + $0x58] sm:$0xff]  }
  0x15   : > { %v1499_v23 = vunpack.c.l.bf16 %v1643_v7  ;;  %v1548_v25 = vld [vmem:[%s1634_s13 + $0x60] sm:$0xff]   ;;  %v1500_v26 = vunpack.c.h.bf16 %v1643_v7  ;;  %v1503_v27 = vunpack.c.l.bf16 %v1543_v12  ;;  %v1504_v28 = vunpack.c.h.bf16 %v1543_v12  ;;  %v1549_v30 = vld [vmem:[%s1634_s13 + $0x68] sm:$0xff]   ;;  %v1550_v31 = vld [vmem:[%s1634_s13 + $0x70] sm:$0xff]  }
  0x16   : > { %v1507_v29 = vunpack.c.l.bf16 %v1544_v13  ;;  %v1508_v32 = vunpack.c.h.bf16 %v1544_v13  ;;  %v1511_v33 = vunpack.c.l.bf16 %v1545_v18  ;;  %v1512_v34 = vunpack.c.h.bf16 %v1545_v18  ;;  %v1551_v44 = vld [vmem:[%s1634_s13 + $0x78] sm:$0xff]  }
  0x17   : > { %v1515_v35 = vunpack.c.l.bf16 %v1546_v19  ;;  %v1516_v36 = vunpack.c.h.bf16 %v1546_v19  ;;  %v1519_v37 = vunpack.c.l.bf16 %v1547_v24  ;;  %v1520_v38 = vunpack.c.h.bf16 %v1547_v24 }
  0x18   : > { %v1523_v39 = vunpack.c.l.bf16 %v1548_v25  ;;  %v1524_v40 = vunpack.c.h.bf16 %v1548_v25  ;;  %v1527_v41 = vunpack.c.l.bf16 %v1549_v30  ;;  %v1528_v42 = vunpack.c.h.bf16 %v1549_v30 }
  0x19   : > { %v1531_v43 = vunpack.c.l.bf16 %v1550_v31  ;;  %v224_v45 = vsel %vm223_vm0, %v1475_v5, -inf  ;;  %v225_v46 = vsel %vm223_vm0, %v1479_v9, -inf  ;;  %v227_v47 = vsel %vm223_vm0, %v1476_v8, -inf }
  0x1a   : > { %v228_v48 = vsel %vm223_vm0, %v1480_v10, -inf  ;;  %v230_v49 = vsel %vm223_vm0, %v1483_v11, -inf  ;;  %v231_v50 = vsel %vm223_vm0, %v1487_v15, -inf  ;;  %v233_v51 = vsel %vm223_vm0, %v1484_v14, -inf }
  0x1b   : > { %v234_v52 = vsel %vm223_vm0, %v1488_v16, -inf  ;;  %v236_v53 = vsel %vm223_vm0, %v1491_v17, -inf  ;;  %v237_v54 = vsel %vm223_vm0, %v1495_v21, -inf  ;;  %v239_v55 = vsel %vm223_vm0, %v1492_v20, -inf }
  0x1c   : > { %v240_v56 = vsel %vm223_vm0, %v1496_v22, -inf  ;;  %v1532_v57 = vunpack.c.h.bf16 %v1550_v31  ;;  %v1535_v58 = vunpack.c.l.bf16 %v1551_v44  ;;  %v242_v59 = vsel %vm223_vm0, %v1499_v23, -inf }
  0x1d   : > { %v243_v60 = vsel %vm223_vm0, %v1503_v27, -inf  ;;  %v1536_v61 = vunpack.c.h.bf16 %v1551_v44  ;;  %v226_v62 = vmax.f32 %v224_v45, %v225_v46  ;;  %v229_v63 = vmax.f32 %v227_v47, %v228_v48 }
  0x1e   : > { %v232_v0 = vmax.f32 %v230_v49, %v231_v50  ;;  %v235_v1 = vmax.f32 %v233_v51, %v234_v52  ;;  %v238_v2 = vmax.f32 %v236_v53, %v237_v54  ;;  %v241_v3 = vmax.f32 %v239_v55, %v240_v56 }
  0x1f   : > { %v244_v4 = vmax.f32 %v242_v59, %v243_v60  ;;  %v245_v5 = vsel %vm223_vm0, %v1500_v26, -inf  ;;  %v246_v6 = vsel %vm223_vm0, %v1504_v28, -inf  ;;  %v248_v7 = vsel %vm223_vm0, %v1507_v29, -inf }
  0x20   : > { %v249_v8 = vsel %vm223_vm0, %v1511_v33, -inf  ;;  %v251_v9 = vsel %vm223_vm0, %v1508_v32, -inf  ;;  %v252_v10 = vsel %vm223_vm0, %v1512_v34, -inf  ;;  %v254_v11 = vsel %vm223_vm0, %v1515_v35, -inf }
  0x21   : > { %v255_v12 = vsel %vm223_vm0, %v1519_v37, -inf  ;;  %v257_v13 = vsel %vm223_vm0, %v1516_v36, -inf  ;;  %v258_v14 = vsel %vm223_vm0, %v1520_v38, -inf  ;;  %v260_v15 = vsel %vm223_vm0, %v1523_v39, -inf }
  0x22   : > { %v261_v16 = vsel %vm223_vm0, %v1527_v41, -inf  ;;  %v263_v17 = vsel %vm223_vm0, %v1524_v40, -inf  ;;  %v264_v18 = vsel %vm223_vm0, %v1528_v42, -inf  ;;  %v266_v19 = vsel %vm223_vm0, %v1531_v43, -inf }
  0x23   : > { %v267_v20 = vsel %vm223_vm0, %v1535_v58, -inf  ;;  %v247_v21 = vmax.f32 %v245_v5, %v246_v6  ;;  %v250_v22 = vmax.f32 %v248_v7, %v249_v8  ;;  %v269_v23 = vsel %vm223_vm0, %v1532_v57, -inf }
  0x24   : > { %v270_v24 = vsel %vm223_vm0, %v1536_v61, -inf  ;;  %v253_v25 = vmax.f32 %v251_v9, %v252_v10  ;;  %v256_v26 = vmax.f32 %v254_v11, %v255_v12  ;;  %v259_v27 = vmax.f32 %v257_v13, %v258_v14 }
  0x25   : > { %v272_v28 = vpack.c.bf16 %v226_v62, %v226_v62  ;;  %v262_v29 = vmax.f32 %v260_v15, %v261_v16  ;;  %v265_v30 = vmax.f32 %v263_v17, %v264_v18  ;;  %v268_v31 = vmax.f32 %v266_v19, %v267_v20 }
  0x26   : > { %v271_v32 = vmax.f32 %v269_v23, %v270_v24  ;;  %v273_v33 = vpack.c.bf16 %v229_v63, %v229_v63  ;;  %v274_v34 = vpack.c.bf16 %v232_v0, %v232_v0  ;;  %v275_v35 = vpack.c.bf16 %v235_v1, %v235_v1 }
  0x27   : > { %v276_v36 = vpack.c.bf16 %v238_v2, %v238_v2  ;;  %v1688_v37 = vpack.c.bf16 %v241_v3, %v241_v3  ;;  %v1690_v38 = vpack.c.bf16 %v244_v4, %v244_v4  ;;  %v1692_v39 = vpack.c.bf16 %v247_v21, %v247_v21 }
  0x28   : > { %v1694_v40 = vpack.c.bf16 %v250_v22, %v250_v22  ;;  %v1696_v41 = vpack.c.bf16 %v253_v25, %v253_v25  ;;  %v1698_v42 = vpack.c.bf16 %v256_v26, %v256_v26  ;;  %v1700_v43 = vpack.c.bf16 %v259_v27, %v259_v27 }
  0x29   : > { %v304_v44 = vrot.slane %v272_v28, 3  ;;  %v1702_v45 = vpack.c.bf16 %v262_v29, %v262_v29  ;;  %v1704_v46 = vpack.c.bf16 %v265_v30, %v265_v30  ;;  %v1706_v47 = vpack.c.bf16 %v268_v31, %v268_v31 }
  0x2a   : > { %v1708_v48 = vpack.c.bf16 %v271_v32, %v271_v32  ;;  %v305_v49 = vrot.slane %v273_v33, 3  ;;  %v306_v50 = vrot.slane %v274_v34, 3  ;;  %v307_v51 = vrot.slane %v275_v35, 3 }
  0x2b   : > { %v308_v52 = vrot.slane %v276_v36, 3  ;;  %v309_v53 = vrot.slane %v1688_v37, 3  ;;  %v310_v54 = vrot.slane %v1690_v38, 3  ;;  %v311_v55 = vrot.slane %v1692_v39, 3 }
  0x2c   : > { %v1714_v56 = vrot.slane %v1694_v40, 3  ;;  %v1717_v57 = vrot.slane %v1696_v41, 3  ;;  %v1720_v58 = vrot.slane %v1698_v42, 3  ;;  %v1723_v59 = vsel %vm324_vm1, %v272_v28, %v304_v44 }
  0x2d   : > { %v1726_v60 = vsel %vm328_vm2, %v272_v28, %v304_v44  ;;  %v1729_v61 = vrot.slane %v1700_v43, 3  ;;  %v1732_v62 = vrot.slane %v1702_v45, 3  ;;  %v1735_v63 = vrot.slane %v1704_v46, 3 }
  0x2e   : > { %v1738_v0 = vsel %vm332_vm3, %v272_v28, %v304_v44  ;;  %v1741_v1 = vrot.slane %v1706_v47, 3  ;;  %v1744_v2 = vrot.slane %v1708_v48, 3  ;;  %v1747_v3 = vsel %vm320_vm4, %v272_v28, %v304_v44 }
  0x2f   : > { %v1750_v4 = vsel %vm324_vm1, %v273_v33, %v305_v49  ;;  %v1755_v7 = vsel %vm328_vm2, %v273_v33, %v305_v49  ;;  %v1758_v8 = vsel %vm332_vm3, %v273_v33, %v305_v49  ;;  %v1762_v10 = vsel %vm320_vm4, %v273_v33, %v305_v49 }
  0x30   : > { %v1765_v11 = vsel %vm320_vm4, %v274_v34, %v306_v50  ;;  %v1768_v12 = vsel %vm324_vm1, %v274_v34, %v306_v50  ;;  %v1772_v14 = vsel %vm328_vm2, %v274_v34, %v306_v50  ;;  %v1775_v15 = vsel %vm332_vm3, %v274_v34, %v306_v50 }
  0x31   : > { %v1778_v16 = vsel %vm324_vm1, %v275_v35, %v307_v51  ;;  %v1783_v19 = vsel %vm328_vm2, %v275_v35, %v307_v51  ;;  %v1786_v20 = vsel %vm332_vm3, %v275_v35, %v307_v51  ;;  %v1790_v22 = vsel %vm320_vm4, %v275_v35, %v307_v51 }
  0x32   : > { %v1793_v23 = vsel %vm324_vm1, %v276_v36, %v308_v52  ;;  %v1796_v24 = vsel %vm328_vm2, %v276_v36, %v308_v52  ;;  %v1802_v28 = vsel %vm332_vm3, %v276_v36, %v308_v52  ;;  %v1807_v31 = vsel %vm320_vm4, %v276_v36, %v308_v52 }
  0x33   : > { %v1811_v32 = vsel %vm324_vm1, %v1688_v37, %v309_v53  ;;  %v1817_v35 = vsel %vm328_vm2, %v1688_v37, %v309_v53  ;;  %v1821_v44 = vsel %vm332_vm3, %v1688_v37, %v309_v53  ;;  %v1826_v36 = vsel %vm320_vm4, %v1688_v37, %v309_v53 }
  0x34   : > { %v1830_v50 = vsel %vm320_vm4, %v1690_v38, %v310_v54  ;;  %v1834_v51 = vsel %vm324_vm1, %v1690_v38, %v310_v54  ;;  %v1839_v34 = vsel %vm328_vm2, %v1690_v38, %v310_v54  ;;  %v1843_v49 = vsel %vm332_vm3, %v1690_v38, %v310_v54 }
  0x35   : > { %v1847_v37 = vsel %vm324_vm1, %v1692_v39, %v311_v55  ;;  %v1853_v30 = vsel %vm328_vm2, %v1692_v39, %v311_v55  ;;  %v1857_v52 = vsel %vm332_vm3, %v1692_v39, %v311_v55  ;;  %v1862_v38 = vsel %vm320_vm4, %v1692_v39, %v311_v55 }
  0x36   : > { %v1867_v54 = vsel %vm324_vm1, %v1694_v40, %v1714_v56  ;;  %v1872_v33 = vsel %vm328_vm2, %v1694_v40, %v1714_v56  ;;  %v1880_v39 = vsel %vm332_vm3, %v1694_v40, %v1714_v56  ;;  %v1887_v25 = vsel %vm320_vm4, %v1694_v40, %v1714_v56 }
  0x37   : > { %3020 = vst [vmem:[#allocation2_spill] sm:$0xff] %v1887_v25  ;;  %v1892_v27 = vsel %vm324_vm1, %v1696_v41, %v1717_v57  ;;  %v1899_v55 = vsel %vm328_vm2, %v1696_v41, %v1717_v57  ;;  %v1904_v26 = vsel %vm332_vm3, %v1696_v41, %v1717_v57  ;;  %v1910_v56 = vsel %vm320_vm4, %v1696_v41, %v1717_v57 }
  0x38   : > { %3021 = vst [vmem:[#allocation3_spill] sm:$0xff] %v1910_v56  ;;  %v1915_v53 = vsel %vm320_vm4, %v1698_v42, %v1720_v58  ;;  %v1920_v29 = vsel %vm324_vm1, %v1698_v42, %v1720_v58  ;;  %v1926_v40 = vsel %vm328_vm2, %v1698_v42, %v1720_v58  ;;  %v1931_v41 = vsel %vm332_vm3, %v1698_v42, %v1720_v58 }
  0x39   : > { %3022 = vst [vmem:[#allocation4_spill] sm:$0xff] %v1915_v53  ;;  %v1936_v57 = vsel %vm324_vm1, %v1700_v43, %v1729_v61  ;;  %v1943_v21 = vsel %vm328_vm2, %v1700_v43, %v1729_v61  ;;  %v1948_v13 = vsel %vm332_vm3, %v1700_v43, %v1729_v61  ;;  %v1954_v58 = vsel %vm320_vm4, %v1700_v43, %v1729_v61 }
  0x3a   : > { %3023 = vst [vmem:[#allocation5_spill] sm:$0xff] %v1948_v13  ;;  %v1959_v17 = vsel %vm324_vm1, %v1702_v45, %v1732_v62  ;;  %v1964_v18 = vsel %vm328_vm2, %v1702_v45, %v1732_v62  ;;  %v1972_v43 = vsel %vm332_vm3, %v1702_v45, %v1732_v62  ;;  %v1986_v42 = vsel %vm324_vm1, %v1704_v46, %v1735_v63 }
  0x3b   : > { %3024 = vst [vmem:[#allocation6_spill] sm:$0xff] %v1954_v58  ;;  %v1979_v58 = vsel %vm320_vm4, %v1702_v45, %v1732_v62  ;;  %v1991_v61 = vsel %vm328_vm2, %v1704_v46, %v1735_v63  ;;  %v1996_v5 = vsel %vm332_vm3, %v1704_v46, %v1735_v63  ;;  %v2002_v62 = vsel %vm324_vm1, %v1706_v47, %v1741_v1 }
  0x3c   : > { %3025 = vst [vmem:[#allocation7_spill] sm:$0xff] %v1959_v17  ;;  %v2007_v6 = vsel %vm328_vm2, %v1706_v47, %v1741_v1  ;;  %v2012_v9 = vsel %vm332_vm3, %v1706_v47, %v1741_v1  ;;  %v2022_v45 = vsel %vm320_vm4, %v1706_v47, %v1741_v1  ;;  %v2032_v17 = vsel %vm328_vm2, %v1708_v48, %v1744_v2 }
  0x3d   : > { %3026 = vst [vmem:[#allocation8_spill] sm:$0xff] %v1964_v18  ;;  %v2017_v18 = vsel %vm320_vm4, %v1704_v46, %v1735_v63  ;;  %v2040_v47 = vsel %vm332_vm3, %v1708_v48, %v1744_v2  ;;  %v2048_v13 = vsel %vm320_vm4, %v1708_v48, %v1744_v2  ;;  %v3039_v63 = vrot.slane %v1755_v7, 2 }
  0x3e   : > { %3027 = vst [vmem:[#allocation9_spill] sm:$0xff] %v1972_v43  ;;  %v2027_v43 = vsel %vm324_vm1, %v1708_v48, %v1744_v2  ;;  %v3038_v2 = vrot.slane %v1750_v4, 1  ;;  %v3043_v4 = vrot.slane %v1775_v15, 3  ;;  %v3047_v15 = vrot.slane %v1793_v23, 1 }
  0x3f   : > { %3028 = vst [vmem:[#allocation10_spill] sm:$0xff] %v1979_v58  ;;  %v2067_v58 = vunpack.c.l.bf16 %v3039_v63  ;;  %v3052_v23 = vrot.slane %v1821_v44, 3  ;;  %v3056_v44 = vrot.slane %v1847_v37, 1  ;;  %v3063_v37 = vrot.slane %v1880_v39, 3 }
  0x40   : > { %3029 = vst [vmem:[#allocation11_spill] sm:$0xff] %v1991_v61  ;;  %v3035_v61 = vrot.slane %v1723_v59, 1  ;;  %v2063_v46 = vunpack.c.l.bf16 %v3038_v2  ;;  %v2084_v2 = vunpack.c.l.bf16 %v3043_v4  ;;  %v3048_v4 = vrot.slane %v1796_v24, 2 }
  0x41   : > { %3030 = vst [vmem:[#allocation12_spill] sm:$0xff] %v1996_v5  ;;  %v580_v5 = vunpack.c.l.bf16 %v1747_v3  ;;  %v3040_v3 = vrot.slane %v1758_v8, 3  ;;  %v3044_v8 = vrot.slane %v1778_v16, 1  ;;  %v3049_v16 = vrot.slane %v1802_v28, 3 }
  0x42   : > { %3031 = vst [vmem:[#allocation13_spill] sm:$0xff] %v2007_v6  ;;  %v581_v1 = vunpack.c.l.bf16 %v3035_v61  ;;  %v3041_v61 = vrot.slane %v1768_v12, 1  ;;  %v3046_v12 = vrot.slane %v1786_v20, 3  ;;  %v2106_v7 = vunpack.c.l.bf16 %v3048_v4 }
  0x43   : > { %3032 = vst [vmem:[#allocation14_spill] sm:$0xff] %v2012_v9  ;;  %v2071_v59 = vunpack.c.l.bf16 %v3040_v3  ;;  %v2089_v63 = vunpack.c.l.bf16 %v3044_v8  ;;  %v3045_v3 = vrot.slane %v1783_v19, 2  ;;  %v2110_v8 = vunpack.c.l.bf16 %v3049_v16 }
  0x44   : > { %3033 = vst [vmem:[#allocation15_spill] sm:$0xff] %v2017_v18  ;;  %v3037_v18 = vrot.slane %v1738_v0, 3  ;;  %v2076_v0 = vunpack.c.l.bf16 %v3041_v61  ;;  %v2097_v61 = vunpack.c.l.bf16 %v3046_v12  ;;  %v3050_v20 = vrot.slane %v1811_v32, 1 }
  0x45   : > { %3034 = vst [vmem:[#allocation16_spill] sm:$0xff] %v2022_v45  ;;  %v3036_v45 = vrot.slane %v1726_v60, 2  ;;  %v2093_v60 = vunpack.c.l.bf16 %v3045_v3  ;;  %v3051_v12 = vrot.slane %v1817_v35, 2  ;;  %v3053_v28 = vrot.slane %v1834_v51, 1 }
  0x46   : > { %v583_v9 = vunpack.c.l.bf16 %v3037_v18  ;;  %v3042_v18 = vrot.slane %v1772_v14, 2  ;;  %v2115_v3 = vunpack.c.l.bf16 %v3050_v20  ;;  %v3054_v16 = vrot.slane %v1839_v34, 2 }
  0x47   : > { %v582_v6 = vunpack.c.l.bf16 %v3036_v45  ;;  %v2119_v14 = vunpack.c.l.bf16 %v3051_v12  ;;  %v2128_v4 = vunpack.c.l.bf16 %v3053_v28  ;;  %v3055_v32 = vrot.slane %v1843_v49, 3 }
  0x48   : > { %v2080_v45 = vunpack.c.l.bf16 %v3042_v18  ;;  %v2102_v18 = vunpack.c.l.bf16 %v3047_v15  ;;  %v2123_v15 = vunpack.c.l.bf16 %v3052_v23  ;;  %v2132_v19 = vunpack.c.l.bf16 %v3054_v16 }
  0x49   : > { %v2136_v20 = vunpack.c.l.bf16 %v3055_v32  ;;  %v2141_v12 = vunpack.c.l.bf16 %v3056_v44  ;;  %v3057_v23 = vrot.slane %v1853_v30, 2  ;;  %v3058_v51 = vrot.slane %v1857_v52, 3 }
  0x4a   : > { %v3059_v49 = vrot.slane %v1867_v54, 1  ;;  %v3061_v32 = vrot.slane %v1872_v33, 2  ;;  %v2162_v44 = vunpack.c.l.bf16 %v3063_v37  ;;  %v3065_v52 = vrot.slane %v1892_v27, 1 }
  0x4b   : > { %v2145_v24 = vunpack.c.l.bf16 %v3057_v23  ;;  %v2149_v28 = vunpack.c.l.bf16 %v3058_v51  ;;  %v3067_v51 = vrot.slane %v1899_v55, 2  ;;  %v3069_v54 = vrot.slane %v1904_v26, 3 }
  0x4c   : > { %v2154_v16 = vunpack.c.l.bf16 %v3059_v49  ;;  %v2158_v35 = vunpack.c.l.bf16 %v3061_v32  ;;  %3064 = vst [vmem:[#allocation19_spill] sm:$0xff] %v2162_v44  ;;  %v2167_v23 = vunpack.c.l.bf16 %v3065_v52  ;;  %v3071_v39 = vrot.slane %v1920_v29, 1  ;;  %v3082_v29 = vld [vmem:[#allocation5_spill] sm:$0xff] }
  0x4d   : > { %v2171_v34 = vunpack.c.l.bf16 %v3067_v51  ;;  %v2175_v49 = vunpack.c.l.bf16 %v3069_v54  ;;  %v3073_v37 = vrot.slane %v1926_v40, 2  ;;  %v3075_v27 = vrot.slane %v1931_v41, 3 }
  0x4e   : > { %3060 = vst [vmem:[#allocation17_spill] sm:$0xff] %v2154_v16  ;;  %v2180_v32 = vunpack.c.l.bf16 %v3071_v39  ;;  %v3078_v26 = vrot.slane %v1936_v57, 1  ;;  %v3080_v33 = vrot.slane %v1943_v21, 2  ;;  %v3083_v39 = vrot.slane %v3082_v29, 3  ;;  %v3092_v57 = vld [vmem:[#allocation9_spill] sm:$0xff] }
  0x4f   : > { %3062 = vst [vmem:[#allocation18_spill] sm:$0xff] %v2158_v35  ;;  %v2184_v30 = vunpack.c.l.bf16 %v3073_v37  ;;  %v2188_v52 = vunpack.c.l.bf16 %v3075_v27  ;;  %v3096_v29 = vrot.slane %v1986_v42, 1  ;;  %v3110_v42 = vld [vmem:[#allocation14_spill] sm:$0xff] }
  0x50   : > { %3066 = vst [vmem:[#allocation20_spill] sm:$0xff] %v2167_v23  ;;  %v2193_v54 = vunpack.c.l.bf16 %v3078_v26  ;;  %v2197_v48 = vunpack.c.l.bf16 %v3080_v33  ;;  %v3093_v26 = vrot.slane %v3092_v57, 3  ;;  %v3105_v57 = vrot.slane %v2002_v62, 1 }
  0x51   : > { %3068 = vst [vmem:[#allocation21_spill] sm:$0xff] %v2171_v34 }
  0x52   : > { %3070 = vst [vmem:[#allocation22_spill] sm:$0xff] %v2175_v49 }
  0x53   : > { %3072 = vst [vmem:[#allocation23_spill] sm:$0xff] %v2180_v32  ;;  %v2201_v32 = vunpack.c.l.bf16 %v3083_v39  ;;  %v2219_v39 = vunpack.c.l.bf16 %v3096_v29  ;;  %v3111_v29 = vrot.slane %v3110_v42, 3  ;;  %v680_v42 = vsel %vm644_vm5, %v2063_v46, -inf }
  0x54   : > { %3074 = vst [vmem:[#allocation24_spill] sm:$0xff] %v2184_v30  ;;  %v3086_v30 = vld [vmem:[#allocation7_spill] sm:$0xff] }
  0x55   : > { %3076 = vst [vmem:[#allocation25_spill] sm:$0xff] %v2188_v52  ;;  %v3087_v41 = vrot.slane %v3086_v30, 1  ;;  %v3089_v52 = vld [vmem:[#allocation8_spill] sm:$0xff] }
  0x56   : > { %3079 = vst [vmem:[#allocation26_spill] sm:$0xff] %v2193_v54  ;;  %v3090_v51 = vrot.slane %v3089_v52, 2  ;;  %v2214_v54 = vunpack.c.l.bf16 %v3093_v26  ;;  %v3101_v30 = vld [vmem:[#allocation12_spill] sm:$0xff]  ;;  %v2232_v26 = vunpack.c.l.bf16 %v3105_v57  ;;  %v681_v52 = vrot.slane %v680_v42, 4 }
  0x57   : > { %3081 = vst [vmem:[#allocation27_spill] sm:$0xff] %v2197_v48  ;;  %v2206_v27 = vunpack.c.l.bf16 %v3087_v41  ;;  %v3102_v41 = vrot.slane %v3101_v30, 3  ;;  %v659_v30 = vsel %vm644_vm5, %v582_v6, -inf }
  0x58   : > { %3084 = vst [vmem:[#allocation5_spill] sm:$0xff] %v2201_v32  ;;  %v2210_v55 = vunpack.c.l.bf16 %v3090_v51  ;;  %v3098_v32 = vld [vmem:[#allocation11_spill] sm:$0xff]  ;;  %v660_v51 = vrot.slane %v659_v30, 4  ;;  %v682_v46 = vmax.f32 %v680_v42, %v681_v52 }
  0x59   : > { %3088 = vst [vmem:[#allocation7_spill] sm:$0xff] %v2206_v27  ;;  %v3099_v37 = vrot.slane %v3098_v32, 2  ;;  %v2227_v27 = vunpack.c.l.bf16 %v3102_v41  ;;  %v645_v32 = vsel %vm644_vm5, %v580_v5, -inf  ;;  %v666_v41 = vsel %vm644_vm5, %v583_v9, -inf }
  0x5a   : > { %3091 = vst [vmem:[#allocation8_spill] sm:$0xff] %v2210_v55  ;;  %v646_v62 = vrot.slane %v645_v32, 4  ;;  %v687_v5 = vsel %vm644_vm5, %v2067_v58, -inf  ;;  %v661_v9 = vmax.f32 %v659_v30, %v660_v51 }
  0x5b   : > { %3094 = vst [vmem:[#allocation9_spill] sm:$0xff] %v2214_v54  ;;  %v2223_v40 = vunpack.c.l.bf16 %v3099_v37  ;;  %v3107_v54 = vld [vmem:[#allocation13_spill] sm:$0xff]  ;;  %v652_v37 = vsel %vm644_vm5, %v581_v1, -inf  ;;  %v694_v1 = vsel %vm644_vm5, %v2071_v59, -inf }
  0x5c   : > { %3097 = vst [vmem:[#allocation28_spill] sm:$0xff] %v2219_v39  ;;  %v3108_v33 = vrot.slane %v3107_v54, 2  ;;  %v2240_v39 = vunpack.c.l.bf16 %v3111_v29  ;;  %v653_v57 = vrot.slane %v652_v37, 4  ;;  %v3113_v54 = vunpack.c.l.bf16 %v1762_v10 }
  0x5d   : > { %3100 = vst [vmem:[#allocation11_spill] sm:$0xff] %v2223_v40  ;;  %v647_v6 = vmax.f32 %v645_v32, %v646_v62  ;;  %v695_v40 = vrot.slane %v694_v1, 4 }
  0x5e   : > { %3103 = vst [vmem:[#allocation12_spill] sm:$0xff] %v2227_v27  ;;  %v2236_v21 = vunpack.c.l.bf16 %v3108_v33  ;;  %v673_v33 = vsel %vm644_vm5, %v3113_v54, -inf  ;;  %v654_v29 = vmax.f32 %v652_v37, %v653_v57  ;;  %v688_v27 = vrot.slane %v687_v5, 4 }
  0x5f   : > { %3106 = vst [vmem:[#allocation29_spill] sm:$0xff] %v2232_v26  ;;  %v667_v26 = vrot.slane %v666_v41, 4  ;;  %v648_v10 = vrot.slane %v647_v6, 2  ;;  %v662_v54 = vrot.slane %v661_v9, 2  ;;  %v696_v34 = vmax.f32 %v694_v1, %v695_v40 }
  0x60   : > { %3109 = vst [vmem:[#allocation13_spill] sm:$0xff] %v2236_v21  ;;  %v674_v21 = vrot.slane %v673_v33, 4  ;;  %v655_v55 = vrot.slane %v654_v29, 2  ;;  %v689_v49 = vmax.f32 %v687_v5, %v688_v27  ;;  %v683_v37 = vrot.slane %v682_v46, 2 }
  0x61   : > { %3112 = vst [vmem:[#allocation14_spill] sm:$0xff] %v2240_v39  ;;  %v668_v39 = vmax.f32 %v666_v41, %v667_v26  ;;  %v649_v58 = vmax.f32 %v647_v6, %v648_v10  ;;  %v663_v56 = vmax.f32 %v661_v9, %v662_v54  ;;  %v697_v26 = vrot.slane %v696_v34, 2 }
  0x62   : > { %v675_v53 = vmax.f32 %v673_v33, %v674_v21  ;;  %v656_v23 = vmax.f32 %v654_v29, %v655_v55  ;;  %v690_v51 = vrot.slane %v689_v49, 2  ;;  %v684_v35 = vmax.f32 %v682_v46, %v683_v37 }
  0x63   : > { %v669_v48 = vrot.slane %v668_v39, 2  ;;  %v650_v30 = vrot.slane %v649_v58, 1  ;;  %v664_v62 = vrot.slane %v663_v56, 1  ;;  %v698_v25 = vmax.f32 %v696_v34, %v697_v26 }
  0x64   : > { %v676_v32 = vrot.slane %v675_v53, 2  ;;  %v657_v41 = vrot.slane %v656_v23, 1  ;;  %v691_v16 = vmax.f32 %v689_v49, %v690_v51  ;;  %v3114_v40 = vrot.slane %v2027_v43, 1 }
  0x65   : > { %v670_v59 = vmax.f32 %v668_v39, %v669_v48  ;;  %v3115_v48 = vrot.slane %v2032_v17, 2  ;;  %v3116_v39 = vrot.slane %v2040_v47, 3  ;;  %v2268_v33 = vmax.f32 %v649_v58, %v650_v30 }
  0x66   : > { %v677_v44 = vmax.f32 %v675_v53, %v676_v32  ;;  %v2258_v27 = vunpack.c.l.bf16 %v3114_v40  ;;  %v2270_v53 = vmax.f32 %v656_v23, %v657_v41  ;;  %v2272_v49 = vmax.f32 %v663_v56, %v664_v62 }
  0x67   : > { %v671_v57 = vrot.slane %v670_v59, 1  ;;  %v2262_v55 = vunpack.c.l.bf16 %v3115_v48  ;;  %v2266_v52 = vunpack.c.l.bf16 %v3116_v39  ;;  %3117 = vst [vmem:[#allocation30_spill] sm:$0xff] %v2268_v33  ;;  %v3121_v43 = vunpack.c.l.bf16 %v1765_v11 }
  0x68   : > { %3118 = vst [vmem:[#allocation31_spill] sm:$0xff] %v2270_v53  ;;  %v708_v17 = vsel %vm644_vm5, %v2076_v0, -inf  ;;  %v715_v47 = vsel %vm644_vm5, %v2080_v45, -inf  ;;  %v722_v5 = vsel %vm644_vm5, %v2084_v2, -inf  ;;  %v678_v1 = vrot.slane %v677_v44, 1 }
  0x69   : > { %3119 = vst [vmem:[#allocation32_spill] sm:$0xff] %v2272_v49  ;;  %v2274_v34 = vmax.f32 %v670_v59, %v671_v57  ;;  %v701_v42 = vsel %vm644_vm5, %v3121_v43, -inf  ;;  %v685_v23 = vrot.slane %v684_v35, 1  ;;  %v692_v6 = vrot.slane %v691_v16, 1 }
  0x6a   : > { %v699_v56 = vrot.slane %v698_v25, 1  ;;  %v702_v29 = vrot.slane %v701_v42, 4  ;;  %v709_v9 = vrot.slane %v708_v17, 4  ;;  %v716_v10 = vrot.slane %v715_v47, 4 }
  0x6b   : > { %3120 = vst [vmem:[#allocation33_spill] sm:$0xff] %v2274_v34  ;;  %v723_v54 = vrot.slane %v722_v5, 4  ;;  %v3122_v11 = vunpack.c.l.bf16 %v1790_v22  ;;  %v736_v0 = vsel %vm644_vm5, %v2089_v63, -inf  ;;  %v743_v45 = vsel %vm644_vm5, %v2093_v60, -inf }
  0x6c   : > { %v750_v2 = vsel %vm644_vm5, %v2097_v61, -inf  ;;  %v703_v58 = vmax.f32 %v701_v42, %v702_v29  ;;  %v710_v59 = vmax.f32 %v708_v17, %v709_v9  ;;  %v717_v32 = vmax.f32 %v715_v47, %v716_v10 }
  0x6d   : > { %v729_v46 = vsel %vm644_vm5, %v3122_v11, -inf  ;;  %v724_v37 = vmax.f32 %v722_v5, %v723_v54  ;;  %v737_v26 = vrot.slane %v736_v0, 4  ;;  %v744_v30 = vrot.slane %v743_v45, 4 }
  0x6e   : > { %v730_v51 = vrot.slane %v729_v46, 4  ;;  %v751_v41 = vrot.slane %v750_v2, 4  ;;  %v704_v22 = vrot.slane %v703_v58, 2  ;;  %v711_v62 = vrot.slane %v710_v59, 2 }
  0x6f   : > { %v718_v57 = vrot.slane %v717_v32, 2  ;;  %v725_v40 = vrot.slane %v724_v37, 2  ;;  %v738_v63 = vmax.f32 %v736_v0, %v737_v26  ;;  %v745_v39 = vmax.f32 %v743_v45, %v744_v30 }
  0x70   : > { %v731_v48 = vmax.f32 %v729_v46, %v730_v51  ;;  %v752_v43 = vmax.f32 %v750_v2, %v751_v41  ;;  %v705_v60 = vmax.f32 %v703_v58, %v704_v22  ;;  %v712_v11 = vmax.f32 %v710_v59, %v711_v62 }
  0x71   : > { %v719_v21 = vmax.f32 %v717_v32, %v718_v57  ;;  %v726_v61 = vmax.f32 %v724_v37, %v725_v40  ;;  %v739_v17 = vrot.slane %v738_v63, 2  ;;  %v746_v47 = vrot.slane %v745_v39, 2 }
  0x72   : > { %v732_v42 = vrot.slane %v731_v48, 2  ;;  %v753_v5 = vrot.slane %v752_v43, 2  ;;  %v706_v29 = vrot.slane %v705_v60, 1  ;;  %v713_v9 = vrot.slane %v712_v11, 1 }
  0x73   : > { %v720_v10 = vrot.slane %v719_v21, 1  ;;  %v727_v54 = vrot.slane %v726_v61, 1  ;;  %v740_v49 = vmax.f32 %v738_v63, %v739_v17  ;;  %v747_v53 = vmax.f32 %v745_v39, %v746_v47 }
  0x74   : > { %v733_v34 = vmax.f32 %v731_v48, %v732_v42  ;;  %v754_v33 = vmax.f32 %v752_v43, %v753_v5  ;;  %v2294_v46 = vmax.f32 %v677_v44, %v678_v1  ;;  %v2296_v0 = vmax.f32 %v684_v35, %v685_v23 }
  0x75   : > { %v2298_v45 = vmax.f32 %v691_v16, %v692_v6  ;;  %v2300_v2 = vmax.f32 %v698_v25, %v699_v56  ;;  %v2302_v58 = vmax.f32 %v705_v60, %v706_v29  ;;  %v2304_v59 = vmax.f32 %v712_v11, %v713_v9 }
  0x76   : > { %v2306_v32 = vmax.f32 %v719_v21, %v720_v10  ;;  %v2308_v37 = vmax.f32 %v726_v61, %v727_v54  ;;  %v3123_v51 = vunpack.c.l.bf16 %v1807_v31  ;;  %v764_v35 = vsel %vm644_vm5, %v2102_v18, -inf }
  0x77   : > { %v771_v16 = vsel %vm644_vm5, %v2106_v7, -inf  ;;  %v778_v25 = vsel %vm644_vm5, %v2110_v8, -inf  ;;  %v734_v44 = vrot.slane %v733_v34, 1  ;;  %v741_v1 = vrot.slane %v740_v49, 1 }
  0x78   : > { %v757_v26 = vsel %vm644_vm5, %v3123_v51, -inf  ;;  %v748_v23 = vrot.slane %v747_v53, 1  ;;  %v755_v21 = vrot.slane %v754_v33, 1  ;;  %v765_v56 = vrot.slane %v764_v35, 4 }
  0x79   : > { %v758_v6 = vrot.slane %v757_v26, 4  ;;  %v772_v30 = vrot.slane %v771_v16, 4  ;;  %v779_v41 = vrot.slane %v778_v25, 4  ;;  %v3124_v31 = vunpack.c.l.bf16 %v1826_v36 }
  0x7a   : > { %v792_v18 = vsel %vm644_vm5, %v2115_v3, -inf  ;;  %v799_v7 = vsel %vm644_vm5, %v2119_v14, -inf  ;;  %v806_v8 = vsel %vm644_vm5, %v2123_v15, -inf  ;;  %v766_v57 = vmax.f32 %v764_v35, %v765_v56 }
  0x7b   : > { %v785_v22 = vsel %vm644_vm5, %v3124_v31, -inf  ;;  %v759_v62 = vmax.f32 %v757_v26, %v758_v6  ;;  %v773_v40 = vmax.f32 %v771_v16, %v772_v30  ;;  %v780_v48 = vmax.f32 %v778_v25, %v779_v41 }
  0x7c   : > { %v786_v63 = vrot.slane %v785_v22, 4  ;;  %v793_v39 = vrot.slane %v792_v18, 4  ;;  %v800_v43 = vrot.slane %v799_v7, 4  ;;  %v807_v60 = vrot.slane %v806_v8, 4 }
  0x7d   : > { %v760_v36 = vrot.slane %v759_v62, 2  ;;  %v767_v11 = vrot.slane %v766_v57, 2  ;;  %v774_v61 = vrot.slane %v773_v40, 2  ;;  %v781_v42 = vrot.slane %v780_v48, 2 }
  0x7e   : > { %v787_v17 = vmax.f32 %v785_v22, %v786_v63  ;;  %v794_v3 = vmax.f32 %v792_v18, %v793_v39  ;;  %v801_v47 = vmax.f32 %v799_v7, %v800_v43  ;;  %v808_v5 = vmax.f32 %v806_v8, %v807_v60 }
  0x7f   : > { %v761_v14 = vmax.f32 %v759_v62, %v760_v36  ;;  %v768_v29 = vmax.f32 %v766_v57, %v767_v11  ;;  %v775_v9 = vmax.f32 %v773_v40, %v774_v61  ;;  %v782_v15 = vmax.f32 %v780_v48, %v781_v42 }
  0x80   : > { %v788_v10 = vrot.slane %v787_v17, 2  ;;  %v795_v54 = vrot.slane %v794_v3, 2  ;;  %v802_v51 = vrot.slane %v801_v47, 2  ;;  %v809_v26 = vrot.slane %v808_v5, 2 }
  0x81   : > { %v762_v35 = vrot.slane %v761_v14, 1  ;;  %v769_v16 = vrot.slane %v768_v29, 1  ;;  %v776_v25 = vrot.slane %v775_v9, 1  ;;  %v783_v6 = vrot.slane %v782_v15, 1 }
  0x82   : > { %v789_v56 = vmax.f32 %v787_v17, %v788_v10  ;;  %v796_v30 = vmax.f32 %v794_v3, %v795_v54  ;;  %v803_v41 = vmax.f32 %v801_v47, %v802_v51  ;;  %v810_v31 = vmax.f32 %v808_v5, %v809_v26 }
  0x83   : > { %v2328_v22 = vmax.f32 %v733_v34, %v734_v44  ;;  %v2330_v18 = vmax.f32 %v740_v49, %v741_v1  ;;  %v2332_v7 = vmax.f32 %v747_v53, %v748_v23  ;;  %v2334_v8 = vmax.f32 %v754_v33, %v755_v21 }
  0x84   : > { %v2336_v62 = vmax.f32 %v761_v14, %v762_v35  ;;  %v2338_v57 = vmax.f32 %v768_v29, %v769_v16  ;;  %v2340_v40 = vmax.f32 %v775_v9, %v776_v25  ;;  %v2342_v48 = vmax.f32 %v782_v15, %v783_v6 }
  0x85   : > { %v3125_v63 = vunpack.c.l.bf16 %v1830_v50  ;;  %v820_v49 = vsel %vm644_vm5, %v2128_v4, -inf  ;;  %v827_v53 = vsel %vm644_vm5, %v2132_v19, -inf  ;;  %v834_v33 = vsel %vm644_vm5, %v2136_v20, -inf }
  0x86   : > { %v790_v34 = vrot.slane %v789_v56, 1  ;;  %v797_v44 = vrot.slane %v796_v30, 1  ;;  %v804_v1 = vrot.slane %v803_v41, 1  ;;  %v811_v23 = vrot.slane %v810_v31, 1 }
  0x87   : > { %v813_v39 = vsel %vm644_vm5, %v3125_v63, -inf  ;;  %v821_v43 = vrot.slane %v820_v49, 4  ;;  %v828_v60 = vrot.slane %v827_v53, 4  ;;  %v835_v36 = vrot.slane %v834_v33, 4 }
  0x88   : > { %v814_v21 = vrot.slane %v813_v39, 4  ;;  %v3126_v50 = vunpack.c.l.bf16 %v1862_v38  ;;  %v848_v4 = vsel %vm644_vm5, %v2141_v12, -inf  ;;  %v855_v19 = vsel %vm644_vm5, %v2145_v24, -inf }
  0x89   : > { %v862_v20 = vsel %vm644_vm5, %v2149_v28, -inf  ;;  %v822_v42 = vmax.f32 %v820_v49, %v821_v43  ;;  %v829_v17 = vmax.f32 %v827_v53, %v828_v60  ;;  %v836_v3 = vmax.f32 %v834_v33, %v835_v36 }
  0x8a   : > { %v841_v11 = vsel %vm644_vm5, %v3126_v50, -inf  ;;  %v815_v61 = vmax.f32 %v813_v39, %v814_v21  ;;  %v849_v5 = vrot.slane %v848_v4, 4  ;;  %v856_v14 = vrot.slane %v855_v19, 4 }
  0x8b   : > { %v842_v47 = vrot.slane %v841_v11, 4  ;;  %v863_v29 = vrot.slane %v862_v20, 4  ;;  %v823_v9 = vrot.slane %v822_v42, 2  ;;  %v830_v15 = vrot.slane %v829_v17, 2 }
  0x8c   : > { %v816_v38 = vrot.slane %v815_v61, 2  ;;  %v837_v10 = vrot.slane %v836_v3, 2  ;;  %v850_v12 = vmax.f32 %v848_v4, %v849_v5  ;;  %v857_v51 = vmax.f32 %v855_v19, %v856_v14 }
  0x8d   : > { %v843_v54 = vmax.f32 %v841_v11, %v842_v47  ;;  %v864_v26 = vmax.f32 %v862_v20, %v863_v29  ;;  %v824_v35 = vmax.f32 %v822_v42, %v823_v9  ;;  %v831_v16 = vmax.f32 %v829_v17, %v830_v15  ;;  %v3135_v47 = vld [vmem:[#allocation2_spill] sm:$0xff] }
  0x8e   : > { %v817_v24 = vmax.f32 %v815_v61, %v816_v38  ;;  %v838_v28 = vmax.f32 %v836_v3, %v837_v10  ;;  %v851_v6 = vrot.slane %v850_v12, 2  ;;  %v858_v63 = vrot.slane %v857_v51, 2 }
  0x8f   : > { %v844_v25 = vrot.slane %v843_v54, 2  ;;  %v865_v39 = vrot.slane %v864_v26, 2  ;;  %v825_v53 = vrot.slane %v824_v35, 1  ;;  %v832_v33 = vrot.slane %v831_v16, 1 }
  0x90   : > { %v818_v49 = vrot.slane %v817_v24, 1  ;;  %v839_v21 = vrot.slane %v838_v28, 1  ;;  %v852_v60 = vmax.f32 %v850_v12, %v851_v6  ;;  %v859_v36 = vmax.f32 %v857_v51, %v858_v63  ;;  %v3140_v12 = vld [vmem:[#allocation3_spill] sm:$0xff] }
  0x91   : > { %v845_v43 = vmax.f32 %v843_v54, %v844_v25  ;;  %v866_v50 = vmax.f32 %v864_v26, %v865_v39  ;;  %v2362_v11 = vmax.f32 %v789_v56, %v790_v34  ;;  %v2364_v4 = vmax.f32 %v796_v30, %v797_v44  ;;  %v3137_v56 = vld [vmem:[#allocation17_spill] sm:$0xff]  ;;  %v3138_v34 = vld [vmem:[#allocation18_spill] sm:$0xff] }
  0x92   : > { %v2366_v19 = vmax.f32 %v803_v41, %v804_v1  ;;  %v2368_v20 = vmax.f32 %v810_v31, %v811_v23  ;;  %v2370_v61 = vmax.f32 %v817_v24, %v818_v49  ;;  %v2372_v42 = vmax.f32 %v824_v35, %v825_v53  ;;  %v3139_v31 = vld [vmem:[#allocation19_spill] sm:$0xff]  ;;  %v3142_v24 = vld [vmem:[#allocation20_spill] sm:$0xff]  ;;  %v3144_v25 = vld [vmem:[#allocation22_spill] sm:$0xff] }
  0x93   : > { %3127 = vst [vmem:[#allocation34_spill] sm:$0xff] %v2362_v11  ;;  %v2374_v17 = vmax.f32 %v831_v16, %v832_v33  ;;  %v2376_v3 = vmax.f32 %v838_v28, %v839_v21  ;;  %v3136_v5 = vunpack.c.l.bf16 %v3135_v47  ;;  %v876_v30 = vsel %vm644_vm5, %v3137_v56, -inf  ;;  %v3143_v16 = vld [vmem:[#allocation21_spill] sm:$0xff] }
  0x94   : > { %3128 = vst [vmem:[#allocation35_spill] sm:$0xff] %v2364_v4  ;;  %v883_v41 = vsel %vm644_vm5, %v3138_v34, -inf  ;;  %v890_v44 = vsel %vm644_vm5, %v3139_v31, -inf  ;;  %v846_v1 = vrot.slane %v845_v43, 1  ;;  %v853_v23 = vrot.slane %v852_v60, 1 }
  0x95   : > { %3129 = vst [vmem:[#allocation36_spill] sm:$0xff] %v2366_v19  ;;  %v869_v14 = vsel %vm644_vm5, %v3136_v5, -inf  ;;  %v860_v29 = vrot.slane %v859_v36, 1  ;;  %v867_v38 = vrot.slane %v866_v50, 1  ;;  %v877_v15 = vrot.slane %v876_v30, 4 }
  0x96   : > { %3130 = vst [vmem:[#allocation37_spill] sm:$0xff] %v2368_v20  ;;  %v870_v9 = vrot.slane %v869_v14, 4  ;;  %v884_v10 = vrot.slane %v883_v41, 4  ;;  %v891_v54 = vrot.slane %v890_v44, 4  ;;  %v3141_v51 = vunpack.c.l.bf16 %v3140_v12 }
  0x97   : > { %3131 = vst [vmem:[#allocation38_spill] sm:$0xff] %v2370_v61  ;;  %v904_v35 = vsel %vm644_vm5, %v3142_v24, -inf  ;;  %v911_v28 = vsel %vm644_vm5, %v3143_v16, -inf  ;;  %v918_v6 = vsel %vm644_vm5, %v3144_v25, -inf  ;;  %v878_v39 = vmax.f32 %v876_v30, %v877_v15 }
  0x98   : > { %3132 = vst [vmem:[#allocation39_spill] sm:$0xff] %v2372_v42  ;;  %v897_v26 = vsel %vm644_vm5, %v3141_v51, -inf  ;;  %v871_v63 = vmax.f32 %v869_v14, %v870_v9  ;;  %v885_v49 = vmax.f32 %v883_v41, %v884_v10  ;;  %v892_v53 = vmax.f32 %v890_v44, %v891_v54 }
  0x99   : > { %3133 = vst [vmem:[#allocation40_spill] sm:$0xff] %v2374_v17  ;;  %v898_v33 = vrot.slane %v897_v26, 4  ;;  %v905_v21 = vrot.slane %v904_v35, 4  ;;  %v912_v47 = vrot.slane %v911_v28, 4  ;;  %v919_v5 = vrot.slane %v918_v6, 4 }
  0x9a   : > { %3134 = vst [vmem:[#allocation41_spill] sm:$0xff] %v2376_v3  ;;  %v872_v56 = vrot.slane %v871_v63, 2  ;;  %v879_v34 = vrot.slane %v878_v39, 2  ;;  %v886_v31 = vrot.slane %v885_v49, 2  ;;  %v893_v12 = vrot.slane %v892_v53, 2 }
  0x9b   : > { %v899_v51 = vmax.f32 %v897_v26, %v898_v33  ;;  %v906_v24 = vmax.f32 %v904_v35, %v905_v21  ;;  %v913_v3 = vmax.f32 %v911_v28, %v912_v47  ;;  %v920_v17 = vmax.f32 %v918_v6, %v919_v5  ;;  %v3153_v33 = vld [vmem:[#allocation4_spill] sm:$0xff] }
  0x9c   : > { %v873_v16 = vmax.f32 %v871_v63, %v872_v56  ;;  %v880_v42 = vmax.f32 %v878_v39, %v879_v34  ;;  %v887_v61 = vmax.f32 %v885_v49, %v886_v31  ;;  %v894_v25 = vmax.f32 %v892_v53, %v893_v12  ;;  %v3158_v34 = vld [vmem:[#allocation6_spill] sm:$0xff] }
  0x9d   : > { %v900_v14 = vrot.slane %v899_v51, 2  ;;  %v907_v30 = vrot.slane %v906_v24, 2  ;;  %v914_v41 = vrot.slane %v913_v3, 2  ;;  %v921_v44 = vrot.slane %v920_v17, 2 }
  0x9e   : > { %v874_v9 = vrot.slane %v873_v16, 1  ;;  %v881_v15 = vrot.slane %v880_v42, 1  ;;  %v888_v10 = vrot.slane %v887_v61, 1  ;;  %v895_v54 = vrot.slane %v894_v25, 1 }
  0x9f   : > { %v901_v20 = vmax.f32 %v899_v51, %v900_v14  ;;  %v908_v19 = vmax.f32 %v906_v24, %v907_v30  ;;  %v915_v4 = vmax.f32 %v913_v3, %v914_v41  ;;  %v922_v11 = vmax.f32 %v920_v17, %v921_v44  ;;  %v3156_v3 = vld [vmem:[#allocation24_spill] sm:$0xff]  ;;  %v3160_v51 = vld [vmem:[#allocation26_spill] sm:$0xff]  ;;  %v3162_v14 = vld [vmem:[#allocation5_spill] sm:$0xff] }
  0xa0   : > { %v2396_v26 = vmax.f32 %v845_v43, %v846_v1  ;;  %v2398_v35 = vmax.f32 %v852_v60, %v853_v23  ;;  %v2400_v28 = vmax.f32 %v859_v36, %v860_v29  ;;  %v2402_v6 = vmax.f32 %v866_v50, %v867_v38  ;;  %v3155_v43 = vld [vmem:[#allocation23_spill] sm:$0xff]  ;;  %v3157_v50 = vld [vmem:[#allocation25_spill] sm:$0xff] }
  0xa1   : > { %v2404_v63 = vmax.f32 %v873_v16, %v874_v9  ;;  %v2406_v39 = vmax.f32 %v880_v42, %v881_v15  ;;  %v2408_v49 = vmax.f32 %v887_v61, %v888_v10  ;;  %v2410_v53 = vmax.f32 %v894_v25, %v895_v54  ;;  %v3161_v16 = vld [vmem:[#allocation27_spill] sm:$0xff] }
  0xa2   : > { %3145 = vst [vmem:[#allocation2_spill] sm:$0xff] %v2396_v26  ;;  %v3154_v21 = vunpack.c.l.bf16 %v3153_v33  ;;  %v932_v60 = vsel %vm644_vm5, %v3155_v43, -inf  ;;  %v939_v36 = vsel %vm644_vm5, %v3156_v3, -inf  ;;  %v946_v1 = vsel %vm644_vm5, %v3157_v50, -inf }
  0xa3   : > { %3146 = vst [vmem:[#allocation17_spill] sm:$0xff] %v2398_v35  ;;  %v902_v23 = vrot.slane %v901_v20, 1  ;;  %v909_v42 = vrot.slane %v908_v19, 1  ;;  %v916_v29 = vrot.slane %v915_v4, 1  ;;  %v923_v61 = vrot.slane %v922_v11, 1 }
  0xa4   : > { %3147 = vst [vmem:[#allocation18_spill] sm:$0xff] %v2400_v28  ;;  %v925_v17 = vsel %vm644_vm5, %v3154_v21, -inf  ;;  %v933_v47 = vrot.slane %v932_v60, 4  ;;  %v940_v5 = vrot.slane %v939_v36, 4  ;;  %v947_v56 = vrot.slane %v946_v1, 4 }
  0xa5   : > { %3148 = vst [vmem:[#allocation19_spill] sm:$0xff] %v2402_v6  ;;  %v926_v38 = vrot.slane %v925_v17, 4  ;;  %v3159_v31 = vunpack.c.l.bf16 %v3158_v34  ;;  %v960_v24 = vsel %vm644_vm5, %v3160_v51, -inf  ;;  %v967_v25 = vsel %vm644_vm5, %v3161_v16, -inf }
  0xa6   : > { %3149 = vst [vmem:[#allocation3_spill] sm:$0xff] %v2404_v63  ;;  %v974_v30 = vsel %vm644_vm5, %v3162_v14, -inf  ;;  %v934_v44 = vmax.f32 %v932_v60, %v933_v47  ;;  %v941_v9 = vmax.f32 %v939_v36, %v940_v5  ;;  %v948_v15 = vmax.f32 %v946_v1, %v947_v56 }
  0xa7   : > { %3150 = vst [vmem:[#allocation20_spill] sm:$0xff] %v2406_v39  ;;  %v953_v12 = vsel %vm644_vm5, %v3159_v31, -inf  ;;  %v927_v41 = vmax.f32 %v925_v17, %v926_v38  ;;  %v961_v54 = vrot.slane %v960_v24, 4  ;;  %v968_v33 = vrot.slane %v967_v25, 4 }
  0xa8   : > { %3151 = vst [vmem:[#allocation21_spill] sm:$0xff] %v2408_v49  ;;  %v954_v10 = vrot.slane %v953_v12, 4  ;;  %v975_v21 = vrot.slane %v974_v30, 4  ;;  %v935_v3 = vrot.slane %v934_v44, 2  ;;  %v942_v50 = vrot.slane %v941_v9, 2 }
  0xa9   : > { %3152 = vst [vmem:[#allocation22_spill] sm:$0xff] %v2410_v53  ;;  %v928_v43 = vrot.slane %v927_v41, 2  ;;  %v949_v34 = vrot.slane %v948_v15, 2  ;;  %v962_v51 = vmax.f32 %v960_v24, %v961_v54  ;;  %v969_v53 = vmax.f32 %v967_v25, %v968_v33 }
  0xaa   : > { %v955_v31 = vmax.f32 %v953_v12, %v954_v10  ;;  %v976_v49 = vmax.f32 %v974_v30, %v975_v21  ;;  %v936_v39 = vmax.f32 %v934_v44, %v935_v3  ;;  %v943_v63 = vmax.f32 %v941_v9, %v942_v50  ;;  %v3171_v10 = vld [vmem:[#allocation10_spill] sm:$0xff]  ;;  %v3176_v3 = vld [vmem:[#allocation15_spill] sm:$0xff] }
  0xab   : > { %v929_v16 = vmax.f32 %v927_v41, %v928_v43  ;;  %v950_v14 = vmax.f32 %v948_v15, %v949_v34  ;;  %v963_v60 = vrot.slane %v962_v51, 2  ;;  %v970_v36 = vrot.slane %v969_v53, 2 }
  0xac   : > { %v956_v17 = vrot.slane %v955_v31, 2  ;;  %v977_v1 = vrot.slane %v976_v49, 2  ;;  %v937_v47 = vrot.slane %v936_v39, 1  ;;  %v944_v5 = vrot.slane %v943_v63, 1 }
  0xad   : > { %v930_v38 = vrot.slane %v929_v16, 1  ;;  %v951_v56 = vrot.slane %v950_v14, 1  ;;  %v964_v28 = vmax.f32 %v962_v51, %v963_v60  ;;  %v971_v35 = vmax.f32 %v969_v53, %v970_v36  ;;  %v3174_v53 = vld [vmem:[#allocation8_spill] sm:$0xff] }
  0xae   : > { %v957_v6 = vmax.f32 %v955_v31, %v956_v17  ;;  %v978_v26 = vmax.f32 %v976_v49, %v977_v1  ;;  %v2430_v12 = vmax.f32 %v901_v20, %v902_v23  ;;  %v2432_v24 = vmax.f32 %v908_v19, %v909_v42  ;;  %v3173_v20 = vld [vmem:[#allocation7_spill] sm:$0xff]  ;;  %v3178_v31 = vld [vmem:[#allocation28_spill] sm:$0xff] }
  0xaf   : > { %v2434_v25 = vmax.f32 %v915_v4, %v916_v29  ;;  %v2436_v30 = vmax.f32 %v922_v11, %v923_v61  ;;  %v2438_v41 = vmax.f32 %v929_v16, %v930_v38  ;;  %v2440_v44 = vmax.f32 %v936_v39, %v937_v47  ;;  %v3175_v11 = vld [vmem:[#allocation9_spill] sm:$0xff]  ;;  %v3179_v16 = vld [vmem:[#allocation11_spill] sm:$0xff]  ;;  %v3180_v17 = vld [vmem:[#allocation12_spill] sm:$0xff] }
  0xb0   : > { %3163 = vst [vmem:[#allocation4_spill] sm:$0xff] %v2430_v12  ;;  %v2442_v9 = vmax.f32 %v943_v63, %v944_v5  ;;  %v2444_v15 = vmax.f32 %v950_v14, %v951_v56  ;;  %v3172_v54 = vunpack.c.l.bf16 %v3171_v10  ;;  %v988_v19 = vsel %vm644_vm5, %v3173_v20, -inf }
  0xb1   : > { %3164 = vst [vmem:[#allocation23_spill] sm:$0xff] %v2432_v24  ;;  %v995_v4 = vsel %vm644_vm5, %v3174_v53, -inf  ;;  %v1002_v23 = vsel %vm644_vm5, %v3175_v11, -inf  ;;  %v958_v42 = vrot.slane %v957_v6, 1  ;;  %v965_v39 = vrot.slane %v964_v28, 1 }
  0xb2   : > { %3165 = vst [vmem:[#allocation24_spill] sm:$0xff] %v2434_v25  ;;  %v981_v49 = vsel %vm644_vm5, %v3172_v54, -inf  ;;  %v972_v29 = vrot.slane %v971_v35, 1  ;;  %v979_v63 = vrot.slane %v978_v26, 1  ;;  %v989_v33 = vrot.slane %v988_v19, 4 }
  0xb3   : > { %3166 = vst [vmem:[#allocation25_spill] sm:$0xff] %v2436_v30  ;;  %v982_v61 = vrot.slane %v981_v49, 4  ;;  %v996_v21 = vrot.slane %v995_v4, 4  ;;  %v1003_v43 = vrot.slane %v1002_v23, 4  ;;  %v3177_v50 = vunpack.c.l.bf16 %v3176_v3 }
  0xb4   : > { %3167 = vst [vmem:[#allocation6_spill] sm:$0xff] %v2438_v41  ;;  %v1016_v51 = vsel %vm644_vm5, %v3178_v31, -inf  ;;  %v1023_v14 = vsel %vm644_vm5, %v3179_v16, -inf  ;;  %v1030_v60 = vsel %vm644_vm5, %v3180_v17, -inf  ;;  %v990_v1 = vmax.f32 %v988_v19, %v989_v33 }
  0xb5   : > { %3168 = vst [vmem:[#allocation26_spill] sm:$0xff] %v2440_v44  ;;  %v1009_v34 = vsel %vm644_vm5, %v3177_v50, -inf  ;;  %v983_v36 = vmax.f32 %v981_v49, %v982_v61  ;;  %v997_v38 = vmax.f32 %v995_v4, %v996_v21  ;;  %v1004_v47 = vmax.f32 %v1002_v23, %v1003_v43 }
  0xb6   : > { %3169 = vst [vmem:[#allocation27_spill] sm:$0xff] %v2442_v9  ;;  %v1010_v5 = vrot.slane %v1009_v34, 4  ;;  %v1017_v56 = vrot.slane %v1016_v51, 4  ;;  %v1024_v10 = vrot.slane %v1023_v14, 4  ;;  %v1031_v54 = vrot.slane %v1030_v60, 4 }
  0xb7   : > { %3170 = vst [vmem:[#allocation5_spill] sm:$0xff] %v2444_v15  ;;  %v984_v20 = vrot.slane %v983_v36, 2  ;;  %v991_v53 = vrot.slane %v990_v1, 2  ;;  %v998_v11 = vrot.slane %v997_v38, 2  ;;  %v1005_v3 = vrot.slane %v1004_v47, 2 }
  0xb8   : > { %v1011_v50 = vmax.f32 %v1009_v34, %v1010_v5  ;;  %v1018_v31 = vmax.f32 %v1016_v51, %v1017_v56  ;;  %v1025_v15 = vmax.f32 %v1023_v14, %v1024_v10  ;;  %v1032_v9 = vmax.f32 %v1030_v60, %v1031_v54  ;;  %v3185_v5 = vld [vmem:[#allocation16_spill] sm:$0xff] }
  0xb9   : > { %v985_v16 = vmax.f32 %v983_v36, %v984_v20  ;;  %v992_v44 = vmax.f32 %v990_v1, %v991_v53  ;;  %v999_v41 = vmax.f32 %v997_v38, %v998_v11  ;;  %v1006_v17 = vmax.f32 %v1004_v47, %v1005_v3 }
  0xba   : > { %v1012_v49 = vrot.slane %v1011_v50, 2  ;;  %v1019_v19 = vrot.slane %v1018_v31, 2  ;;  %v1026_v4 = vrot.slane %v1025_v15, 2  ;;  %v1033_v23 = vrot.slane %v1032_v9, 2 }
  0xbb   : > { %v986_v61 = vrot.slane %v985_v16, 1  ;;  %v993_v33 = vrot.slane %v992_v44, 1  ;;  %v1000_v21 = vrot.slane %v999_v41, 1  ;;  %v1007_v43 = vrot.slane %v1006_v17, 1 }
  0xbc   : > { %v1013_v30 = vmax.f32 %v1011_v50, %v1012_v49  ;;  %v1020_v25 = vmax.f32 %v1018_v31, %v1019_v19  ;;  %v1027_v24 = vmax.f32 %v1025_v15, %v1026_v4  ;;  %v1034_v12 = vmax.f32 %v1032_v9, %v1033_v23  ;;  %v3188_v15 = vld [vmem:[#allocation13_spill] sm:$0xff] }
  0xbd   : > { %v2464_v34 = vmax.f32 %v957_v6, %v958_v42  ;;  %v2466_v51 = vmax.f32 %v964_v28, %v965_v39  ;;  %v2468_v14 = vmax.f32 %v971_v35, %v972_v29  ;;  %v2470_v60 = vmax.f32 %v978_v26, %v979_v63  ;;  %v3187_v6 = vld [vmem:[#allocation29_spill] sm:$0xff]  ;;  %v3189_v26 = vld [vmem:[#allocation14_spill] sm:$0xff] }
  0xbe   : > { %v2472_v36 = vmax.f32 %v985_v16, %v986_v61  ;;  %v2474_v1 = vmax.f32 %v992_v44, %v993_v33  ;;  %v2476_v38 = vmax.f32 %v999_v41, %v1000_v21  ;;  %v2478_v47 = vmax.f32 %v1006_v17, %v1007_v43 }
  0xbf   : > { %v3186_v56 = vunpack.c.l.bf16 %v3185_v5  ;;  %v1044_v28 = vsel %vm644_vm5, %v3187_v6, -inf  ;;  %v1051_v35 = vsel %vm644_vm5, %v3188_v15, -inf  ;;  %v1058_v42 = vsel %vm644_vm5, %v3189_v26, -inf }
  0xc0   : > { %3181 = vst [vmem:[#allocation10_spill] sm:$0xff] %v2472_v36  ;;  %v1014_v39 = vrot.slane %v1013_v30, 1  ;;  %v1021_v44 = vrot.slane %v1020_v25, 1  ;;  %v1028_v29 = vrot.slane %v1027_v24, 1  ;;  %v1035_v41 = vrot.slane %v1034_v12, 1 }
  0xc1   : > { %3182 = vst [vmem:[#allocation7_spill] sm:$0xff] %v2474_v1  ;;  %v1037_v9 = vsel %vm644_vm5, %v3186_v56, -inf  ;;  %v1045_v10 = vrot.slane %v1044_v28, 4  ;;  %v1052_v54 = vrot.slane %v1051_v35, 4  ;;  %v1059_v20 = vrot.slane %v1058_v42, 4 }
  0xc2   : > { %3183 = vst [vmem:[#allocation8_spill] sm:$0xff] %v2476_v38  ;;  %v1038_v63 = vrot.slane %v1037_v9, 4  ;;  %v3190_v53 = vunpack.c.l.bf16 %v2048_v13  ;;  %v1072_v3 = vsel %vm644_vm5, %v2258_v27, -inf  ;;  %v1079_v50 = vsel %vm644_vm5, %v2262_v55, -inf }
  0xc3   : > { %3184 = vst [vmem:[#allocation9_spill] sm:$0xff] %v2478_v47  ;;  %v1086_v31 = vsel %vm644_vm5, %v2266_v52, -inf  ;;  %v1046_v17 = vmax.f32 %v1044_v28, %v1045_v10  ;;  %v1053_v49 = vmax.f32 %v1051_v35, %v1052_v54  ;;  %v1060_v19 = vmax.f32 %v1058_v42, %v1059_v20 }
  0xc4   : > { %v1065_v11 = vsel %vm644_vm5, %v3190_v53, -inf  ;;  %v1039_v16 = vmax.f32 %v1037_v9, %v1038_v63  ;;  %v1073_v23 = vrot.slane %v1072_v3, 4  ;;  %v1080_v61 = vrot.slane %v1079_v50, 4 }
  0xc5   : > { %v1066_v4 = vrot.slane %v1065_v11, 4  ;;  %v1087_v33 = vrot.slane %v1086_v31, 4  ;;  %v1047_v21 = vrot.slane %v1046_v17, 2  ;;  %v1054_v43 = vrot.slane %v1053_v49, 2 }
  0xc6   : > { %v1040_v13 = vrot.slane %v1039_v16, 2  ;;  %v1061_v5 = vrot.slane %v1060_v19, 2  ;;  %v1074_v27 = vmax.f32 %v1072_v3, %v1073_v23  ;;  %v1081_v6 = vmax.f32 %v1079_v50, %v1080_v61 }
  0xc7   : > { %v1067_v56 = vmax.f32 %v1065_v11, %v1066_v4  ;;  %v1088_v15 = vmax.f32 %v1086_v31, %v1087_v33  ;;  %v1048_v26 = vmax.f32 %v1046_v17, %v1047_v21  ;;  %v1055_v53 = vmax.f32 %v1053_v49, %v1054_v43 }
  0xc8   : > { %v1041_v55 = vmax.f32 %v1039_v16, %v1040_v13  ;;  %v1062_v52 = vmax.f32 %v1060_v19, %v1061_v5  ;;  %v1075_v28 = vrot.slane %v1074_v27, 2  ;;  %v1082_v35 = vrot.slane %v1081_v6, 2 }
  0xc9   : > { %v1068_v9 = vrot.slane %v1067_v56, 2  ;;  %v1089_v42 = vrot.slane %v1088_v15, 2  ;;  %v1049_v10 = vrot.slane %v1048_v26, 1  ;;  %v1056_v54 = vrot.slane %v1055_v53, 1 }
  0xca   : > { %v1042_v63 = vrot.slane %v1041_v55, 1  ;;  %v1063_v20 = vrot.slane %v1062_v52, 1  ;;  %v1076_v38 = vmax.f32 %v1074_v27, %v1075_v28  ;;  %v1083_v1 = vmax.f32 %v1081_v6, %v1082_v35  ;;  %v3224_v6 = vld [vmem:[#allocation8_spill] sm:$0xff]  ;;  %v3225_v27 = vld [vmem:[#allocation9_spill] sm:$0xff] }
  0xcb   : > { %v1069_v47 = vmax.f32 %v1067_v56, %v1068_v9  ;;  %v1090_v36 = vmax.f32 %v1088_v15, %v1089_v42  ;;  %v2498_v11 = vmax.f32 %v1013_v30, %v1014_v39  ;;  %v2500_v3 = vmax.f32 %v1020_v25, %v1021_v44  ;;  %v3193_v30 = vld [vmem:[#allocation30_spill] sm:$0xff]  ;;  %v3194_v39 = vld [vmem:[#allocation31_spill] sm:$0xff]  ;;  %v3214_v56 = vld [vmem:[#allocation4_spill] sm:$0xff] }
  0xcc   : > { %v2502_v50 = vmax.f32 %v1027_v24, %v1028_v29  ;;  %v2504_v31 = vmax.f32 %v1034_v12, %v1035_v41  ;;  %v1077_v17 = vrot.slane %v1076_v38, 1  ;;  %v1084_v49 = vrot.slane %v1083_v1, 1  ;;  %v3195_v12 = vld [vmem:[#allocation32_spill] sm:$0xff]  ;;  %v3196_v29 = vld [vmem:[#allocation33_spill] sm:$0xff]  ;;  %v3202_v9 = vld [vmem:[#allocation38_spill] sm:$0xff] }
  0xcd   : > { %v1070_v16 = vrot.slane %v1069_v47, 1  ;;  %v1091_v19 = vrot.slane %v1090_v36, 1  ;;  %v2506_v4 = vmax.f32 %v1041_v55, %v1042_v63  ;;  %v2508_v23 = vmax.f32 %v1048_v26, %v1049_v10  ;;  %v3198_v63 = vld [vmem:[#allocation34_spill] sm:$0xff]  ;;  %v3205_v26 = vld [vmem:[#allocation41_spill] sm:$0xff]  ;;  %v3215_v41 = vld [vmem:[#allocation23_spill] sm:$0xff] }
  0xce   : > { %3191 = vst [vmem:[#allocation15_spill] sm:$0xff] %v2502_v50  ;;  %v2510_v61 = vmax.f32 %v1055_v53, %v1056_v54  ;;  %v2512_v33 = vmax.f32 %v1062_v52, %v1063_v20  ;;  %v2524_v21 = vmax.f32 %v1076_v38, %v1077_v17  ;;  %v2526_v43 = vmax.f32 %v1083_v1, %v1084_v49  ;;  %v3199_v54 = vld [vmem:[#allocation35_spill] sm:$0xff]  ;;  %v3201_v49 = vld [vmem:[#allocation37_spill] sm:$0xff]  ;;  %v3204_v53 = vld [vmem:[#allocation40_spill] sm:$0xff] }
  0xcf   : > { %3192 = vst [vmem:[#allocation28_spill] sm:$0xff] %v2504_v31  ;;  %v2522_v13 = vmax.f32 %v1069_v47, %v1070_v16  ;;  %v2528_v5 = vmax.f32 %v1090_v36, %v1091_v19  ;;  %v3200_v16 = vld [vmem:[#allocation36_spill] sm:$0xff]  ;;  %v3203_v52 = vld [vmem:[#allocation39_spill] sm:$0xff]  ;;  %v3206_v55 = vld [vmem:[#allocation2_spill] sm:$0xff]  ;;  %v1149_v20 = vpack.c.bf16 %v2506_v4, %v2506_v4  ;;  %v1150_v17 = vpack.c.bf16 %v2508_v23, %v2508_v23 }
  0xd0   : > { %v3207_v47 = vld [vmem:[#allocation17_spill] sm:$0xff]  ;;  %v3208_v36 = vld [vmem:[#allocation18_spill] sm:$0xff]  ;;  %v3209_v1 = vld [vmem:[#allocation19_spill] sm:$0xff]  ;;  %v1151_v19 = vpack.c.bf16 %v2510_v61, %v2510_v61  ;;  %v1152_v28 = vpack.c.bf16 %v2512_v33, %v2512_v33  ;;  %v3226_v23 = vpack.c.bf16 %v3193_v30, %v3193_v30  ;;  %v3227_v61 = vpack.c.bf16 %v3194_v39, %v3194_v39 }
  0xd1   : > { %3197 = vst [vmem:[#allocation11_spill] sm:$0xff] %v2528_v5  ;;  %v3210_v38 = vld [vmem:[#allocation3_spill] sm:$0xff]  ;;  %v3216_v44 = vld [vmem:[#allocation24_spill] sm:$0xff]  ;;  %v3217_v24 = vld [vmem:[#allocation25_spill] sm:$0xff]  ;;  %v1153_v35 = vpack.c.bf16 %v2522_v13, %v2522_v13  ;;  %v3228_v13 = vpack.c.bf16 %v3195_v12, %v3195_v12  ;;  %v3229_v42 = vpack.c.bf16 %v3196_v29, %v3196_v29  ;;  %v3230_v4 = vpack.c.bf16 %v2294_v46, %v2294_v46 }
  0xd2   : > { %v3222_v25 = vld [vmem:[#allocation10_spill] sm:$0xff]  ;;  %v3223_v15 = vld [vmem:[#allocation7_spill] sm:$0xff]  ;;  %v1221_v31 = vunpack.c.l.b16 %v3226_v23  ;;  %v1222_v33 = vunpack.c.l.b16 %v3227_v61  ;;  %v3231_v30 = vpack.c.bf16 %v2296_v0, %v2296_v0  ;;  %v3232_v12 = vpack.c.bf16 %v2298_v45, %v2298_v45 }
  0xd3   : > { %v2659_v50 = vunpack.c.l.b16 %v3228_v13  ;;  %v2664_v10 = vunpack.c.l.b16 %v3229_v42  ;;  %v2669_v5 = vunpack.c.l.b16 %v3230_v4  ;;  %v3233_v29 = vpack.c.bf16 %v2300_v2, %v2300_v2 }
  0xd4   : > { %v2674_v39 = vunpack.c.l.b16 %v3231_v30  ;;  %v2679_v23 = vunpack.c.l.b16 %v3232_v12  ;;  %v3234_v46 = vpack.c.bf16 %v2302_v58, %v2302_v58  ;;  %v3235_v61 = vpack.c.bf16 %v2304_v59, %v2304_v59 }
  0xd5   : > { %v2684_v42 = vunpack.c.l.b16 %v3233_v29  ;;  %v3236_v13 = vpack.c.bf16 %v2306_v32, %v2306_v32  ;;  %v3237_v45 = vpack.c.bf16 %v2308_v37, %v2308_v37  ;;  %v3238_v2 = vpack.c.bf16 %v2328_v22, %v2328_v22 }
  0xd6   : > { %v1229_v4 = vunpack.c.l.b16 %v3234_v46  ;;  %v1230_v0 = vunpack.c.l.b16 %v3235_v61  ;;  %v3239_v58 = vpack.c.bf16 %v2330_v18, %v2330_v18  ;;  %v3240_v59 = vpack.c.bf16 %v2332_v7, %v2332_v7 }
  0xd7   : > { %v1231_v30 = vunpack.c.l.b16 %v3236_v13  ;;  %v2698_v12 = vunpack.c.l.b16 %v3237_v45  ;;  %v2703_v29 = vunpack.c.l.b16 %v3238_v2  ;;  %v3241_v37 = vpack.c.bf16 %v2334_v8, %v2334_v8 }
  0xd8   : > { %v2708_v46 = vunpack.c.l.b16 %v3239_v58  ;;  %v2713_v32 = vunpack.c.l.b16 %v3240_v59  ;;  %v3242_v22 = vpack.c.bf16 %v2336_v62, %v2336_v62  ;;  %v3243_v45 = vpack.c.bf16 %v2338_v57, %v2338_v57 }
  0xd9   : > { %v2718_v61 = vunpack.c.l.b16 %v3241_v37  ;;  %v3244_v2 = vpack.c.bf16 %v2340_v40, %v2340_v40  ;;  %v3245_v7 = vpack.c.bf16 %v2342_v48, %v2342_v48  ;;  %v3246_v8 = vpack.c.bf16 %v3198_v63, %v3198_v63 }
  0xda   : > { %v1237_v13 = vunpack.c.l.b16 %v3242_v22  ;;  %v1238_v18 = vunpack.c.l.b16 %v3243_v45  ;;  %v3247_v62 = vpack.c.bf16 %v3199_v54, %v3199_v54  ;;  %v3248_v57 = vpack.c.bf16 %v3200_v16, %v3200_v16 }
  0xdb   : > { %v1239_v58 = vunpack.c.l.b16 %v3244_v2  ;;  %v1240_v59 = vunpack.c.l.b16 %v3245_v7  ;;  %v1241_v37 = vunpack.c.l.b16 %v3246_v8  ;;  %v3250_v40 = vpack.c.bf16 %v3201_v49, %v3201_v49 }
  0xdc   : > { %v1242_v22 = vunpack.c.l.b16 %v3247_v62  ;;  %v2741_v45 = vunpack.c.l.b16 %v3248_v57  ;;  %v3252_v48 = vpack.c.bf16 %v3202_v9, %v3202_v9  ;;  %v3253_v63 = vpack.c.bf16 %v3203_v52, %v3203_v52 }
  0xdd   : > { %v2746_v2 = vunpack.c.l.b16 %v3250_v40  ;;  %v3254_v54 = vpack.c.bf16 %v3204_v53, %v3204_v53  ;;  %v3255_v16 = vpack.c.bf16 %v3205_v26, %v3205_v26  ;;  %v3256_v49 = vpack.c.bf16 %v3206_v55, %v3206_v55  ;;  %v3263_v55 = vld [vmem:[#allocation20_spill] sm:$0xff] }
  0xde   : > { %3249 = vst [vmem:[#allocation12_spill] sm:$0xff] %v2741_v45  ;;  %v1245_v7 = vunpack.c.l.b16 %v3252_v48  ;;  %v1246_v8 = vunpack.c.l.b16 %v3253_v63  ;;  %v3257_v9 = vpack.c.bf16 %v3207_v47, %v3207_v47  ;;  %v3258_v52 = vpack.c.bf16 %v3208_v36, %v3208_v36  ;;  %v3265_v47 = vld [vmem:[#allocation21_spill] sm:$0xff]  ;;  %v3267_v36 = vld [vmem:[#allocation22_spill] sm:$0xff] }
  0xdf   : > { %3251 = vst [vmem:[#allocation16_spill] sm:$0xff] %v2746_v2  ;;  %v1247_v62 = vunpack.c.l.b16 %v3254_v54  ;;  %v1248_v57 = vunpack.c.l.b16 %v3255_v16  ;;  %v1249_v40 = vunpack.c.l.b16 %v3256_v49  ;;  %v3260_v53 = vpack.c.bf16 %v3209_v1, %v3209_v1 }
  0xe0   : > { %v1250_v48 = vunpack.c.l.b16 %v3257_v9  ;;  %v2769_v63 = vunpack.c.l.b16 %v3258_v52  ;;  %v3262_v26 = vpack.c.bf16 %v3210_v38, %v3210_v38  ;;  %v3264_v49 = vpack.c.bf16 %v3263_v55, %v3263_v55 }
  0xe1   : > { %v2774_v54 = vunpack.c.l.b16 %v3260_v53  ;;  %v3266_v9 = vpack.c.bf16 %v3265_v47, %v3265_v47  ;;  %v3268_v52 = vpack.c.bf16 %v3267_v36, %v3267_v36  ;;  %v3269_v1 = vpack.c.bf16 %v3214_v56, %v3214_v56  ;;  %v3277_v36 = vld [vmem:[#allocation6_spill] sm:$0xff] }
  0xe2   : > { %3259 = vst [vmem:[#allocation29_spill] sm:$0xff] %v2769_v63  ;;  %v1253_v16 = vunpack.c.l.b16 %v3262_v26  ;;  %v1254_v2 = vunpack.c.l.b16 %v3264_v49  ;;  %v3271_v38 = vpack.c.bf16 %v3215_v41, %v3215_v41  ;;  %v3273_v55 = vpack.c.bf16 %v3216_v44, %v3216_v44  ;;  %v3283_v44 = vld [vmem:[#allocation5_spill] sm:$0xff] }
  0xe3   : > { %3261 = vst [vmem:[#allocation13_spill] sm:$0xff] %v2774_v54  ;;  %v1255_v45 = vunpack.c.l.b16 %v3266_v9  ;;  %v1256_v63 = vunpack.c.l.b16 %v3268_v52  ;;  %v2791_v53 = vunpack.c.l.b16 %v3269_v1  ;;  %v3275_v47 = vpack.c.bf16 %v3217_v24, %v3217_v24  ;;  %v3279_v1 = vld [vmem:[#allocation26_spill] sm:$0xff] }
  0xe4   : > { %v2796_v26 = vunpack.c.l.b16 %v3271_v38  ;;  %v2801_v49 = vunpack.c.l.b16 %v3273_v55  ;;  %v3278_v56 = vpack.c.bf16 %v3277_v36, %v3277_v36  ;;  %v3280_v54 = vpack.c.bf16 %v3279_v1, %v3279_v1  ;;  %v3281_v38 = vld [vmem:[#allocation27_spill] sm:$0xff] }
  0xe5   : > { %3270 = vst [vmem:[#allocation14_spill] sm:$0xff] %v2791_v53  ;;  %v2806_v9 = vunpack.c.l.b16 %v3275_v47  ;;  %v3284_v55 = vpack.c.bf16 %v3283_v44, %v3283_v44  ;;  %v3285_v24 = vpack.c.bf16 %v2464_v34, %v2464_v34  ;;  %v3286_v36 = vpack.c.bf16 %v2466_v51, %v2466_v51 }
  0xe6   : > { %3272 = vst [vmem:[#allocation30_spill] sm:$0xff] %v2796_v26  ;;  %v1261_v52 = vunpack.c.l.b16 %v3278_v56  ;;  %v1262_v41 = vunpack.c.l.b16 %v3280_v54  ;;  %v3282_v26 = vpack.c.bf16 %v3281_v38, %v3281_v38  ;;  %v3288_v54 = vpack.c.bf16 %v2468_v14, %v2468_v14 }
  0xe7   : > { %3274 = vst [vmem:[#allocation31_spill] sm:$0xff] %v2801_v49  ;;  %v1264_v49 = vunpack.c.l.b16 %v3284_v55  ;;  %v1265_v47 = vunpack.c.l.b16 %v3285_v24  ;;  %v2826_v56 = vunpack.c.l.b16 %v3286_v36  ;;  %v3292_v44 = vpack.c.bf16 %v3222_v25, %v3222_v25 }
  0xe8   : > { %3276 = vst [vmem:[#allocation32_spill] sm:$0xff] %v2806_v9  ;;  %v1263_v53 = vunpack.c.l.b16 %v3282_v26  ;;  %v2831_v1 = vunpack.c.l.b16 %v3288_v54  ;;  %v3290_v26 = vpack.c.bf16 %v2470_v60, %v2470_v60  ;;  %v3293_v55 = vpack.c.bf16 %v3223_v15, %v3223_v15 }
  0xe9   : > { %3287 = vst [vmem:[#allocation33_spill] sm:$0xff] %v2826_v56  ;;  %v1269_v34 = vunpack.c.l.b16 %v3292_v44  ;;  %v3294_v24 = vpack.c.bf16 %v3224_v6, %v3224_v6  ;;  %v3295_v14 = vpack.c.bf16 %v3225_v27, %v3225_v27  ;;  %v3296_v60 = vpack.c.bf16 %v2498_v11, %v2498_v11 }
  0xea   : > { %3289 = vst [vmem:[#allocation34_spill] sm:$0xff] %v2831_v1  ;;  %v2836_v38 = vunpack.c.l.b16 %v3290_v26  ;;  %v1270_v51 = vunpack.c.l.b16 %v3293_v55  ;;  %v3297_v25 = vpack.c.bf16 %v2500_v3, %v2500_v3  ;;  %v1277_v9 = vunpack.c.l.b16 %v1149_v20 }
  0xeb   : > { %v1271_v36 = vunpack.c.l.b16 %v3294_v24  ;;  %v1272_v54 = vunpack.c.l.b16 %v3295_v14  ;;  %v1273_v26 = vunpack.c.l.b16 %v3296_v60  ;;  %v1278_v6 = vunpack.c.l.b16 %v1150_v17 }
  0xec   : > { %3291 = vst [vmem:[#allocation35_spill] sm:$0xff] %v2836_v38  ;;  %v1274_v44 = vunpack.c.l.b16 %v3297_v25  ;;  %v3298_v38 = vld [vmem:[#allocation15_spill] sm:$0xff]  ;;  %v1279_v24 = vunpack.c.l.b16 %v1151_v19  ;;  %v1280_v1 = vunpack.c.l.b16 %v1152_v28  ;;  %v1281_v56 = vunpack.c.l.b16 %v1153_v35  ;;  %v3304_v60 = vld [vmem:[#allocation14_spill] sm:$0xff] }
  0xed   : > { %v3299_v15 = vpack.c.bf16 %v3298_v38, %v3298_v38  ;;  %v1285_v27 = vsel %vm324_vm1, %v1222_v33, %v1221_v31  ;;  %v1296_v3 = vsel %vm324_vm1, %v1230_v0, %v1229_v4  ;;  %v1303_v38 = vsel %vm324_vm1, %v1238_v18, %v1237_v13 }
  0xee   : > { %v1286_v11 = vsel %vm328_vm2, %v2659_v50, %v1285_v27  ;;  %v1297_v17 = vsel %vm328_vm2, %v1231_v30, %v1296_v3  ;;  %v1304_v28 = vsel %vm328_vm2, %v1239_v58, %v1303_v38  ;;  %v1310_v31 = vsel %vm324_vm1, %v1246_v8, %v1245_v7  ;;  %v3302_v7 = vld [vmem:[#allocation12_spill] sm:$0xff]  ;;  %v3312_v38 = vld [vmem:[#allocation11_spill] sm:$0xff] }
  0xef   : > { %v2859_v55 = vunpack.c.l.b16 %v3299_v15  ;;  %v1287_v20 = vsel %vm332_vm3, %v2664_v10, %v1286_v11  ;;  %v1298_v50 = vsel %vm332_vm3, %v2698_v12, %v1297_v17  ;;  %v1305_v19 = vsel %vm332_vm3, %v1240_v59, %v1304_v28  ;;  %v3314_v28 = vld [vmem:[#allocation13_spill] sm:$0xff] }
  0xf0   : > { %v1289_v35 = vsel %vm1288_vm6, %v2669_v5, %v1287_v20  ;;  %v1311_v33 = vsel %vm328_vm2, %v1247_v62, %v1310_v31  ;;  %v1299_v10 = vsel %vm1288_vm6, %v2703_v29, %v1298_v50  ;;  %v1306_v0 = vsel %vm1288_vm6, %v1241_v37, %v1305_v19  ;;  %v3303_v62 = vld [vmem:[#allocation29_spill] sm:$0xff] }
  0xf1   : > { %v1291_v4 = vsel %vm1290_vm7, %v2674_v39, %v1289_v35  ;;  %v1312_v30 = vsel %vm332_vm3, %v1248_v57, %v1311_v33  ;;  %v1300_v12 = vsel %vm1290_vm7, %v2708_v46, %v1299_v10  ;;  %v1307_v13 = vsel %vm1290_vm7, %v1242_v22, %v1306_v0  ;;  %v3311_v11 = vld [vmem:[#allocation34_spill] sm:$0xff]  ;;  %v3315_v35 = vld [vmem:[#allocation32_spill] sm:$0xff] }
  0xf2   : > { %v1293_v5 = vsel %vm1292_vm8, %v2679_v23, %v1291_v4  ;;  %v1313_v18 = vsel %vm1288_vm6, %v1249_v40, %v1312_v30  ;;  %v3300_v39 = vpack.c.bf16 %v2524_v21, %v2524_v21  ;;  %v3301_v29 = vpack.c.bf16 %v2526_v43, %v2526_v43 }
  0xf3   : > { %v1301_v37 = vsel %vm1292_vm8, %v2713_v32, %v1300_v12  ;;  %v1314_v23 = vsel %vm1290_vm7, %v1250_v48, %v1313_v18  ;;  %v1295_v46 = vsel %vm1294_vm9, %v2684_v42, %v1293_v5  ;;  %v1308_v8 = vsel %vm1292_vm8, %v3302_v7, %v1307_v13  ;;  %v3316_v4 = vld [vmem:[#allocation35_spill] sm:$0xff] }
  0xf4   : > { %v1282_v58 = vunpack.c.l.b16 %v3300_v39  ;;  %v1283_v59 = vunpack.c.l.b16 %v3301_v29  ;;  %v1302_v22 = vsel %vm1294_vm9, %v2718_v61, %v1301_v37  ;;  %v1317_v21 = vsel %vm324_vm1, %v1254_v2, %v1253_v16 }
  0xf5   : > { %v1315_v43 = vsel %vm1292_vm8, %v3303_v62, %v1314_v23  ;;  %v1318_v57 = vsel %vm328_vm2, %v1255_v45, %v1317_v21  ;;  %v1324_v32 = vsel %vm324_vm1, %v1262_v41, %v1261_v52  ;;  %v1331_v40 = vsel %vm324_vm1, %v1270_v51, %v1269_v34  ;;  %v3305_v52 = vld [vmem:[#allocation30_spill] sm:$0xff] }
  0xf6   : > { %v1319_v42 = vsel %vm332_vm3, %v1256_v63, %v1318_v57  ;;  %v1325_v48 = vsel %vm328_vm2, %v1263_v53, %v1324_v32  ;;  %v1332_v61 = vsel %vm328_vm2, %v1271_v36, %v1331_v40  ;;  %v1338_v14 = vsel %vm324_vm1, %v1278_v6, %v1277_v9  ;;  %v3306_v9 = vld [vmem:[#allocation31_spill] sm:$0xff]  ;;  %v3307_v36 = vld [vmem:[#allocation33_spill] sm:$0xff]  ;;  %v3308_v6 = vld [vmem:[#allocation28_spill] sm:$0xff] }
  0xf7   : > { %v1320_v2 = vsel %vm1288_vm6, %v3304_v60, %v1319_v42  ;;  %v1326_v16 = vsel %vm332_vm3, %v1264_v49, %v1325_v48  ;;  %v1333_v25 = vsel %vm332_vm3, %v1272_v54, %v1332_v61  ;;  %v1339_v45 = vsel %vm328_vm2, %v1279_v24, %v1338_v14 }
  0xf8   : > { %v1321_v41 = vsel %vm1290_vm7, %v3305_v52, %v1320_v2  ;;  %v1327_v63 = vsel %vm1288_vm6, %v1265_v47, %v1326_v16  ;;  %v1334_v53 = vsel %vm1288_vm6, %v1273_v26, %v1333_v25  ;;  %v1340_v34 = vsel %vm332_vm3, %v1280_v1, %v1339_v45  ;;  %v3310_v47 = vld [vmem:[#allocation16_spill] sm:$0xff] }
  0xf9   : > { %v1322_v51 = vsel %vm1292_vm8, %v3306_v9, %v1321_v41  ;;  %v1328_v49 = vsel %vm1290_vm7, %v3307_v36, %v1327_v63  ;;  %v1335_v54 = vsel %vm1290_vm7, %v1274_v44, %v1334_v53  ;;  %v1341_v15 = vsel %vm1288_vm6, %v1281_v56, %v1340_v34 }
  0xfa   : > { %v3309_v24 = vpack.c.bf16 %v3308_v6, %v3308_v6  ;;  %v1309_v26 = vsel %vm1294_vm9, %v3310_v47, %v1308_v8  ;;  %v1329_v1 = vsel %vm1292_vm8, %v3311_v11, %v1328_v49  ;;  %v1342_v3 = vsel %vm1290_vm7, %v1282_v58, %v1341_v15 }
  0xfb   : > { %v3313_v20 = vpack.c.bf16 %v3312_v38, %v3312_v38  ;;  %v1316_v44 = vsel %vm1294_vm9, %v3314_v28, %v1315_v43  ;;  %v1336_v56 = vsel %vm1292_vm8, %v2859_v55, %v1335_v54  ;;  %v1345_v31 = vpack.c.b16 %v1295_v46, %v1295_v46 }
  0xfc   : > { %v1276_v27 = vunpack.c.l.b16 %v3309_v24  ;;  %v1323_v50 = vsel %vm1294_vm9, %v3315_v35, %v1322_v51  ;;  %v1343_v19 = vsel %vm1292_vm8, %v1283_v59, %v1342_v3  ;;  %v1346_v33 = vpack.c.b16 %v1302_v22, %v1302_v22 }
  0xfd   : > { %v1284_v17 = vunpack.c.l.b16 %v3313_v20  ;;  %v1330_v10 = vsel %vm1294_vm9, %v3316_v4, %v1329_v1  ;;  %v1347_v0 = vpack.c.b16 %v1309_v26, %v1309_v26  ;;  %v1348_v5 = vpack.c.b16 %v1316_v44, %v1316_v44  ;;  %1362 = vst.msk [vmem:[%s157_s17] sm:$0xf] %vm1361_vm10, %v1345_v31 }
  0xfe   : > { %v1337_v30 = vsel %vm1294_vm9, %v1276_v27, %v1336_v56  ;;  %v1349_v12 = vpack.c.b16 %v1323_v50, %v1323_v50  ;;  %v1350_v13 = vpack.c.b16 %v1330_v10, %v1330_v10  ;;  %1363 = vst.msk [vmem:[%s157_s17 + $0x4] sm:$0xf] %vm1361_vm10, %v1346_v33 }
  0xff   : > { %v1344_v55 = vsel %vm1294_vm9, %v1284_v17, %v1343_v19  ;;  %v1351_v18 = vpack.c.b16 %v1337_v30, %v1337_v30  ;;  %1364 = vst.msk [vmem:[%s157_s17 + $0x8] sm:$0xf] %vm1361_vm10, %v1347_v0 }
 0x100   : > { %v1352_v39 = vpack.c.b16 %v1344_v55, %v1344_v55  ;;  %1365 = vst.msk [vmem:[%s157_s17 + $0xc] sm:$0xf] %vm1361_vm10, %v1348_v5 }
 0x101   : > { %1366 = vst.msk [vmem:[%s157_s17 + $0x10] sm:$0xf] %vm1361_vm10, %v1349_v12 }
 0x102   : > { %1367 = vst.msk [vmem:[%s157_s17 + $0x14] sm:$0xf] %vm1361_vm10, %v1350_v13 }
 0x103   : > { %1368 = vst.msk [vmem:[%s157_s17 + $0x18] sm:$0xf] %vm1361_vm10, %v1351_v18 }
 0x104   : > { %1369 = vst.msk [vmem:[%s157_s17 + $0x1c] sm:$0xf] %vm1361_vm10, %v1352_v39 }
 0x105 PF: > { %s11_s8 = sadd.s32 1, %s1598_s8   ;;  %s3317_s6 = smov %s1594_s7 }
 0x106   : > { %p8_p5 = scmp.ge.s32.totalorder %s11_s8, 4   ;;  %s3318_s7 = smov %s3320_s9 }
 0x108   :  { %10 = sbr.rel (!%p8_p5) target bundleno = 2 (0x2), region = 54 }

// kernel: perceptual_vgg_forward.11
= control target key start
LH: loop header
LB: loop body
LE: loop exit
PB: predicated region body
PF: predicated region fallthrough
CT: control target
= control target key end

     0   :  { %s1820_s12 = smov 0   ;;  %s1822_s13 = smov 0   ;;  %s2262_s0 = inlined_call_operand.vmem [shape: bf16[2,10,10,64], index: 0, kind: input, shape index: {}]   ;;  %s2263_s1 = inlined_call_operand.vmem [shape: bf16[9,64,128], index: 1, kind: input, shape index: {}]   ;;  %s2264_s2 = inlined_call_operand.vmem [shape: f32[1,128], index: 2, kind: input, shape index: {}]   ;;  %s2265_s3 = inlined_call_operand.vmem [shape: bf16[2,8,8,128], index: 3, kind: output, shape index: {}]  }
   0x1   :  { %s1824_s14 = smov 0  }
   0x2 LB: > { %s32_s15 = sadd.s32 1, %s1794_s13  ;;  %p1418_p0 = scmp.ge.s32.totalorder %s1798_s14, 1  ;;  %s1798_s14 = sphi %s1824_s14, %s13_s14   ;;  %s1794_s13 = sphi %s1822_s13, %s2271_s13   ;;  %s1790_s12 = sphi %s1820_s12, %s2270_s12  }
   0x3   : > { %p34_p1 = scmp.ge.s32.totalorder %s32_s15, 2  ;;  %p177_p2 = scmp.lt.s32.totalorder %s1798_s14, 3 }
   0x5   : > { %s2273_s15 = smov (%p34_p1, %s32_s15), 0  ;;  %p178_p3 = pnand %p1418_p0, %p177_p2 }
   0x6   : > { %p215_p4 = scmp.lt.s32.totalorder (!%p178_p3), %s1790_s12, 1 }
   0x7   : > { %181 = sbr.rel (%p178_p3) target bundleno = 309 (0x135), region = 32 }
   0xc   : > { %v1686_v0 = vld [vmem:[%s2263_s1 + $0x78] sm:$0xff]  ;;  %v1685_v1 = vld [vmem:[%s2263_s1 + $0x70] sm:$0xff]  ;;  %s2275_s12 = smov (!%p215_p4, %s1790_s12), 1  ;;  %v1684_v2 = vld [vmem:[%s2263_s1 + $0x68] sm:$0xff]  ;;  %vm316_vm0 = vcmask 523264   ;;  %vm959_vm4 = vcmask 1042432  }
   0xd   : > { %1738 = vmatpush.bf16.msra.mxu1 %v1686_v0  ;;  %1739 = vmatpush.bf16.msra.mxu2 %v1686_v0  ;;  %s1750_s20 = smul.u32 80, %s2275_s12  ;;  %v1683_v15 = vld [vmem:[%s2263_s1 + $0x60] sm:$0xff]  ;;  %v1690_v28 = vld [vmem:[%s2263_s1 + $0xd8] sm:$0xff]  ;;  %v1689_v46 = vld [vmem:[%s2263_s1 + $0xd0] sm:$0xff]  ;;  %vm534_vm1 = vsmask.f32 3328 }
   0xe   : > { %1740 = vmatpush.bf16.msra.mxu3 %v1686_v0  ;;  %333 = vmatpush.bf16.msra.mxu0 %v1686_v0  ;;  %v1682_v29 = vld [vmem:[%s2263_s1 + $0x18] sm:$0xff]  ;;  %v1681_v47 = vld [vmem:[%s2263_s1 + $0x10] sm:$0xff]  ;;  %vm535_vm2 = vsmask.f32 7440  ;;  %v1688_v54 = vld [vmem:[%s2263_s1 + $0xc8] sm:$0xff]  ;;  %vm960_vm5 = vcmask 1046532  }
   0xf   : > { %s1853_s25 = scalar_lea.vmem %s2262_s0, %s1750_s20  ;;  %v1694_v40 = vld [vmem:[%s2263_s1 + $0x38] sm:$0xff]  ;;  %v1693_v52 = vld [vmem:[%s2263_s1 + $0x30] sm:$0xff]  ;;  %v1680_v61 = vld [vmem:[%s2263_s1 + $0x8] sm:$0xff]  ;;  %s1678_s27 = sshll.u32 %s2275_s12, 5 }
  0x10   : > { %v1856_v3 = vld [vmem:[%s1853_s25 + $0x18] sm:$0xf]  ;;  %v1859_v4 = vld [vmem:[%s1853_s25 + $0x20] sm:$0xf]  ;;  %v1862_v5 = vld [vmem:[%s1853_s25 + $0x28] sm:$0xf]  ;;  %s2228_s30 = scalar_lea.vmem %s2265_s3, %s1678_s27 }
  0x11   : > { %1741 = vmatpush.bf16.msra.mxu1 %v1685_v1  ;;  %1742 = vmatpush.bf16.msra.mxu2 %v1685_v1  ;;  %v282_v6 = vunpack.c.l.b16 %v1856_v3  ;;  %v283_v7 = vunpack.c.l.b16 %v1859_v4  ;;  %v1867_v8 = vld [vmem:[%s1853_s25 + $0x30] sm:$0xf]  ;;  %v284_v9 = vunpack.c.l.b16 %v1862_v5  ;;  %v1871_v10 = vld [vmem:[%s1853_s25 + $0x38] sm:$0xf]  ;;  %v1874_v11 = vld [vmem:[%s1853_s25 + $0x40] sm:$0xf] }
  0x12   : > { %1743 = vmatpush.bf16.msra.mxu3 %v1685_v1  ;;  %334 = vmatpush.bf16.msra.mxu0 %v1685_v1  ;;  %v285_v12 = vunpack.c.l.b16 %v1867_v8  ;;  %v1878_v13 = vld [vmem:[%s1853_s25 + $0x8] sm:$0xf]  ;;  %v1881_v14 = vld [vmem:[%s1853_s25 + $0x10] sm:$0xf]  ;;  %v286_v16 = vunpack.c.l.b16 %v1871_v10  ;;  %v287_v17 = vunpack.c.l.b16 %v1874_v11  ;;  %v505_v20 = vld [vmem:[%s1853_s25] sm:$0xf] }
  0x13   : > { %v280_v18 = vunpack.c.l.b16 %v1878_v13  ;;  %v281_v19 = vunpack.c.l.b16 %v1881_v14  ;;  %v507_v21 = vld [vmem:[%s1853_s25 + $0x8] sm:$0xf]  ;;  %v1893_v22 = vld [vmem:[%s1853_s25 + $0x4] sm:$0x1]  ;;  %v1896_v23 = vld [vmem:[%s1853_s25 + $0xc] sm:$0x1]  ;;  %v289_v26 = vpack.c.b16 %v283_v7, %v282_v6 }
  0x14   : > { %v538_v24 = vshrl.u32 %v505_v20, 16  ;;  %v541_v25 = vshll.u32 %v505_v20, 16  ;;  %v290_v27 = vpack.c.b16 %v285_v12, %v284_v9  ;;  %v509_v30 = vld [vmem:[%s1853_s25 + $0x10] sm:$0xf]  ;;  %v552_v33 = vshrl.u32 %v507_v21, 16  ;;  %v1698_v41 = vld [vmem:[%s2263_s1 + $0x98] sm:$0xff]  ;;  %vm1958_vm3 = vmor %vm534_vm1, %vm535_vm2 }
  0x15   : > { %1744 = vmatpush.bf16.msra.mxu1 %v1684_v2  ;;  %1745 = vmatpush.bf16.msra.mxu2 %v1684_v2  ;;  %v555_v34 = vshll.u32 %v507_v21, 16  ;;  %v1914_v35 = vld [vmem:[%s1853_s25 + $0x14] sm:$0x1]  ;;  %v291_v36 = vpack.c.b16 %v287_v17, %v286_v16  ;;  %v288_v37 = vpack.c.b16 %v281_v19, %v280_v18  ;;  %v547_v38 = vshll.u32 %v1893_v22, 16  ;;  %v511_v60 = vld [vmem:[%s1853_s25 + $0x18] sm:$0xf]  ;;  %vm2109_vm6 = vmor %vm959_vm4, %vm960_vm5 }
  0x16   : > { %1746 = vmatpush.bf16.msra.mxu3 %v1684_v2  ;;  %335 = vmatpush.bf16.msra.mxu0 %v1684_v2  ;;  %v540_v31 = vrot.slane %v538_v24, 4  ;;  %v543_v32 = vrot.slane %v541_v25, 5  ;;  %v561_v39 = vshll.u32 %v1896_v23, 16  ;;  %v554_v43 = vrot.slane %v552_v33, 4  ;;  %v1697_v53 = vld [vmem:[%s2263_s1 + $0x90] sm:$0xff]  ;;  %v1692_v24 = vld [vmem:[%s2263_s1 + $0x28] sm:$0xff] }
  0x17   : > { %v557_v44 = vrot.slane %v555_v34, 5  ;;  %v566_v45 = vshrl.u32 %v509_v30, 16  ;;  %v569_v48 = vshll.u32 %v509_v30, 16  ;;  %v575_v49 = vshll.u32 %v1914_v35, 16  ;;  %v513_v1 = vld [vmem:[%s1853_s25 + $0x20] sm:$0xf] }
  0x18   : > { %v544_v42 = vor.u32 %v543_v32, %v540_v31  ;;  %v549_v57 = vrot.slane %v547_v38, 5  ;;  %v563_v59 = vrot.slane %v561_v39, 5  ;;  %v245_v2 = vld [vmem:[%s1853_s25] sm:$0xf]  ;;  %v580_v20 = vshrl.u32 %v511_v60, 16  ;;  %v1696_v25 = vld [vmem:[%s2263_s1 + $0x88] sm:$0xff] }
  0x19   : > { %1747 = vmatpush.bf16.msra.mxu1 %v1683_v15  ;;  %1748 = vmatpush.bf16.msra.mxu2 %v1683_v15  ;;  %v558_v50 = vor.u32 %v557_v44, %v554_v43  ;;  %v568_v51 = vrot.slane %v566_v45, 4  ;;  %v571_v55 = vrot.slane %v569_v48, 5  ;;  %v577_v0 = vrot.slane %v575_v49, 5  ;;  %v1687_v30 = vld [vmem:[%s2263_s1 + $0xc0] sm:$0xff]  ;;  %v1706_v34 = vld [vmem:[%s2263_s1 + $0x58] sm:$0xff]  ;;  %v1705_v13 = vld [vmem:[%s2263_s1 + $0x50] sm:$0xff] }
  0x1a   : > { %1749 = vmatpush.bf16.msra.mxu3 %v1683_v15  ;;  %336 = vmatpush.bf16.msra.mxu0 %v1683_v15  ;;  %v545_v56 = vrot.slane %v544_v42, 4  ;;  %v583_v21 = vshll.u32 %v511_v60, 16  ;;  %v1679_v31 = vld [vmem:[%s2263_s1] sm:$0xff]  ;;  %v359_v33 = vunpack.c.l.b16 %v245_v2  ;;  %v1710_v42 = vld [vmem:[%s2263_s1 + $0xb8] sm:$0xff]  ;;  %v582_v43 = vrot.slane %v580_v20, 4 }
  0x1b   : > { %v559_v58 = vrot.slane %v558_v50, 4  ;;  %v572_v63 = vor.u32 %v571_v55, %v568_v51  ;;  %v2003_v48 = vld [vmem:[%s1853_s25 + $0x1c] sm:$0x1]  ;;  %v2006_v49 = vld [vmem:[%s1853_s25 + $0x24] sm:$0x1]  ;;  %v2014_v51 = vpack.c.b16 %v282_v6, %v281_v19  ;;  %v1701_v6 = vld [vmem:[%s2263_s1 + $0xf0] sm:$0xff] }
  0x1c   : > { %1447 = vmatmul.msk.bf16.vlgmr.msra.gmra.mxu1 %vm316_vm0, %v289_v26  ;;  %1448 = vmatmul.msk.bf16.vlgmr.msra.gmra.mxu2 %vm316_vm0, %v290_v27  ;;  %v550_v26 = vsel %vm1958_vm3, %v545_v56, %v549_v57  ;;  %v585_v44 = vrot.slane %v583_v21, 5  ;;  %v360_v50 = vpack.c.b16 %v280_v18, %v359_v33  ;;  %v589_v55 = vshll.u32 %v2003_v48, 16  ;;  %v1709_v18 = vld [vmem:[%s2263_s1 + $0xb0] sm:$0xff]  ;;  %v515_v56 = vld [vmem:[%s1853_s25 + $0x28] sm:$0xf]  ;;  %v1703_v4 = vld [vmem:[%s2263_s1 + $0x40] sm:$0xff] }
  0x1d   : > { %472 = vmatpush.bf16.msrb.mxu2 %v1690_v28  ;;  %404 = vmatpush.bf16.msrb.mxu1 %v1682_v29  ;;  %v573_v15 = vrot.slane %v572_v63, 4  ;;  %v564_v27 = vsel %vm1958_vm3, %v559_v58, %v563_v59  ;;  %v594_v28 = vshrl.u32 %v513_v1, 16  ;;  %v597_v29 = vshll.u32 %v513_v1, 16  ;;  %v1713_v19 = vld [vmem:[%s2263_s1 + $0x110] sm:$0xff]  ;;  %v1704_v63 = vld [vmem:[%s2263_s1 + $0x48] sm:$0xff]  ;;  %v1707_v5 = vld [vmem:[%s2263_s1 + $0xa0] sm:$0xff] }
  0x1e   : > { %1449 = vmatmul.msk.bf16.vlgmr.msra.gmra.mxu3 %vm316_vm0, %v291_v36  ;;  %1446 = vmatmul.msk.bf16.vlgmr.msra.gmra.mxu0 %vm316_vm0, %v288_v37  ;;  %v1702_v36 = vld [vmem:[%s2263_s1 + $0xf8] sm:$0xff]  ;;  %v1691_v37 = vld [vmem:[%s2263_s1 + $0x20] sm:$0xff]  ;;  %v649_v38 = vunpack.c.l.b16 %v550_v26  ;;  %v650_v39 = vunpack.c.l.b16 %v564_v27  ;;  %v603_v3 = vshll.u32 %v2006_v49, 16  ;;  %v517_v57 = vld [vmem:[%s1853_s25 + $0x30] sm:$0xf]  ;;  %v591_v59 = vrot.slane %v589_v55, 5 }
  0x1f   : > { %701 = vmatpush.bf16.msrb.mxu3 %v1694_v40  ;;  %802 = vmatpush.bf16.msrb.mxu0 %v1698_v41  ;;  %v578_v32 = vsel %vm1958_vm3, %v573_v15, %v577_v0  ;;  %v1695_v41 = vld [vmem:[%s2263_s1 + $0x80] sm:$0xff]  ;;  %v596_v45 = vrot.slane %v594_v28, 4  ;;  %v1700_v0 = vld [vmem:[%s2263_s1 + $0xe8] sm:$0xff]  ;;  %v608_v1 = vshrl.u32 %v515_v56, 16  ;;  %v611_v2 = vshll.u32 %v515_v56, 16 }
  0x20   : > { %v1991_v40 = vunpack.c.l.b16 %v578_v32  ;;  %v622_v15 = vshrl.u32 %v517_v57, 16  ;;  %v625_v20 = vshll.u32 %v517_v57, 16  ;;  %v1708_v21 = vld [vmem:[%s2263_s1 + $0xa8] sm:$0xff]  ;;  %v2058_v32 = vld [vmem:[%s1853_s25 + $0x34] sm:$0x1] }
  0x21   : > { %473 = vmatpush.bf16.msrb.mxu2 %v1689_v46  ;;  %405 = vmatpush.bf16.msrb.mxu1 %v1681_v47  ;;  %v599_v46 = vrot.slane %v597_v29, 5  ;;  %v1714_v47 = vld [vmem:[%s2263_s1 + $0x118] sm:$0xff]  ;;  %v610_v27 = vrot.slane %v608_v1, 4  ;;  %v613_v28 = vrot.slane %v611_v2, 5 }
  0x22   : > { %v624_v29 = vrot.slane %v622_v15, 4 }
  0x23   : > { %702 = vmatpush.bf16.msrb.mxu3 %v1693_v52  ;;  %803 = vmatpush.bf16.msrb.mxu0 %v1697_v53  ;;  %v657_v52 = vpack.c.b16 %v650_v39, %v649_v38  ;;  %v758_v53 = vpack.c.b16 %v1991_v40, %v650_v39  ;;  %v600_v14 = vor.u32 %v599_v46, %v596_v45  ;;  %v631_v39 = vshll.u32 %v2058_v32, 16 }
  0x25   : > { %474 = vmatpush.bf16.msrb.mxu2 %v1688_v54  ;;  %406 = vmatpush.bf16.msrb.mxu1 %v1680_v61  ;;  %v586_v54 = vor.u32 %v585_v44, %v582_v43  ;;  %v601_v60 = vrot.slane %v600_v14, 4  ;;  %v605_v61 = vrot.slane %v603_v3, 5  ;;  %v964_v14 = vrot.slane %v1893_v22, 5 }
  0x26   : > { %v968_v3 = vrot.slane %v1896_v23, 5  ;;  %v363_v22 = vpack.c.b16 %v286_v16, %v285_v12  ;;  %v2104_v23 = vld [vmem:[%s1853_s25 + $0x3c] sm:$0x1] }
  0x27   : > { %703 = vmatpush.bf16.msrb.mxu3 %v1692_v24  ;;  %804 = vmatpush.bf16.msrb.mxu0 %v1696_v25  ;;  %v587_v58 = vrot.slane %v586_v54, 4  ;;  %v1712_v24 = vld [vmem:[%s2263_s1 + $0x108] sm:$0xff]  ;;  %v606_v26 = vsel %vm1958_vm3, %v601_v60, %v605_v61  ;;  %v924_v60 = vld [vmem:[%s1853_s25] sm:$0xe] }
  0x28   : > { %v925_v61 = vld [vmem:[%s1853_s25 + $0x8] sm:$0xe] }
  0x29   : > { %475 = vmatpush.bf16.msrb.mxu2 %v1687_v30  ;;  %407 = vmatpush.bf16.msrb.mxu1 %v1679_v31  ;;  %v592_v25 = vsel %vm1958_vm3, %v587_v58, %v591_v59  ;;  %v627_v30 = vrot.slane %v625_v20, 5  ;;  %v2055_v31 = vld [vmem:[%s1853_s25 + $0x2c] sm:$0x1]  ;;  %v1591_v1 = vrot.slane %v925_v61, 9 }
  0x2a   : > { %v652_v33 = vunpack.c.l.b16 %v592_v25 }
  0x2b   : > { %704 = vmatpush.bf16.msrb.mxu3 %v1691_v37  ;;  %805 = vmatpush.bf16.msrb.mxu0 %v1695_v41  ;;  %v617_v37 = vshll.u32 %v2055_v31, 16  ;;  %v628_v38 = vor.u32 %v627_v30, %v624_v29  ;;  %v362_v41 = vpack.c.b16 %v284_v9, %v283_v7  ;;  %v1699_v7 = vld [vmem:[%s2263_s1 + $0xe0] sm:$0xff]  ;;  %v969_v8 = vsel %vm2109_vm6, %v1591_v1, %v968_v3 }
  0x2c   : > { %1466 = vmatmul.msk.bf16.vlgmr.msrb.gmra.mxu1 %vm316_vm0, %v360_v50  ;;  %1494 = vmatmul.msk.bf16.vlgmr.msrb.gmra.mxu2 %vm316_vm0, %v2014_v51  ;;  %v519_v50 = vld [vmem:[%s1853_s25 + $0x38] sm:$0xf]  ;;  %v1711_v9 = vld [vmem:[%s2263_s1 + $0x100] sm:$0xff]  ;;  %v995_v12 = vunpack.c.l.b16 %v969_v8 }
  0x2d   : > { %1046 = vmatpush.bf16.msra.mxu2 %v1706_v34  ;;  %891 = vmatpush.bf16.msra.mxu1 %v1702_v36  ;;  %v653_v34 = vunpack.c.l.b16 %v606_v26  ;;  %v614_v36 = vor.u32 %v613_v28, %v610_v27  ;;  %v619_v45 = vrot.slane %v617_v37, 5  ;;  %v629_v46 = vrot.slane %v628_v38, 4 }
  0x2e   : > { %1522 = vmatmul.msk.bf16.vlgmr.msrb.gmra.mxu3 %vm316_vm0, %v657_v52  ;;  %1550 = vmatmul.msk.bf16.vlgmr.msrb.gmra.mxu0 %vm316_vm0, %v758_v53  ;;  %v521_v52 = vld [vmem:[%s1853_s25 + $0x40] sm:$0xf]  ;;  %v636_v53 = vshrl.u32 %v519_v50, 16  ;;  %v639_v54 = vshll.u32 %v519_v50, 16  ;;  %v645_v26 = vshll.u32 %v2104_v23, 16 }
  0x2f   : > { %1139 = vmatpush.bf16.msra.mxu3 %v1710_v42  ;;  %1220 = vmatpush.bf16.msra.mxu0 %v1714_v47  ;;  %v2067_v42 = vpack.c.b16 %v652_v33, %v1991_v40  ;;  %v759_v43 = vpack.c.b16 %v653_v34, %v652_v33  ;;  %v615_v44 = vrot.slane %v614_v36, 4  ;;  %v633_v47 = vrot.slane %v631_v39, 5  ;;  %v254_v39 = vld [vmem:[%s1853_s25 + $0x48] sm:$0xf] }
  0x30   : > { %v744_v55 = vshrl.u32 %v521_v52, 16  ;;  %v638_v56 = vrot.slane %v636_v53, 4  ;;  %v641_v57 = vrot.slane %v639_v54, 5  ;;  %v647_v36 = vrot.slane %v645_v26, 5 }
  0x31   : > { %1047 = vmatpush.bf16.msra.mxu2 %v1705_v13  ;;  %892 = vmatpush.bf16.msra.mxu1 %v1701_v6  ;;  %v620_v40 = vsel %vm1958_vm3, %v615_v44, %v619_v45  ;;  %v747_v13 = vshll.u32 %v521_v52, 16  ;;  %v972_v6 = vrot.slane %v1914_v35, 5  ;;  %v2107_v35 = vld [vmem:[%s1853_s25 + $0x44] sm:$0x1]  ;;  %v980_v53 = vrot.slane %v2006_v49, 5 }
  0x32   : > { %v746_v58 = vrot.slane %v744_v55, 4  ;;  %v642_v25 = vor.u32 %v641_v57, %v638_v56  ;;  %v753_v28 = vshll.u32 %v2107_v35, 16  ;;  %v984_v55 = vrot.slane %v2055_v31, 5  ;;  %v931_v56 = vld [vmem:[%s1853_s25 + $0x38] sm:$0xe] }
  0x33   : > { %1140 = vmatpush.bf16.msra.mxu3 %v1709_v18  ;;  %1221 = vmatpush.bf16.msra.mxu0 %v1713_v19  ;;  %v654_v18 = vunpack.c.l.b16 %v620_v40  ;;  %v749_v59 = vrot.slane %v747_v13, 5  ;;  %v928_v40 = vld [vmem:[%s1853_s25 + $0x20] sm:$0xe]  ;;  %v988_v31 = vrot.slane %v2058_v32, 5  ;;  %v1597_v57 = vrot.slane %v931_v56, 9 }
  0x34   : > { %v755_v38 = vrot.slane %v753_v28, 5 }
  0x35   : > { %1048 = vmatpush.bf16.msra.mxu2 %v1704_v63  ;;  %893 = vmatpush.bf16.msra.mxu1 %v1700_v0  ;;  %v926_v63 = vld [vmem:[%s1853_s25 + $0x10] sm:$0xe]  ;;  %v1590_v0 = vrot.slane %v924_v60, 9  ;;  %v659_v20 = vpack.c.b16 %v654_v18, %v653_v34  ;;  %v750_v27 = vor.u32 %v749_v59, %v746_v58  ;;  %v643_v34 = vrot.slane %v642_v25, 4  ;;  %v523_v59 = vld [vmem:[%s1853_s25 + $0x48] sm:$0xf] }
  0x36   : > { %v1592_v15 = vrot.slane %v926_v63, 9  ;;  %v992_v58 = vrot.slane %v2104_v23, 5  ;;  %v845_v60 = vshrl.u32 %v523_v59, 16  ;;  %v848_v61 = vshll.u32 %v523_v59, 16  ;;  %v932_v23 = vld [vmem:[%s1853_s25 + $0x40] sm:$0xe] }
  0x37   : > { %1141 = vmatpush.bf16.msra.mxu3 %v1708_v21  ;;  %1222 = vmatpush.bf16.msra.mxu0 %v1712_v24  ;;  %v965_v24 = vsel %vm2109_vm6, %v1590_v0, %v964_v14  ;;  %v751_v37 = vrot.slane %v750_v27, 4  ;;  %v1626_v26 = vrot.slane %v932_v23, 9  ;;  %v1092_v27 = vrot.slane %v2107_v35, 5 }
  0x38   : > { %v994_v10 = vunpack.c.l.b16 %v965_v24  ;;  %v973_v16 = vsel %vm2109_vm6, %v1592_v15, %v972_v6  ;;  %v993_v0 = vsel %vm2109_vm6, %v1597_v57, %v992_v58  ;;  %v847_v15 = vrot.slane %v845_v60, 4 }
  0x39   : > { %1049 = vmatpush.bf16.msra.mxu2 %v1703_v4  ;;  %894 = vmatpush.bf16.msra.mxu1 %v1699_v7  ;;  %v996_v29 = vunpack.c.l.b16 %v973_v16  ;;  %v756_v44 = vsel %vm1958_vm3, %v751_v37, %v755_v38  ;;  %v927_v4 = vld [vmem:[%s1853_s25 + $0x18] sm:$0xe] }
  0x3a   : > { %v1002_v30 = vpack.c.b16 %v995_v12, %v994_v10  ;;  %v1593_v7 = vrot.slane %v927_v4, 9  ;;  %v933_v10 = vld [vmem:[%s1853_s25 + $0x48] sm:$0xe] }
  0x3b   : > { %1142 = vmatpush.bf16.msra.mxu3 %v1707_v5  ;;  %1223 = vmatpush.bf16.msra.mxu0 %v1711_v9  ;;  %v1095_v33 = vpack.c.b16 %v996_v29, %v995_v12  ;;  %v976_v5 = vrot.slane %v2003_v48, 5  ;;  %v1594_v48 = vrot.slane %v928_v40, 9  ;;  %v1655_v28 = vrot.slane %v933_v10, 9 }
  0x3c   : > { %1467 = vmatmul.msk.bf16.gmra.mxu1 %vm316_vm0, %v2014_v51  ;;  %1495 = vmatmul.msk.bf16.gmra.mxu2 %vm316_vm0, %v362_v41  ;;  %v634_v51 = vsel %vm1958_vm3, %v629_v46, %v633_v47  ;;  %v2130_v46 = vunpack.c.l.b16 %v756_v44 }
  0x3d   : > { %v655_v19 = vunpack.c.l.b16 %v634_v51  ;;  %v977_v9 = vsel %vm2109_vm6, %v1593_v7, %v976_v5  ;;  %v929_v51 = vld [vmem:[%s1853_s25 + $0x28] sm:$0xe]  ;;  %v981_v13 = vsel %vm2109_vm6, %v1594_v48, %v980_v53 }
  0x3e   : > { %1523 = vmatmul.msk.bf16.gmra.mxu3 %vm316_vm0, %v2067_v42  ;;  %1551 = vmatmul.msk.bf16.gmra.mxu0 %vm316_vm0, %v759_v43  ;;  %v648_v43 = vsel %vm1958_vm3, %v643_v34, %v647_v36  ;;  %v997_v11 = vunpack.c.l.b16 %v977_v9  ;;  %v1595_v54 = vrot.slane %v929_v51, 9 }
  0x3f   : > { %v760_v21 = vpack.c.b16 %v655_v19, %v654_v18  ;;  %v656_v45 = vunpack.c.l.b16 %v648_v43 }
  0x40   : > { %v985_v14 = vsel %vm2109_vm6, %v1595_v54, %v984_v55 }
  0x41   : > { %v660_v50 = vpack.c.b16 %v656_v45, %v655_v19  ;;  %v761_v52 = vpack.c.b16 %v2130_v46, %v656_v45  ;;  %v999_v3 = vunpack.c.l.b16 %v985_v14  ;;  %v930_v19 = vld [vmem:[%s1853_s25 + $0x30] sm:$0xe] }
  0x42   : > { %v1596_v49 = vrot.slane %v930_v19, 9 }
  0x44   : > { %v989_v63 = vsel %vm2109_vm6, %v1596_v49, %v988_v31 }
  0x45   : > { %v1000_v1 = vunpack.c.l.b16 %v989_v63 }
  0x47   : > { %v1097_v32 = vpack.c.b16 %v1000_v1, %v999_v3 }
  0x4c   : > { %1468 = vmatmul.msk.bf16.gmra.mxu1 %vm316_vm0, %v362_v41  ;;  %1496 = vmatmul.msk.bf16.gmra.mxu2 %vm316_vm0, %v363_v22  ;;  %v439_v41 = vunpack.c.l.b16 %v254_v39 }
  0x4e   : > { %1524 = vmatmul.msk.bf16.gmra.mxu3 %vm316_vm0, %v659_v20  ;;  %1552 = vmatmul.msk.bf16.gmra.mxu0 %vm316_vm0, %v760_v21  ;;  %v440_v47 = vpack.c.b16 %v439_v41, %v287_v17  ;;  %v1003_v17 = vpack.c.b16 %v997_v11, %v996_v29  ;;  %v524_v21 = vld [vmem:[%s1853_s25 + $0x4c] sm:$0x1] }
  0x4f   : > { %v854_v25 = vshll.u32 %v524_v21, 16  ;;  %v1185_v29 = vrot.slane %v524_v21, 5 }
  0x51   : > { %v856_v16 = vrot.slane %v854_v25, 5  ;;  %v1186_v34 = vsel %vm2109_vm6, %v1655_v28, %v1185_v29 }
  0x52   : > { %v1187_v38 = vunpack.c.l.b16 %v1186_v34 }
  0x5c   : > { %1469 = vmatmul.msk.bf16.gmra.mxu1 %vm316_vm0, %v363_v22  ;;  %1497 = vmatmul.msk.bf16.gmra.mxu2 %vm316_vm0, %v440_v47  ;;  %v1001_v22 = vunpack.c.l.b16 %v993_v0 }
  0x5e   : > { %1525 = vmatmul.msk.bf16.gmra.mxu3 %vm316_vm0, %v660_v50  ;;  %1553 = vmatmul.msk.bf16.gmra.mxu0 %vm316_vm0, %v761_v52  ;;  %v1005_v24 = vpack.c.b16 %v1001_v22, %v1000_v1 }
  0x6c   : > { %1578 = vmatmul.msk.bf16.vlgmr.msra.gmra.mxu1 %vm316_vm0, %v2067_v42  ;;  %1614 = vmatmul.msk.bf16.vlgmr.msra.gmra.mxu2 %vm316_vm0, %v1002_v30  ;;  %v998_v42 = vunpack.c.l.b16 %v981_v13 }
  0x6e   : > { %1643 = vmatmul.msk.bf16.vlgmr.msra.gmra.mxu3 %vm316_vm0, %v1095_v33  ;;  %1672 = vmatmul.msk.bf16.vlgmr.msra.gmra.mxu0 %vm316_vm0, %v1003_v17  ;;  %v1096_v6 = vpack.c.b16 %v998_v42, %v997_v11  ;;  %v1004_v18 = vpack.c.b16 %v999_v3, %v998_v42  ;;  %v1093_v33 = vsel %vm2109_vm6, %v1626_v26, %v1092_v27 }
  0x6f   : > { %v1094_v37 = vunpack.c.l.b16 %v1093_v33 }
  0x71   : > { %v1098_v44 = vpack.c.b16 %v1094_v37, %v1001_v22  ;;  %v1188_v41 = vpack.c.b16 %v1187_v38, %v1094_v37 }
  0x7c   : > { %1579 = vmatmul.msk.bf16.gmra.mxu1 %vm316_vm0, %v659_v20  ;;  %1615 = vmatmul.msk.bf16.gmra.mxu2 %vm316_vm0, %v1003_v17  ;;  %v850_v20 = vrot.slane %v848_v61, 5 }
  0x7e   : > { %1644 = vmatmul.msk.bf16.gmra.mxu3 %vm316_vm0, %v1096_v6  ;;  %1673 = vmatmul.msk.bf16.gmra.mxu0 %vm316_vm0, %v1004_v18  ;;  %v851_v8 = vor.u32 %v850_v20, %v847_v15 }
  0x80   : > { %v852_v12 = vrot.slane %v851_v8, 4 }
  0x82   : > { %v857_v30 = vsel %vm1958_vm3, %v852_v12, %v856_v16 }
  0x83   : > { %v858_v36 = vunpack.c.l.b16 %v857_v30 }
  0x85   : > { %v859_v39 = vpack.c.b16 %v858_v36, %v2130_v46 }
  0x8c   : > { %1580 = vmatmul.msk.bf16.gmra.mxu1 %vm316_vm0, %v660_v50  ;;  %1616 = vmatmul.msk.bf16.gmra.mxu2 %vm316_vm0, %v1004_v18 }
  0x8e   : > { %1645 = vmatmul.msk.bf16.gmra.mxu3 %vm316_vm0, %v1097_v32  ;;  %1674 = vmatmul.msk.bf16.gmra.mxu0 %vm316_vm0, %v1005_v24 }
  0x99   : > { %v343_v43 = vpop.f32.mrf.mxu1 }
  0x9b   : > { %v338_v35 = vpop.f32.mrf.mxu0 }
  0x9c   : > { %1581 = vmatmul.msk.bf16.gmra.mxu1 %vm316_vm0, %v859_v39  ;;  %1617 = vmatmul.msk.bf16.gmra.mxu2 %vm316_vm0, %v1005_v24 }
  0x9e   : > { %1646 = vmatmul.msk.bf16.gmra.mxu3 %vm316_vm0, %v1098_v44  ;;  %1675 = vmatmul.msk.bf16.gmra.mxu0 %vm316_vm0, %v1188_v41 }
  0x9f   : > { %v348_v62 = vpop.f32.mrf.mxu2 }
  0xa1   : > { %v353_v2 = vpop.f32.mrf.mxu3  ;;  %v2188_v45 = vpop.f32.mrf.mxu1 }
  0xa3   : > { %v340_v47 = vpop.f32.mrf.mxu0 }
  0xa7   : > { %v2190_v50 = vpop.f32.mrf.mxu2 }
  0xa9   : > { %v2192_v46 = vpop.f32.mrf.mxu3  ;;  %v409_v52 = vpop.f32.mrf.mxu1 }
  0xaa   : > { %v410_v4 = vadd.f32 %v409_v52, %v338_v35 }
  0xab   : > { %v807_v5 = vpop.f32.mrf.mxu0 }
  0xaf   : > { %v477_v7 = vpop.f32.mrf.mxu2 }
  0xb0   : > { %v497_v9 = vadd.f32 %v477_v7, %v410_v4 }
  0xb1   : > { %v706_v11 = vpop.f32.mrf.mxu3  ;;  %v411_v17 = vpop.f32.mrf.mxu1 }
  0xb2   : > { %v726_v40 = vadd.f32 %v706_v11, %v497_v9  ;;  %v412_v34 = vadd.f32 %v411_v17, %v340_v47  ;;  %v2219_v9 = vld [vmem:[%s2264_s2] ss:$0 sm:$0xff] }
  0xb3   : > { %v809_v51 = vpop.f32.mrf.mxu0 }
  0xb4   : > { %v827_v48 = vadd.f32 %v807_v5, %v726_v40 }
  0xb7   : > { %v479_v53 = vpop.f32.mrf.mxu2 }
  0xb8   : > { %v498_v37 = vadd.f32 %v479_v53, %v412_v34 }
  0xb9   : > { %v708_v54 = vpop.f32.mrf.mxu3  ;;  %v414_v55 = vpop.f32.mrf.mxu1 }
  0xba   : > { %v415_v13 = vadd.f32 %v414_v55, %v343_v43  ;;  %v727_v43 = vadd.f32 %v708_v54, %v498_v37 }
  0xbb   : > { %v812_v14 = vpop.f32.mrf.mxu0 }
  0xbc   : > { %v828_v52 = vadd.f32 %v809_v51, %v727_v43 }
  0xbf   : > { %v482_v42 = vpop.f32.mrf.mxu2 }
  0xc0   : > { %v499_v3 = vadd.f32 %v482_v42, %v415_v13 }
  0xc1   : > { %v711_v6 = vpop.f32.mrf.mxu3  ;;  %v416_v18 = vpop.f32.mrf.mxu1 }
  0xc2   : > { %v728_v19 = vadd.f32 %v711_v6, %v499_v3  ;;  %v417_v40 = vadd.f32 %v416_v18, %v2188_v45 }
  0xc3   : > { %v2194_v56 = vpop.f32.mrf.mxu0 }
  0xc4   : > { %v829_v49 = vadd.f32 %v812_v14, %v728_v19 }
  0xc7   : > { %v484_v31 = vpop.f32.mrf.mxu2 }
  0xc8   : > { %v500_v54 = vadd.f32 %v484_v31, %v417_v40 }
  0xc9   : > { %v713_v57 = vpop.f32.mrf.mxu3  ;;  %v419_v58 = vpop.f32.mrf.mxu1 }
  0xca   : > { %v420_v59 = vadd.f32 %v419_v58, %v348_v62  ;;  %v729_v3 = vadd.f32 %v713_v57, %v500_v54 }
  0xcb   : > { %v817_v60 = vpop.f32.mrf.mxu0 }
  0xcf   : > { %v487_v61 = vpop.f32.mrf.mxu2 }
  0xd0   : > { %v501_v63 = vadd.f32 %v487_v61, %v420_v59  ;;  %v830_v61 = vadd.f32 %v2194_v56, %v729_v3 }
  0xd1   : > { %v716_v0 = vpop.f32.mrf.mxu3  ;;  %v2196_v1 = vpop.f32.mrf.mxu1 }
  0xd2   : > { %v730_v22 = vadd.f32 %v716_v0, %v501_v63 }
  0xd3   : > { %v2198_v15 = vpop.f32.mrf.mxu0 }
  0xd4   : > { %v2200_v20 = vadd.f32 %v817_v60, %v730_v22 }
  0xd7   : > { %v2202_v21 = vpop.f32.mrf.mxu2 }
  0xd9   : > { %v2204_v32 = vpop.f32.mrf.mxu3  ;;  %v424_v24 = vpop.f32.mrf.mxu1 }
  0xda   : > { %v425_v8 = vadd.f32 %v424_v24, %v353_v2 }
  0xdb   : > { %v822_v25 = vpop.f32.mrf.mxu0 }
  0xdf   : > { %v492_v23 = vpop.f32.mrf.mxu2 }
  0xe0   : > { %v503_v10 = vadd.f32 %v492_v23, %v425_v8  ;;  %v422_v8 = vadd.f32 %v2196_v1, %v2190_v50 }
  0xe1   : > { %v721_v12 = vpop.f32.mrf.mxu3  ;;  %v2206_v16 = vpop.f32.mrf.mxu1 }
  0xe2   : > { %v732_v26 = vadd.f32 %v721_v12, %v503_v10  ;;  %v502_v23 = vadd.f32 %v2202_v21, %v422_v8 }
  0xe3   : > { %v2208_v27 = vpop.f32.mrf.mxu0 }
  0xe4   : > { %v2210_v28 = vadd.f32 %v822_v25, %v732_v26 }
  0xe7   : > { %v2212_v29 = vpop.f32.mrf.mxu2 }
  0xe9   : > { %v2214_v30 = vpop.f32.mrf.mxu3  ;;  %v896_v33 = vpop.f32.mrf.mxu1 }
  0xea   : > { %v916_v38 = vadd.f32 %v896_v33, %v827_v48 }
  0xeb   : > { %v1225_v36 = vpop.f32.mrf.mxu0 }
  0xef   : > { %v1051_v39 = vpop.f32.mrf.mxu2 }
  0xf0   : > { %v1071_v44 = vadd.f32 %v1051_v39, %v916_v38 }
  0xf1   : > { %v1144_v41 = vpop.f32.mrf.mxu3  ;;  %v898_v35 = vpop.f32.mrf.mxu1 }
  0xf2   : > { %v1164_v2 = vadd.f32 %v1144_v41, %v1071_v44  ;;  %v917_v4 = vadd.f32 %v898_v35, %v828_v52 }
  0xf3   : > { %v1227_v62 = vpop.f32.mrf.mxu0 }
  0xf4   : > { %v1245_v7 = vadd.f32 %v1225_v36, %v1164_v2  ;;  %v731_v36 = vadd.f32 %v2204_v32, %v502_v23  ;;  %v427_v32 = vadd.f32 %v2206_v16, %v2192_v46 }
  0xf6   : > { %v1257_v55 = vadd.f32 %v2219_v9, %v1245_v7  ;;  %v832_v21 = vadd.f32 %v2198_v15, %v731_v36  ;;  %v504_v7 = vadd.f32 %v2212_v29, %v427_v32 }
  0xf7   : > { %v1053_v5 = vpop.f32.mrf.mxu2 }
  0xf8   : > { %v1072_v47 = vadd.f32 %v1053_v5, %v917_v4  ;;  %v1265_v6 = vmax.f32 %v1257_v55, 0.0 }
  0xf9   : > { %v1146_v11 = vpop.f32.mrf.mxu3  ;;  %v901_v17 = vpop.f32.mrf.mxu1 }
  0xfa   : > { %v1165_v48 = vadd.f32 %v1146_v11, %v1072_v47  ;;  %v918_v14 = vadd.f32 %v901_v17, %v829_v49 }
  0xfb   : > { %v1230_v53 = vpop.f32.mrf.mxu0 }
  0xfc   : > { %v1246_v13 = vadd.f32 %v1227_v62, %v1165_v48  ;;  %v733_v48 = vadd.f32 %v2214_v30, %v504_v7 }
  0xfe   : > { %v1258_v51 = vadd.f32 %v2219_v9, %v1246_v13 }
  0xff   : > { %v1056_v42 = vpop.f32.mrf.mxu2 }
 0x100   : > { %v1266_v19 = vmax.f32 %v1258_v51, 0.0  ;;  %v1073_v58 = vadd.f32 %v1056_v42, %v918_v14  ;;  %v834_v14 = vadd.f32 %v2208_v27, %v733_v48 }
 0x101   : > { %v1149_v59 = vpop.f32.mrf.mxu3  ;;  %v903_v45 = vpop.f32.mrf.mxu1 }
 0x102   : > { %v1718_v18 = vpack.c.bf16 %v1266_v19, %v1265_v6  ;;  %v1166_v60 = vadd.f32 %v1149_v59, %v1073_v58  ;;  %v919_v49 = vadd.f32 %v903_v45, %v830_v61 }
 0x103   : > { %v1232_v31 = vpop.f32.mrf.mxu0 }
 0x104   : > { %1719 = vst [vmem:[%s2228_s30] sm:$0xff] %v1718_v18   ;;  %v1247_v57 = vadd.f32 %v1230_v53, %v1166_v60 }
 0x106   : > { %v1259_v10 = vadd.f32 %v2219_v9, %v1247_v57 }
 0x107   : > { %v1058_v63 = vpop.f32.mrf.mxu2 }
 0x108   : > { %v1074_v0 = vadd.f32 %v1058_v63, %v919_v49  ;;  %v1267_v37 = vmax.f32 %v1259_v10, 0.0 }
 0x109   : > { %v1151_v22 = vpop.f32.mrf.mxu3  ;;  %v906_v24 = vpop.f32.mrf.mxu1 }
 0x10a   : > { %v1167_v25 = vadd.f32 %v1151_v22, %v1074_v0  ;;  %v920_v56 = vadd.f32 %v906_v24, %v2200_v20 }
 0x10b   : > { %v1235_v26 = vpop.f32.mrf.mxu0 }
 0x10c   : > { %v1248_v12 = vadd.f32 %v1232_v31, %v1167_v25 }
 0x10e   : > { %v1260_v33 = vadd.f32 %v2219_v9, %v1248_v12 }
 0x10f   : > { %v1061_v34 = vpop.f32.mrf.mxu2 }
 0x110   : > { %v1268_v38 = vmax.f32 %v1260_v33, 0.0  ;;  %v1075_v39 = vadd.f32 %v1061_v34, %v920_v56 }
 0x111   : > { %v1154_v43 = vpop.f32.mrf.mxu3  ;;  %v908_v50 = vpop.f32.mrf.mxu1 }
 0x112   : > { %v1723_v1 = vpack.c.bf16 %v1268_v38, %v1267_v37  ;;  %v1168_v44 = vadd.f32 %v1154_v43, %v1075_v39  ;;  %v921_v41 = vadd.f32 %v908_v50, %v832_v21 }
 0x113   : > { %v1237_v35 = vpop.f32.mrf.mxu0 }
 0x114   : > { %1735 = vst [vmem:[%s2228_s30 + $0x8] sm:$0xff] %v1723_v1   ;;  %v1249_v2 = vadd.f32 %v1235_v26, %v1168_v44 }
 0x116   : > { %v1261_v47 = vadd.f32 %v2219_v9, %v1249_v2 }
 0x117   : > { %v1063_v62 = vpop.f32.mrf.mxu2 }
 0x118   : > { %v1076_v52 = vadd.f32 %v1063_v62, %v921_v41  ;;  %v1269_v53 = vmax.f32 %v1261_v47, 0.0 }
 0x119   : > { %v1156_v4 = vpop.f32.mrf.mxu3  ;;  %v911_v20 = vpop.f32.mrf.mxu1 }
 0x11a   : > { %v1169_v5 = vadd.f32 %v1156_v4, %v1076_v52  ;;  %v922_v15 = vadd.f32 %v911_v20, %v2210_v28 }
 0x11b   : > { %v1240_v51 = vpop.f32.mrf.mxu0 }
 0x11c   : > { %v1250_v11 = vadd.f32 %v1237_v35, %v1169_v5 }
 0x11e   : > { %v1262_v17 = vadd.f32 %v2219_v9, %v1250_v11 }
 0x11f   : > { %v1066_v40 = vpop.f32.mrf.mxu2 }
 0x120   : > { %v1270_v54 = vmax.f32 %v1262_v17, 0.0  ;;  %v1077_v55 = vadd.f32 %v1066_v40, %v922_v15 }
 0x121   : > { %v1159_v13 = vpop.f32.mrf.mxu3  ;;  %v913_v16 = vpop.f32.mrf.mxu1 }
 0x122   : > { %v1728_v46 = vpack.c.bf16 %v1270_v54, %v1269_v53  ;;  %v1170_v29 = vadd.f32 %v1159_v13, %v1077_v55  ;;  %v923_v42 = vadd.f32 %v913_v16, %v834_v14 }
 0x123   : > { %v1242_v59 = vpop.f32.mrf.mxu0 }
 0x124   : > { %1736 = vst [vmem:[%s2228_s30 + $0x10] sm:$0xff] %v1728_v46   ;;  %v1251_v6 = vadd.f32 %v1240_v51, %v1170_v29 }
 0x126   : > { %v1263_v30 = vadd.f32 %v2219_v9, %v1251_v6 }
 0x127   : > { %v1068_v3 = vpop.f32.mrf.mxu2 }
 0x128   : > { %v1078_v19 = vadd.f32 %v1068_v3, %v923_v42  ;;  %v1271_v31 = vmax.f32 %v1263_v30, 0.0 }
 0x129   : > { %v1161_v28 = vpop.f32.mrf.mxu3 }
 0x12a   : > { %v1171_v58 = vadd.f32 %v1161_v28, %v1078_v19 }
 0x12c   : > { %v1252_v45 = vadd.f32 %v1242_v59, %v1171_v58 }
 0x12e   : > { %v1264_v18 = vadd.f32 %v2219_v9, %v1252_v45 }
 0x130   : > { %v1272_v60 = vmax.f32 %v1264_v18, 0.0 }
 0x132   : > { %v1733_v61 = vpack.c.bf16 %v1272_v60, %v1271_v31 }
 0x134   : > { %1737 = vst [vmem:[%s2228_s30 + $0x18] sm:$0xff] %v1733_v61  }
 0x135 PF: > { %s13_s14 = sadd.s32 1, %s1798_s14   ;;  %s2270_s12 = smov %s1794_s13 }
 0x136   : > { %p10_p5 = scmp.ge.s32.totalorder %s13_s14, 4   ;;  %s2271_s13 = smov %s2273_s15 }
 0x138   :  { %12 = sbr.rel (!%p10_p5) target bundleno = 2 (0x2), region = 77 }

// kernel: perceptual_vgg_forward.8
= control target key start
LH: loop header
LB: loop body
LE: loop exit
PB: predicated region body
PF: predicated region fallthrough
CT: control target
= control target key end

     0   :  { %s3512_s12 = smov 0   ;;  %s3514_s13 = smov 0   ;;  %s4612_s0 = inlined_call_operand.vmem [shape: bf16[2,18,18,64], index: 0, kind: input, shape index: {}]   ;;  %s4613_s1 = inlined_call_operand.vmem [shape: bf16[9,64,64], index: 1, kind: input, shape index: {}]   ;;  %s4614_s2 = inlined_call_operand.vmem [shape: f32[1,64], index: 2, kind: input, shape index: {}]   ;;  %s4615_s3 = inlined_call_operand.vmem [shape: bf16[2,16,16,64], index: 3, kind: output, shape index: {}]  }
   0x1   :  { %s3516_s14 = smov 0  }
   0x2 LB: > { %s32_s15 = sadd.s32 1, %s3486_s13  ;;  %p2891_p0 = scmp.ge.s32.totalorder %s3490_s14, 1  ;;  %s3490_s14 = sphi %s3516_s14, %s13_s14   ;;  %s3486_s13 = sphi %s3514_s13, %s4663_s13   ;;  %s3482_s12 = sphi %s3512_s12, %s4662_s12  }
   0x3   : > { %p34_p1 = scmp.ge.s32.totalorder %s32_s15, 2  ;;  %p177_p2 = scmp.lt.s32.totalorder %s3490_s14, 3 }
   0x5   : > { %s4665_s15 = smov (%p34_p1, %s32_s15), 0  ;;  %p178_p3 = pnand %p2891_p0, %p177_p2 }
   0x7   : > { %181 = sbr.rel (%p178_p3) target bundleno = 739 (0x2e3), region = 32 }
   0xc   : > { %v3365_v0 = vld [vmem:[%s4613_s1 + $0x78] sm:$0xff]  ;;  %p216_p4 = scmp.lt.s32.totalorder %s3482_s12, 1  ;;  %v3364_v1 = vld [vmem:[%s4613_s1 + $0x70] sm:$0xff]  ;;  %v3363_v2 = vld [vmem:[%s4613_s1 + $0x68] sm:$0xff]  ;;  %vm404_vm0 = vcmask 523264   ;;  %vm1959_vm4 = vcmask 1042432  }
   0xd   : > { %3394 = vmatpush.bf16.msra.mxu1 %v3365_v0  ;;  %3395 = vmatpush.bf16.msra.mxu2 %v3365_v0  ;;  %v3362_v3 = vld [vmem:[%s4613_s1 + $0x60] sm:$0xff]  ;;  %v3369_v4 = vld [vmem:[%s4613_s1 + $0xd8] sm:$0xff]  ;;  %v3368_v12 = vld [vmem:[%s4613_s1 + $0xd0] sm:$0xff]  ;;  %vm888_vm1 = vsmask.f32 3328  ;;  %vm1960_vm5 = vcmask 1046532  }
   0xe   : > { %s4667_s12 = smov (!%p216_p4, %s3482_s12), 1  ;;  %3396 = vmatpush.bf16.msra.mxu3 %v3365_v0  ;;  %457 = vmatpush.bf16.msra.mxu0 %v3365_v0  ;;  %v3373_v5 = vld [vmem:[%s4613_s1 + $0x38] sm:$0xff]  ;;  %v3372_v13 = vld [vmem:[%s4613_s1 + $0x30] sm:$0xff]  ;;  %v3367_v16 = vld [vmem:[%s4613_s1 + $0xc8] sm:$0xff]  ;;  %vm889_vm2 = vsmask.f32 7440 }
   0xf   : > { %s3406_s22 = smul.u32 216, %s4667_s12  ;;  %v3361_v10 = vld [vmem:[%s4613_s1 + $0x18] sm:$0xff]  ;;  %v3360_v14 = vld [vmem:[%s4613_s1 + $0x10] sm:$0xff]  ;;  %v3371_v17 = vld [vmem:[%s4613_s1 + $0x28] sm:$0xff]  ;;  %s3339_s28 = sshll.u32 %s4667_s12, 7  ;;  %vm2723_vm7 = vcmask 519168  }
  0x10   : > { %v3377_v11 = vld [vmem:[%s4613_s1 + $0x98] sm:$0xff]  ;;  %v3376_v15 = vld [vmem:[%s4613_s1 + $0x90] sm:$0xff]  ;;  %v3359_v18 = vld [vmem:[%s4613_s1 + $0x8] sm:$0xff]  ;;  %s4362_s4 = scalar_lea.vmem %s4615_s3, %s3339_s28 }
  0x11   : > { %3397 = vmatpush.bf16.msra.mxu1 %v3364_v1  ;;  %3398 = vmatpush.bf16.msra.mxu2 %v3364_v1  ;;  %s3548_s27 = scalar_lea.vmem %s4612_s0, %s3406_s22  ;;  %v3375_v19 = vld [vmem:[%s4613_s1 + $0x88] sm:$0xff]  ;;  %v3366_v24 = vld [vmem:[%s4613_s1 + $0xc0] sm:$0xff]  ;;  %v3385_v36 = vld [vmem:[%s4613_s1 + $0x58] sm:$0xff] }
  0x12   : > { %3399 = vmatpush.bf16.msra.mxu3 %v3364_v1  ;;  %458 = vmatpush.bf16.msra.mxu0 %v3364_v1  ;;  %v3557_v6 = vld [vmem:[%s3548_s27 + $0x3c] sm:$0xff]  ;;  %v3560_v7 = vld [vmem:[%s3548_s27 + $0x6c] sm:$0xff]  ;;  %v3633_v28 = vld [vmem:[%s3548_s27 + $0x54] sm:$0xff] }
  0x13   : > { %v3353_v8 = vld [vmem:[%s3548_s27 + $0x9c] sm:$0xff]  ;;  %v3564_v9 = vld [vmem:[%s3548_s27 + $0xc] sm:$0xff]  ;;  %v3636_v29 = vld [vmem:[%s3548_s27 + $0x84] sm:$0xff] }
  0x14   : > { %v3604_v20 = vld [vmem:[%s3548_s27 + $0x48] sm:$0xff]  ;;  %v3607_v21 = vld [vmem:[%s3548_s27 + $0x78] sm:$0xff]  ;;  %v3370_v25 = vld [vmem:[%s4613_s1 + $0x20] sm:$0xff] }
  0x15   : > { %3400 = vmatpush.bf16.msra.mxu1 %v3363_v2  ;;  %3401 = vmatpush.bf16.msra.mxu2 %v3363_v2  ;;  %v3354_v22 = vld [vmem:[%s3548_s27 + $0xa8] sm:$0xff]  ;;  %v3611_v23 = vld [vmem:[%s3548_s27 + $0x18] sm:$0xff]  ;;  %v3358_v26 = vld [vmem:[%s4613_s1] sm:$0xff] }
  0x16   : > { %3402 = vmatpush.bf16.msra.mxu3 %v3363_v2  ;;  %459 = vmatpush.bf16.msra.mxu0 %v3363_v2  ;;  %v3374_v27 = vld [vmem:[%s4613_s1 + $0x80] sm:$0xff]  ;;  %v3355_v30 = vld [vmem:[%s3548_s27 + $0xb4] sm:$0xff]  ;;  %v828_v34 = vld [vmem:[%s3548_s27 + $0xc] sm:$0xf] }
  0x17   : > { %v3640_v31 = vld [vmem:[%s3548_s27 + $0x24] sm:$0xff]  ;;  %v825_v32 = vld [vmem:[%s3548_s27] sm:$0xf]  ;;  %v829_v35 = vld [vmem:[%s3548_s27 + $0x10] sm:$0xf]  ;;  %v916_v44 = vshrl.u32 %v828_v34, 16 }
  0x18   : > { %v826_v33 = vld [vmem:[%s3548_s27 + $0x4] sm:$0xf]  ;;  %v3389_v37 = vld [vmem:[%s4613_s1 + $0xb8] sm:$0xff]  ;;  %v892_v40 = vshrl.u32 %v825_v32, 16  ;;  %v895_v41 = vshll.u32 %v825_v32, 16  ;;  %v919_v45 = vshll.u32 %v828_v34, 16  ;;  %vm3687_vm3 = vmor %vm888_vm1, %vm889_vm2 }
  0x19   : > { %3403 = vmatpush.bf16.msra.mxu1 %v3362_v3  ;;  %3404 = vmatpush.bf16.msra.mxu2 %v3362_v3  ;;  %v3381_v38 = vld [vmem:[%s4613_s1 + $0xf8] sm:$0xff]  ;;  %v901_v42 = vshll.u32 %v826_v33, 16  ;;  %v905_v43 = vshrl.u32 %v826_v33, 16  ;;  %v925_v46 = vshll.u32 %v829_v35, 16  ;;  %v929_v47 = vshrl.u32 %v829_v35, 16  ;;  %v3668_v59 = vld [vmem:[%s3548_s27 + $0x60] sm:$0xff]  ;;  %vm3698_vm6 = vmor %vm1959_vm4, %vm1960_vm5 }
  0x1a   : > { %3405 = vmatpush.bf16.msra.mxu3 %v3362_v3  ;;  %460 = vmatpush.bf16.msra.mxu0 %v3362_v3  ;;  %v3393_v39 = vld [vmem:[%s4613_s1 + $0x118] sm:$0xff]  ;;  %v894_v48 = vrot.slane %v892_v40, 4  ;;  %v897_v49 = vrot.slane %v895_v41, 5  ;;  %v918_v52 = vrot.slane %v916_v44, 4  ;;  %v921_v53 = vrot.slane %v919_v45, 5  ;;  %v3671_v60 = vld [vmem:[%s3548_s27 + $0x90] sm:$0xff] }
  0x1b   : > { %v903_v50 = vrot.slane %v901_v42, 5  ;;  %v907_v51 = vrot.slane %v905_v43, 4  ;;  %v927_v54 = vrot.slane %v925_v46, 5  ;;  %v931_v55 = vrot.slane %v929_v47, 4  ;;  %v827_v56 = vld [vmem:[%s3548_s27 + $0x8] sm:$0x1] }
  0x1c   : > { %2987 = vmatmul.msk.bf16.vlgmr.msra.gmra.mxu1 %vm404_vm0, %v3557_v6  ;;  %2991 = vmatmul.msk.bf16.vlgmr.msra.gmra.mxu2 %vm404_vm0, %v3560_v7  ;;  %v830_v57 = vld [vmem:[%s3548_s27 + $0x14] sm:$0x1]  ;;  %v898_v58 = vor.u32 %v897_v49, %v894_v48  ;;  %v911_v62 = vshll.u32 %v827_v56, 16  ;;  %v922_v63 = vor.u32 %v921_v53, %v918_v52  ;;  %v3356_v1 = vld [vmem:[%s3548_s27 + $0xc0] sm:$0xff] }
  0x1d   : > { %708 = vmatpush.bf16.msrb.mxu2 %v3369_v4  ;;  %2995 = vmatmul.msk.bf16.vlgmr.msra.gmra.mxu3 %vm404_vm0, %v3353_v8  ;;  %v908_v61 = vor.u32 %v907_v51, %v903_v50  ;;  %v932_v0 = vor.u32 %v931_v55, %v927_v54  ;;  %v3675_v2 = vld [vmem:[%s3548_s27 + $0x30] sm:$0xff]  ;;  %v935_v3 = vshll.u32 %v830_v57, 16  ;;  %v3340_v44 = vld [vmem:[%s3548_s27] sm:$0xff]  ;;  %v835_v51 = vld [vmem:[%s3548_s27 + $0x28] sm:$0xf] }
  0x1e   : > { %1399 = vmatpush.bf16.msrb.mxu3 %v3373_v5  ;;  %2983 = vmatmul.msk.bf16.vlgmr.msra.gmra.mxu0 %vm404_vm0, %v3564_v9  ;;  %v899_v4 = vrot.slane %v898_v58, 4  ;;  %v913_v8 = vrot.slane %v911_v62, 5  ;;  %v973_v57 = vshll.u32 %v835_v51, 16  ;;  %v977_v58 = vshrl.u32 %v835_v51, 16  ;;  %v841_v51 = vld [vmem:[%s3548_s27 + $0x40] sm:$0xf] }
  0x1f   : > { %578 = vmatpush.bf16.msrb.mxu1 %v3361_v10  ;;  %1583 = vmatpush.bf16.msrb.mxu0 %v3377_v11  ;;  %v909_v5 = vrot.slane %v908_v61, 4  ;;  %v923_v10 = vrot.slane %v922_v63, 4  ;;  %v933_v11 = vrot.slane %v932_v0, 4 }
  0x21   : > { %709 = vmatpush.bf16.msrb.mxu2 %v3368_v12  ;;  %v3682_v12 = vld [vmem:[%s3548_s27 + $0x1c] sm:$0xf] }
  0x22   : > { %1400 = vmatpush.bf16.msrb.mxu3 %v3372_v13  ;;  %v949_v34 = vshll.u32 %v3682_v12, 16  ;;  %v953_v35 = vshrl.u32 %v3682_v12, 16 }
  0x23   : > { %579 = vmatpush.bf16.msrb.mxu1 %v3360_v14  ;;  %1584 = vmatpush.bf16.msrb.mxu0 %v3376_v15  ;;  %v937_v14 = vrot.slane %v935_v3, 5  ;;  %v833_v15 = vld [vmem:[%s3548_s27 + $0x20] sm:$0x1]  ;;  %v979_v3 = vrot.slane %v977_v58, 4  ;;  %v1025_v58 = vshrl.u32 %v841_v51, 16 }
  0x24   : > { %v951_v42 = vrot.slane %v949_v34, 5  ;;  %v955_v43 = vrot.slane %v953_v35, 4  ;;  %v959_v49 = vshll.u32 %v833_v15, 16 }
  0x25   : > { %710 = vmatpush.bf16.msrb.mxu2 %v3367_v16  ;;  %v4616_v16 = vrot.slane %v3682_v12, 5 }
  0x26   : > { %1401 = vmatpush.bf16.msrb.mxu3 %v3371_v17  ;;  %v1981_v17 = vrot.slane %v833_v15, 5  ;;  %v956_v48 = vor.u32 %v955_v43, %v951_v42 }
  0x27   : > { %580 = vmatpush.bf16.msrb.mxu1 %v3359_v18  ;;  %1585 = vmatpush.bf16.msrb.mxu0 %v3375_v19  ;;  %v831_v18 = vld [vmem:[%s3548_s27 + $0x18] sm:$0xf]  ;;  %v1980_v19 = vrot.slane %v4616_v16, 4 }
  0x28   : > { %v940_v32 = vshrl.u32 %v831_v18, 16  ;;  %v943_v33 = vshll.u32 %v831_v18, 16  ;;  %v957_v53 = vrot.slane %v956_v48, 4 }
  0x29   : > { %711 = vmatpush.bf16.msrb.mxu2 %v3366_v24 }
  0x2a   : > { %1402 = vmatpush.bf16.msrb.mxu3 %v3370_v25  ;;  %v914_v25 = vsel %vm3687_vm3, %v909_v5, %v913_v8  ;;  %v942_v40 = vrot.slane %v940_v32, 4  ;;  %v945_v41 = vrot.slane %v943_v33, 5  ;;  %v836_v8 = vld [vmem:[%s3548_s27 + $0x2c] sm:$0x1] }
  0x2b   : > { %581 = vmatpush.bf16.msrb.mxu1 %v3358_v26  ;;  %1586 = vmatpush.bf16.msrb.mxu0 %v3374_v27  ;;  %v928_v26 = vsel %vm3687_vm3, %v923_v10, %v927_v54  ;;  %v938_v27 = vsel %vm3687_vm3, %v933_v11, %v937_v14  ;;  %v961_v54 = vrot.slane %v959_v49, 5  ;;  %v983_v14 = vshll.u32 %v836_v8, 16  ;;  %v3384_v49 = vld [vmem:[%s4613_s1 + $0x50] sm:$0xff] }
  0x2c   : > { %2988 = vmatmul.msk.bf16.gmra.mxu1 %vm404_vm0, %v3604_v20  ;;  %2992 = vmatmul.msk.bf16.gmra.mxu2 %vm404_vm0, %v3607_v21  ;;  %v946_v47 = vor.u32 %v945_v41, %v942_v40  ;;  %v839_v41 = vld [vmem:[%s3548_s27 + $0x38] sm:$0x1] }
  0x2d   : > { %2996 = vmatmul.msk.bf16.gmra.mxu3 %vm404_vm0, %v3354_v22  ;;  %2198 = vmatpush.bf16.msra.mxu2 %v3385_v36  ;;  %v904_v22 = vsel %vm3687_vm3, %v899_v4, %v903_v50  ;;  %v834_v50 = vld [vmem:[%s3548_s27 + $0x24] sm:$0xf]  ;;  %v962_v62 = vsel %vm3687_vm3, %v957_v53, %v961_v54 }
  0x2e   : > { %2984 = vmatmul.msk.bf16.gmra.mxu0 %vm404_vm0, %v3611_v23  ;;  %2368 = vmatpush.bf16.msra.mxu3 %v3389_v37  ;;  %v1275_v36 = vunpack.c.l.b16 %v904_v22  ;;  %v1276_v37 = vunpack.c.l.b16 %v914_v25  ;;  %v947_v52 = vrot.slane %v946_v47, 4  ;;  %v964_v55 = vshrl.u32 %v834_v50, 16  ;;  %v837_v22 = vld [vmem:[%s3548_s27 + $0x30] sm:$0xf]  ;;  %v838_v25 = vld [vmem:[%s3548_s27 + $0x34] sm:$0xf] }
  0x2f   : > { %1767 = vmatpush.bf16.msra.mxu1 %v3381_v38  ;;  %2538 = vmatpush.bf16.msra.mxu0 %v3393_v39  ;;  %v1277_v38 = vunpack.c.l.b16 %v928_v26  ;;  %v1278_v39 = vunpack.c.l.b16 %v938_v27  ;;  %v967_v56 = vshll.u32 %v834_v50, 16  ;;  %v1280_v5 = vunpack.c.l.b16 %v962_v62  ;;  %v840_v50 = vld [vmem:[%s3548_s27 + $0x3c] sm:$0xf] }
  0x30   : > { %v1307_v45 = vpack.c.b16 %v1276_v37, %v1275_v36  ;;  %v952_v61 = vsel %vm3687_vm3, %v947_v52, %v951_v42  ;;  %v966_v63 = vrot.slane %v964_v55, 4  ;;  %v988_v27 = vshrl.u32 %v837_v22, 16  ;;  %v3380_v52 = vld [vmem:[%s4613_s1 + $0xf0] sm:$0xff] }
  0x31   : > { %v1308_v46 = vpack.c.b16 %v1278_v39, %v1277_v38  ;;  %v969_v0 = vrot.slane %v967_v56, 5  ;;  %v1279_v4 = vunpack.c.l.b16 %v952_v61  ;;  %v991_v32 = vshll.u32 %v837_v22, 16  ;;  %2199 = vmatpush.bf16.msra.mxu2 %v3384_v49  ;;  %v3392_v61 = vld [vmem:[%s4613_s1 + $0x110] sm:$0xff] }
  0x32   : > { %v997_v33 = vshll.u32 %v838_v25, 16  ;;  %v1001_v34 = vshrl.u32 %v838_v25, 16  ;;  %v990_v37 = vrot.slane %v988_v27, 4  ;;  %v1012_v55 = vshrl.u32 %v840_v50, 16 }
  0x33   : > { %v970_v10 = vor.u32 %v969_v0, %v966_v63  ;;  %v3727_v15 = vpack.c.b16 %v1280_v5, %v1279_v4  ;;  %v993_v38 = vrot.slane %v991_v32, 5  ;;  %v1015_v56 = vshll.u32 %v840_v50, 16  ;;  %1768 = vmatpush.bf16.msra.mxu1 %v3380_v52  ;;  %2539 = vmatpush.bf16.msra.mxu0 %v3392_v61  ;;  %v842_v5 = vld [vmem:[%s3548_s27 + $0x44] sm:$0x1]  ;;  %v846_v50 = vld [vmem:[%s3548_s27 + $0x54] sm:$0xf] }
  0x34   : > { %v999_v39 = vrot.slane %v997_v33, 5  ;;  %v1003_v40 = vrot.slane %v1001_v34, 4  ;;  %v1014_v0 = vrot.slane %v1012_v55, 4  ;;  %v1027_v4 = vrot.slane %v1025_v58, 4 }
  0x35   : > { %v994_v43 = vor.u32 %v993_v38, %v990_v37 }
  0x3c   : > { %2989 = vmatmul.msk.bf16.gmra.mxu1 %vm404_vm0, %v3633_v28  ;;  %2993 = vmatmul.msk.bf16.gmra.mxu2 %vm404_vm0, %v3636_v29 }
  0x3d   : > { %2997 = vmatmul.msk.bf16.gmra.mxu3 %vm404_vm0, %v3355_v30  ;;  %v3710_v30 = vsel %vm3698_vm6, %v1980_v19, %v1981_v17  ;;  %v971_v17 = vrot.slane %v970_v10, 4  ;;  %v985_v19 = vrot.slane %v983_v14, 5  ;;  %v1031_v14 = vshll.u32 %v842_v5, 16 }
  0x3e   : > { %2985 = vmatmul.msk.bf16.gmra.mxu0 %vm404_vm0, %v3640_v31 }
  0x3f   : > { %v1033_v25 = vrot.slane %v1031_v14, 5 }
  0x4c   : > { %2990 = vmatmul.msk.bf16.gmra.mxu1 %vm404_vm0, %v3668_v59  ;;  %2994 = vmatmul.msk.bf16.gmra.mxu2 %vm404_vm0, %v3671_v60 }
  0x4d   : > { %2998 = vmatmul.msk.bf16.gmra.mxu3 %vm404_vm0, %v3356_v1  ;;  %v975_v1 = vrot.slane %v973_v57, 5  ;;  %v1021_v57 = vshll.u32 %v841_v51, 16  ;;  %v847_v51 = vld [vmem:[%s3548_s27 + $0x58] sm:$0xf] }
  0x4e   : > { %2986 = vmatmul.msk.bf16.gmra.mxu0 %vm404_vm0, %v3675_v2  ;;  %v1069_v58 = vshll.u32 %v847_v51, 16  ;;  %v1073_v61 = vshrl.u32 %v847_v51, 16 }
  0x4f   : > { %v980_v11 = vor.u32 %v979_v3, %v975_v1  ;;  %v976_v26 = vsel %vm3687_vm3, %v971_v17, %v975_v1  ;;  %v1017_v1 = vrot.slane %v1015_v56, 5  ;;  %v1023_v3 = vrot.slane %v1021_v57, 5  ;;  %v843_v17 = vld [vmem:[%s3548_s27 + $0x48] sm:$0xf] }
  0x50   : > { %v1281_v35 = vunpack.c.l.b16 %v976_v26  ;;  %v1036_v26 = vshrl.u32 %v843_v17, 16  ;;  %v1060_v56 = vshrl.u32 %v846_v50, 16  ;;  %v1063_v57 = vshll.u32 %v846_v50, 16 }
  0x51   : > { %v981_v18 = vrot.slane %v980_v11, 4  ;;  %v1018_v10 = vor.u32 %v1017_v1, %v1014_v0  ;;  %v1028_v11 = vor.u32 %v1027_v4, %v1023_v3  ;;  %v1071_v4 = vrot.slane %v1069_v58, 5 }
  0x52   : > { %v1038_v34 = vrot.slane %v1036_v26, 4  ;;  %v1062_v1 = vrot.slane %v1060_v56, 4  ;;  %v1075_v5 = vrot.slane %v1073_v61, 4 }
  0x53   : > { %v1029_v22 = vrot.slane %v1028_v11, 4 }
  0x55   : > { %v1034_v33 = vsel %vm3687_vm3, %v1029_v22, %v1033_v25  ;;  %v1076_v22 = vor.u32 %v1075_v5, %v1071_v4  ;;  %v853_v5 = vld [vmem:[%s3548_s27 + $0x70] sm:$0xf] }
  0x5c   : > { %3019 = vmatmul.msk.bf16.vlgmr.msrb.gmra.mxu1 %vm404_vm0, %v3340_v44  ;;  %3063 = vmatmul.msk.bf16.vlgmr.msrb.gmra.mxu2 %vm404_vm0, %v3611_v23  ;;  %v1004_v44 = vor.u32 %v1003_v40, %v999_v39  ;;  %v845_v40 = vld [vmem:[%s3548_s27 + $0x50] sm:$0x1] }
  0x5d   : > { %3103 = vmatmul.msk.bf16.vlgmr.msrb.gmra.mxu3 %vm404_vm0, %v1307_v45  ;;  %v1007_v45 = vshll.u32 %v839_v41, 16 }
  0x5e   : > { %3143 = vmatmul.msk.bf16.vlgmr.msrb.gmra.mxu0 %vm404_vm0, %v1308_v46  ;;  %v1005_v47 = vrot.slane %v1004_v44, 4  ;;  %v1055_v44 = vshll.u32 %v845_v40, 16 }
  0x5f   : > { %v1009_v48 = vrot.slane %v1007_v45, 5 }
  0x61   : > { %v1010_v54 = vsel %vm3687_vm3, %v1005_v47, %v1009_v48 }
  0x62   : > { %v1284_v63 = vunpack.c.l.b16 %v1010_v54 }
  0x6c   : > { %3020 = vmatmul.msk.bf16.gmra.mxu1 %vm404_vm0, %v3564_v9  ;;  %3064 = vmatmul.msk.bf16.gmra.mxu2 %vm404_vm0, %v3640_v31  ;;  %v986_v9 = vsel %vm3687_vm3, %v981_v18, %v985_v19  ;;  %v844_v18 = vld [vmem:[%s3548_s27 + $0x4c] sm:$0xf]  ;;  %v1019_v19 = vrot.slane %v1018_v10, 4  ;;  %v848_v10 = vld [vmem:[%s3548_s27 + $0x5c] sm:$0x1] }
  0x6d   : > { %3104 = vmatmul.msk.bf16.gmra.mxu3 %vm404_vm0, %v1308_v46  ;;  %v1282_v36 = vunpack.c.l.b16 %v986_v9  ;;  %v995_v46 = vrot.slane %v994_v43, 4  ;;  %v1039_v9 = vshll.u32 %v843_v17, 16  ;;  %v1045_v27 = vshll.u32 %v844_v18, 16 }
  0x6e   : > { %3144 = vmatmul.msk.bf16.gmra.mxu0 %vm404_vm0, %v3727_v15  ;;  %v1049_v32 = vshrl.u32 %v844_v18, 16  ;;  %v1079_v25 = vshll.u32 %v848_v10, 16  ;;  %v3387_v10 = vld [vmem:[%s4613_s1 + $0xa8] sm:$0xff] }
  0x6f   : > { %v3743_v42 = vpack.c.b16 %v1282_v36, %v1281_v35  ;;  %v1000_v53 = vsel %vm3687_vm3, %v995_v46, %v999_v39  ;;  %v1041_v35 = vrot.slane %v1039_v9, 5  ;;  %v1047_v36 = vrot.slane %v1045_v27, 5 }
  0x70   : > { %v1283_v62 = vunpack.c.l.b16 %v1000_v53  ;;  %v1051_v37 = vrot.slane %v1049_v32, 4  ;;  %v1286_v39 = vunpack.c.l.b16 %v1034_v33  ;;  %v1077_v27 = vrot.slane %v1076_v22, 4  ;;  %v849_v33 = vld [vmem:[%s3548_s27 + $0x60] sm:$0xf] }
  0x71   : > { %v1042_v41 = vor.u32 %v1041_v35, %v1038_v34  ;;  %v1081_v32 = vrot.slane %v1079_v25, 5  ;;  %v850_v34 = vld [vmem:[%s3548_s27 + $0x64] sm:$0xf]  ;;  %v1087_v40 = vshll.u32 %v849_v33, 16 }
  0x72   : > { %v3772_v8 = vpack.c.b16 %v1284_v63, %v1283_v62  ;;  %v1052_v43 = vor.u32 %v1051_v37, %v1047_v36 }
  0x73   : > { %v1043_v48 = vrot.slane %v1042_v41, 4  ;;  %v1082_v37 = vsel %vm3687_vm3, %v1077_v27, %v1081_v32  ;;  %v1093_v41 = vshll.u32 %v850_v34, 16 }
  0x74   : > { %v1053_v49 = vrot.slane %v1052_v43, 4  ;;  %v1097_v43 = vshrl.u32 %v850_v34, 16  ;;  %v1121_v34 = vshrl.u32 %v853_v5, 16 }
  0x75   : > { %v1095_v50 = vrot.slane %v1093_v41, 5  ;;  %v3379_v41 = vld [vmem:[%s4613_s1 + $0xe8] sm:$0xff] }
  0x76   : > { %v1099_v51 = vrot.slane %v1097_v43, 4  ;;  %v3391_v43 = vld [vmem:[%s4613_s1 + $0x108] sm:$0xff]  ;;  %1769 = vmatpush.bf16.msra.mxu1 %v3379_v41 }
  0x77   : > { %2540 = vmatpush.bf16.msra.mxu0 %v3391_v43 }
  0x7c   : > { %3021 = vmatmul.msk.bf16.gmra.mxu1 %vm404_vm0, %v3611_v23  ;;  %3065 = vmatmul.msk.bf16.gmra.mxu2 %vm404_vm0, %v3675_v2  ;;  %v3388_v23 = vld [vmem:[%s4613_s1 + $0xb0] sm:$0xff] }
  0x7d   : > { %3105 = vmatmul.msk.bf16.gmra.mxu3 %vm404_vm0, %v3727_v15 }
  0x7e   : > { %3145 = vmatmul.msk.bf16.gmra.mxu0 %vm404_vm0, %v3743_v42  ;;  %2369 = vmatpush.bf16.msra.mxu3 %v3388_v23  ;;  %v1057_v23 = vrot.slane %v1055_v44, 5 }
  0x80   : > { %v1058_v54 = vsel %vm3687_vm3, %v1053_v49, %v1057_v23  ;;  %v1089_v23 = vrot.slane %v1087_v40, 5 }
  0x81   : > { %v1288_v0 = vunpack.c.l.b16 %v1058_v54  ;;  %v851_v54 = vld [vmem:[%s3548_s27 + $0x68] sm:$0x1] }
  0x82   : > { %2370 = vmatpush.bf16.msra.mxu3 %v3387_v10 }
  0x8c   : > { %3022 = vmatmul.msk.bf16.gmra.mxu1 %vm404_vm0, %v3640_v31  ;;  %3066 = vmatmul.msk.bf16.gmra.mxu2 %vm404_vm0, %v3557_v6  ;;  %v1024_v31 = vsel %vm3687_vm3, %v1019_v19, %v1023_v3  ;;  %v1065_v3 = vrot.slane %v1063_v57, 5 }
  0x8d   : > { %3106 = vmatmul.msk.bf16.gmra.mxu3 %vm404_vm0, %v3743_v42  ;;  %v1285_v38 = vunpack.c.l.b16 %v1024_v31 }
  0x8e   : > { %3146 = vmatmul.msk.bf16.gmra.mxu0 %vm404_vm0, %v3772_v8  ;;  %v1066_v19 = vor.u32 %v1065_v3, %v1062_v1  ;;  %v1103_v1 = vshll.u32 %v851_v54, 16  ;;  %v852_v3 = vld [vmem:[%s3548_s27 + $0x6c] sm:$0xf] }
  0x8f   : > { %v3791_v46 = vpack.c.b16 %v1286_v39, %v1285_v38  ;;  %v1084_v39 = vshrl.u32 %v849_v33, 16  ;;  %v1108_v27 = vshrl.u32 %v852_v3, 16  ;;  %v1111_v32 = vshll.u32 %v852_v3, 16 }
  0x90   : > { %v1067_v9 = vrot.slane %v1066_v19, 4  ;;  %v1105_v22 = vrot.slane %v1103_v1, 5  ;;  %v1117_v33 = vshll.u32 %v853_v5, 16 }
  0x91   : > { %v1086_v49 = vrot.slane %v1084_v39, 4 }
  0x99   : > { %v3789_v45 = vpop.f32.mrf.mxu1 }
  0x9b   : > { %v3793_v47 = vpop.f32.mrf.mxu0 }
  0x9c   : > { %3023 = vmatmul.msk.bf16.gmra.mxu1 %vm404_vm0, %v3675_v2  ;;  %3067 = vmatmul.msk.bf16.gmra.mxu2 %vm404_vm0, %v3604_v20  ;;  %v1048_v2 = vsel %vm3687_vm3, %v1043_v48, %v1047_v36  ;;  %v1072_v36 = vsel %vm3687_vm3, %v1067_v9, %v1071_v4  ;;  %v1290_v48 = vunpack.c.l.b16 %v1082_v37  ;;  %v3383_v4 = vld [vmem:[%s4613_s1 + $0x48] sm:$0xff] }
  0x9d   : > { %3107 = vmatmul.msk.bf16.gmra.mxu3 %vm404_vm0, %v3772_v8  ;;  %v1287_v63 = vunpack.c.l.b16 %v1048_v2  ;;  %v1289_v44 = vunpack.c.l.b16 %v1072_v36  ;;  %2200 = vmatpush.bf16.msra.mxu2 %v3383_v4 }
  0x9e   : > { %3147 = vmatmul.msk.bf16.gmra.mxu0 %vm404_vm0, %v3791_v46 }
  0x9f   : > { %v3805_v52 = vpop.f32.mrf.mxu2  ;;  %v3824_v18 = vpack.c.b16 %v1288_v0, %v1287_v63  ;;  %v3857_v58 = vpack.c.b16 %v1290_v48, %v1289_v44  ;;  %v1090_v63 = vor.u32 %v1089_v23, %v1086_v49  ;;  %v1100_v0 = vor.u32 %v1099_v51, %v1095_v50 }
  0xa0   : > { %v3807_v53 = vpop.f32.mrf.mxu3  ;;  %v1110_v44 = vrot.slane %v1108_v27, 4  ;;  %v1113_v48 = vrot.slane %v1111_v32, 5  ;;  %v1119_v49 = vrot.slane %v1117_v33, 5  ;;  %v1123_v23 = vrot.slane %v1121_v34, 4  ;;  %v855_v32 = vld [vmem:[%s3548_s27 + $0x78] sm:$0xf] }
  0xa1   : > { %v3813_v55 = vpop.f32.mrf.mxu1  ;;  %4627 = vst [vmem:[#allocation4_spill] sm:$0xff] %v3857_v58  ;;  %v1101_v19 = vrot.slane %v1100_v0, 4  ;;  %v856_v33 = vld [vmem:[%s3548_s27 + $0x7c] sm:$0xf]  ;;  %v1132_v43 = vshrl.u32 %v855_v32, 16 }
  0xa2   : > { %v1114_v1 = vor.u32 %v1113_v48, %v1110_v44  ;;  %v1124_v3 = vor.u32 %v1123_v23, %v1119_v49  ;;  %v1135_v44 = vshll.u32 %v855_v32, 16  ;;  %v1141_v48 = vshll.u32 %v856_v33, 16 }
  0xa3   : > { %v3815_v62 = vpop.f32.mrf.mxu0  ;;  %v1106_v40 = vsel %vm3687_vm3, %v1101_v19, %v1105_v22  ;;  %v1145_v23 = vshrl.u32 %v856_v33, 16 }
  0xa4   : > { %v1292_v54 = vunpack.c.l.b16 %v1106_v40  ;;  %v1115_v19 = vrot.slane %v1114_v1, 4  ;;  %v1125_v22 = vrot.slane %v1124_v3, 4  ;;  %v1134_v1 = vrot.slane %v1132_v43, 4 }
  0xa5   : > { %v1137_v3 = vrot.slane %v1135_v44, 5  ;;  %v1147_v16 = vrot.slane %v1145_v23, 4  ;;  %v859_v23 = vld [vmem:[%s3548_s27 + $0x88] sm:$0xf] }
  0xa7   : > { %v3818_v11 = vpop.f32.mrf.mxu2 }
  0xa8   : > { %v3820_v14 = vpop.f32.mrf.mxu3 }
  0xa9   : > { %v3822_v17 = vpop.f32.mrf.mxu1 }
  0xab   : > { %v3826_v26 = vpop.f32.mrf.mxu0 }
  0xac   : > { %3024 = vmatmul.msk.bf16.gmra.mxu1 %vm404_vm0, %v3557_v6  ;;  %3068 = vmatmul.msk.bf16.gmra.mxu2 %vm404_vm0, %v3633_v28 }
  0xad   : > { %3108 = vmatmul.msk.bf16.gmra.mxu3 %vm404_vm0, %v3791_v46 }
  0xae   : > { %3148 = vmatmul.msk.bf16.gmra.mxu0 %vm404_vm0, %v3824_v18 }
  0xaf   : > { %v3836_v31 = vpop.f32.mrf.mxu2 }
  0xb0   : > { %v3840_v35 = vpop.f32.mrf.mxu3 }
  0xb1   : > { %4625 = vst [vmem:[#allocation2_spill] sm:$0xff] %v3840_v35  ;;  %v3842_v6 = vpop.f32.mrf.mxu1 }
  0xb3   : > { %v3848_v38 = vpop.f32.mrf.mxu0 }
  0xb7   : > { %v3850_v2 = vpop.f32.mrf.mxu2 }
  0xb8   : > { %v3853_v56 = vpop.f32.mrf.mxu3 }
  0xb9   : > { %4626 = vst [vmem:[#allocation3_spill] sm:$0xff] %v3853_v56  ;;  %v3855_v57 = vpop.f32.mrf.mxu1 }
  0xbb   : > { %v3859_v61 = vpop.f32.mrf.mxu0 }
  0xbc   : > { %3025 = vmatmul.msk.bf16.gmra.mxu1 %vm404_vm0, %v3604_v20  ;;  %3069 = vmatmul.msk.bf16.gmra.mxu2 %vm404_vm0, %v3668_v59  ;;  %v1091_v20 = vrot.slane %v1090_v63, 4 }
  0xbd   : > { %3109 = vmatmul.msk.bf16.gmra.mxu3 %vm404_vm0, %v3824_v18 }
  0xbe   : > { %3149 = vmatmul.msk.bf16.gmra.mxu0 %vm404_vm0, %v3857_v58  ;;  %v1096_v39 = vsel %vm3687_vm3, %v1091_v20, %v1095_v50  ;;  %v854_v50 = vld [vmem:[%s3548_s27 + $0x74] sm:$0x1] }
  0xbf   : > { %v3877_v25 = vpop.f32.mrf.mxu2  ;;  %v1291_v51 = vunpack.c.l.b16 %v1096_v39  ;;  %v1127_v4 = vshll.u32 %v854_v50, 16 }
  0xc0   : > { %v3879_v9 = vpop.f32.mrf.mxu3 }
  0xc1   : > { %4628 = vst [vmem:[#allocation5_spill] sm:$0xff] %v3879_v9  ;;  %v3881_v36 = vpop.f32.mrf.mxu1  ;;  %v3902_v10 = vpack.c.b16 %v1292_v54, %v1291_v51  ;;  %v1129_v27 = vrot.slane %v1127_v4, 5  ;;  %v1143_v4 = vrot.slane %v1141_v48, 5  ;;  %v1169_v9 = vshrl.u32 %v859_v23, 16 }
  0xc3   : > { %v3883_v37 = vpop.f32.mrf.mxu0  ;;  %4630 = vst [vmem:[#allocation7_spill] sm:$0xff] %v3902_v10  ;;  %v1130_v40 = vsel %vm3687_vm3, %v1125_v22, %v1129_v27  ;;  %v1138_v27 = vor.u32 %v1137_v3, %v1134_v1  ;;  %v1148_v32 = vor.u32 %v1147_v16, %v1143_v4  ;;  %v858_v16 = vld [vmem:[%s3548_s27 + $0x84] sm:$0xf] }
  0xc4   : > { %v1294_v50 = vunpack.c.l.b16 %v1130_v40  ;;  %v1156_v3 = vshrl.u32 %v858_v16, 16 }
  0xc5   : > { %v1139_v43 = vrot.slane %v1138_v27, 4  ;;  %v1149_v44 = vrot.slane %v1148_v32, 4 }
  0xc6   : > { %v1158_v56 = vrot.slane %v1156_v3, 4 }
  0xc7   : > { %v3896_v63 = vpop.f32.mrf.mxu2 }
  0xc8   : > { %v3898_v0 = vpop.f32.mrf.mxu3 }
  0xc9   : > { %4629 = vst [vmem:[#allocation6_spill] sm:$0xff] %v3898_v0  ;;  %v3900_v5 = vpop.f32.mrf.mxu1 }
  0xcb   : > { %v3904_v20 = vpop.f32.mrf.mxu0 }
  0xcc   : > { %3026 = vmatmul.msk.bf16.gmra.mxu1 %vm404_vm0, %v3633_v28  ;;  %3070 = vmatmul.msk.bf16.gmra.mxu2 %vm404_vm0, %v3560_v7  ;;  %v1120_v28 = vsel %vm3687_vm3, %v1115_v19, %v1119_v49 }
  0xcd   : > { %3110 = vmatmul.msk.bf16.gmra.mxu3 %vm404_vm0, %v3857_v58  ;;  %v1293_v54 = vunpack.c.l.b16 %v1120_v28 }
  0xce   : > { %3150 = vmatmul.msk.bf16.gmra.mxu0 %vm404_vm0, %v3902_v10 }
  0xcf   : > { %v3916_v34 = vpop.f32.mrf.mxu2  ;;  %v3933_v22 = vpack.c.b16 %v1294_v50, %v1293_v54 }
  0xd0   : > { %v3918_v39 = vpop.f32.mrf.mxu3 }
  0xd1   : > { %4631 = vst [vmem:[#allocation8_spill] sm:$0xff] %v3918_v39  ;;  %v3924_v41 = vpop.f32.mrf.mxu1  ;;  %v857_v39 = vld [vmem:[%s3548_s27 + $0x80] sm:$0x1] }
  0xd2   : > { %v1151_v33 = vshll.u32 %v857_v39, 16 }
  0xd3   : > { %v3926_v51 = vpop.f32.mrf.mxu0 }
  0xd4   : > { %v1153_v48 = vrot.slane %v1151_v33, 5  ;;  %v1165_v33 = vshll.u32 %v859_v23, 16 }
  0xd6   : > { %v1154_v1 = vsel %vm3687_vm3, %v1149_v44, %v1153_v48  ;;  %v1167_v58 = vrot.slane %v1165_v33, 5  ;;  %v860_v44 = vld [vmem:[%s3548_s27 + $0x8c] sm:$0x1] }
  0xd7   : > { %v3929_v0 = vpop.f32.mrf.mxu2 }
  0xd8   : > { %v3931_v49 = vpop.f32.mrf.mxu3 }
  0xd9   : > { %4632 = vst [vmem:[#allocation9_spill] sm:$0xff] %v3931_v49  ;;  %v583_v19 = vpop.f32.mrf.mxu1 }
  0xda   : > { %v584_v28 = vadd.f32 %v583_v19, %v3793_v47  ;;  %v1159_v19 = vshll.u32 %v858_v16, 16 }
  0xdb   : > { %v1588_v40 = vpop.f32.mrf.mxu0 }
  0xdc   : > { %3027 = vmatmul.msk.bf16.gmra.mxu1 %vm404_vm0, %v3668_v59  ;;  %3071 = vmatmul.msk.bf16.gmra.mxu2 %vm404_vm0, %v3607_v21  ;;  %v1144_v59 = vsel %vm3687_vm3, %v1139_v43, %v1143_v4  ;;  %v1161_v35 = vrot.slane %v1159_v19, 5  ;;  %v1171_v4 = vrot.slane %v1169_v9, 4  ;;  %v861_v9 = vld [vmem:[%s3548_s27 + $0x90] sm:$0xf] }
  0xdd   : > { %3111 = vmatmul.msk.bf16.gmra.mxu3 %vm404_vm0, %v3902_v10 }
  0xde   : > { %3151 = vmatmul.msk.bf16.gmra.mxu0 %vm404_vm0, %v3933_v22  ;;  %v1172_v23 = vor.u32 %v1171_v4, %v1167_v58 }
  0xdf   : > { %v713_v39 = vpop.f32.mrf.mxu2 }
  0xe0   : > { %v793_v47 = vadd.f32 %v713_v39, %v584_v28  ;;  %v1404_v54 = vpop.f32.mrf.mxu3  ;;  %v1295_v28 = vunpack.c.l.b16 %v1144_v59  ;;  %v1296_v39 = vunpack.c.l.b16 %v1154_v1  ;;  %v1175_v59 = vshll.u32 %v860_v44, 16 }
  0xe1   : > { %v585_v50 = vpop.f32.mrf.mxu1 }
  0xe2   : > { %v1484_v49 = vadd.f32 %v1404_v54, %v793_v47  ;;  %v586_v27 = vadd.f32 %v585_v50, %v3815_v62  ;;  %v3954_v54 = vpack.c.b16 %v1296_v39, %v1295_v28  ;;  %v1162_v62 = vor.u32 %v1161_v35, %v1158_v56  ;;  %v862_v35 = vld [vmem:[%s3548_s27 + $0x94] sm:$0xf] }
  0xe3   : > { %v1590_v32 = vpop.f32.mrf.mxu0  ;;  %v1173_v56 = vrot.slane %v1172_v23, 4  ;;  %v1177_v3 = vrot.slane %v1175_v59, 5  ;;  %v1183_v28 = vshll.u32 %v861_v9, 16  ;;  %v1189_v39 = vshll.u32 %v862_v35, 16 }
  0xe4   : > { %v3951_v10 = vadd.f32 %v1588_v40, %v1484_v49  ;;  %v1193_v4 = vshrl.u32 %v862_v35, 16  ;;  %v863_v35 = vld [vmem:[%s3548_s27 + $0x98] sm:$0x1] }
  0xe5   : > { %v1191_v23 = vrot.slane %v1189_v39, 5 }
  0xe6   : > { %4633 = vst [vmem:[#allocation10_spill] sm:$0xff] %v3951_v10  ;;  %v1199_v10 = vshll.u32 %v863_v35, 16 }
  0xe7   : > { %v715_v43 = vpop.f32.mrf.mxu2 }
  0xe8   : > { %v794_v48 = vadd.f32 %v715_v43, %v586_v27  ;;  %v1406_v16 = vpop.f32.mrf.mxu3  ;;  %v1180_v27 = vshrl.u32 %v861_v9, 16 }
  0xe9   : > { %v588_v47 = vpop.f32.mrf.mxu1 }
  0xea   : > { %v1485_v50 = vadd.f32 %v1406_v16, %v794_v48  ;;  %v589_v49 = vadd.f32 %v588_v47, %v3826_v26  ;;  %v1163_v26 = vrot.slane %v1162_v62, 4  ;;  %v1178_v47 = vsel %vm3687_vm3, %v1173_v56, %v1177_v3 }
  0xeb   : > { %v1593_v40 = vpop.f32.mrf.mxu0  ;;  %v1182_v62 = vrot.slane %v1180_v27, 4 }
  0xec   : > { %3028 = vmatmul.msk.bf16.gmra.mxu1 %vm404_vm0, %v3560_v7  ;;  %3072 = vmatmul.msk.bf16.gmra.mxu2 %vm404_vm0, %v3636_v29  ;;  %v3962_v1 = vadd.f32 %v1590_v32, %v1485_v50  ;;  %v1168_v16 = vsel %vm3687_vm3, %v1163_v26, %v1167_v58  ;;  %v1185_v50 = vrot.slane %v1183_v28, 5  ;;  %v1201_v28 = vrot.slane %v1199_v10, 5 }
  0xed   : > { %3112 = vmatmul.msk.bf16.gmra.mxu3 %vm404_vm0, %v3933_v22  ;;  %v1297_v9 = vunpack.c.l.b16 %v1168_v16 }
  0xee   : > { %4634 = vst [vmem:[#allocation11_spill] sm:$0xff] %v3962_v1  ;;  %3152 = vmatmul.msk.bf16.gmra.mxu0 %vm404_vm0, %v3954_v54 }
  0xef   : > { %v718_v19 = vpop.f32.mrf.mxu2 }
  0xf0   : > { %v795_v33 = vadd.f32 %v718_v19, %v589_v49  ;;  %v1409_v7 = vpop.f32.mrf.mxu3  ;;  %v1195_v49 = vrot.slane %v1193_v4, 4  ;;  %v1298_v19 = vunpack.c.l.b16 %v1178_v47  ;;  %v864_v4 = vld [vmem:[%s3548_s27 + $0x9c] sm:$0xf] }
  0xf1   : > { %v590_v32 = vpop.f32.mrf.mxu1 }
  0xf2   : > { %v1486_v43 = vadd.f32 %v1409_v7, %v795_v33  ;;  %v591_v44 = vadd.f32 %v590_v32, %v3848_v38  ;;  %v1186_v38 = vor.u32 %v1185_v50, %v1182_v62  ;;  %v1196_v32 = vor.u32 %v1195_v49, %v1191_v23 }
  0xf3   : > { %v1595_v48 = vpop.f32.mrf.mxu0  ;;  %v3977_v26 = vpack.c.b16 %v1298_v19, %v1297_v9  ;;  %v1204_v50 = vshrl.u32 %v864_v4, 16  ;;  %v1207_v49 = vshll.u32 %v864_v4, 16 }
  0xf4   : > { %v3974_v59 = vadd.f32 %v1593_v40, %v1486_v43  ;;  %v1187_v40 = vrot.slane %v1186_v38, 4  ;;  %v865_v43 = vld [vmem:[%s3548_s27 + $0xa0] sm:$0xf] }
  0xf5   : > { %v1213_v9 = vshll.u32 %v865_v43, 16  ;;  %v1217_v19 = vshrl.u32 %v865_v43, 16  ;;  %v3378_v38 = vld [vmem:[%s4613_s1 + $0xe0] sm:$0xff] }
  0xf6   : > { %v1192_v16 = vsel %vm3687_vm3, %v1187_v40, %v1191_v23  ;;  %v3390_v23 = vld [vmem:[%s4613_s1 + $0x100] sm:$0xff]  ;;  %1770 = vmatpush.bf16.msra.mxu1 %v3378_v38  ;;  %v1209_v40 = vrot.slane %v1207_v49, 5  ;;  %v868_v38 = vld [vmem:[%s3548_s27 + $0xac] sm:$0xf] }
  0xf7   : > { %v720_v1 = vpop.f32.mrf.mxu2  ;;  %2541 = vmatpush.bf16.msra.mxu0 %v3390_v23 }
  0xf8   : > { %v796_v33 = vadd.f32 %v720_v1, %v591_v44  ;;  %v1411_v7 = vpop.f32.mrf.mxu3  ;;  %v1197_v1 = vrot.slane %v1196_v32, 4  ;;  %v1299_v32 = vunpack.c.l.b16 %v1192_v16 }
  0xf9   : > { %v593_v58 = vpop.f32.mrf.mxu1 }
  0xfa   : > { %v1487_v56 = vadd.f32 %v1411_v7, %v796_v33  ;;  %v594_v3 = vadd.f32 %v593_v58, %v3859_v61  ;;  %v3382_v61 = vld [vmem:[%s4613_s1 + $0x40] sm:$0xff]  ;;  %v1202_v47 = vsel %vm3687_vm3, %v1197_v1, %v1201_v28  ;;  %v1215_v1 = vrot.slane %v1213_v9, 5 }
  0xfb   : > { %v1598_v27 = vpop.f32.mrf.mxu0  ;;  %2201 = vmatpush.bf16.msra.mxu2 %v3382_v61  ;;  %v1300_v58 = vunpack.c.l.b16 %v1202_v47  ;;  %v866_v28 = vld [vmem:[%s3548_s27 + $0xa4] sm:$0x1] }
  0xfc   : > { %3029 = vmatmul.msk.bf16.gmra.mxu1 %vm404_vm0, %v3607_v21  ;;  %3073 = vmatmul.msk.bf16.gmra.mxu2 %vm404_vm0, %v3671_v60  ;;  %v3984_v39 = vadd.f32 %v1595_v48, %v1487_v56  ;;  %v3386_v21 = vld [vmem:[%s4613_s1 + $0xa0] sm:$0xff]  ;;  %v1223_v16 = vshll.u32 %v866_v28, 16 }
  0xfd   : > { %3113 = vmatmul.msk.bf16.gmra.mxu3 %vm404_vm0, %v3954_v54 }
  0xfe   : > { %3153 = vmatmul.msk.bf16.gmra.mxu0 %vm404_vm0, %v3977_v26  ;;  %2371 = vmatpush.bf16.msra.mxu3 %v3386_v21 }
  0xff   : > { %v723_v44 = vpop.f32.mrf.mxu2 }
 0x100   : > { %v797_v10 = vadd.f32 %v723_v44, %v594_v3  ;;  %v1414_v48 = vpop.f32.mrf.mxu3  ;;  %v1206_v3 = vrot.slane %v1204_v50, 4  ;;  %v4012_v44 = vpack.c.b16 %v1300_v58, %v1299_v32  ;;  %v4018_v50 = vld [vmem:[%s3548_s27 + $0x9c] sm:$0xff] }
 0x101   : > { %v595_v62 = vpop.f32.mrf.mxu1 }
 0x102   : > { %v1488_v35 = vadd.f32 %v1414_v48, %v797_v10  ;;  %v596_v33 = vadd.f32 %v595_v62, %v3883_v37  ;;  %v1219_v37 = vrot.slane %v1217_v19, 4  ;;  %4636 = vst [vmem:[#allocation13_spill] sm:$0xff] %v4012_v44  ;;  %v1210_v10 = vor.u32 %v1209_v40, %v1206_v3 }
 0x103   : > { %v1600_v7 = vpop.f32.mrf.mxu0 }
 0x104   : > { %v4009_v56 = vadd.f32 %v1598_v27, %v1488_v35  ;;  %v1220_v48 = vor.u32 %v1219_v37, %v1215_v1  ;;  %v1211_v9 = vrot.slane %v1210_v10, 4  ;;  %v867_v35 = vld [vmem:[%s3548_s27 + $0xa8] sm:$0xf] }
 0x105   : > { %v1228_v3 = vshrl.u32 %v867_v35, 16  ;;  %v1231_v40 = vshll.u32 %v867_v35, 16 }
 0x106   : > { %4635 = vst [vmem:[#allocation12_spill] sm:$0xff] %v4009_v56  ;;  %v1221_v19 = vrot.slane %v1220_v48, 4  ;;  %v1216_v58 = vsel %vm3687_vm3, %v1211_v9, %v1215_v1  ;;  %v1886_v56 = vld [vmem:[%s3548_s27 + $0x18] sm:$0xe] }
 0x107   : > { %v725_v61 = vpop.f32.mrf.mxu2  ;;  %v1301_v10 = vunpack.c.l.b16 %v1216_v58  ;;  %v4043_v58 = vld [vmem:[%s3548_s27 + $0xa8] sm:$0xff] }
 0x108   : > { %v798_v21 = vadd.f32 %v725_v61, %v596_v33  ;;  %v1416_v4 = vpop.f32.mrf.mxu3 }
 0x109   : > { %v598_v43 = vpop.f32.mrf.mxu1 }
 0x10a   : > { %v1489_v47 = vadd.f32 %v1416_v4, %v798_v21  ;;  %v599_v27 = vadd.f32 %v598_v43, %v3904_v20  ;;  %v1225_v20 = vrot.slane %v1223_v16, 5  ;;  %v1237_v21 = vshll.u32 %v868_v38, 16 }
 0x10b   : > { %v1603_v62 = vpop.f32.mrf.mxu0  ;;  %v1241_v4 = vshrl.u32 %v868_v38, 16  ;;  %v1230_v16 = vrot.slane %v1228_v3, 4 }
 0x10c   : > { %3030 = vmatmul.msk.bf16.gmra.mxu1 %vm404_vm0, %v3636_v29  ;;  %3074 = vmatmul.msk.bf16.gmra.mxu2 %vm404_vm0, %v4018_v50  ;;  %v4022_v49 = vadd.f32 %v1600_v7, %v1489_v47  ;;  %v1226_v7 = vsel %vm3687_vm3, %v1221_v19, %v1225_v20  ;;  %v1233_v47 = vrot.slane %v1231_v40, 5  ;;  %v1239_v1 = vrot.slane %v1237_v21, 5  ;;  %v869_v19 = vld [vmem:[%s3548_s27 + $0xb0] sm:$0x1]  ;;  %v871_v40 = vld [vmem:[%s3548_s27 + $0xb8] sm:$0xf] }
 0x10d   : > { %3114 = vmatmul.msk.bf16.gmra.mxu3 %vm404_vm0, %v3977_v26  ;;  %v1302_v48 = vunpack.c.l.b16 %v1226_v7  ;;  %v870_v7 = vld [vmem:[%s3548_s27 + $0xb4] sm:$0xf] }
 0x10e   : > { %4637 = vst [vmem:[#allocation14_spill] sm:$0xff] %v4022_v49  ;;  %3154 = vmatmul.msk.bf16.gmra.mxu0 %vm404_vm0, %v4012_v44 }
 0x10f   : > { %v728_v33 = vpop.f32.mrf.mxu2 }
 0x110   : > { %v799_v29 = vadd.f32 %v728_v33, %v599_v27  ;;  %v1419_v23 = vpop.f32.mrf.mxu3  ;;  %v1243_v27 = vrot.slane %v1241_v4, 4 }
 0x111   : > { %v600_v32 = vpop.f32.mrf.mxu1 }
 0x112   : > { %v1490_v37 = vadd.f32 %v1419_v23, %v799_v29  ;;  %v601_v28 = vadd.f32 %v600_v32, %v3926_v51  ;;  %v4038_v51 = vpack.c.b16 %v1302_v48, %v1301_v10  ;;  %v1244_v23 = vor.u32 %v1243_v27, %v1239_v1 }
 0x113   : > { %v1605_v61 = vpop.f32.mrf.mxu0  ;;  %v1247_v32 = vshll.u32 %v869_v19, 16  ;;  %v1252_v10 = vshrl.u32 %v870_v7, 16  ;;  %v1265_v27 = vshrl.u32 %v871_v40, 16 }
 0x114   : > { %v4035_v43 = vadd.f32 %v1603_v62, %v1490_v37  ;;  %4639 = vst [vmem:[#allocation16_spill] sm:$0xff] %v4038_v51  ;;  %v1234_v62 = vor.u32 %v1233_v47, %v1230_v16  ;;  %v1245_v21 = vrot.slane %v1244_v23, 4  ;;  %v1255_v47 = vshll.u32 %v870_v7, 16 }
 0x115   : > { %v1267_v23 = vrot.slane %v1265_v27, 4 }
 0x116   : > { %4638 = vst [vmem:[#allocation15_spill] sm:$0xff] %v4035_v43 }
 0x117   : > { %v730_v9 = vpop.f32.mrf.mxu2 }
 0x118   : > { %v800_v20 = vadd.f32 %v730_v9, %v601_v28  ;;  %v1421_v35 = vpop.f32.mrf.mxu3  ;;  %v1235_v28 = vrot.slane %v1234_v62, 4 }
 0x119   : > { %v603_v33 = vpop.f32.mrf.mxu1 }
 0x11a   : > { %v1491_v29 = vadd.f32 %v1421_v35, %v800_v20  ;;  %v604_v37 = vadd.f32 %v603_v33, %v3789_v45  ;;  %v1240_v35 = vsel %vm3687_vm3, %v1235_v28, %v1239_v1  ;;  %v1254_v33 = vrot.slane %v1252_v10, 4 }
 0x11b   : > { %v1608_v38 = vpop.f32.mrf.mxu0 }
 0x11c   : > { %3031 = vmatmul.msk.bf16.gmra.mxu1 %vm404_vm0, %v3671_v60  ;;  %3075 = vmatmul.msk.bf16.gmra.mxu2 %vm404_vm0, %v4043_v58  ;;  %v4048_v3 = vadd.f32 %v1605_v61, %v1491_v29  ;;  %v1249_v60 = vrot.slane %v1247_v32, 5  ;;  %v1261_v61 = vshll.u32 %v871_v40, 16  ;;  %v1257_v29 = vrot.slane %v1255_v47, 5  ;;  %v4069_v47 = vld [vmem:[%s3548_s27 + $0xb4] sm:$0xff] }
 0x11d   : > { %3115 = vmatmul.msk.bf16.gmra.mxu3 %vm404_vm0, %v4012_v44 }
 0x11e   : > { %4640 = vst [vmem:[#allocation17_spill] sm:$0xff] %v4048_v3  ;;  %3155 = vmatmul.msk.bf16.gmra.mxu0 %vm404_vm0, %v4038_v51  ;;  %v1250_v45 = vsel %vm3687_vm3, %v1245_v21, %v1249_v60  ;;  %v1263_v62 = vrot.slane %v1261_v61, 5  ;;  %v1258_v1 = vor.u32 %v1257_v29, %v1254_v33  ;;  %v3435_v29 = vld [vmem:[%s3548_s27 + $0x4] sm:$0xf] }
 0x11f   : > { %v733_v4 = vpop.f32.mrf.mxu2  ;;  %v1304_v7 = vunpack.c.l.b16 %v1250_v45 }
 0x120   : > { %v801_v48 = vadd.f32 %v733_v4, %v604_v37  ;;  %v1424_v16 = vpop.f32.mrf.mxu3  ;;  %v1303_v37 = vunpack.c.l.b16 %v1240_v35  ;;  %v872_v4 = vld [vmem:[%s3548_s27 + $0xbc] sm:$0x1]  ;;  %v1268_v28 = vor.u32 %v1267_v23, %v1263_v62  ;;  %v1964_v23 = vrot.slane %v3435_v29, 5  ;;  %v3438_v29 = vld [vmem:[%s3548_s27 + $0x14] sm:$0x1] }
 0x121   : > { %v605_v9 = vpop.f32.mrf.mxu1  ;;  %v1271_v43 = vshll.u32 %v872_v4, 16  ;;  %v3436_v4 = vld [vmem:[%s3548_s27 + $0x10] sm:$0xf] }
 0x122   : > { %v1492_v19 = vadd.f32 %v1424_v16, %v801_v48  ;;  %v606_v40 = vadd.f32 %v605_v9, %v3813_v55  ;;  %v4064_v60 = vpack.c.b16 %v1304_v7, %v1303_v37  ;;  %v1259_v55 = vrot.slane %v1258_v1, 4  ;;  %v873_v9 = vld [vmem:[%s3548_s27 + $0xc0] sm:$0xf] }
 0x123   : > { %v1610_v20 = vpop.f32.mrf.mxu0  ;;  %v1269_v61 = vrot.slane %v1268_v28, 4  ;;  %v1273_v27 = vrot.slane %v1271_v43, 5  ;;  %v1526_v45 = vshrl.u32 %v873_v9, 16  ;;  %v1529_v33 = vshll.u32 %v873_v9, 16 }
 0x124   : > { %v4060_v32 = vadd.f32 %v1608_v38, %v1492_v19 }
 0x125   : > { %v1274_v7 = vsel %vm3687_vm3, %v1269_v61, %v1273_v27  ;;  %v1528_v9 = vrot.slane %v1526_v45, 4  ;;  %v1974_v61 = vrot.slane %v3438_v29, 5  ;;  %v875_v27 = vld [vmem:[%s3548_s27 + $0xc8] sm:$0x1] }
 0x126   : > { %4641 = vst [vmem:[#allocation18_spill] sm:$0xff] %v4060_v32 }
 0x127   : > { %v735_v48 = vpop.f32.mrf.mxu2 }
 0x128   : > { %v802_v16 = vadd.f32 %v735_v48, %v606_v40  ;;  %v1426_v3 = vpop.f32.mrf.mxu3  ;;  %v1971_v40 = vrot.slane %v3436_v4, 5 }
 0x129   : > { %v608_v21 = vpop.f32.mrf.mxu1 }
 0x12a   : > { %v1493_v10 = vadd.f32 %v1426_v3, %v802_v16  ;;  %v874_v3 = vld [vmem:[%s3548_s27 + $0xc4] sm:$0xf]  ;;  %v1973_v4 = vrot.slane %v1971_v40, 4 }
 0x12b   : > { %v1613_v38 = vpop.f32.mrf.mxu0  ;;  %v1535_v48 = vshll.u32 %v874_v3, 16  ;;  %v1539_v28 = vshrl.u32 %v874_v3, 16 }
 0x12c   : > { %3032 = vmatmul.msk.bf16.gmra.mxu1 %vm404_vm0, %v4018_v50  ;;  %3076 = vmatmul.msk.bf16.gmra.mxu2 %vm404_vm0, %v4069_v47  ;;  %v4074_v19 = vadd.f32 %v1610_v20, %v1493_v10  ;;  %v609_v50 = vadd.f32 %v608_v21, %v3822_v17  ;;  %v1264_v20 = vsel %vm3687_vm3, %v1259_v55, %v1263_v62  ;;  %v1306_v10 = vunpack.c.l.b16 %v1274_v7  ;;  %v3437_v62 = vld [vmem:[%s3548_s27 + $0x8] sm:$0x1] }
 0x12d   : > { %3116 = vmatmul.msk.bf16.gmra.mxu3 %vm404_vm0, %v4038_v51  ;;  %v1305_v21 = vunpack.c.l.b16 %v1264_v20  ;;  %v1967_v55 = vrot.slane %v3437_v62, 5  ;;  %v1537_v32 = vrot.slane %v1535_v48, 5  ;;  %v1541_v3 = vrot.slane %v1539_v28, 4 }
 0x12e   : > { %4642 = vst [vmem:[#allocation19_spill] sm:$0xff] %v4074_v19  ;;  %3156 = vmatmul.msk.bf16.gmra.mxu0 %vm404_vm0, %v4064_v60  ;;  %v1545_v62 = vshll.u32 %v875_v27, 16 }
 0x12f   : > { %v738_v35 = vpop.f32.mrf.mxu2 }
 0x130   : > { %v803_v37 = vadd.f32 %v738_v35, %v609_v50  ;;  %v1429_v43 = vpop.f32.mrf.mxu3  ;;  %v1531_v50 = vrot.slane %v1529_v33, 5  ;;  %v1966_v35 = vrot.slane %v1964_v23, 4  ;;  %v4096_v33 = vpack.c.b16 %v1306_v10, %v1305_v21 }
 0x131   : > { %v610_v17 = vpop.f32.mrf.mxu1  ;;  %v1975_v21 = vsel %vm3698_vm6, %v1973_v4, %v1974_v61 }
 0x132   : > { %v1494_v16 = vadd.f32 %v1429_v43, %v803_v37  ;;  %v1884_v37 = vld [vmem:[%s3548_s27] sm:$0xe]  ;;  %v1885_v43 = vld [vmem:[%s3548_s27 + $0xc] sm:$0xe]  ;;  %v611_v51 = vadd.f32 %v610_v17, %v3842_v6  ;;  %v1532_v49 = vor.u32 %v1531_v50, %v1528_v9  ;;  %v1968_v48 = vsel %vm3698_vm6, %v1966_v35, %v1967_v55 }
 0x133   : > { %v1615_v1 = vpop.f32.mrf.mxu0  ;;  %v3207_v20 = vrot.slane %v1884_v37, 9  ;;  %v3208_v7 = vrot.slane %v1885_v43, 9  ;;  %v2075_v28 = vunpack.c.l.b16 %v1968_v48  ;;  %v1542_v50 = vor.u32 %v1541_v3, %v1537_v32  ;;  %v3439_v35 = vld [vmem:[%s3548_s27 + $0xc0] sm:$0xff] }
 0x134   : > { %v4091_v19 = vadd.f32 %v1613_v38, %v1494_v16  ;;  %v2077_v27 = vunpack.c.l.b16 %v1975_v21  ;;  %v3209_v37 = vrot.slane %v1886_v56, 9  ;;  %v4643_v55 = vrot.slane %v3682_v12, 5 }
 0x135   : > { %v1965_v38 = vsel %vm3698_vm6, %v3207_v20, %v1964_v23  ;;  %v1972_v6 = vsel %vm3698_vm6, %v3208_v7, %v1971_v40  ;;  %v2079_v23 = vunpack.c.l.b16 %v3710_v30  ;;  %v1543_v4 = vrot.slane %v1542_v50, 4 }
 0x136   : > { %v2074_v16 = vunpack.c.l.b16 %v1965_v38  ;;  %v2076_v10 = vunpack.c.l.b16 %v1972_v6  ;;  %v1547_v3 = vrot.slane %v1545_v62, 5 }
 0x137   : > { %v740_v45 = vpop.f32.mrf.mxu2 }
 0x138   : > { %v804_v44 = vadd.f32 %v740_v45, %v611_v51  ;;  %v1431_v29 = vpop.f32.mrf.mxu3  ;;  %v2106_v43 = vpack.c.b16 %v2075_v28, %v2074_v16  ;;  %v4112_v40 = vpack.c.b16 %v2077_v27, %v2076_v10  ;;  %v1548_v6 = vsel %vm3687_vm3, %v1543_v4, %v1547_v3  ;;  %v3357_v10 = vld [vmem:[%s3548_s27 + $0xcc] sm:$0xff] }
 0x139   : > { %v613_v17 = vpop.f32.mrf.mxu1 }
 0x13a   : > { %v1495_v9 = vadd.f32 %v1431_v29, %v804_v44  ;;  %v1979_v44 = vsel %vm3698_vm6, %v3209_v37, %v4643_v55  ;;  %v614_v56 = vadd.f32 %v613_v17, %v3855_v57 }
 0x13b   : > { %v1618_v51 = vpop.f32.mrf.mxu0  ;;  %v2078_v30 = vunpack.c.l.b16 %v1979_v44 }
 0x13c   : > { %3033 = vmatmul.msk.bf16.gmra.mxu1 %vm404_vm0, %v4043_v58  ;;  %3077 = vmatmul.msk.bf16.gmra.mxu2 %vm404_vm0, %v3439_v35  ;;  %v4118_v61 = vadd.f32 %v1615_v1, %v1495_v9  ;;  %v1533_v58 = vrot.slane %v1532_v49, 4  ;;  %v1550_v49 = vunpack.c.l.b16 %v1548_v6 }
 0x13d   : > { %3117 = vmatmul.msk.bf16.gmra.mxu3 %vm404_vm0, %v4064_v60  ;;  %v4125_v12 = vpack.c.b16 %v2079_v23, %v2078_v30 }
 0x13e   : > { %3157 = vmatmul.msk.bf16.gmra.mxu0 %vm404_vm0, %v4096_v33  ;;  %v1538_v48 = vsel %vm3687_vm3, %v1533_v58, %v1537_v32 }
 0x13f   : > { %v743_v20 = vpop.f32.mrf.mxu2  ;;  %v1549_v57 = vunpack.c.l.b16 %v1538_v48 }
 0x140   : > { %v805_v7 = vadd.f32 %v743_v20, %v614_v56  ;;  %v1434_v45 = vpop.f32.mrf.mxu3 }
 0x141   : > { %v615_v1 = vpop.f32.mrf.mxu1  ;;  %v4135_v50 = vpack.c.b16 %v1550_v49, %v1549_v57 }
 0x142   : > { %v1496_v29 = vadd.f32 %v1434_v45, %v805_v7  ;;  %v616_v62 = vadd.f32 %v615_v1, %v3881_v36  ;;  %v3440_v1 = vld [vmem:[%s3548_s27 + $0x28] sm:$0xf] }
 0x143   : > { %v1620_v38 = vpop.f32.mrf.mxu0 }
 0x144   : > { %v4131_v16 = vadd.f32 %v1618_v51, %v1496_v29  ;;  %v1887_v29 = vld [vmem:[%s3548_s27 + $0x24] sm:$0xe] }
 0x145   : > { %v3210_v57 = vrot.slane %v1887_v29, 9 }
 0x147   : > { %v745_v17 = vpop.f32.mrf.mxu2 }
 0x148   : > { %v806_v28 = vadd.f32 %v745_v17, %v616_v62  ;;  %v1436_v21 = vpop.f32.mrf.mxu3 }
 0x149   : > { %v618_v9 = vpop.f32.mrf.mxu1 }
 0x14a   : > { %v1497_v27 = vadd.f32 %v1436_v21, %v806_v28  ;;  %v619_v36 = vadd.f32 %v618_v9, %v3900_v5  ;;  %v1985_v5 = vrot.slane %v3440_v1, 5 }
 0x14b   : > { %v1623_v37 = vpop.f32.mrf.mxu0 }
 0x14c   : > { %3034 = vmatmul.msk.bf16.gmra.mxu1 %vm404_vm0, %v4069_v47  ;;  %3078 = vmatmul.msk.bf16.gmra.mxu2 %vm404_vm0, %v3357_v10  ;;  %v4140_v32 = vadd.f32 %v1620_v38, %v1497_v27  ;;  %v1987_v49 = vrot.slane %v1985_v5, 4  ;;  %v1986_v10 = vsel %vm3698_vm6, %v3210_v57, %v1985_v5 }
 0x14d   : > { %3118 = vmatmul.msk.bf16.gmra.mxu3 %vm404_vm0, %v4096_v33 }
 0x14e   : > { %3158 = vmatmul.msk.bf16.gmra.mxu0 %vm404_vm0, %v4135_v50 }
 0x14f   : > { %v748_v51 = vpop.f32.mrf.mxu2 }
 0x150   : > { %v807_v23 = vadd.f32 %v748_v51, %v619_v36  ;;  %v1439_v35 = vpop.f32.mrf.mxu3 }
 0x151   : > { %v620_v55 = vpop.f32.mrf.mxu1 }
 0x152   : > { %v1498_v44 = vadd.f32 %v1439_v35, %v807_v23  ;;  %v621_v56 = vadd.f32 %v620_v55, %v3924_v41  ;;  %v3441_v41 = vld [vmem:[%s3548_s27 + $0x2c] sm:$0x1] }
 0x153   : > { %v1625_v47 = vpop.f32.mrf.mxu0  ;;  %v1988_v48 = vrot.slane %v3441_v41, 5 }
 0x154   : > { %v4147_v30 = vadd.f32 %v1623_v37, %v1498_v44  ;;  %v2080_v37 = vunpack.c.l.b16 %v1986_v10 }
 0x155   : > { %v1989_v9 = vsel %vm3698_vm6, %v1987_v49, %v1988_v48 }
 0x157   : > { %v750_v58 = vpop.f32.mrf.mxu2 }
 0x158   : > { %v808_v4 = vadd.f32 %v750_v58, %v621_v56  ;;  %v1441_v3 = vpop.f32.mrf.mxu3  ;;  %v3442_v58 = vld [vmem:[%s3548_s27 + $0x34] sm:$0xf] }
 0x159   : > { %v623_v20 = vpop.f32.mrf.mxu1 }
 0x15a   : > { %v1499_v7 = vadd.f32 %v1441_v3, %v808_v4  ;;  %v624_v6 = vadd.f32 %v623_v20, %v3805_v52  ;;  %v2081_v52 = vunpack.c.l.b16 %v1989_v9  ;;  %v1992_v4 = vrot.slane %v3442_v58, 5  ;;  %v1888_v3 = vld [vmem:[%s3548_s27 + $0x30] sm:$0xe] }
 0x15b   : > { %v1628_v45 = vpop.f32.mrf.mxu0  ;;  %v3211_v1 = vrot.slane %v1888_v3, 9 }
 0x15c   : > { %3183 = vmatmul.msk.bf16.vlgmr.msra.gmra.mxu1 %vm404_vm0, %v3727_v15  ;;  %3239 = vmatmul.msk.bf16.vlgmr.msra.gmra.mxu2 %vm404_vm0, %v2106_v43  ;;  %v4155_v38 = vadd.f32 %v1625_v47, %v1499_v7  ;;  %v4170_v44 = vpack.c.b16 %v2081_v52, %v2080_v37  ;;  %v1994_v5 = vrot.slane %v1992_v4, 4 }
 0x15d   : > { %3280 = vmatmul.msk.bf16.vlgmr.msra.gmra.mxu3 %vm404_vm0, %v4112_v40  ;;  %v1993_v57 = vsel %vm3698_vm6, %v3211_v1, %v1992_v4 }
 0x15e   : > { %3321 = vmatmul.msk.bf16.vlgmr.msra.gmra.mxu0 %vm404_vm0, %v4125_v12 }
 0x15f   : > { %v753_v62 = vpop.f32.mrf.mxu2 }
 0x160   : > { %v809_v17 = vadd.f32 %v753_v62, %v624_v6  ;;  %v1444_v28 = vpop.f32.mrf.mxu3 }
 0x161   : > { %v625_v15 = vpop.f32.mrf.mxu1 }
 0x162   : > { %v1500_v43 = vadd.f32 %v1444_v28, %v809_v17  ;;  %v626_v36 = vadd.f32 %v625_v15, %v3818_v11  ;;  %v3443_v11 = vld [vmem:[%s3548_s27 + $0x38] sm:$0x1]  ;;  %v2082_v17 = vunpack.c.l.b16 %v1993_v57 }
 0x163   : > { %v1630_v21 = vpop.f32.mrf.mxu0  ;;  %v1995_v7 = vrot.slane %v3443_v11, 5 }
 0x164   : > { %v4167_v27 = vadd.f32 %v1628_v45, %v1500_v43 }
 0x165   : > { %v1996_v49 = vsel %vm3698_vm6, %v1994_v5, %v1995_v7 }
 0x167   : > { %v755_v51 = vpop.f32.mrf.mxu2 }
 0x168   : > { %v810_v23 = vadd.f32 %v755_v51, %v626_v36  ;;  %v1446_v35 = vpop.f32.mrf.mxu3  ;;  %v3444_v36 = vld [vmem:[%s3548_s27 + $0x40] sm:$0xf] }
 0x169   : > { %v628_v55 = vpop.f32.mrf.mxu1  ;;  %v1999_v51 = vrot.slane %v3444_v36, 5 }
 0x16a   : > { %v1501_v47 = vadd.f32 %v1446_v35, %v810_v23  ;;  %v629_v45 = vadd.f32 %v628_v55, %v3836_v31  ;;  %v2083_v31 = vunpack.c.l.b16 %v1996_v49  ;;  %v1889_v23 = vld [vmem:[%s3548_s27 + $0x3c] sm:$0xe] }
 0x16b   : > { %v1633_v56 = vpop.f32.mrf.mxu0  ;;  %v2001_v58 = vrot.slane %v1999_v51, 4 }
 0x16c   : > { %3184 = vmatmul.msk.bf16.gmra.mxu1 %vm404_vm0, %v3743_v42  ;;  %3240 = vmatmul.msk.bf16.gmra.mxu2 %vm404_vm0, %v4112_v40  ;;  %v4178_v20 = vadd.f32 %v1630_v21, %v1501_v47  ;;  %v4193_v9 = vpack.c.b16 %v2083_v31, %v2082_v17  ;;  %v3446_v31 = vld [vmem:[%s3548_s27 + $0x4c] sm:$0xf] }
 0x16d   : > { %3281 = vmatmul.msk.bf16.gmra.mxu3 %vm404_vm0, %v4125_v12 }
 0x16e   : > { %3322 = vmatmul.msk.bf16.gmra.mxu0 %vm404_vm0, %v4170_v44 }
 0x16f   : > { %v758_v29 = vpop.f32.mrf.mxu2 }
 0x170   : > { %v811_v41 = vadd.f32 %v758_v29, %v629_v45  ;;  %v1449_v42 = vpop.f32.mrf.mxu3 }
 0x171   : > { %v630_v48 = vpop.f32.mrf.mxu1 }
 0x172   : > { %v1502_v40 = vadd.f32 %v1449_v42, %v811_v41  ;;  %v631_v28 = vadd.f32 %v630_v48, %v3850_v2  ;;  %v3445_v2 = vld [vmem:[%s3548_s27 + $0x44] sm:$0x1] }
 0x173   : > { %v1635_v6 = vpop.f32.mrf.mxu0  ;;  %v2002_v55 = vrot.slane %v3445_v2, 5 }
 0x174   : > { %v4190_v62 = vadd.f32 %v1633_v56, %v1502_v40  ;;  %v3212_v56 = vrot.slane %v1889_v23, 9 }
 0x175   : > { %v2003_v1 = vsel %vm3698_vm6, %v2001_v58, %v2002_v55 }
 0x176   : > { %v2000_v45 = vsel %vm3698_vm6, %v3212_v56, %v1999_v51 }
 0x177   : > { %v760_v15 = vpop.f32.mrf.mxu2  ;;  %v2084_v29 = vunpack.c.l.b16 %v2000_v45 }
 0x178   : > { %v812_v43 = vadd.f32 %v760_v15, %v631_v28  ;;  %v1451_v21 = vpop.f32.mrf.mxu3  ;;  %v2006_v28 = vrot.slane %v3446_v31, 5  ;;  %v1890_v15 = vld [vmem:[%s3548_s27 + $0x48] sm:$0xe] }
 0x179   : > { %v633_v10 = vpop.f32.mrf.mxu1 }
 0x17a   : > { %v1503_v37 = vadd.f32 %v1451_v21, %v812_v43  ;;  %v634_v47 = vadd.f32 %v633_v10, %v3877_v25  ;;  %v2085_v25 = vunpack.c.l.b16 %v2003_v1 }
 0x17b   : > { %v1638_v52 = vpop.f32.mrf.mxu0 }
 0x17c   : > { %3185 = vmatmul.msk.bf16.gmra.mxu1 %vm404_vm0, %v3772_v8  ;;  %3241 = vmatmul.msk.bf16.gmra.mxu2 %vm404_vm0, %v4125_v12  ;;  %v4201_v35 = vadd.f32 %v1635_v6, %v1503_v37  ;;  %v4216_v57 = vpack.c.b16 %v2085_v25, %v2084_v29  ;;  %v3213_v37 = vrot.slane %v1890_v15, 9  ;;  %v3448_v29 = vld [vmem:[%s3548_s27 + $0x58] sm:$0xf] }
 0x17d   : > { %3282 = vmatmul.msk.bf16.gmra.mxu3 %vm404_vm0, %v4170_v44  ;;  %v2013_v25 = vrot.slane %v3448_v29, 5 }
 0x17e   : > { %3323 = vmatmul.msk.bf16.gmra.mxu0 %vm404_vm0, %v4193_v9  ;;  %v2007_v55 = vsel %vm3698_vm6, %v3213_v37, %v2006_v28 }
 0x17f   : > { %v763_v4 = vpop.f32.mrf.mxu2  ;;  %v2086_v58 = vunpack.c.l.b16 %v2007_v55 }
 0x180   : > { %v813_v3 = vadd.f32 %v763_v4, %v634_v47  ;;  %v1454_v8 = vpop.f32.mrf.mxu3 }
 0x181   : > { %v635_v11 = vpop.f32.mrf.mxu1 }
 0x182   : > { %v1504_v12 = vadd.f32 %v1454_v8, %v813_v3  ;;  %v636_v41 = vadd.f32 %v635_v11, %v3896_v63  ;;  %v3447_v63 = vld [vmem:[%s3548_s27 + $0x50] sm:$0x1] }
 0x183   : > { %v1640_v7 = vpop.f32.mrf.mxu0  ;;  %v2009_v21 = vrot.slane %v3447_v63, 5 }
 0x184   : > { %v4213_v5 = vadd.f32 %v1638_v52, %v1504_v12  ;;  %v2008_v52 = vrot.slane %v2006_v28, 4 }
 0x186   : > { %v2010_v47 = vsel %vm3698_vm6, %v2008_v52, %v2009_v21 }
 0x187   : > { %v765_v42 = vpop.f32.mrf.mxu2 }
 0x188   : > { %v814_v48 = vadd.f32 %v765_v42, %v636_v41  ;;  %v1456_v40 = vpop.f32.mrf.mxu3  ;;  %v1891_v41 = vld [vmem:[%s3548_s27 + $0x54] sm:$0xe] }
 0x189   : > { %v638_v6 = vpop.f32.mrf.mxu1 }
 0x18a   : > { %v1505_v49 = vadd.f32 %v1456_v40, %v814_v48  ;;  %v639_v10 = vadd.f32 %v638_v6, %v3916_v34  ;;  %v2087_v34 = vunpack.c.l.b16 %v2010_v47  ;;  %v3214_v6 = vrot.slane %v1891_v41, 9  ;;  %v3450_v47 = vld [vmem:[%s3548_s27 + $0x64] sm:$0xf] }
 0x18b   : > { %v1643_v17 = vpop.f32.mrf.mxu0 }
 0x18c   : > { %3186 = vmatmul.msk.bf16.gmra.mxu1 %vm404_vm0, %v3791_v46  ;;  %3242 = vmatmul.msk.bf16.gmra.mxu2 %vm404_vm0, %v4170_v44  ;;  %v4224_v43 = vadd.f32 %v1640_v7, %v1505_v49  ;;  %v4239_v7 = vpack.c.b16 %v2087_v34, %v2086_v58  ;;  %v2015_v49 = vrot.slane %v2013_v25, 4  ;;  %v2014_v63 = vsel %vm3698_vm6, %v3214_v6, %v2013_v25  ;;  %v1892_v34 = vld [vmem:[%s3548_s27 + $0x60] sm:$0xe] }
 0x18d   : > { %3283 = vmatmul.msk.bf16.gmra.mxu3 %vm404_vm0, %v4193_v9  ;;  %v2088_v37 = vunpack.c.l.b16 %v2014_v63  ;;  %v2020_v58 = vrot.slane %v3450_v47, 5 }
 0x18e   : > { %3324 = vmatmul.msk.bf16.gmra.mxu0 %vm404_vm0, %v4216_v57 }
 0x18f   : > { %v768_v36 = vpop.f32.mrf.mxu2 }
 0x190   : > { %v815_v51 = vadd.f32 %v768_v36, %v639_v10  ;;  %v1459_v46 = vpop.f32.mrf.mxu3 }
 0x191   : > { %v640_v23 = vpop.f32.mrf.mxu1 }
 0x192   : > { %v1506_v44 = vadd.f32 %v1459_v46, %v815_v51  ;;  %v641_v4 = vadd.f32 %v640_v23, %v3929_v0  ;;  %v3449_v0 = vld [vmem:[%s3548_s27 + $0x5c] sm:$0x1] }
 0x193   : > { %v1645_v2 = vpop.f32.mrf.mxu0  ;;  %v2016_v48 = vrot.slane %v3449_v0, 5 }
 0x194   : > { %v4236_v56 = vadd.f32 %v1643_v17, %v1506_v44 }
 0x195   : > { %v2017_v21 = vsel %vm3698_vm6, %v2015_v49, %v2016_v48 }
 0x197   : > { %v770_v3 = vpop.f32.mrf.mxu2 }
 0x198   : > { %v816_v8 = vadd.f32 %v770_v3, %v641_v4  ;;  %v1461_v11 = vpop.f32.mrf.mxu3  ;;  %v4644_v4 = vld [vmem:[#allocation4_spill] sm:$0xff] }
 0x199   : > { %v643_v12 = vpop.f32.mrf.mxu1 }
 0x19a   : > { %v1507_v45 = vadd.f32 %v1461_v11, %v816_v8  ;;  %v644_v40 = vadd.f32 %v643_v12, %v3807_v53  ;;  %v2089_v53 = vunpack.c.l.b16 %v2017_v21  ;;  %v4645_v11 = vld [vmem:[#allocation2_spill] sm:$0xff] }
 0x19b   : > { %v1648_v1 = vpop.f32.mrf.mxu0 }
 0x19c   : > { %3187 = vmatmul.msk.bf16.gmra.mxu1 %vm404_vm0, %v3824_v18  ;;  %3243 = vmatmul.msk.bf16.gmra.mxu2 %vm404_vm0, %v4193_v9  ;;  %v4247_v42 = vadd.f32 %v1645_v2, %v1507_v45  ;;  %v4262_v44 = vpack.c.b16 %v2089_v53, %v2088_v37  ;;  %v3215_v45 = vrot.slane %v1892_v34, 9 }
 0x19d   : > { %3284 = vmatmul.msk.bf16.gmra.mxu3 %vm404_vm0, %v4216_v57 }
 0x19e   : > { %3325 = vmatmul.msk.bf16.gmra.mxu0 %vm404_vm0, %v4239_v7 }
 0x19f   : > { %v773_v17 = vpop.f32.mrf.mxu2 }
 0x1a0   : > { %v817_v31 = vadd.f32 %v773_v17, %v644_v40  ;;  %v1464_v18 = vpop.f32.mrf.mxu3  ;;  %v2021_v40 = vsel %vm3698_vm6, %v3215_v45, %v2020_v58 }
 0x1a1   : > { %v645_v28 = vpop.f32.mrf.mxu1  ;;  %v2090_v17 = vunpack.c.l.b16 %v2021_v40 }
 0x1a2   : > { %v1508_v9 = vadd.f32 %v1464_v18, %v817_v31  ;;  %v646_v52 = vadd.f32 %v645_v28, %v3820_v14  ;;  %v3451_v14 = vld [vmem:[%s3548_s27 + $0x68] sm:$0x1] }
 0x1a3   : > { %v1650_v15 = vpop.f32.mrf.mxu0  ;;  %v2023_v8 = vrot.slane %v3451_v14, 5  ;;  %v4646_v18 = vld [vmem:[#allocation3_spill] sm:$0xff] }
 0x1a4   : > { %v4259_v10 = vadd.f32 %v1648_v1, %v1508_v9  ;;  %v2022_v1 = vrot.slane %v2020_v58, 4 }
 0x1a6   : > { %v2024_v6 = vsel %vm3698_vm6, %v2022_v1, %v2023_v8 }
 0x1a7   : > { %v775_v36 = vpop.f32.mrf.mxu2  ;;  %v2091_v31 = vunpack.c.l.b16 %v2024_v6 }
 0x1a8   : > { %v818_v51 = vadd.f32 %v775_v36, %v646_v52  ;;  %v1466_v46 = vpop.f32.mrf.mxu3  ;;  %v3452_v36 = vld [vmem:[%s3548_s27 + $0x70] sm:$0xf] }
 0x1a9   : > { %v648_v23 = vpop.f32.mrf.mxu1  ;;  %v4285_v37 = vpack.c.b16 %v2091_v31, %v2090_v17 }
 0x1aa   : > { %v1509_v2 = vadd.f32 %v1466_v46, %v818_v51  ;;  %v649_v12 = vadd.f32 %v648_v23, %v4645_v11  ;;  %v2027_v51 = vrot.slane %v3452_v36, 5  ;;  %v1893_v46 = vld [vmem:[%s3548_s27 + $0x6c] sm:$0xe]  ;;  %v4650_v36 = vld [vmem:[#allocation8_spill] sm:$0xff] }
 0x1ab   : > { %v1653_v55 = vpop.f32.mrf.mxu0  ;;  %v4647_v23 = vld [vmem:[#allocation7_spill] sm:$0xff]  ;;  %v3216_v58 = vrot.slane %v1893_v46, 9 }
 0x1ac   : > { %3188 = vmatmul.msk.bf16.gmra.mxu1 %vm404_vm0, %v4644_v4  ;;  %3244 = vmatmul.msk.bf16.gmra.mxu2 %vm404_vm0, %v4216_v57  ;;  %v4270_v3 = vadd.f32 %v1650_v15, %v1509_v2  ;;  %v2029_v34 = vrot.slane %v2027_v51, 4  ;;  %v3453_v4 = vld [vmem:[%s3548_s27 + $0x74] sm:$0x1] }
 0x1ad   : > { %3285 = vmatmul.msk.bf16.gmra.mxu3 %vm404_vm0, %v4239_v7  ;;  %v2030_v14 = vrot.slane %v3453_v4, 5 }
 0x1ae   : > { %3326 = vmatmul.msk.bf16.gmra.mxu0 %vm404_vm0, %v4262_v44 }
 0x1af   : > { %v778_v29 = vpop.f32.mrf.mxu2 }
 0x1b0   : > { %v819_v25 = vadd.f32 %v778_v29, %v649_v12  ;;  %v1469_v41 = vpop.f32.mrf.mxu3  ;;  %v2028_v29 = vsel %vm3698_vm6, %v3216_v58, %v2027_v51 }
 0x1b1   : > { %v650_v0 = vpop.f32.mrf.mxu1 }
 0x1b2   : > { %v1510_v57 = vadd.f32 %v1469_v41, %v819_v25  ;;  %v651_v28 = vadd.f32 %v650_v0, %v4646_v18  ;;  %v2031_v25 = vsel %vm3698_vm6, %v2029_v34, %v2030_v14  ;;  %v2092_v0 = vunpack.c.l.b16 %v2028_v29 }
 0x1b3   : > { %v1655_v48 = vpop.f32.mrf.mxu0 }
 0x1b4   : > { %v4282_v49 = vadd.f32 %v1653_v55, %v1510_v57  ;;  %v4648_v55 = vld [vmem:[#allocation5_spill] sm:$0xff]  ;;  %v2093_v57 = vunpack.c.l.b16 %v2031_v25 }
 0x1b7   : > { %v780_v9 = vpop.f32.mrf.mxu2 }
 0x1b8   : > { %v820_v15 = vadd.f32 %v780_v9, %v651_v28  ;;  %v1471_v63 = vpop.f32.mrf.mxu3  ;;  %v4308_v28 = vpack.c.b16 %v2093_v57, %v2092_v0 }
 0x1b9   : > { %v653_v21 = vpop.f32.mrf.mxu1 }
 0x1ba   : > { %v1511_v53 = vadd.f32 %v1471_v63, %v820_v15  ;;  %v654_v47 = vadd.f32 %v653_v21, %v4648_v55  ;;  %v3454_v63 = vld [vmem:[%s3548_s27 + $0x7c] sm:$0xf]  ;;  %v3455_v55 = vld [vmem:[%s3548_s27 + $0x80] sm:$0x1] }
 0x1bb   : > { %v1658_v52 = vpop.f32.mrf.mxu0  ;;  %v2034_v21 = vrot.slane %v3454_v63, 5  ;;  %v4652_v63 = vld [vmem:[#allocation10_spill] sm:$0xff] }
 0x1bc   : > { %3189 = vmatmul.msk.bf16.gmra.mxu1 %vm404_vm0, %v4647_v23  ;;  %3245 = vmatmul.msk.bf16.gmra.mxu2 %vm404_vm0, %v4239_v7  ;;  %v4293_v2 = vadd.f32 %v1655_v48, %v1511_v53  ;;  %v4649_v48 = vld [vmem:[#allocation6_spill] sm:$0xff]  ;;  %v1894_v53 = vld [vmem:[%s3548_s27 + $0x78] sm:$0xe] }
 0x1bd   : > { %3286 = vmatmul.msk.bf16.gmra.mxu3 %vm404_vm0, %v4262_v44  ;;  %v3217_v46 = vrot.slane %v1894_v53, 9  ;;  %v2036_v23 = vrot.slane %v2034_v21, 4 }
 0x1be   : > { %3327 = vmatmul.msk.bf16.gmra.mxu0 %vm404_vm0, %v4285_v37 }
 0x1bf   : > { %v783_v8 = vpop.f32.mrf.mxu2 }
 0x1c0   : > { %v821_v11 = vadd.f32 %v783_v8, %v654_v47  ;;  %v1474_v12 = vpop.f32.mrf.mxu3  ;;  %v2037_v47 = vrot.slane %v3455_v55, 5  ;;  %v2035_v8 = vsel %vm3698_vm6, %v3217_v46, %v2034_v21 }
 0x1c1   : > { %v655_v45 = vpop.f32.mrf.mxu1 }
 0x1c2   : > { %v1512_v7 = vadd.f32 %v1474_v12, %v821_v11  ;;  %v656_v40 = vadd.f32 %v655_v45, %v4649_v48  ;;  %v2038_v11 = vsel %vm3698_vm6, %v2036_v23, %v2037_v47  ;;  %v2094_v45 = vunpack.c.l.b16 %v2035_v8 }
 0x1c3   : > { %v1660_v1 = vpop.f32.mrf.mxu0 }
 0x1c4   : > { %v4305_v41 = vadd.f32 %v1658_v52, %v1512_v7  ;;  %v2095_v7 = vunpack.c.l.b16 %v2038_v11 }
 0x1c7   : > { %v785_v6 = vpop.f32.mrf.mxu2 }
 0x1c8   : > { %v822_v17 = vadd.f32 %v785_v6, %v656_v40  ;;  %v1476_v31 = vpop.f32.mrf.mxu3  ;;  %v4331_v40 = vpack.c.b16 %v2095_v7, %v2094_v45  ;;  %v4653_v45 = vld [vmem:[#allocation11_spill] sm:$0xff] }
 0x1c9   : > { %v658_v18 = vpop.f32.mrf.mxu1 }
 0x1ca   : > { %v1513_v9 = vadd.f32 %v1476_v31, %v822_v17  ;;  %v659_v51 = vadd.f32 %v658_v18, %v4650_v36  ;;  %v3456_v31 = vld [vmem:[%s3548_s27 + $0x88] sm:$0xf] }
 0x1cb   : > { %v1663_v15 = vpop.f32.mrf.mxu0  ;;  %v2041_v18 = vrot.slane %v3456_v31, 5  ;;  %v1896_v31 = vld [vmem:[%s3548_s27 + $0x90] sm:$0xe] }
 0x1cc   : > { %3190 = vmatmul.msk.bf16.gmra.mxu1 %vm404_vm0, %v3933_v22  ;;  %3246 = vmatmul.msk.bf16.gmra.mxu2 %vm404_vm0, %v4262_v44  ;;  %v4316_v52 = vadd.f32 %v1660_v1, %v1513_v9  ;;  %v4651_v1 = vld [vmem:[#allocation9_spill] sm:$0xff]  ;;  %v1895_v9 = vld [vmem:[%s3548_s27 + $0x84] sm:$0xe] }
 0x1cd   : > { %3287 = vmatmul.msk.bf16.gmra.mxu3 %vm404_vm0, %v4285_v37  ;;  %v3218_v53 = vrot.slane %v1895_v9, 9  ;;  %v2043_v36 = vrot.slane %v2041_v18, 4 }
 0x1ce   : > { %3328 = vmatmul.msk.bf16.gmra.mxu0 %vm404_vm0, %v4308_v28 }
 0x1cf   : > { %v788_v58 = vpop.f32.mrf.mxu2 }
 0x1d0   : > { %v823_v34 = vadd.f32 %v788_v58, %v659_v51  ;;  %v1479_v22 = vpop.f32.mrf.mxu3  ;;  %v3457_v51 = vld [vmem:[%s3548_s27 + $0x8c] sm:$0x1]  ;;  %v4350_v58 = vld [vmem:[%s4614_s2] ss:$0 sm:$0xff] }
 0x1d1   : > { %v660_v4 = vpop.f32.mrf.mxu1  ;;  %v2044_v46 = vrot.slane %v3457_v51, 5 }
 0x1d2   : > { %v1514_v44 = vadd.f32 %v1479_v22, %v823_v34  ;;  %v661_v29 = vadd.f32 %v660_v4, %v4651_v1  ;;  %v2042_v22 = vsel %vm3698_vm6, %v3218_v53, %v2041_v18  ;;  %v3458_v18 = vld [vmem:[%s3548_s27 + $0x94] sm:$0xf] }
 0x1d3   : > { %v1665_v14 = vpop.f32.mrf.mxu0  ;;  %v2045_v4 = vsel %vm3698_vm6, %v2043_v36, %v2044_v46  ;;  %v2048_v9 = vrot.slane %v3458_v18, 5  ;;  %v3459_v46 = vld [vmem:[%s3548_s27 + $0x98] sm:$0x1] }
 0x1d4   : > { %v4328_v12 = vadd.f32 %v1663_v15, %v1514_v44  ;;  %v2097_v8 = vunpack.c.l.b16 %v2045_v4 }
 0x1d5   : > { %v2050_v51 = vrot.slane %v2048_v9, 4 }
 0x1d7   : > { %v790_v25 = vpop.f32.mrf.mxu2 }
 0x1d8   : > { %v824_v0 = vadd.f32 %v790_v25, %v661_v29  ;;  %v1481_v57 = vpop.f32.mrf.mxu3 }
 0x1d9   : > { %v1772_v48 = vpop.f32.mrf.mxu1 }
 0x1da   : > { %v1515_v6 = vadd.f32 %v1481_v57, %v824_v0  ;;  %v1852_v21 = vadd.f32 %v1772_v48, %v4652_v63 }
 0x1db   : > { %v2543_v17 = vpop.f32.mrf.mxu0 }
 0x1dc   : > { %3191 = vmatmul.msk.bf16.gmra.mxu1 %vm404_vm0, %v3954_v54  ;;  %3247 = vmatmul.msk.bf16.gmra.mxu2 %vm404_vm0, %v4285_v37  ;;  %v4339_v15 = vadd.f32 %v1665_v14, %v1515_v6  ;;  %v2096_v14 = vunpack.c.l.b16 %v2042_v22 }
 0x1dd   : > { %3288 = vmatmul.msk.bf16.gmra.mxu3 %vm404_vm0, %v4308_v28 }
 0x1de   : > { %3329 = vmatmul.msk.bf16.gmra.mxu0 %vm404_vm0, %v4331_v40  ;;  %v4364_v48 = vpack.c.b16 %v2097_v8, %v2096_v14 }
 0x1df   : > { %v2203_v23 = vpop.f32.mrf.mxu2 }
 0x1e0   : > { %v2283_v54 = vadd.f32 %v2203_v23, %v1852_v21  ;;  %v2373_v55 = vpop.f32.mrf.mxu3  ;;  %v3219_v21 = vrot.slane %v1896_v31, 9  ;;  %v2051_v23 = vrot.slane %v3459_v46, 5  ;;  %v1897_v31 = vld [vmem:[%s3548_s27 + $0x9c] sm:$0xe]  ;;  %v3461_v46 = vld [vmem:[%s3548_s27 + $0xa4] sm:$0x1] }
 0x1e1   : > { %v1774_v47 = vpop.f32.mrf.mxu1 }
 0x1e2   : > { %v2453_v37 = vadd.f32 %v2373_v55, %v2283_v54  ;;  %v1853_v7 = vadd.f32 %v1774_v47, %v4653_v45  ;;  %v2049_v22 = vsel %vm3698_vm6, %v3219_v21, %v2048_v9 }
 0x1e3   : > { %v2545_v34 = vpop.f32.mrf.mxu0 }
 0x1e4   : > { %v2623_v44 = vadd.f32 %v2543_v17, %v2453_v37 }
 0x1e6   : > { %v2659_v11 = vadd.f32 %v4350_v58, %v2623_v44  ;;  %v2098_v44 = vunpack.c.l.b16 %v2049_v22 }
 0x1e7   : > { %v2205_v1 = vpop.f32.mrf.mxu2 }
 0x1e8   : > { %v2691_v29 = vpack.c.bf16 %v2659_v11, %v2659_v11  ;;  %v2284_v25 = vadd.f32 %v2205_v1, %v1853_v7  ;;  %v2375_v0 = vpop.f32.mrf.mxu3 }
 0x1e9   : > { %v1777_v57 = vpop.f32.mrf.mxu1 }
 0x1ea   : > { %2724 = vst.msk [vmem:[%s4362_s4] sm:$0xf] %vm2723_vm7, %v2691_v29  ;;  %v2454_v6 = vadd.f32 %v2375_v0, %v2284_v25  ;;  %v1854_v36 = vadd.f32 %v1777_v57, %v3974_v59  ;;  %v2052_v59 = vsel %vm3698_vm6, %v2050_v51, %v2051_v23  ;;  %v2058_v23 = vrot.slane %v3461_v46, 5 }
 0x1eb   : > { %v2548_v17 = vpop.f32.mrf.mxu0  ;;  %v2099_v14 = vunpack.c.l.b16 %v2052_v59 }
 0x1ec   : > { %v2624_v63 = vadd.f32 %v2545_v34, %v2454_v6  ;;  %3192 = vmatmul.msk.bf16.gmra.mxu1 %vm404_vm0, %v3977_v26  ;;  %3248 = vmatmul.msk.bf16.gmra.mxu2 %vm404_vm0, %v4308_v28 }
 0x1ed   : > { %3289 = vmatmul.msk.bf16.gmra.mxu3 %vm404_vm0, %v4331_v40  ;;  %v4389_v0 = vpack.c.b16 %v2099_v14, %v2098_v44 }
 0x1ee   : > { %3330 = vmatmul.msk.bf16.gmra.mxu0 %vm404_vm0, %v4364_v48  ;;  %v2660_v53 = vadd.f32 %v4350_v58, %v2624_v63  ;;  %v4654_v63 = vld [vmem:[#allocation13_spill] sm:$0xff] }
 0x1ef   : > { %v2208_v54 = vpop.f32.mrf.mxu2 }
 0x1f0   : > { %v2692_v55 = vpack.c.bf16 %v2660_v53, %v2660_v53  ;;  %v2285_v26 = vadd.f32 %v2208_v54, %v1854_v36  ;;  %v2378_v47 = vpop.f32.mrf.mxu3  ;;  %v4655_v53 = vld [vmem:[#allocation12_spill] sm:$0xff] }
 0x1f1   : > { %v1779_v37 = vpop.f32.mrf.mxu1 }
 0x1f2   : > { %2725 = vst.msk [vmem:[%s4362_s4 + $0x4] sm:$0xf] %vm2723_vm7, %v2692_v55  ;;  %v2455_v28 = vadd.f32 %v2378_v47, %v2285_v26  ;;  %v1855_v11 = vadd.f32 %v1779_v37, %v3984_v39  ;;  %v3220_v39 = vrot.slane %v1897_v31, 9 }
 0x1f3   : > { %v2550_v34 = vpop.f32.mrf.mxu0 }
 0x1f4   : > { %v2625_v4 = vadd.f32 %v2548_v17, %v2455_v28  ;;  %v3460_v17 = vld [vmem:[%s3548_s27 + $0xa0] sm:$0xf] }
 0x1f5   : > { %v2055_v18 = vrot.slane %v3460_v17, 5 }
 0x1f6   : > { %v2661_v8 = vadd.f32 %v4350_v58, %v2625_v4 }
 0x1f7   : > { %v2210_v45 = vpop.f32.mrf.mxu2  ;;  %v2057_v51 = vrot.slane %v2055_v18, 4 }
 0x1f8   : > { %v2693_v7 = vpack.c.bf16 %v2661_v8, %v2661_v8  ;;  %v2286_v1 = vadd.f32 %v2210_v45, %v1855_v11  ;;  %v2380_v29 = vpop.f32.mrf.mxu3  ;;  %v4656_v8 = vld [vmem:[#allocation14_spill] sm:$0xff] }
 0x1f9   : > { %v1782_v25 = vpop.f32.mrf.mxu1  ;;  %v2059_v22 = vsel %vm3698_vm6, %v2057_v51, %v2058_v23  ;;  %v3463_v23 = vld [vmem:[%s3548_s27 + $0xb0] sm:$0x1] }
 0x1fa   : > { %2726 = vst.msk [vmem:[%s4362_s4 + $0x8] sm:$0xf] %vm2723_vm7, %v2693_v7  ;;  %v2456_v57 = vadd.f32 %v2380_v29, %v2286_v1  ;;  %v1856_v36 = vadd.f32 %v1782_v25, %v4655_v53  ;;  %v2101_v44 = vunpack.c.l.b16 %v2059_v22 }
 0x1fb   : > { %v2553_v6 = vpop.f32.mrf.mxu0 }
 0x1fc   : > { %v2626_v9 = vadd.f32 %v2550_v34, %v2456_v57  ;;  %3193 = vmatmul.msk.bf16.gmra.mxu1 %vm404_vm0, %v4654_v63  ;;  %3249 = vmatmul.msk.bf16.gmra.mxu2 %vm404_vm0, %v4331_v40  ;;  %v2056_v34 = vsel %vm3698_vm6, %v3220_v39, %v2055_v18  ;;  %v1898_v18 = vld [vmem:[%s3548_s27 + $0xa8] sm:$0xe]  ;;  %v4657_v39 = vld [vmem:[#allocation16_spill] sm:$0xff] }
 0x1fd   : > { %3290 = vmatmul.msk.bf16.gmra.mxu3 %vm404_vm0, %v4364_v48  ;;  %v2100_v4 = vunpack.c.l.b16 %v2056_v34 }
 0x1fe   : > { %3331 = vmatmul.msk.bf16.gmra.mxu0 %vm404_vm0, %v4389_v0  ;;  %v2662_v21 = vadd.f32 %v4350_v58, %v2626_v9 }
 0x1ff   : > { %v2213_v54 = vpop.f32.mrf.mxu2  ;;  %v4414_v57 = vpack.c.b16 %v2101_v44, %v2100_v4 }
 0x200   : > { %v2694_v55 = vpack.c.bf16 %v2662_v21, %v2662_v21  ;;  %v2287_v26 = vadd.f32 %v2213_v54, %v1856_v36  ;;  %v2383_v47 = vpop.f32.mrf.mxu3  ;;  %v3221_v21 = vrot.slane %v1898_v18, 9  ;;  %v4658_v36 = vld [vmem:[#allocation15_spill] sm:$0xff]  ;;  %v2065_v54 = vrot.slane %v3463_v23, 5  ;;  %v3465_v23 = vld [vmem:[%s3548_s27 + $0xbc] sm:$0x1] }
 0x201   : > { %v1784_v37 = vpop.f32.mrf.mxu1 }
 0x202   : > { %2727 = vst.msk [vmem:[%s4362_s4 + $0xc] sm:$0xf] %vm2723_vm7, %v2694_v55  ;;  %v2457_v40 = vadd.f32 %v2383_v47, %v2287_v26  ;;  %v1857_v11 = vadd.f32 %v1784_v37, %v4656_v8  ;;  %v4659_v8 = vld [vmem:[#allocation17_spill] sm:$0xff] }
 0x203   : > { %v2555_v28 = vpop.f32.mrf.mxu0 }
 0x204   : > { %v2627_v59 = vadd.f32 %v2553_v6, %v2457_v40  ;;  %v3462_v6 = vld [vmem:[%s3548_s27 + $0xac] sm:$0xf] }
 0x205   : > { %v2062_v9 = vrot.slane %v3462_v6, 5 }
 0x206   : > { %v2663_v14 = vadd.f32 %v4350_v58, %v2627_v59 }
 0x207   : > { %v2215_v45 = vpop.f32.mrf.mxu2  ;;  %v2064_v46 = vrot.slane %v2062_v9, 4  ;;  %v2063_v34 = vsel %vm3698_vm6, %v3221_v21, %v2062_v9  ;;  %v1899_v9 = vld [vmem:[%s3548_s27 + $0xb4] sm:$0xe] }
 0x208   : > { %v2695_v7 = vpack.c.bf16 %v2663_v14, %v2663_v14  ;;  %v2288_v1 = vadd.f32 %v2215_v45, %v1857_v11  ;;  %v2385_v29 = vpop.f32.mrf.mxu3  ;;  %v2102_v4 = vunpack.c.l.b16 %v2063_v34  ;;  %v3222_v21 = vrot.slane %v1899_v9, 9  ;;  %v1900_v9 = vld [vmem:[%s3548_s27 + $0xc0] sm:$0xe] }
 0x209   : > { %v1787_v25 = vpop.f32.mrf.mxu1  ;;  %v2066_v22 = vsel %vm3698_vm6, %v2064_v46, %v2065_v54  ;;  %v2072_v54 = vrot.slane %v3465_v23, 5  ;;  %v876_v23 = vld [vmem:[%s3548_s27 + $0xcc] sm:$0xf] }
 0x20a   : > { %2728 = vst.msk [vmem:[%s4362_s4 + $0x10] sm:$0xf] %vm2723_vm7, %v2695_v7  ;;  %v2458_v31 = vadd.f32 %v2385_v29, %v2288_v1  ;;  %v1858_v51 = vadd.f32 %v1787_v25, %v4658_v36  ;;  %v2103_v44 = vunpack.c.l.b16 %v2066_v22  ;;  %v4660_v36 = vld [vmem:[#allocation18_spill] sm:$0xff] }
 0x20b   : > { %v2558_v17 = vpop.f32.mrf.mxu0 }
 0x20c   : > { %v2628_v63 = vadd.f32 %v2555_v28, %v2458_v31  ;;  %3194 = vmatmul.msk.bf16.gmra.mxu1 %vm404_vm0, %v4657_v39  ;;  %3250 = vmatmul.msk.bf16.gmra.mxu2 %vm404_vm0, %v4364_v48  ;;  %v4439_v31 = vpack.c.b16 %v2103_v44, %v2102_v4  ;;  %v4661_v44 = vld [vmem:[#allocation19_spill] sm:$0xff] }
 0x20d   : > { %3291 = vmatmul.msk.bf16.gmra.mxu3 %vm404_vm0, %v4389_v0 }
 0x20e   : > { %3332 = vmatmul.msk.bf16.gmra.mxu0 %vm404_vm0, %v4414_v57  ;;  %v2664_v53 = vadd.f32 %v4350_v58, %v2628_v63 }
 0x20f   : > { %v2218_v55 = vpop.f32.mrf.mxu2 }
 0x210   : > { %v2696_v26 = vpack.c.bf16 %v2664_v53, %v2664_v53  ;;  %v2289_v47 = vadd.f32 %v2218_v55, %v1858_v51  ;;  %v2388_v37 = vpop.f32.mrf.mxu3 }
 0x211   : > { %v1789_v40 = vpop.f32.mrf.mxu1 }
 0x212   : > { %2729 = vst.msk [vmem:[%s4362_s4 + $0x14] sm:$0xf] %vm2723_vm7, %v2696_v26  ;;  %v2459_v48 = vadd.f32 %v2388_v37, %v2289_v47  ;;  %v1859_v11 = vadd.f32 %v1789_v40, %v4659_v8 }
 0x213   : > { %v2560_v28 = vpop.f32.mrf.mxu0 }
 0x214   : > { %v2629_v59 = vadd.f32 %v2558_v17, %v2459_v48  ;;  %v3464_v17 = vld [vmem:[%s3548_s27 + $0xb8] sm:$0xf] }
 0x215   : > { %v2069_v63 = vrot.slane %v3464_v17, 5 }
 0x216   : > { %v2665_v14 = vadd.f32 %v4350_v58, %v2629_v59 }
 0x217   : > { %v2220_v45 = vpop.f32.mrf.mxu2  ;;  %v2071_v46 = vrot.slane %v2069_v63, 4  ;;  %v2070_v48 = vsel %vm3698_vm6, %v3222_v21, %v2069_v63 }
 0x218   : > { %v2697_v7 = vpack.c.bf16 %v2665_v14, %v2665_v14  ;;  %v2290_v1 = vadd.f32 %v2220_v45, %v1859_v11  ;;  %v2390_v29 = vpop.f32.mrf.mxu3  ;;  %v2104_v22 = vunpack.c.l.b16 %v2070_v48 }
 0x219   : > { %v1792_v25 = vpop.f32.mrf.mxu1 }
 0x21a   : > { %2730 = vst.msk [vmem:[%s4362_s4 + $0x18] sm:$0xf] %vm2723_vm7, %v2697_v7  ;;  %v2460_v18 = vadd.f32 %v2390_v29, %v2290_v1  ;;  %v1860_v51 = vadd.f32 %v1792_v25, %v4660_v36  ;;  %v3466_v1 = vld [vmem:[%s3548_s27 + $0xc4] sm:$0xf] }
 0x21b   : > { %v2563_v6 = vpop.f32.mrf.mxu0  ;;  %v2329_v29 = vrot.slane %v3466_v1, 5  ;;  %v878_v1 = vld [vmem:[%s3548_s27 + $0xd4] sm:$0x1] }
 0x21c   : > { %v2630_v39 = vadd.f32 %v2560_v28, %v2460_v18  ;;  %3195 = vmatmul.msk.bf16.gmra.mxu1 %vm404_vm0, %v4064_v60  ;;  %3251 = vmatmul.msk.bf16.gmra.mxu2 %vm404_vm0, %v4389_v0  ;;  %v2073_v28 = vsel %vm3698_vm6, %v2071_v46, %v2072_v54 }
 0x21d   : > { %3292 = vmatmul.msk.bf16.gmra.mxu3 %vm404_vm0, %v4414_v57  ;;  %v2105_v59 = vunpack.c.l.b16 %v2073_v28  ;;  %v2331_v21 = vrot.slane %v2329_v29, 4 }
 0x21e   : > { %3333 = vmatmul.msk.bf16.gmra.mxu0 %vm404_vm0, %v4439_v31  ;;  %v2666_v53 = vadd.f32 %v4350_v58, %v2630_v39  ;;  %v3263_v39 = vrot.slane %v1900_v9, 9 }
 0x21f   : > { %v2223_v55 = vpop.f32.mrf.mxu2  ;;  %v4465_v18 = vpack.c.b16 %v2105_v59, %v2104_v22 }
 0x220   : > { %v2698_v26 = vpack.c.bf16 %v2666_v53, %v2666_v53  ;;  %v2291_v60 = vadd.f32 %v2223_v55, %v1860_v51  ;;  %v2393_v47 = vpop.f32.mrf.mxu3  ;;  %v3467_v53 = vld [vmem:[%s3548_s27 + $0xc8] sm:$0x1] }
 0x221   : > { %v1794_v0 = vpop.f32.mrf.mxu1  ;;  %v2332_v36 = vrot.slane %v3467_v53, 5  ;;  %v1729_v53 = vshll.u32 %v878_v1, 16 }
 0x222   : > { %2731 = vst.msk [vmem:[%s4362_s4 + $0x1c] sm:$0xf] %vm2723_vm7, %v2698_v26  ;;  %v2461_v37 = vadd.f32 %v2393_v47, %v2291_v60  ;;  %v1861_v14 = vadd.f32 %v1794_v0, %v4661_v44  ;;  %v2330_v60 = vsel %vm3698_vm6, %v3263_v39, %v2329_v29 }
 0x223   : > { %v2565_v40 = vpop.f32.mrf.mxu0  ;;  %v2333_v47 = vsel %vm3698_vm6, %v2331_v21, %v2332_v36  ;;  %v2334_v59 = vunpack.c.l.b16 %v2330_v60 }
 0x224   : > { %v2631_v34 = vadd.f32 %v2563_v6, %v2461_v37  ;;  %v1710_v37 = vshrl.u32 %v876_v23, 16 }
 0x226   : > { %v2667_v4 = vadd.f32 %v4350_v58, %v2631_v34  ;;  %v1712_v44 = vrot.slane %v1710_v37, 4 }
 0x227   : > { %v2225_v8 = vpop.f32.mrf.mxu2 }
 0x228   : > { %v2699_v11 = vpack.c.bf16 %v2667_v4, %v2667_v4  ;;  %v2292_v45 = vadd.f32 %v2225_v8, %v1861_v14  ;;  %v2395_v7 = vpop.f32.mrf.mxu3  ;;  %v2335_v4 = vunpack.c.l.b16 %v2333_v47 }
 0x229   : > { %v1797_v25 = vpop.f32.mrf.mxu1 }
 0x22a   : > { %2732 = vst.msk [vmem:[%s4362_s4 + $0x20] sm:$0xf] %vm2723_vm7, %v2699_v11  ;;  %v2462_v6 = vadd.f32 %v2395_v7, %v2292_v45  ;;  %v1862_v46 = vadd.f32 %v1797_v25, %v4091_v19  ;;  %v2336_v39 = vpack.c.b16 %v2335_v4, %v2334_v59 }
 0x22b   : > { %v2568_v17 = vpop.f32.mrf.mxu0 }
 0x22c   : > { %v2632_v63 = vadd.f32 %v2565_v40, %v2462_v6  ;;  %3196 = vmatmul.msk.bf16.gmra.mxu1 %vm404_vm0, %v4096_v33  ;;  %3252 = vmatmul.msk.bf16.gmra.mxu2 %vm404_vm0, %v4414_v57  ;;  %v4483_v33 = vld [vmem:[%s3548_s27 + $0xd0] sm:$0xf]  ;;  %v1713_v40 = vshll.u32 %v876_v23, 16 }
 0x22d   : > { %3293 = vmatmul.msk.bf16.gmra.mxu3 %vm404_vm0, %v4439_v31  ;;  %v1719_v48 = vshll.u32 %v4483_v33, 16  ;;  %v1723_v19 = vshrl.u32 %v4483_v33, 16  ;;  %v2499_v23 = vrot.slane %v4483_v33, 5 }
 0x22e   : > { %3334 = vmatmul.msk.bf16.gmra.mxu0 %vm404_vm0, %v4465_v18  ;;  %v2668_v51 = vadd.f32 %v4350_v58, %v2632_v63  ;;  %v1715_v14 = vrot.slane %v1713_v40, 5 }
 0x22f   : > { %v2228_v54 = vpop.f32.mrf.mxu2  ;;  %v1721_v8 = vrot.slane %v1719_v48, 5  ;;  %v1725_v11 = vrot.slane %v1723_v19, 4  ;;  %v2501_v47 = vrot.slane %v2499_v23, 4 }
 0x230   : > { %v2700_v57 = vpack.c.bf16 %v2668_v51, %v2668_v51  ;;  %v2293_v55 = vadd.f32 %v2228_v54, %v1862_v46  ;;  %v2398_v26 = vpop.f32.mrf.mxu3  ;;  %v1901_v46 = vld [vmem:[%s3548_s27 + $0xcc] sm:$0xe] }
 0x231   : > { %v1799_v0 = vpop.f32.mrf.mxu1  ;;  %v1726_v21 = vor.u32 %v1725_v11, %v1721_v8 }
 0x232   : > { %2733 = vst.msk [vmem:[%s4362_s4 + $0x24] sm:$0xf] %vm2723_vm7, %v2700_v57  ;;  %v2463_v28 = vadd.f32 %v2398_v26, %v2293_v55  ;;  %v1863_v7 = vadd.f32 %v1799_v0, %v4118_v61  ;;  %v1731_v55 = vrot.slane %v1729_v53, 5  ;;  %v3304_v26 = vrot.slane %v1901_v46, 9 }
 0x233   : > { %v2570_v34 = vpop.f32.mrf.mxu0  ;;  %v1727_v57 = vrot.slane %v1726_v21, 4  ;;  %v2502_v0 = vrot.slane %v878_v1, 5 }
 0x234   : > { %v2633_v22 = vadd.f32 %v2568_v17, %v2463_v28  ;;  %v1716_v17 = vor.u32 %v1715_v14, %v1712_v44 }
 0x235   : > { %v1732_v28 = vsel %vm3687_vm3, %v1727_v57, %v1731_v55  ;;  %v2503_v59 = vsel %vm3698_vm6, %v2501_v47, %v2502_v0 }
 0x236   : > { %v2669_v45 = vadd.f32 %v4350_v58, %v2633_v22  ;;  %v1717_v61 = vrot.slane %v1716_v17, 4  ;;  %v1734_v14 = vunpack.c.l.b16 %v1732_v28 }
 0x237   : > { %v2230_v29 = vpop.f32.mrf.mxu2 }
 0x238   : > { %v2701_v25 = vpack.c.bf16 %v2669_v45, %v2669_v45  ;;  %v2294_v9 = vadd.f32 %v2230_v29, %v1863_v7  ;;  %v2400_v6 = vpop.f32.mrf.mxu3  ;;  %v1722_v19 = vsel %vm3687_vm3, %v1717_v61, %v1721_v8  ;;  %v2505_v45 = vunpack.c.l.b16 %v2503_v59 }
 0x239   : > { %v1802_v63 = vpop.f32.mrf.mxu1  ;;  %v1733_v44 = vunpack.c.l.b16 %v1722_v19 }
 0x23a   : > { %2734 = vst.msk [vmem:[%s4362_s4 + $0x28] sm:$0xf] %vm2723_vm7, %v2701_v25  ;;  %v2464_v36 = vadd.f32 %v2400_v6, %v2294_v9  ;;  %v1864_v33 = vadd.f32 %v1802_v63, %v4131_v16  ;;  %v2500_v16 = vsel %vm3698_vm6, %v3304_v26, %v2499_v23 }
 0x23b   : > { %v2573_v51 = vpop.f32.mrf.mxu0  ;;  %v2504_v11 = vunpack.c.l.b16 %v2500_v16  ;;  %v1735_v9 = vpack.c.b16 %v1734_v14, %v1733_v44 }
 0x23c   : > { %v2634_v54 = vadd.f32 %v2570_v34, %v2464_v36  ;;  %3197 = vmatmul.msk.bf16.gmra.mxu1 %vm404_vm0, %v4135_v50  ;;  %3253 = vmatmul.msk.bf16.gmra.mxu2 %vm404_vm0, %v4439_v31 }
 0x23d   : > { %3294 = vmatmul.msk.bf16.gmra.mxu3 %vm404_vm0, %v4465_v18  ;;  %v2506_v63 = vpack.c.b16 %v2505_v45, %v2504_v11 }
 0x23e   : > { %3335 = vmatmul.msk.bf16.gmra.mxu0 %vm404_vm0, %v2336_v39  ;;  %v2670_v60 = vadd.f32 %v4350_v58, %v2634_v54 }
 0x23f   : > { %v2233_v50 = vpop.f32.mrf.mxu2 }
 0x240   : > { %v2702_v37 = vpack.c.bf16 %v2670_v60, %v2670_v60  ;;  %v2295_v40 = vadd.f32 %v2233_v50, %v1864_v33  ;;  %v2403_v31 = vpop.f32.mrf.mxu3 }
 0x241   : > { %v1804_v48 = vpop.f32.mrf.mxu1 }
 0x242   : > { %2735 = vst.msk [vmem:[%s4362_s4 + $0x2c] sm:$0xf] %vm2723_vm7, %v2702_v37  ;;  %v2465_v34 = vadd.f32 %v2403_v31, %v2295_v40  ;;  %v1865_v13 = vadd.f32 %v1804_v48, %v4140_v32 }
 0x243   : > { %v2575_v22 = vpop.f32.mrf.mxu0 }
 0x244   : > { %v2635_v4 = vadd.f32 %v2573_v51, %v2465_v34 }
 0x246   : > { %v2671_v8 = vadd.f32 %v4350_v58, %v2635_v4 }
 0x247   : > { %v2235_v7 = vpop.f32.mrf.mxu2 }
 0x248   : > { %v2703_v1 = vpack.c.bf16 %v2671_v8, %v2671_v8  ;;  %v2296_v29 = vadd.f32 %v2235_v7, %v1865_v13  ;;  %v2405_v25 = vpop.f32.mrf.mxu3 }
 0x249   : > { %v1807_v6 = vpop.f32.mrf.mxu1 }
 0x24a   : > { %2736 = vst.msk [vmem:[%s4362_s4 + $0x30] sm:$0xf] %vm2723_vm7, %v2703_v1  ;;  %v2466_v24 = vadd.f32 %v2405_v25, %v2296_v29  ;;  %v1866_v53 = vadd.f32 %v1807_v6, %v4147_v30 }
 0x24b   : > { %v2578_v17 = vpop.f32.mrf.mxu0 }
 0x24c   : > { %v2636_v21 = vadd.f32 %v2575_v22, %v2466_v24  ;;  %3198 = vmatmul.msk.bf16.gmra.mxu1 %vm404_vm0, %v1735_v9  ;;  %3254 = vmatmul.msk.bf16.gmra.mxu2 %vm404_vm0, %v4465_v18 }
 0x24d   : > { %3295 = vmatmul.msk.bf16.gmra.mxu3 %vm404_vm0, %v2336_v39 }
 0x24e   : > { %3336 = vmatmul.msk.bf16.gmra.mxu0 %vm404_vm0, %v2506_v63  ;;  %v2672_v32 = vadd.f32 %v4350_v58, %v2636_v21 }
 0x24f   : > { %v2238_v36 = vpop.f32.mrf.mxu2 }
 0x250   : > { %v2704_v51 = vpack.c.bf16 %v2672_v32, %v2672_v32  ;;  %v2297_v46 = vadd.f32 %v2238_v36, %v1866_v53  ;;  %v2408_v23 = vpop.f32.mrf.mxu3 }
 0x251   : > { %v1809_v54 = vpop.f32.mrf.mxu1 }
 0x252   : > { %2737 = vst.msk [vmem:[%s4362_s4 + $0x34] sm:$0xf] %vm2723_vm7, %v2704_v51  ;;  %v2467_v61 = vadd.f32 %v2408_v23, %v2297_v46  ;;  %v1867_v39 = vadd.f32 %v1809_v54, %v4155_v38 }
 0x253   : > { %v2580_v57 = vpop.f32.mrf.mxu0 }
 0x254   : > { %v2637_v55 = vadd.f32 %v2578_v17, %v2467_v61 }
 0x256   : > { %v2673_v18 = vadd.f32 %v4350_v58, %v2637_v55 }
 0x257   : > { %v2240_v26 = vpop.f32.mrf.mxu2 }
 0x258   : > { %v2705_v60 = vpack.c.bf16 %v2673_v18, %v2673_v18  ;;  %v2298_v33 = vadd.f32 %v2240_v26, %v1867_v39  ;;  %v2410_v30 = vpop.f32.mrf.mxu3 }
 0x259   : > { %v1812_v47 = vpop.f32.mrf.mxu1 }
 0x25a   : > { %2738 = vst.msk [vmem:[%s4362_s4 + $0x38] sm:$0xf] %vm2723_vm7, %v2705_v60  ;;  %v2468_v0 = vadd.f32 %v2410_v30, %v2298_v33  ;;  %v1868_v31 = vadd.f32 %v1812_v47, %v4167_v27 }
 0x25b   : > { %v2583_v50 = vpop.f32.mrf.mxu0 }
 0x25c   : > { %v2638_v37 = vadd.f32 %v2580_v57, %v2468_v0 }
 0x25e   : > { %v2674_v40 = vadd.f32 %v4350_v58, %v2638_v37 }
 0x25f   : > { %v2243_v48 = vpop.f32.mrf.mxu2 }
 0x260   : > { %v2706_v19 = vpack.c.bf16 %v2674_v40, %v2674_v40  ;;  %v2299_v28 = vadd.f32 %v2243_v48, %v1868_v31  ;;  %v2413_v38 = vpop.f32.mrf.mxu3 }
 0x261   : > { %v1814_v34 = vpop.f32.mrf.mxu1 }
 0x262   : > { %2739 = vst.msk [vmem:[%s4362_s4 + $0x3c] sm:$0xf] %vm2723_vm7, %v2706_v19  ;;  %v2469_v22 = vadd.f32 %v2413_v38, %v2299_v28  ;;  %v1869_v44 = vadd.f32 %v1814_v34, %v4178_v20 }
 0x263   : > { %v2585_v16 = vpop.f32.mrf.mxu0 }
 0x264   : > { %v2639_v59 = vadd.f32 %v2583_v50, %v2469_v22 }
 0x266   : > { %v2675_v4 = vadd.f32 %v4350_v58, %v2639_v59 }
 0x267   : > { %v2245_v14 = vpop.f32.mrf.mxu2 }
 0x268   : > { %v2707_v11 = vpack.c.bf16 %v2675_v4, %v2675_v4  ;;  %v2300_v45 = vadd.f32 %v2245_v14, %v1869_v44  ;;  %v2415_v27 = vpop.f32.mrf.mxu3 }
 0x269   : > { %v1817_v8 = vpop.f32.mrf.mxu1 }
 0x26a   : > { %2740 = vst.msk [vmem:[%s4362_s4 + $0x40] sm:$0xf] %vm2723_vm7, %v2707_v11  ;;  %v2470_v13 = vadd.f32 %v2415_v27, %v2300_v45  ;;  %v1870_v25 = vadd.f32 %v1817_v8, %v4190_v62 }
 0x26b   : > { %v2588_v7 = vpop.f32.mrf.mxu0 }
 0x26c   : > { %v2640_v1 = vadd.f32 %v2585_v16, %v2470_v13 }
 0x26e   : > { %v2676_v29 = vadd.f32 %v4350_v58, %v2640_v1 }
 0x26f   : > { %v2248_v9 = vpop.f32.mrf.mxu2 }
 0x270   : > { %v2708_v6 = vpack.c.bf16 %v2676_v29, %v2676_v29  ;;  %v2301_v63 = vadd.f32 %v2248_v9, %v1870_v25  ;;  %v2418_v20 = vpop.f32.mrf.mxu3 }
 0x271   : > { %v1819_v24 = vpop.f32.mrf.mxu1 }
 0x272   : > { %2741 = vst.msk [vmem:[%s4362_s4 + $0x44] sm:$0xf] %vm2723_vm7, %v2708_v6  ;;  %v2471_v17 = vadd.f32 %v2418_v20, %v2301_v63  ;;  %v1871_v36 = vadd.f32 %v1819_v24, %v4201_v35 }
 0x273   : > { %v2590_v21 = vpop.f32.mrf.mxu0 }
 0x274   : > { %v2641_v32 = vadd.f32 %v2588_v7, %v2471_v17 }
 0x276   : > { %v2677_v53 = vadd.f32 %v4350_v58, %v2641_v32 }
 0x277   : > { %v2250_v51 = vpop.f32.mrf.mxu2 }
 0x278   : > { %v2709_v46 = vpack.c.bf16 %v2677_v53, %v2677_v53  ;;  %v2302_v23 = vadd.f32 %v2250_v51, %v1871_v36  ;;  %v2420_v62 = vpop.f32.mrf.mxu3 }
 0x279   : > { %v1822_v54 = vpop.f32.mrf.mxu1 }
 0x27a   : > { %2742 = vst.msk [vmem:[%s4362_s4 + $0x48] sm:$0xf] %vm2723_vm7, %v2709_v46  ;;  %v2472_v61 = vadd.f32 %v2420_v62, %v2302_v23  ;;  %v1872_v39 = vadd.f32 %v1822_v54, %v4213_v5 }
 0x27b   : > { %v2593_v57 = vpop.f32.mrf.mxu0 }
 0x27c   : > { %v2642_v55 = vadd.f32 %v2590_v21, %v2472_v61 }
 0x27e   : > { %v2678_v18 = vadd.f32 %v4350_v58, %v2642_v55 }
 0x27f   : > { %v2253_v26 = vpop.f32.mrf.mxu2 }
 0x280   : > { %v2710_v60 = vpack.c.bf16 %v2678_v18, %v2678_v18  ;;  %v2303_v33 = vadd.f32 %v2253_v26, %v1872_v39  ;;  %v2423_v35 = vpop.f32.mrf.mxu3 }
 0x281   : > { %v1824_v30 = vpop.f32.mrf.mxu1 }
 0x282   : > { %2743 = vst.msk [vmem:[%s4362_s4 + $0x4c] sm:$0xf] %vm2723_vm7, %v2710_v60  ;;  %v2473_v47 = vadd.f32 %v2423_v35, %v2303_v33  ;;  %v1873_v40 = vadd.f32 %v1824_v30, %v4224_v43 }
 0x283   : > { %v2595_v0 = vpop.f32.mrf.mxu0 }
 0x284   : > { %v2643_v50 = vadd.f32 %v2593_v57, %v2473_v47 }
 0x286   : > { %v2679_v37 = vadd.f32 %v4350_v58, %v2643_v50 }
 0x287   : > { %v2255_v31 = vpop.f32.mrf.mxu2 }
 0x288   : > { %v2711_v48 = vpack.c.bf16 %v2679_v37, %v2679_v37  ;;  %v2304_v19 = vadd.f32 %v2255_v31, %v1873_v40  ;;  %v2425_v5 = vpop.f32.mrf.mxu3 }
 0x289   : > { %v1827_v28 = vpop.f32.mrf.mxu1 }
 0x28a   : > { %2744 = vst.msk [vmem:[%s4362_s4 + $0x50] sm:$0xf] %vm2723_vm7, %v2711_v48  ;;  %v2474_v38 = vadd.f32 %v2425_v5, %v2304_v19  ;;  %v1874_v59 = vadd.f32 %v1827_v28, %v4236_v56 }
 0x28b   : > { %v2598_v34 = vpop.f32.mrf.mxu0 }
 0x28c   : > { %v2644_v22 = vadd.f32 %v2595_v0, %v2474_v38 }
 0x28e   : > { %v2680_v16 = vadd.f32 %v4350_v58, %v2644_v22 }
 0x28f   : > { %v2258_v4 = vpop.f32.mrf.mxu2 }
 0x290   : > { %v2712_v44 = vpack.c.bf16 %v2680_v16, %v2680_v16  ;;  %v2305_v14 = vadd.f32 %v2258_v4, %v1874_v59  ;;  %v2428_v43 = vpop.f32.mrf.mxu3 }
 0x291   : > { %v1829_v11 = vpop.f32.mrf.mxu1 }
 0x292   : > { %2745 = vst.msk [vmem:[%s4362_s4 + $0x54] sm:$0xf] %vm2723_vm7, %v2712_v44  ;;  %v2475_v45 = vadd.f32 %v2428_v43, %v2305_v14  ;;  %v1875_v7 = vadd.f32 %v1829_v11, %v4247_v42 }
 0x293   : > { %v2600_v27 = vpop.f32.mrf.mxu0 }
 0x294   : > { %v2645_v8 = vadd.f32 %v2598_v34, %v2475_v45 }
 0x296   : > { %v2681_v13 = vadd.f32 %v4350_v58, %v2645_v8 }
 0x297   : > { %v2260_v1 = vpop.f32.mrf.mxu2 }
 0x298   : > { %v2713_v29 = vpack.c.bf16 %v2681_v13, %v2681_v13  ;;  %v2306_v25 = vadd.f32 %v2260_v1, %v1875_v7  ;;  %v2430_v56 = vpop.f32.mrf.mxu3 }
 0x299   : > { %v1832_v9 = vpop.f32.mrf.mxu1 }
 0x29a   : > { %2746 = vst.msk [vmem:[%s4362_s4 + $0x58] sm:$0xf] %vm2723_vm7, %v2713_v29  ;;  %v2476_v6 = vadd.f32 %v2430_v56, %v2306_v25  ;;  %v1876_v17 = vadd.f32 %v1832_v9, %v4259_v10 }
 0x29b   : > { %v2603_v63 = vpop.f32.mrf.mxu0 }
 0x29c   : > { %v2646_v20 = vadd.f32 %v2600_v27, %v2476_v6 }
 0x29e   : > { %v2682_v24 = vadd.f32 %v4350_v58, %v2646_v20 }
 0x29f   : > { %v2263_v21 = vpop.f32.mrf.mxu2 }
 0x2a0   : > { %v2714_v32 = vpack.c.bf16 %v2682_v24, %v2682_v24  ;;  %v2307_v53 = vadd.f32 %v2263_v21, %v1876_v17  ;;  %v2433_v42 = vpop.f32.mrf.mxu3 }
 0x2a1   : > { %v1834_v36 = vpop.f32.mrf.mxu1 }
 0x2a2   : > { %2747 = vst.msk [vmem:[%s4362_s4 + $0x5c] sm:$0xf] %vm2723_vm7, %v2714_v32  ;;  %v2477_v51 = vadd.f32 %v2433_v42, %v2307_v53  ;;  %v1877_v54 = vadd.f32 %v1834_v36, %v4270_v3 }
 0x2a3   : > { %v2605_v46 = vpop.f32.mrf.mxu0 }
 0x2a4   : > { %v2647_v23 = vadd.f32 %v2603_v63, %v2477_v51 }
 0x2a6   : > { %v2683_v62 = vadd.f32 %v4350_v58, %v2647_v23 }
 0x2a7   : > { %v2265_v61 = vpop.f32.mrf.mxu2 }
 0x2a8   : > { %v2715_v57 = vpack.c.bf16 %v2683_v62, %v2683_v62  ;;  %v2308_v55 = vadd.f32 %v2265_v61, %v1877_v54  ;;  %v2435_v10 = vpop.f32.mrf.mxu3 }
 0x2a9   : > { %v1837_v18 = vpop.f32.mrf.mxu1 }
 0x2aa   : > { %2748 = vst.msk [vmem:[%s4362_s4 + $0x60] sm:$0xf] %vm2723_vm7, %v2715_v57  ;;  %v2478_v39 = vadd.f32 %v2435_v10, %v2308_v55  ;;  %v1878_v35 = vadd.f32 %v1837_v18, %v4282_v49 }
 0x2ab   : > { %v2608_v26 = vpop.f32.mrf.mxu0 }
 0x2ac   : > { %v2648_v60 = vadd.f32 %v2605_v46, %v2478_v39 }
 0x2ae   : > { %v2684_v33 = vadd.f32 %v4350_v58, %v2648_v60 }
 0x2af   : > { %v2268_v30 = vpop.f32.mrf.mxu2 }
 0x2b0   : > { %v2716_v47 = vpack.c.bf16 %v2684_v33, %v2684_v33  ;;  %v2309_v0 = vadd.f32 %v2268_v30, %v1878_v35  ;;  %v2438_v3 = vpop.f32.mrf.mxu3 }
 0x2b1   : > { %v1839_v50 = vpop.f32.mrf.mxu1 }
 0x2b2   : > { %2749 = vst.msk [vmem:[%s4362_s4 + $0x64] sm:$0xf] %vm2723_vm7, %v2716_v47  ;;  %v2479_v37 = vadd.f32 %v2438_v3, %v2309_v0  ;;  %v1879_v19 = vadd.f32 %v1839_v50, %v4293_v2 }
 0x2b3   : > { %v2610_v40 = vpop.f32.mrf.mxu0 }
 0x2b4   : > { %v2649_v31 = vadd.f32 %v2608_v26, %v2479_v37 }
 0x2b6   : > { %v2685_v48 = vadd.f32 %v4350_v58, %v2649_v31 }
 0x2b7   : > { %v2270_v5 = vpop.f32.mrf.mxu2 }
 0x2b8   : > { %v2717_v28 = vpack.c.bf16 %v2685_v48, %v2685_v48  ;;  %v2310_v38 = vadd.f32 %v2270_v5, %v1879_v19  ;;  %v2440_v49 = vpop.f32.mrf.mxu3 }
 0x2b9   : > { %v1842_v34 = vpop.f32.mrf.mxu1 }
 0x2ba   : > { %2750 = vst.msk [vmem:[%s4362_s4 + $0x68] sm:$0xf] %vm2723_vm7, %v2717_v28  ;;  %v2480_v22 = vadd.f32 %v2440_v49, %v2310_v38  ;;  %v1880_v44 = vadd.f32 %v1842_v34, %v4305_v41 }
 0x2bb   : > { %v2613_v59 = vpop.f32.mrf.mxu0 }
 0x2bc   : > { %v2650_v16 = vadd.f32 %v2610_v40, %v2480_v22 }
 0x2be   : > { %v2686_v4 = vadd.f32 %v4350_v58, %v2650_v16 }
 0x2bf   : > { %v2273_v14 = vpop.f32.mrf.mxu2 }
 0x2c0   : > { %v2718_v43 = vpack.c.bf16 %v2686_v4, %v2686_v4  ;;  %v2311_v11 = vadd.f32 %v2273_v14, %v1880_v44  ;;  %v2443_v2 = vpop.f32.mrf.mxu3 }
 0x2c1   : > { %v1844_v45 = vpop.f32.mrf.mxu1 }
 0x2c2   : > { %2751 = vst.msk [vmem:[%s4362_s4 + $0x6c] sm:$0xf] %vm2723_vm7, %v2718_v43  ;;  %v2481_v27 = vadd.f32 %v2443_v2, %v2311_v11  ;;  %v1881_v7 = vadd.f32 %v1844_v45, %v4316_v52 }
 0x2c3   : > { %v2615_v1 = vpop.f32.mrf.mxu0 }
 0x2c4   : > { %v2651_v8 = vadd.f32 %v2613_v59, %v2481_v27 }
 0x2c6   : > { %v2687_v13 = vadd.f32 %v4350_v58, %v2651_v8 }
 0x2c7   : > { %v2275_v29 = vpop.f32.mrf.mxu2 }
 0x2c8   : > { %v2719_v25 = vpack.c.bf16 %v2687_v13, %v2687_v13  ;;  %v2312_v56 = vadd.f32 %v2275_v29, %v1881_v7  ;;  %v2445_v41 = vpop.f32.mrf.mxu3 }
 0x2c9   : > { %v1847_v9 = vpop.f32.mrf.mxu1 }
 0x2ca   : > { %2752 = vst.msk [vmem:[%s4362_s4 + $0x70] sm:$0xf] %vm2723_vm7, %v2719_v25  ;;  %v2482_v6 = vadd.f32 %v2445_v41, %v2312_v56  ;;  %v1882_v24 = vadd.f32 %v1847_v9, %v4328_v12 }
 0x2cb   : > { %v2618_v53 = vpop.f32.mrf.mxu0 }
 0x2cc   : > { %v2652_v63 = vadd.f32 %v2615_v1, %v2482_v6 }
 0x2ce   : > { %v2688_v20 = vadd.f32 %v4350_v58, %v2652_v63 }
 0x2cf   : > { %v2278_v17 = vpop.f32.mrf.mxu2 }
 0x2d0   : > { %v2720_v21 = vpack.c.bf16 %v2688_v20, %v2688_v20  ;;  %v2313_v32 = vadd.f32 %v2278_v17, %v1882_v24  ;;  %v2448_v52 = vpop.f32.mrf.mxu3 }
 0x2d1   : > { %v1849_v36 = vpop.f32.mrf.mxu1 }
 0x2d2   : > { %2753 = vst.msk [vmem:[%s4362_s4 + $0x74] sm:$0xf] %vm2723_vm7, %v2720_v21  ;;  %v2483_v42 = vadd.f32 %v2448_v52, %v2313_v32  ;;  %v1883_v23 = vadd.f32 %v1849_v36, %v4339_v15 }
 0x2d3   : > { %v2620_v55 = vpop.f32.mrf.mxu0 }
 0x2d4   : > { %v2653_v51 = vadd.f32 %v2618_v53, %v2483_v42 }
 0x2d6   : > { %v2689_v46 = vadd.f32 %v4350_v58, %v2653_v51 }
 0x2d7   : > { %v2280_v62 = vpop.f32.mrf.mxu2 }
 0x2d8   : > { %v2721_v54 = vpack.c.bf16 %v2689_v46, %v2689_v46  ;;  %v2314_v61 = vadd.f32 %v2280_v62, %v1883_v23  ;;  %v2450_v12 = vpop.f32.mrf.mxu3 }
 0x2da   : > { %2754 = vst.msk [vmem:[%s4362_s4 + $0x78] sm:$0xf] %vm2723_vm7, %v2721_v54  ;;  %v2484_v57 = vadd.f32 %v2450_v12, %v2314_v61 }
 0x2dc   : > { %v2654_v10 = vadd.f32 %v2620_v55, %v2484_v57 }
 0x2de   : > { %v2690_v18 = vadd.f32 %v4350_v58, %v2654_v10 }
 0x2e0   : > { %v2722_v39 = vpack.c.bf16 %v2690_v18, %v2690_v18 }
 0x2e2   : > { %2755 = vst.msk [vmem:[%s4362_s4 + $0x7c] sm:$0xf] %vm2723_vm7, %v2722_v39 }
 0x2e3 PF: > { %s13_s14 = sadd.s32 1, %s3490_s14   ;;  %s4662_s12 = smov %s3486_s13 }
 0x2e4   : > { %p10_p5 = scmp.ge.s32.totalorder %s13_s14, 4   ;;  %s4663_s13 = smov %s4665_s15 }
 0x2e6   :  { %12 = sbr.rel (!%p10_p5) target bundleno = 2 (0x2), region = 77 }

// kernel: perceptual_vgg_forward.12
= control target key start
LH: loop header
LB: loop body
LE: loop exit
PB: predicated region body
PF: predicated region fallthrough
CT: control target
= control target key end

     0   :  { %s2669_s12 = smov 0   ;;  %s2671_s13 = smov 0   ;;  %s3264_s0 = inlined_call_operand.vmem [shape: bf16[2,10,10,128], index: 0, kind: input, shape index: {}]   ;;  %s3265_s1 = inlined_call_operand.vmem [shape: bf16[9,128,128], index: 1, kind: input, shape index: {}]   ;;  %s3266_s2 = inlined_call_operand.vmem [shape: f32[1,128], index: 2, kind: input, shape index: {}]   ;;  %s3267_s3 = inlined_call_operand.vmem [shape: bf16[2,4,4,128], index: 3, kind: output, shape index: {}]  }
   0x1   :  { %s2673_s14 = smov 0  }
   0x2 LB: > { %s32_s15 = sadd.s32 1, %s2643_s13  ;;  %p2078_p0 = scmp.ge.s32.totalorder %s2647_s14, 1  ;;  %s2647_s14 = sphi %s2673_s14, %s13_s14   ;;  %s2643_s13 = sphi %s2671_s13, %s3273_s13   ;;  %s2639_s12 = sphi %s2669_s12, %s3272_s12  }
   0x3   : > { %p34_p1 = scmp.ge.s32.totalorder %s32_s15, 2  ;;  %p177_p2 = scmp.lt.s32.totalorder %s2647_s14, 3 }
   0x5   : > { %s3275_s15 = smov (%p34_p1, %s32_s15), 0  ;;  %p178_p3 = pnand %p2078_p0, %p177_p2 }
   0x6   : > { %p215_p4 = scmp.lt.s32.totalorder (!%p178_p3), %s2639_s12, 1 }
   0x7   : > { %181 = sbr.rel (%p178_p3) target bundleno = 397 (0x18d), region = 32 }
   0xc   : > { %v2526_v0 = vld [vmem:[%s3265_s1 + $0xf8] sm:$0xff]  ;;  %v2525_v2 = vld [vmem:[%s3265_s1 + $0xf0] sm:$0xff]  ;;  %s3277_s12 = smov (!%p215_p4, %s2639_s12), 1  ;;  %v2524_v6 = vld [vmem:[%s3265_s1 + $0xe8] sm:$0xff]  ;;  %vm618_vm0 = vsmask.f32 3328 }
   0xd   : > { %v2534_v1 = vld [vmem:[%s3265_s1 + $0x1b8] sm:$0xff]  ;;  %2583 = vmatpush.bf16.msra.mxu1 %v2526_v0  ;;  %359 = vmatpush.bf16.msra.mxu0 %v2526_v0  ;;  %v2533_v3 = vld [vmem:[%s3265_s1 + $0x1b0] sm:$0xff]  ;;  %v2532_v7 = vld [vmem:[%s3265_s1 + $0x1a8] sm:$0xff]  ;;  %s2599_s5 = smul.u32 80, %s3277_s12  ;;  %vm619_vm1 = vsmask.f32 7440 }
   0xe   : > { %544 = vmatpush.bf16.msra.mxu2 %v2534_v1  ;;  %v2542_v4 = vld [vmem:[%s3265_s1 + $0x78] sm:$0xff]  ;;  %v2541_v5 = vld [vmem:[%s3265_s1 + $0x70] sm:$0xff]  ;;  %v2540_v8 = vld [vmem:[%s3265_s1 + $0x68] sm:$0xff]  ;;  %vm1121_vm3 = vcmask 1042432   ;;  %vm1122_vm4 = vcmask 1046532   ;;  %vm1537_vm6 = vcmask 1040384  }
   0xf   : > { %797 = vmatpush.bf16.msra.mxu3 %v2542_v4  ;;  %v2523_v9 = vld [vmem:[%s3265_s1 + $0xe0] sm:$0xff]  ;;  %s2726_s18 = scalar_lea.vmem %s3264_s0, %s2599_s5  ;;  %v2522_v13 = vld [vmem:[%s3265_s1 + $0xd8] sm:$0xff]  ;;  %v2521_v30 = vld [vmem:[%s3265_s1 + $0xd0] sm:$0xff]  ;;  %vm1541_vm7 = vcmask 1041409   ;;  %vm1545_vm8 = vcmask 1042434   ;;  %vm1549_vm9 = vcmask 1043459  }
  0x10   : > { %v2531_v10 = vld [vmem:[%s3265_s1 + $0x1a0] sm:$0xff]  ;;  %v583_v12 = vld [vmem:[%s2726_s18 + $0x8] sm:$0xf]  ;;  %v2740_v18 = vld [vmem:[%s2726_s18 + $0xc] sm:$0x1]  ;;  %vm1621_vm10 = vcmask 1041408  }
  0x11   : > { %2584 = vmatpush.bf16.msra.mxu1 %v2525_v2  ;;  %360 = vmatpush.bf16.msra.mxu0 %v2525_v2  ;;  %v581_v11 = vld [vmem:[%s2726_s18] sm:$0xf]  ;;  %v2737_v15 = vld [vmem:[%s2726_s18 + $0x4] sm:$0x1]  ;;  %v636_v19 = vshrl.u32 %v583_v12, 16  ;;  %v639_v20 = vshll.u32 %v583_v12, 16  ;;  %vm2773_vm2 = vmor %vm618_vm0, %vm619_vm1 }
  0x12   : > { %545 = vmatpush.bf16.msra.mxu2 %v2533_v3  ;;  %v2539_v14 = vld [vmem:[%s3265_s1 + $0x60] sm:$0xff]  ;;  %v622_v16 = vshrl.u32 %v581_v11, 16  ;;  %v625_v17 = vshll.u32 %v581_v11, 16  ;;  %v2530_v21 = vld [vmem:[%s3265_s1 + $0x198] sm:$0xff]  ;;  %v631_v24 = vshll.u32 %v2737_v15, 16  ;;  %v645_v29 = vshll.u32 %v2740_v18, 16  ;;  %vm3054_vm5 = vmor %vm1121_vm3, %vm1122_vm4 }
  0x13   : > { %798 = vmatpush.bf16.msra.mxu3 %v2541_v5  ;;  %v2538_v25 = vld [vmem:[%s3265_s1 + $0x58] sm:$0xff]  ;;  %v638_v27 = vrot.slane %v636_v19, 4  ;;  %v641_v28 = vrot.slane %v639_v20, 5  ;;  %v2529_v31 = vld [vmem:[%s3265_s1 + $0x190] sm:$0xff]  ;;  %v2757_v32 = vld [vmem:[%s2726_s18 + $0x28] sm:$0xf] }
  0x14   : > { %v624_v22 = vrot.slane %v622_v16, 4  ;;  %v627_v23 = vrot.slane %v625_v17, 5  ;;  %v2760_v34 = vld [vmem:[%s2726_s18 + $0x30] sm:$0xf]  ;;  %v2763_v35 = vld [vmem:[%s2726_s18 + $0x8] sm:$0xf]  ;;  %v299_v46 = vunpack.c.l.b16 %v2757_v32 }
  0x15   : > { %2585 = vmatpush.bf16.msra.mxu1 %v2524_v6  ;;  %361 = vmatpush.bf16.msra.mxu0 %v2524_v6  ;;  %v642_v33 = vor.u32 %v641_v28, %v638_v27  ;;  %v246_v36 = vld [vmem:[%s2726_s18 + $0x10] sm:$0xf]  ;;  %v633_v39 = vrot.slane %v631_v24, 5  ;;  %v647_v41 = vrot.slane %v645_v29, 5  ;;  %v2520_v42 = vld [vmem:[%s3265_s1 + $0xc8] sm:$0xff]  ;;  %v300_v47 = vunpack.c.l.b16 %v2760_v34  ;;  %v2519_v55 = vld [vmem:[%s3265_s1 + $0xc0] sm:$0xff] }
  0x16   : > { %546 = vmatpush.bf16.msra.mxu2 %v2532_v7  ;;  %v628_v26 = vor.u32 %v627_v23, %v624_v22  ;;  %v2537_v37 = vld [vmem:[%s3265_s1 + $0x50] sm:$0xff]  ;;  %v2528_v44 = vld [vmem:[%s3265_s1 + $0x188] sm:$0xff]  ;;  %v2781_v45 = vld [vmem:[%s2726_s18 + $0x18] sm:$0xf]  ;;  %v295_v48 = vunpack.c.l.b16 %v2763_v35  ;;  %v296_v49 = vunpack.c.l.b16 %v246_v36  ;;  %s2510_s5 = sshll.u32 %s3277_s12, 3 }
  0x17   : > { %799 = vmatpush.bf16.msra.mxu3 %v2540_v8  ;;  %v643_v40 = vrot.slane %v642_v33, 4  ;;  %v2536_v50 = vld [vmem:[%s3265_s1 + $0x48] sm:$0xff]  ;;  %v585_v53 = vld [vmem:[%s2726_s18 + $0x10] sm:$0xf]  ;;  %v587_v54 = vld [vmem:[%s2726_s18 + $0x18] sm:$0xf]  ;;  %v297_v56 = vunpack.c.l.b16 %v2781_v45  ;;  %v305_v63 = vpack.c.b16 %v300_v47, %v299_v46  ;;  %s3212_s12 = scalar_lea.vmem %s3267_s3, %s2510_s5 }
  0x18   : > { %v629_v38 = vrot.slane %v628_v26, 4  ;;  %v650_v57 = vshrl.u32 %v585_v53, 16  ;;  %v653_v58 = vshll.u32 %v585_v53, 16  ;;  %v664_v59 = vshrl.u32 %v587_v54, 16  ;;  %v2518_v60 = vld [vmem:[%s3265_s1 + $0x38] sm:$0xff]  ;;  %v2527_v61 = vld [vmem:[%s3265_s1 + $0x180] sm:$0xff] }
  0x19   : > { %2586 = vmatpush.bf16.msra.mxu1 %v2523_v9  ;;  %362 = vmatpush.bf16.msra.mxu0 %v2523_v9  ;;  %v648_v52 = vsel %vm2773_vm2, %v643_v40, %v647_v41  ;;  %v667_v62 = vshll.u32 %v587_v54, 16  ;;  %v303_v0 = vpack.c.b16 %v296_v49, %v295_v48  ;;  %v2550_v1 = vld [vmem:[%s3265_s1 + $0x138] sm:$0xff]  ;;  %v2821_v9 = vpack.c.b16 %v297_v56, %v296_v49  ;;  %v2827_v11 = vld [vmem:[%s2726_s18 + $0x14] sm:$0x1]  ;;  %v2516_v24 = vld [vmem:[%s3265_s1 + $0x28] sm:$0xff] }
  0x1a   : > { %547 = vmatpush.bf16.msra.mxu2 %v2531_v10  ;;  %v634_v51 = vsel %vm2773_vm2, %v629_v38, %v633_v39  ;;  %v2566_v2 = vld [vmem:[%s3265_s1 + $0xb8] sm:$0xff]  ;;  %v2817_v4 = vunpack.c.l.b16 %v648_v52  ;;  %v652_v5 = vrot.slane %v650_v57, 4  ;;  %v655_v6 = vrot.slane %v653_v58, 5  ;;  %v2535_v10 = vld [vmem:[%s3265_s1 + $0x40] sm:$0xff]  ;;  %v2549_v16 = vld [vmem:[%s3265_s1 + $0x130] sm:$0xff] }
  0x1b   : > { %800 = vmatpush.bf16.msra.mxu3 %v2539_v14  ;;  %v733_v3 = vunpack.c.l.b16 %v634_v51  ;;  %v666_v7 = vrot.slane %v664_v59, 4  ;;  %v669_v8 = vrot.slane %v667_v62, 5  ;;  %v2830_v12 = vld [vmem:[%s2726_s18 + $0x1c] sm:$0x1]  ;;  %v2565_v19 = vld [vmem:[%s3265_s1 + $0xb0] sm:$0xff]  ;;  %v2564_v29 = vld [vmem:[%s3265_s1 + $0xa8] sm:$0xff] }
  0x1c   : > { %v2574_v14 = vld [vmem:[%s3265_s1 + $0x178] sm:$0xff]  ;;  %v656_v20 = vor.u32 %v655_v6, %v652_v5  ;;  %v673_v23 = vshll.u32 %v2830_v12, 16  ;;  %v2573_v26 = vld [vmem:[%s3265_s1 + $0x170] sm:$0xff]  ;;  %v2861_v28 = vld [vmem:[%s2726_s18 + $0x40] sm:$0xf] }
  0x1d   : > { %2587 = vmatpush.bf16.msra.mxu1 %v2522_v13  ;;  %363 = vmatpush.bf16.msra.mxu0 %v2522_v13  ;;  %v2517_v13 = vld [vmem:[%s3265_s1 + $0x30] sm:$0xff]  ;;  %v741_v17 = vpack.c.b16 %v2817_v4, %v733_v3  ;;  %v670_v22 = vor.u32 %v669_v8, %v666_v7  ;;  %v2858_v27 = vld [vmem:[%s2726_s18 + $0x38] sm:$0xf]  ;;  %v2515_v38 = vld [vmem:[%s3265_s1 + $0x20] sm:$0xff]  ;;  %v302_v41 = vunpack.c.l.b16 %v2861_v28 }
  0x1e   : > { %548 = vmatpush.bf16.msra.mxu2 %v2530_v21  ;;  %v659_v21 = vshll.u32 %v2827_v11, 16  ;;  %v2572_v39 = vld [vmem:[%s3265_s1 + $0x168] sm:$0xff]  ;;  %v301_v40 = vunpack.c.l.b16 %v2858_v27  ;;  %v2563_v49 = vld [vmem:[%s3265_s1 + $0xa0] sm:$0xff]  ;;  %v2514_v59 = vld [vmem:[%s3265_s1 + $0x18] sm:$0xff] }
  0x1f   : > { %801 = vmatpush.bf16.msra.mxu3 %v2538_v25  ;;  %v2548_v25 = vld [vmem:[%s3265_s1 + $0x128] sm:$0xff]  ;;  %v671_v36 = vrot.slane %v670_v22, 4  ;;  %v589_v52 = vld [vmem:[%s2726_s18 + $0x20] sm:$0xf]  ;;  %v2546_v62 = vld [vmem:[%s3265_s1 + $0x118] sm:$0xff] }
  0x20   : > { %v661_v33 = vrot.slane %v659_v21, 5  ;;  %v591_v53 = vld [vmem:[%s2726_s18 + $0x28] sm:$0xf]  ;;  %v678_v54 = vshrl.u32 %v589_v52, 16  ;;  %v2908_v7 = vld [vmem:[%s2726_s18 + $0x24] sm:$0x1] }
  0x21   : > { %2588 = vmatpush.bf16.msra.mxu1 %v2521_v30  ;;  %364 = vmatpush.bf16.msra.mxu0 %v2521_v30  ;;  %v248_v30 = vld [vmem:[%s2726_s18 + $0x20] sm:$0xf]  ;;  %v692_v57 = vshrl.u32 %v591_v53, 16  ;;  %v695_v58 = vshll.u32 %v591_v53, 16  ;;  %v2911_v45 = vld [vmem:[%s2726_s18 + $0x2c] sm:$0x1] }
  0x22   : > { %549 = vmatpush.bf16.msra.mxu2 %v2529_v31  ;;  %v657_v31 = vrot.slane %v656_v20, 4  ;;  %v2545_v8 = vld [vmem:[%s3265_s1 + $0x110] sm:$0xff]  ;;  %v2562_v32 = vld [vmem:[%s3265_s1 + $0x98] sm:$0xff]  ;;  %v2544_v21 = vld [vmem:[%s3265_s1 + $0x108] sm:$0xff] }
  0x23   : > { %802 = vmatpush.bf16.msra.mxu3 %v2537_v37  ;;  %v675_v37 = vrot.slane %v673_v23, 5  ;;  %v694_v3 = vrot.slane %v692_v57, 4  ;;  %v697_v5 = vrot.slane %v695_v58, 5  ;;  %v2561_v20 = vld [vmem:[%s3265_s1 + $0x90] sm:$0xff]  ;;  %v2570_v22 = vld [vmem:[%s3265_s1 + $0x158] sm:$0xff]  ;;  %v2975_v57 = vpack.c.b16 %v301_v40, %v300_v47  ;;  %v2556_v34 = vld [vmem:[%s3265_s1 + $0x1e8] sm:$0xff] }
  0x24   : > { %v244_v23 = vld [vmem:[%s2726_s18] sm:$0xf]  ;;  %v2560_v47 = vld [vmem:[%s3265_s1 + $0x88] sm:$0xff] }
  0x25   : > { %2589 = vmatpush.bf16.msra.mxu1 %v2520_v42  ;;  %365 = vmatpush.bf16.msra.mxu0 %v2520_v42  ;;  %v2547_v42 = vld [vmem:[%s3265_s1 + $0x120] sm:$0xff]  ;;  %v676_v51 = vsel %vm2773_vm2, %v671_v36, %v675_v37  ;;  %v2582_v37 = vld [vmem:[%s3265_s1 + $0x238] sm:$0xff]  ;;  %v2552_v28 = vld [vmem:[%s3265_s1 + $0x1c8] sm:$0xff] }
  0x26   : > { %550 = vmatpush.bf16.msra.mxu2 %v2528_v44  ;;  %v298_v44 = vunpack.c.l.b16 %v248_v30  ;;  %v2511_v30 = vld [vmem:[%s3265_s1] sm:$0xff] }
  0x27   : > { %803 = vmatpush.bf16.msra.mxu3 %v2536_v50  ;;  %v662_v50 = vsel %vm2773_vm2, %v657_v31, %v661_v33  ;;  %v389_v31 = vunpack.c.l.b16 %v244_v23  ;;  %v2558_v33 = vld [vmem:[%s3265_s1 + $0x1f8] sm:$0xff]  ;;  %v2543_v36 = vld [vmem:[%s3265_s1 + $0x100] sm:$0xff] }
  0x28   : > { %v2905_v6 = vpack.c.b16 %v299_v46, %v298_v44 }
  0x29   : > { %2590 = vmatpush.bf16.msra.mxu1 %v2519_v55  ;;  %366 = vmatpush.bf16.msra.mxu0 %v2519_v55  ;;  %v681_v55 = vshll.u32 %v589_v52, 16  ;;  %v390_v53 = vpack.c.b16 %v295_v48, %v389_v31  ;;  %v2581_v48 = vld [vmem:[%s3265_s1 + $0x230] sm:$0xff] }
  0x2a   : > { %551 = vmatpush.bf16.msra.mxu2 %v2527_v61  ;;  %v304_v61 = vpack.c.b16 %v298_v44, %v297_v56  ;;  %v2513_v56 = vld [vmem:[%s3265_s1 + $0x10] sm:$0xff]  ;;  %v595_v44 = vld [vmem:[%s2726_s18 + $0x38] sm:$0xf] }
  0x2b   : > { %804 = vmatpush.bf16.msra.mxu3 %v2535_v10  ;;  %v723_v52 = vshll.u32 %v595_v44, 16 }
  0x2c   : > { %377 = vmatmul.bf16.vlgmr.msra.gmra.mxu1 %v305_v63  ;;  %367 = vmatmul.bf16.vlgmr.msra.gmra.mxu0 %v303_v0  ;;  %v2899_v63 = vunpack.c.l.b16 %v662_v50  ;;  %v2901_v0 = vunpack.c.l.b16 %v676_v51  ;;  %v720_v51 = vshrl.u32 %v595_v44, 16  ;;  %v1130_v44 = vrot.slane %v2740_v18, 5 }
  0x2d   : > { %446 = vmatpush.bf16.msrb.mxu1 %v2518_v60  ;;  %922 = vmatpush.bf16.msrb.mxu0 %v2550_v1  ;;  %v306_v60 = vpack.c.b16 %v302_v41, %v301_v40  ;;  %v680_v1 = vrot.slane %v678_v54, 4  ;;  %v2557_v54 = vld [vmem:[%s3265_s1 + $0x1f0] sm:$0xff] }
  0x2e   : > { %1220 = vmatpush.bf16.msrb.mxu2 %v2566_v2  ;;  %805 = vmatmul.bf16.vlgmr.msra.gmra.mxu3 %v741_v17  ;;  %v683_v2 = vrot.slane %v681_v55, 5  ;;  %v2921_v10 = vpack.c.b16 %v2901_v0, %v2899_v63  ;;  %v2571_v17 = vld [vmem:[%s3265_s1 + $0x160] sm:$0xff]  ;;  %v866_v55 = vpack.c.b16 %v2899_v63, %v2817_v4  ;;  %v2986_v4 = vld [vmem:[%s2726_s18 + $0x3c] sm:$0x1]  ;;  %v2569_v40 = vld [vmem:[%s3265_s1 + $0x150] sm:$0xff] }
  0x2f   : > { %552 = vmatmul.bf16.vlgmr.msra.gmra.mxu2 %v2821_v9  ;;  %1337 = vmatpush.bf16.msrb.mxu3 %v2574_v14  ;;  %v698_v14 = vor.u32 %v697_v5, %v694_v3  ;;  %v2580_v63 = vld [vmem:[%s3265_s1 + $0x228] sm:$0xff] }
  0x30   : > { %v684_v46 = vor.u32 %v683_v2, %v680_v1  ;;  %v2983_v1 = vld [vmem:[%s2726_s18 + $0x34] sm:$0x1] }
  0x31   : > { %447 = vmatpush.bf16.msrb.mxu1 %v2517_v13  ;;  %923 = vmatpush.bf16.msrb.mxu0 %v2549_v16  ;;  %v687_v13 = vshll.u32 %v2908_v7, 16  ;;  %v701_v16 = vshll.u32 %v2911_v45, 16  ;;  %v715_v3 = vshll.u32 %v2983_v1, 16 }
  0x32   : > { %1221 = vmatpush.bf16.msrb.mxu2 %v2565_v19  ;;  %v2512_v19 = vld [vmem:[%s3265_s1 + $0x8] sm:$0xff] }
  0x33   : > { %1338 = vmatpush.bf16.msrb.mxu3 %v2573_v26  ;;  %v699_v26 = vrot.slane %v698_v14, 4  ;;  %v717_v14 = vrot.slane %v715_v3, 5 }
  0x35   : > { %448 = vmatpush.bf16.msrb.mxu1 %v2516_v24  ;;  %924 = vmatpush.bf16.msrb.mxu0 %v2548_v25  ;;  %v685_v24 = vrot.slane %v684_v46, 4  ;;  %v689_v25 = vrot.slane %v687_v13, 5  ;;  %v2555_v46 = vld [vmem:[%s3265_s1 + $0x1e0] sm:$0xff] }
  0x36   : > { %1222 = vmatpush.bf16.msrb.mxu2 %v2564_v29  ;;  %v703_v29 = vrot.slane %v701_v16, 5 }
  0x37   : > { %1339 = vmatpush.bf16.msrb.mxu3 %v2572_v39 }
  0x38   : > { %v704_v39 = vsel %vm2773_vm2, %v699_v26, %v703_v29  ;;  %v2553_v26 = vld [vmem:[%s3265_s1 + $0x1d0] sm:$0xff] }
  0x39   : > { %449 = vmatpush.bf16.msrb.mxu1 %v2515_v38  ;;  %925 = vmatpush.bf16.msrb.mxu0 %v2547_v42  ;;  %v690_v38 = vsel %vm2773_vm2, %v685_v24, %v689_v25  ;;  %v593_v42 = vld [vmem:[%s2726_s18 + $0x30] sm:$0xf]  ;;  %v2977_v35 = vunpack.c.l.b16 %v704_v39  ;;  %v2578_v25 = vld [vmem:[%s3265_s1 + $0x218] sm:$0xff]  ;;  %v1126_v39 = vrot.slane %v2737_v15, 5 }
  0x3a   : > { %1223 = vmatpush.bf16.msrb.mxu2 %v2563_v49  ;;  %v706_v49 = vshrl.u32 %v593_v42, 16  ;;  %v709_v50 = vshll.u32 %v593_v42, 16  ;;  %v737_v58 = vunpack.c.l.b16 %v690_v38  ;;  %v2577_v42 = vld [vmem:[%s3265_s1 + $0x210] sm:$0xff] }
  0x3b   : > { %1340 = vmatpush.bf16.msrb.mxu3 %v2571_v17 }
  0x3c   : > { %382 = vmatmul.bf16.gmra.mxu1 %v306_v60  ;;  %372 = vmatmul.bf16.gmra.mxu0 %v304_v61  ;;  %v711_v60 = vrot.slane %v709_v50, 5  ;;  %v722_v61 = vrot.slane %v720_v51, 4  ;;  %v2995_v27 = vpack.c.b16 %v2977_v35, %v737_v58  ;;  %v867_v29 = vpack.c.b16 %v737_v58, %v2901_v0  ;;  %v1080_v50 = vld [vmem:[%s2726_s18 + $0x10] sm:$0xe]  ;;  %v2576_v51 = vld [vmem:[%s3265_s1 + $0x208] sm:$0xff] }
  0x3d   : > { %450 = vmatpush.bf16.msrb.mxu1 %v2514_v59  ;;  %926 = vmatpush.bf16.msrb.mxu0 %v2546_v62  ;;  %v708_v59 = vrot.slane %v706_v49, 4  ;;  %v725_v62 = vrot.slane %v723_v52, 5  ;;  %v597_v49 = vld [vmem:[%s2726_s18 + $0x40] sm:$0xf]  ;;  %v1134_v58 = vrot.slane %v2827_v11, 5 }
  0x3e   : > { %1224 = vmatpush.bf16.msrb.mxu2 %v2562_v32  ;;  %810 = vmatmul.bf16.gmra.mxu3 %v2921_v10  ;;  %v2568_v32 = vld [vmem:[%s3265_s1 + $0x148] sm:$0xff]  ;;  %v2551_v52 = vld [vmem:[%s3265_s1 + $0x1c0] sm:$0xff] }
  0x3f   : > { %557 = vmatmul.bf16.gmra.mxu2 %v2905_v6  ;;  %1341 = vmatpush.bf16.msrb.mxu3 %v2570_v22  ;;  %v712_v2 = vor.u32 %v711_v60, %v708_v59  ;;  %v726_v5 = vor.u32 %v725_v62, %v722_v61 }
  0x41   : > { %451 = vmatpush.bf16.msrb.mxu1 %v2513_v56  ;;  %927 = vmatpush.bf16.msrb.mxu0 %v2545_v8  ;;  %v729_v56 = vshll.u32 %v2986_v4, 16  ;;  %v2559_v8 = vld [vmem:[%s3265_s1 + $0x80] sm:$0xff]  ;;  %v713_v13 = vrot.slane %v712_v2, 4  ;;  %v727_v16 = vrot.slane %v726_v5, 4  ;;  %v1081_v5 = vld [vmem:[%s2726_s18 + $0x18] sm:$0xe] }
  0x42   : > { %1225 = vmatpush.bf16.msrb.mxu2 %v2561_v20  ;;  %v253_v20 = vld [vmem:[%s2726_s18 + $0x48] sm:$0xf] }
  0x43   : > { %1342 = vmatpush.bf16.msrb.mxu3 %v2569_v40  ;;  %v731_v17 = vrot.slane %v729_v56, 5  ;;  %v493_v22 = vunpack.c.l.b16 %v253_v20  ;;  %v718_v23 = vsel %vm2773_vm2, %v713_v13, %v717_v14  ;;  %v1138_v13 = vrot.slane %v2830_v12, 5  ;;  %v1082_v14 = vld [vmem:[%s2726_s18 + $0x20] sm:$0xe] }
  0x45   : > { %452 = vmatpush.bf16.msrb.mxu1 %v2512_v19  ;;  %928 = vmatpush.bf16.msrb.mxu0 %v2544_v21  ;;  %v2579_v19 = vld [vmem:[%s3265_s1 + $0x220] sm:$0xff]  ;;  %v2554_v21 = vld [vmem:[%s3265_s1 + $0x1d8] sm:$0xff]  ;;  %v732_v24 = vsel %vm2773_vm2, %v727_v16, %v731_v17  ;;  %v2374_v16 = vrot.slane %v1082_v14, 9  ;;  %v1142_v17 = vrot.slane %v2908_v7, 5 }
  0x46   : > { %1226 = vmatpush.bf16.msrb.mxu2 %v2560_v47  ;;  %v3034_v31 = vunpack.c.l.b16 %v732_v24  ;;  %v3076_v47 = vld [vmem:[%s2726_s18 + $0x44] sm:$0x1] }
  0x47   : > { %1343 = vmatpush.bf16.msrb.mxu3 %v2568_v32  ;;  %v861_v3 = vshll.u32 %v3076_v47, 16  ;;  %v1143_v12 = vsel %vm3054_vm5, %v2374_v16, %v1142_v17 }
  0x49   : > { %453 = vmatpush.bf16.msrb.mxu1 %v2511_v30  ;;  %929 = vmatpush.bf16.msrb.mxu0 %v2543_v36  ;;  %v739_v30 = vunpack.c.l.b16 %v718_v23  ;;  %v1078_v36 = vld [vmem:[%s2726_s18] sm:$0xe]  ;;  %v1160_v23 = vunpack.c.l.b16 %v1143_v12 }
  0x4a   : > { %1227 = vmatpush.bf16.msrb.mxu2 %v2559_v8  ;;  %v2370_v38 = vrot.slane %v1078_v36, 9  ;;  %v2575_v8 = vld [vmem:[%s3265_s1 + $0x200] sm:$0xff]  ;;  %v1150_v36 = vrot.slane %v2983_v1, 5  ;;  %v1154_v1 = vrot.slane %v2986_v4, 5 }
  0x4b   : > { %v3042_v0 = vpack.c.b16 %v3034_v31, %v739_v30  ;;  %v868_v40 = vpack.c.b16 %v739_v30, %v2977_v35  ;;  %v2373_v35 = vrot.slane %v1081_v5, 9  ;;  %v1084_v30 = vld [vmem:[%s2726_s18 + $0x30] sm:$0xe] }
  0x4c   : > { %454 = vmatmul.bf16.vlgmr.msrb.gmra.mxu1 %v390_v53  ;;  %930 = vmatmul.bf16.vlgmr.msrb.gmra.mxu0 %v866_v55  ;;  %v1127_v18 = vsel %vm3054_vm5, %v2370_v38, %v1126_v39  ;;  %v852_v53 = vshrl.u32 %v597_v49, 16  ;;  %v2372_v55 = vrot.slane %v1080_v50, 9 }
  0x4d   : > { %1041 = vmatpush.bf16.msra.mxu1 %v2558_v33  ;;  %1448 = vmatpush.bf16.msra.mxu0 %v2582_v37  ;;  %v494_v33 = vpack.c.b16 %v493_v22, %v302_v41  ;;  %v2567_v41 = vld [vmem:[%s3265_s1 + $0x140] sm:$0xff]  ;;  %v1156_v59 = vunpack.c.l.b16 %v1127_v18  ;;  %v600_v18 = vld [vmem:[%s2726_s18 + $0x4c] sm:$0x1] }
  0x4e   : > { %815 = vmatmul.bf16.gmra.mxu3 %v2995_v27  ;;  %2591 = vmatpush.bf16.msra.mxu2 %v2582_v37  ;;  %v1079_v37 = vld [vmem:[%s2726_s18 + $0x8] sm:$0xe]  ;;  %v854_v61 = vrot.slane %v852_v53, 4 }
  0x4f   : > { %562 = vmatmul.bf16.gmra.mxu2 %v2975_v57  ;;  %v2371_v15 = vrot.slane %v1079_v37, 9  ;;  %1344 = vmatpush.bf16.msrb.mxu3 %v2567_v41  ;;  %v1087_v53 = vld [vmem:[%s2726_s18 + $0x48] sm:$0xe] }
  0x51   : > { %1042 = vmatpush.bf16.msra.mxu1 %v2557_v54  ;;  %1449 = vmatpush.bf16.msra.mxu0 %v2581_v48  ;;  %v855_v54 = vshll.u32 %v597_v49, 16 }
  0x52   : > { %2592 = vmatpush.bf16.msra.mxu2 %v2581_v48  ;;  %v1131_v48 = vsel %vm3054_vm5, %v2371_v15, %v1130_v44  ;;  %v1278_v15 = vrot.slane %v3076_v47, 5 }
  0x53   : > { %v1157_v60 = vunpack.c.l.b16 %v1131_v48  ;;  %v857_v62 = vrot.slane %v855_v54, 5  ;;  %v2475_v54 = vrot.slane %v1087_v53, 9 }
  0x55   : > { %1043 = vmatpush.bf16.msra.mxu1 %v2556_v34  ;;  %1450 = vmatpush.bf16.msra.mxu0 %v2580_v63  ;;  %v1135_v34 = vsel %vm3054_vm5, %v2372_v55, %v1134_v58  ;;  %v858_v2 = vor.u32 %v857_v62, %v854_v61  ;;  %v1395_v55 = vrot.slane %v600_v18, 5  ;;  %v599_v58 = vld [vmem:[%s2726_s18 + $0x48] sm:$0xf] }
  0x56   : > { %2593 = vmatpush.bf16.msra.mxu2 %v2580_v63  ;;  %v1158_v11 = vunpack.c.l.b16 %v1135_v34  ;;  %v1164_v63 = vpack.c.b16 %v1157_v60, %v1156_v59  ;;  %v977_v48 = vshrl.u32 %v599_v58, 16  ;;  %v980_v59 = vshll.u32 %v599_v58, 16 }
  0x57   : > { %v859_v32 = vrot.slane %v858_v2, 4 }
  0x58   : > { %v1281_v56 = vpack.c.b16 %v1158_v11, %v1157_v60  ;;  %v1396_v60 = vsel %vm3054_vm5, %v2475_v54, %v1395_v55  ;;  %v979_v62 = vrot.slane %v977_v48, 4  ;;  %v982_v34 = vrot.slane %v980_v59, 5 }
  0x59   : > { %1044 = vmatpush.bf16.msra.mxu1 %v2555_v46  ;;  %1451 = vmatpush.bf16.msra.mxu0 %v2579_v19  ;;  %v863_v46 = vrot.slane %v861_v3, 5  ;;  %v1397_v61 = vunpack.c.l.b16 %v1396_v60 }
  0x5a   : > { %2594 = vmatpush.bf16.msra.mxu2 %v2579_v19  ;;  %v1139_v19 = vsel %vm3054_vm5, %v2373_v35, %v1138_v13 }
  0x5c   : > { %459 = vmatmul.bf16.gmra.mxu1 %v2821_v9  ;;  %935 = vmatmul.bf16.gmra.mxu0 %v867_v29  ;;  %v1146_v29 = vrot.slane %v2911_v45, 5 }
  0x5d   : > { %1045 = vmatpush.bf16.msra.mxu1 %v2554_v21  ;;  %1452 = vmatpush.bf16.msra.mxu0 %v2578_v25  ;;  %v1159_v21 = vunpack.c.l.b16 %v1139_v19 }
  0x5e   : > { %820 = vmatmul.bf16.gmra.mxu3 %v3042_v0  ;;  %2595 = vmatpush.bf16.msra.mxu2 %v2578_v25  ;;  %v1083_v25 = vld [vmem:[%s2726_s18 + $0x28] sm:$0xe] }
  0x5f   : > { %567 = vmatmul.bf16.gmra.mxu2 %v494_v33  ;;  %v1165_v24 = vpack.c.b16 %v1159_v21, %v1158_v11  ;;  %v1282_v7 = vpack.c.b16 %v1160_v23, %v1159_v21  ;;  %v2376_v33 = vrot.slane %v1084_v30, 9 }
  0x61   : > { %1046 = vmatpush.bf16.msra.mxu1 %v2553_v26  ;;  %1453 = vmatpush.bf16.msra.mxu0 %v2577_v42  ;;  %v2375_v26 = vrot.slane %v1083_v25, 9  ;;  %v1151_v38 = vsel %vm3054_vm5, %v2376_v33, %v1150_v36 }
  0x62   : > { %2596 = vmatpush.bf16.msra.mxu2 %v2577_v42  ;;  %v1086_v42 = vld [vmem:[%s2726_s18 + $0x40] sm:$0xe] }
  0x63   : > { %v2426_v44 = vrot.slane %v1086_v42, 9 }
  0x65   : > { %1047 = vmatpush.bf16.msra.mxu1 %v2552_v28  ;;  %1454 = vmatpush.bf16.msra.mxu0 %v2576_v51  ;;  %v1085_v28 = vld [vmem:[%s2726_s18 + $0x38] sm:$0xe] }
  0x66   : > { %2597 = vmatpush.bf16.msra.mxu2 %v2576_v51  ;;  %v2377_v41 = vrot.slane %v1085_v28, 9 }
  0x68   : > { %v1155_v49 = vsel %vm3054_vm5, %v2377_v41, %v1154_v1 }
  0x69   : > { %1048 = vmatpush.bf16.msra.mxu1 %v2551_v52  ;;  %1455 = vmatpush.bf16.msra.mxu0 %v2575_v8  ;;  %v1163_v50 = vunpack.c.l.b16 %v1155_v49 }
  0x6a   : > { %2598 = vmatpush.bf16.msra.mxu2 %v2575_v8 }
  0x6c   : > { %464 = vmatmul.bf16.gmra.mxu1 %v2905_v6  ;;  %940 = vmatmul.bf16.gmra.mxu0 %v868_v40  ;;  %v864_v6 = vsel %vm2773_vm2, %v859_v32, %v863_v46 }
  0x6d   : > { %v3092_v20 = vunpack.c.l.b16 %v864_v6 }
  0x6e   : > { %1345 = vmatmul.bf16.vlgmr.msrb.gmra.mxu3 %v1281_v56 }
  0x6f   : > { %1228 = vmatmul.bf16.vlgmr.msrb.gmra.mxu2 %v1164_v63  ;;  %v869_v22 = vpack.c.b16 %v3092_v20, %v3034_v31  ;;  %v1147_v31 = vsel %vm3054_vm5, %v2375_v26, %v1146_v29  ;;  %v983_v63 = vor.u32 %v982_v34, %v979_v62 }
  0x70   : > { %v1161_v37 = vunpack.c.l.b16 %v1147_v31 }
  0x71   : > { %v984_v2 = vrot.slane %v983_v63, 4 }
  0x72   : > { %v1166_v39 = vpack.c.b16 %v1161_v37, %v1160_v23 }
  0x7c   : > { %469 = vmatmul.bf16.gmra.mxu1 %v2975_v57  ;;  %945 = vmatmul.bf16.gmra.mxu0 %v869_v22  ;;  %v1162_v57 = vunpack.c.l.b16 %v1151_v38 }
  0x7e   : > { %1350 = vmatmul.bf16.gmra.mxu3 %v1282_v7  ;;  %v1283_v45 = vpack.c.b16 %v1162_v57, %v1161_v37  ;;  %v1167_v52 = vpack.c.b16 %v1163_v50, %v1162_v57 }
  0x7f   : > { %1233 = vmatmul.bf16.gmra.mxu2 %v1165_v24 }
  0x8c   : > { %1049 = vmatmul.bf16.vlgmr.msra.gmra.mxu1 %v2921_v10  ;;  %1456 = vmatmul.bf16.vlgmr.msra.gmra.mxu0 %v1165_v24  ;;  %v1279_v10 = vsel %vm3054_vm5, %v2426_v44, %v1278_v15 }
  0x8d   : > { %v1280_v51 = vunpack.c.l.b16 %v1279_v10 }
  0x8e   : > { %1355 = vmatmul.bf16.gmra.mxu3 %v1283_v45 }
  0x8f   : > { %1238 = vmatmul.bf16.gmra.mxu2 %v1166_v39  ;;  %v1284_v4 = vpack.c.b16 %v1280_v51, %v1163_v50  ;;  %v1398_v11 = vpack.c.b16 %v1397_v61, %v1280_v51 }
  0x9c   : > { %1054 = vmatmul.bf16.gmra.mxu1 %v2995_v27  ;;  %1461 = vmatmul.bf16.gmra.mxu0 %v1166_v39  ;;  %v986_v27 = vshll.u32 %v600_v18, 16 }
  0x9e   : > { %1360 = vmatmul.bf16.gmra.mxu3 %v1284_v4  ;;  %v988_v3 = vrot.slane %v986_v27, 5 }
  0x9f   : > { %1243 = vmatmul.bf16.gmra.mxu2 %v1167_v52 }
  0xa0   : > { %v989_v9 = vsel %vm2773_vm2, %v984_v2, %v988_v3 }
  0xa1   : > { %v990_v32 = vunpack.c.l.b16 %v989_v9 }
  0xa3   : > { %v991_v35 = vpack.c.b16 %v990_v32, %v3092_v20 }
  0xa9   : > { %v378_v47 = vpop.f32.mrf.mxu1  ;;  %v368_v40 = vpop.f32.mrf.mxu0 }
  0xac   : > { %1059 = vmatmul.bf16.gmra.mxu1 %v3042_v0  ;;  %1466 = vmatmul.bf16.gmra.mxu0 %v1167_v52 }
  0xaf   : > { %1471 = vmatmul.bf16.vlgmr.msra.gmra.mxu2 %v1398_v11 }
  0xb1   : > { %v3123_v56 = vpop.f32.mrf.mxu1  ;;  %v370_v8 = vpop.f32.mrf.mxu0 }
  0xb2   : > { %v553_v5 = vpop.f32.mrf.mxu2  ;;  %v806_v46 = vpop.f32.mrf.mxu3 }
  0xb9   : > { %v383_v14 = vpop.f32.mrf.mxu1  ;;  %v373_v6 = vpop.f32.mrf.mxu0 }
  0xba   : > { %v555_v13 = vpop.f32.mrf.mxu2  ;;  %v808_v0 = vpop.f32.mrf.mxu3 }
  0xbc   : > { %1064 = vmatmul.bf16.gmra.mxu1 %v991_v35 }
  0xc1   : > { %v385_v17 = vpop.f32.mrf.mxu1  ;;  %v3128_v19 = vpop.f32.mrf.mxu0 }
  0xc2   : > { %v558_v16 = vpop.f32.mrf.mxu2  ;;  %v811_v12 = vpop.f32.mrf.mxu3 }
  0xc9   : > { %v455_v22 = vpop.f32.mrf.mxu1  ;;  %v931_v23 = vpop.f32.mrf.mxu0 }
  0xca   : > { %v3130_v21 = vpop.f32.mrf.mxu2  ;;  %v456_v43 = vadd.f32 %v455_v22, %v368_v40  ;;  %v3132_v30 = vpop.f32.mrf.mxu3 }
  0xcc   : > { %v573_v24 = vadd.f32 %v553_v5, %v456_v43 }
  0xce   : > { %v826_v25 = vadd.f32 %v806_v46, %v573_v24 }
  0xd0   : > { %v951_v7 = vadd.f32 %v931_v23, %v826_v25 }
  0xd1   : > { %v457_v20 = vpop.f32.mrf.mxu1  ;;  %v933_v29 = vpop.f32.mrf.mxu0 }
  0xd2   : > { %v563_v26 = vpop.f32.mrf.mxu2  ;;  %v816_v57 = vpop.f32.mrf.mxu3  ;;  %v458_v63 = vadd.f32 %v457_v20, %v370_v8 }
  0xd4   : > { %v574_v9 = vadd.f32 %v555_v13, %v458_v63  ;;  %v3152_v13 = vld [vmem:[%s3266_s2] ss:$0 sm:$0xff] }
  0xd9   : > { %v460_v36 = vpop.f32.mrf.mxu1  ;;  %v936_v31 = vpop.f32.mrf.mxu0 }
  0xda   : > { %v3134_v33 = vpop.f32.mrf.mxu2  ;;  %v461_v37 = vadd.f32 %v460_v36, %v373_v6  ;;  %v3136_v42 = vpop.f32.mrf.mxu3  ;;  %v827_v6 = vadd.f32 %v808_v0, %v574_v9 }
  0xdc   : > { %v575_v38 = vadd.f32 %v558_v16, %v461_v37  ;;  %v952_v22 = vadd.f32 %v933_v29, %v827_v6 }
  0xde   : > { %v828_v39 = vadd.f32 %v811_v12, %v575_v38 }
  0xe0   : > { %v953_v28 = vadd.f32 %v936_v31, %v828_v39 }
  0xe1   : > { %v462_v41 = vpop.f32.mrf.mxu1  ;;  %v938_v1 = vpop.f32.mrf.mxu0 }
  0xe2   : > { %v568_v45 = vpop.f32.mrf.mxu2  ;;  %v821_v18 = vpop.f32.mrf.mxu3  ;;  %v463_v8 = vadd.f32 %v462_v41, %v3128_v19 }
  0xe4   : > { %v576_v0 = vadd.f32 %v3130_v21, %v463_v8 }
  0xe9   : > { %v465_v15 = vpop.f32.mrf.mxu1  ;;  %v941_v49 = vpop.f32.mrf.mxu0 }
  0xea   : > { %v570_v44 = vpop.f32.mrf.mxu2  ;;  %v466_v50 = vadd.f32 %v465_v15, %v378_v47  ;;  %v823_v59 = vpop.f32.mrf.mxu3 }
  0xec   : > { %v577_v10 = vadd.f32 %v563_v26, %v466_v50 }
  0xee   : > { %v830_v51 = vadd.f32 %v816_v57, %v577_v10 }
  0xf0   : > { %v3138_v52 = vadd.f32 %v941_v49, %v830_v51 }
  0xf1   : > { %v3140_v53 = vpop.f32.mrf.mxu1  ;;  %v3142_v4 = vpop.f32.mrf.mxu0 }
  0xf2   : > { %v1229_v54 = vpop.f32.mrf.mxu2  ;;  %v1346_v2 = vpop.f32.mrf.mxu3 }
  0xf9   : > { %v470_v55 = vpop.f32.mrf.mxu1  ;;  %v946_v58 = vpop.f32.mrf.mxu0 }
  0xfa   : > { %v471_v48 = vadd.f32 %v470_v55, %v383_v14  ;;  %v1231_v61 = vpop.f32.mrf.mxu2  ;;  %v1348_v12 = vpop.f32.mrf.mxu3 }
  0xfc   : > { %v579_v60 = vadd.f32 %v568_v45, %v471_v48  ;;  %v829_v45 = vadd.f32 %v3132_v30, %v576_v0 }
  0xfe   : > { %v832_v62 = vadd.f32 %v821_v18, %v579_v60  ;;  %v954_v50 = vadd.f32 %v938_v1, %v829_v45 }
 0x100   : > { %v3144_v34 = vadd.f32 %v946_v58, %v832_v62 }
 0x101   : > { %v472_v47 = vpop.f32.mrf.mxu1  ;;  %v948_v40 = vpop.f32.mrf.mxu0 }
 0x102   : > { %v473_v11 = vadd.f32 %v472_v47, %v385_v17  ;;  %v1234_v5 = vpop.f32.mrf.mxu2  ;;  %v1351_v29 = vpop.f32.mrf.mxu3 }
 0x104   : > { %v580_v27 = vadd.f32 %v570_v44, %v473_v11 }
 0x106   : > { %v833_v3 = vadd.f32 %v823_v59, %v580_v27 }
 0x108   : > { %v3146_v32 = vadd.f32 %v948_v40, %v833_v3 }
 0x109   : > { %v1050_v46 = vpop.f32.mrf.mxu1  ;;  %v1457_v35 = vpop.f32.mrf.mxu0 }
 0x10a   : > { %v1070_v14 = vadd.f32 %v1050_v46, %v951_v7  ;;  %v1236_v23 = vpop.f32.mrf.mxu2  ;;  %v1353_v18 = vpop.f32.mrf.mxu3 }
 0x10c   : > { %v1249_v16 = vadd.f32 %v1229_v54, %v1070_v14 }
 0x10e   : > { %v1366_v43 = vadd.f32 %v1346_v2, %v1249_v16 }
 0x110   : > { %v1477_v26 = vadd.f32 %v1457_v35, %v1366_v43 }
 0x111   : > { %v1052_v24 = vpop.f32.mrf.mxu1  ;;  %v1459_v25 = vpop.f32.mrf.mxu0 }
 0x112   : > { %v1071_v17 = vadd.f32 %v1052_v24, %v952_v22  ;;  %v1489_v7 = vadd.f32 %v3152_v13, %v1477_v26  ;;  %v1239_v38 = vpop.f32.mrf.mxu2 }
 0x114   : > { %v1250_v20 = vadd.f32 %v1231_v61, %v1071_v17  ;;  %v1497_v41 = vmax.f32 %v1489_v7, 0.0 }
 0x116   : > { %v1367_v36 = vadd.f32 %v1348_v12, %v1250_v20  ;;  %v1356_v20 = vpop.f32.mrf.mxu3 }
 0x118   : > { %v1478_v31 = vadd.f32 %v1459_v25, %v1367_v36 }
 0x119   : > { %v1055_v37 = vpop.f32.mrf.mxu1  ;;  %v1462_v19 = vpop.f32.mrf.mxu0 }
 0x11a   : > { %v1490_v57 = vadd.f32 %v3152_v13, %v1478_v31  ;;  %v1072_v39 = vadd.f32 %v1055_v37, %v953_v28  ;;  %v468_v28 = vadd.f32 %v3140_v53, %v3123_v56  ;;  %v1241_v59 = vpop.f32.mrf.mxu2 }
 0x11c   : > { %v1498_v44 = vmax.f32 %v1490_v57, 0.0  ;;  %v1251_v49 = vadd.f32 %v1234_v5, %v1072_v39  ;;  %v578_v9 = vadd.f32 %v3134_v33, %v468_v28 }
 0x11e   : > { %v1521_v15 = vmax.f32 %v1497_v41, %v1498_v44  ;;  %v1368_v54 = vadd.f32 %v1351_v29, %v1251_v49  ;;  %v831_v36 = vadd.f32 %v3136_v42, %v578_v9 }
 0x120   : > { %v1525_v10 = vpack.c.bf16 %v1521_v15, %v1521_v15  ;;  %v1479_v11 = vadd.f32 %v1462_v19, %v1368_v54 }
 0x121   : > { %v1057_v21 = vpop.f32.mrf.mxu1  ;;  %v1464_v40 = vpop.f32.mrf.mxu0 }
 0x122   : > { %v1533_v51 = vrot.slane %v1525_v10, 3  ;;  %v1073_v55 = vadd.f32 %v1057_v21, %v954_v50  ;;  %v1491_v43 = vadd.f32 %v3152_v13, %v1479_v11  ;;  %v3173_v39 = vpop.f32.mrf.mxu2  ;;  %v956_v50 = vadd.f32 %v3142_v4, %v831_v36 }
 0x124   : > { %v1540_v30 = vsel %vm1537_vm6, %v1525_v10, %v1533_v51  ;;  %v1542_v58 = vsel %vm1541_vm7, %v1525_v10, %v1533_v51  ;;  %v1546_v1 = vsel %vm1545_vm8, %v1525_v10, %v1533_v51  ;;  %v1550_v48 = vsel %vm1549_vm9, %v1525_v10, %v1533_v51 }
 0x125   : > { %v1544_v60 = vrot.slane %v1542_v58, 1  ;;  %v1548_v61 = vrot.slane %v1546_v1, 2  ;;  %v1552_v62 = vrot.slane %v1550_v48, 3  ;;  %v1605_v47 = vunpack.c.l.bf16 %v1540_v30 }
 0x126   : > { %v1252_v63 = vadd.f32 %v1236_v23, %v1073_v55  ;;  %v1499_v19 = vmax.f32 %v1491_v43, 0.0 }
 0x127   : > { %v1606_v27 = vunpack.c.l.bf16 %v1544_v60  ;;  %v1607_v2 = vunpack.c.l.bf16 %v1548_v61  ;;  %v1608_v56 = vunpack.c.l.bf16 %v1552_v62  ;;  %v1622_v53 = vsel %vm1621_vm10, %v1605_v47, -inf }
 0x128   : > { %v1623_v3 = vrot.slane %v1622_v53, 4  ;;  %v1369_v5 = vadd.f32 %v1353_v18, %v1252_v63  ;;  %v1358_v63 = vpop.f32.mrf.mxu3 }
 0x129   : > { %v1629_v46 = vsel %vm1621_vm10, %v1606_v27, -inf  ;;  %v1636_v35 = vsel %vm1621_vm10, %v1607_v2, -inf  ;;  %v1643_v14 = vsel %vm1621_vm10, %v1608_v56, -inf  ;;  %v1060_v6 = vpop.f32.mrf.mxu1  ;;  %v1467_v41 = vpop.f32.mrf.mxu0 }
 0x12a   : > { %v1624_v16 = vmax.f32 %v1622_v53, %v1623_v3  ;;  %v1630_v12 = vrot.slane %v1629_v46, 4  ;;  %v1637_v22 = vrot.slane %v1636_v35, 4  ;;  %v1644_v23 = vrot.slane %v1643_v14, 4 }
 0x12b   : > { %v1480_v24 = vadd.f32 %v1464_v40, %v1369_v5  ;;  %v1074_v25 = vadd.f32 %v1060_v6, %v3138_v52 }
 0x12c   : > { %v1625_v17 = vrot.slane %v1624_v16, 2  ;;  %v1631_v8 = vmax.f32 %v1629_v46, %v1630_v12  ;;  %v1638_v26 = vmax.f32 %v1636_v35, %v1637_v22  ;;  %v1645_v33 = vmax.f32 %v1643_v14, %v1644_v23  ;;  %v3181_v35 = vpop.f32.mrf.mxu2 }
 0x12d   : > { %v1492_v0 = vadd.f32 %v3152_v13, %v1480_v24  ;;  %v1253_v7 = vadd.f32 %v1239_v38, %v1074_v25 }
 0x12e   : > { %v1626_v29 = vmax.f32 %v1624_v16, %v1625_v17  ;;  %v1632_v31 = vrot.slane %v1631_v8, 2  ;;  %v1639_v37 = vrot.slane %v1638_v26, 2  ;;  %v1646_v57 = vrot.slane %v1645_v33, 2 }
 0x12f   : > { %v1500_v45 = vmax.f32 %v1492_v0, 0.0  ;;  %v1370_v42 = vadd.f32 %v1356_v20, %v1253_v7 }
 0x130   : > { %v1627_v52 = vrot.slane %v1626_v29, 1  ;;  %v1633_v44 = vmax.f32 %v1631_v8, %v1632_v31  ;;  %v1640_v15 = vmax.f32 %v1638_v26, %v1639_v37  ;;  %v1647_v49 = vmax.f32 %v1645_v33, %v1646_v57 }
 0x131   : > { %v1522_v10 = vmax.f32 %v1499_v19, %v1500_v45  ;;  %v1062_v21 = vpop.f32.mrf.mxu1  ;;  %v1481_v61 = vadd.f32 %v1467_v41, %v1370_v42  ;;  %v1469_v12 = vpop.f32.mrf.mxu0 }
 0x132   : > { %v1628_v51 = vmax.f32 %v1626_v29, %v1627_v52  ;;  %v1634_v38 = vrot.slane %v1633_v44, 1  ;;  %v1641_v18 = vrot.slane %v1640_v15, 1  ;;  %v1648_v54 = vrot.slane %v1647_v49, 1  ;;  %v1361_v42 = vpop.f32.mrf.mxu3 }
 0x133   : > { %v1526_v55 = vpack.c.bf16 %v1522_v10, %v1522_v10  ;;  %v1075_v28 = vadd.f32 %v1062_v21, %v956_v50  ;;  %v1493_v37 = vadd.f32 %v3152_v13, %v1481_v61 }
 0x134   : > { %v1635_v30 = vmax.f32 %v1633_v44, %v1634_v38  ;;  %v1642_v58 = vmax.f32 %v1640_v15, %v1641_v18  ;;  %v1649_v1 = vmax.f32 %v1647_v49, %v1648_v54  ;;  %v1734_v48 = vpack.c.bf16 %v1628_v51, %v1628_v51 }
 0x135   : > { %v1534_v60 = vrot.slane %v1526_v55, 3  ;;  %v1254_v62 = vadd.f32 %v1241_v59, %v1075_v28  ;;  %v1501_v51 = vmax.f32 %v1493_v37, 0.0 }
 0x136   : > { %v1735_v47 = vpack.c.bf16 %v1635_v30, %v1635_v30  ;;  %v1736_v40 = vpack.c.bf16 %v1642_v58, %v1642_v58  ;;  %v1737_v11 = vpack.c.bf16 %v1649_v1, %v1649_v1  ;;  %v1766_v4 = vrot.slane %v1734_v48, 2 }
 0x137   : > { %v1555_v27 = vsel %vm1537_vm6, %v1526_v55, %v1534_v60  ;;  %v1556_v2 = vsel %vm1541_vm7, %v1526_v55, %v1534_v60  ;;  %v1559_v56 = vsel %vm1545_vm8, %v1526_v55, %v1534_v60  ;;  %v1562_v53 = vsel %vm1549_vm9, %v1526_v55, %v1534_v60 }
 0x138   : > { %v1767_v3 = vrot.slane %v1735_v47, 2  ;;  %v1768_v5 = vrot.slane %v1736_v40, 2  ;;  %v1769_v9 = vrot.slane %v1737_v11, 2  ;;  %v1784_v46 = vsel %vm1621_vm10, %v1734_v48, %v1766_v4  ;;  %v1472_v48 = vpop.f32.mrf.mxu2 }
 0x139   : > { %1830 = vst [vmem:[#allocation1] ss:$2 sm:$0xff] %v1784_v46  ;;  %v1558_v59 = vrot.slane %v1556_v2, 1  ;;  %v1561_v14 = vrot.slane %v1559_v56, 2  ;;  %v1564_v6 = vrot.slane %v1562_v53, 3  ;;  %v1609_v16 = vunpack.c.l.bf16 %v1555_v27  ;;  %v1065_v22 = vpop.f32.mrf.mxu1 }
 0x13a   : > { %v1787_v23 = vsel %vm1621_vm10, %v1735_v47, %v1767_v3  ;;  %v1790_v43 = vsel %vm1621_vm10, %v1736_v40, %v1768_v5  ;;  %v1793_v24 = vsel %vm1621_vm10, %v1737_v11, %v1769_v9  ;;  %v1371_v25 = vadd.f32 %v1358_v63, %v1254_v62 }
 0x13b   : > { %1834 = vst [vmem:[#allocation1 + $0x10] ss:$2 sm:$0xff] %v1787_v23  ;;  %v1610_v17 = vunpack.c.l.bf16 %v1558_v59  ;;  %v1611_v8 = vunpack.c.l.bf16 %v1561_v14  ;;  %v1612_v26 = vunpack.c.l.bf16 %v1564_v6  ;;  %v1650_v33 = vsel %vm1621_vm10, %v1609_v16, -inf }
 0x13c   : > { %1838 = vst [vmem:[#allocation1 + $0x20] ss:$2 sm:$0xff] %v1790_v43  ;;  %v1651_v20 = vrot.slane %v1650_v33, 4  ;;  %v1482_v36 = vadd.f32 %v1469_v12, %v1371_v25  ;;  %v1076_v0 = vadd.f32 %v1065_v22, %v3144_v34 }
 0x13d   : > { %1842 = vst [vmem:[#allocation1 + $0x30] ss:$2 sm:$0xff] %v1793_v24  ;;  %v1657_v7 = vsel %vm1621_vm10, %v1610_v17, -inf  ;;  %v1664_v29 = vsel %vm1621_vm10, %v1611_v8, -inf  ;;  %v1671_v31 = vsel %vm1621_vm10, %v1612_v26, -inf }
 0x13e   : > { %v1652_v57 = vmax.f32 %v1650_v33, %v1651_v20  ;;  %v1658_v19 = vrot.slane %v1657_v7, 4  ;;  %v1665_v45 = vrot.slane %v1664_v29, 4  ;;  %v1672_v41 = vrot.slane %v1671_v31, 4 }
 0x13f   : > { %v1494_v52 = vadd.f32 %v3152_v13, %v1482_v36  ;;  %v1255_v44 = vadd.f32 %v3173_v39, %v1076_v0 }
 0x140   : > { %v1653_v15 = vrot.slane %v1652_v57, 2  ;;  %v1659_v49 = vmax.f32 %v1657_v7, %v1658_v19  ;;  %v1666_v34 = vmax.f32 %v1664_v29, %v1665_v45  ;;  %v1673_v50 = vmax.f32 %v1671_v31, %v1672_v41  ;;  %v1831_v10 = vld.sshfl [vmem:[#allocation1] sm:$0xff pattern:$0x75643120] }
 0x141   : > { %v1881_v21 = vunpack.c.l.b16 %v1831_v10  ;;  %v1502_v38 = vmax.f32 %v1494_v52, 0.0  ;;  %v1372_v18 = vadd.f32 %v1361_v42, %v1255_v44  ;;  %v1067_v54 = vpop.f32.mrf.mxu1 }
 0x142   : > { %v1654_v55 = vmax.f32 %v1652_v57, %v1653_v15  ;;  %v1660_v28 = vrot.slane %v1659_v49, 2  ;;  %v1667_v30 = vrot.slane %v1666_v34, 2  ;;  %v1674_v58 = vrot.slane %v1673_v50, 2  ;;  %v1835_v1 = vld.sshfl [vmem:[#allocation1 + $0x10] sm:$0xff pattern:$0x75643120] }
 0x143   : > { %v1839_v60 = vld.sshfl [vmem:[#allocation1 + $0x20] sm:$0xff pattern:$0x75643120]  ;;  %v1882_v61 = vunpack.c.l.b16 %v1835_v1  ;;  %v1523_v39 = vmax.f32 %v1501_v51, %v1502_v38  ;;  %v3194_v62 = vadd.f32 %v1472_v48, %v1372_v18  ;;  %v1077_v47 = vadd.f32 %v1067_v54, %v3146_v32 }
 0x144   : > { %v1655_v40 = vrot.slane %v1654_v55, 1  ;;  %v1661_v11 = vmax.f32 %v1659_v49, %v1660_v28  ;;  %v1668_v4 = vmax.f32 %v1666_v34, %v1667_v30  ;;  %v1675_v63 = vmax.f32 %v1673_v50, %v1674_v58  ;;  %v1843_v27 = vld.sshfl [vmem:[#allocation1 + $0x30] sm:$0xff pattern:$0x75643120] }
 0x145   : > { %v1883_v2 = vunpack.c.l.b16 %v1839_v60  ;;  %v1884_v56 = vunpack.c.l.b16 %v1843_v27  ;;  %v1897_v53 = vrot.slane %v1882_v61, 7  ;;  %v1527_v3 = vpack.c.bf16 %v1523_v39, %v1523_v39 }
 0x146   : > { %v1656_v5 = vmax.f32 %v1654_v55, %v1655_v40  ;;  %v1662_v9 = vrot.slane %v1661_v11, 1  ;;  %v1669_v46 = vrot.slane %v1668_v4, 1  ;;  %v1676_v59 = vrot.slane %v1675_v63, 1  ;;  %v1363_v40 = vpop.f32.mrf.mxu3 }
 0x147   : > { %v1898_v14 = vsel %vm1541_vm7, %v1897_v53, %v1881_v21  ;;  %v1899_v6 = vrot.slane %v1883_v2, 6  ;;  %v1901_v16 = vrot.slane %v1884_v56, 5  ;;  %v1535_v12 = vrot.slane %v1527_v3, 3  ;;  %v1474_v53 = vpop.f32.mrf.mxu2 }
 0x148   : > { %v1663_v22 = vmax.f32 %v1661_v11, %v1662_v9  ;;  %v1670_v32 = vmax.f32 %v1668_v4, %v1669_v46  ;;  %v1677_v23 = vmax.f32 %v1675_v63, %v1676_v59  ;;  %v1738_v43 = vpack.c.bf16 %v1656_v5, %v1656_v5 }
 0x149   : > { %v1900_v24 = vsel %vm1545_vm8, %v1899_v6, %v1898_v14  ;;  %v1567_v25 = vsel %vm1537_vm6, %v1527_v3, %v1535_v12  ;;  %v1568_v17 = vsel %vm1541_vm7, %v1527_v3, %v1535_v12  ;;  %v1571_v8 = vsel %vm1545_vm8, %v1527_v3, %v1535_v12 }
 0x14a   : > { %v1739_v26 = vpack.c.bf16 %v1663_v22, %v1663_v22  ;;  %v1740_v33 = vpack.c.bf16 %v1670_v32, %v1670_v32  ;;  %v1741_v20 = vpack.c.bf16 %v1677_v23, %v1677_v23  ;;  %v1770_v36 = vrot.slane %v1738_v43, 2 }
 0x14b   : > { %v1902_v0 = vsel %vm1549_vm9, %v1901_v16, %v1900_v24  ;;  %v1570_v7 = vrot.slane %v1568_v17, 1  ;;  %v1573_v29 = vrot.slane %v1571_v8, 2  ;;  %v1574_v31 = vsel %vm1549_vm9, %v1527_v3, %v1535_v12 }
 0x14c   : > { %v1771_v37 = vrot.slane %v1739_v26, 2  ;;  %v1772_v57 = vrot.slane %v1740_v33, 2  ;;  %v1773_v19 = vrot.slane %v1741_v20, 2  ;;  %v1796_v45 = vsel %vm1621_vm10, %v1738_v43, %v1770_v36 }
 0x14d   : > { %1845 = vst [vmem:[#allocation1] ss:$2 sm:$0xff] %v1796_v45  ;;  %v1921_v41 = vpack.c.b16 %v1902_v0, %v1902_v0  ;;  %v1576_v52 = vrot.slane %v1574_v31, 3  ;;  %v1613_v44 = vunpack.c.l.bf16 %v1567_v25  ;;  %v1614_v15 = vunpack.c.l.bf16 %v1570_v7 }
 0x14e   : > { %v1799_v49 = vsel %vm1621_vm10, %v1739_v26, %v1771_v37  ;;  %v1802_v34 = vsel %vm1621_vm10, %v1740_v33, %v1772_v57  ;;  %v1805_v50 = vsel %vm1621_vm10, %v1741_v20, %v1773_v19  ;;  %v1615_v10 = vunpack.c.l.bf16 %v1573_v29 }
 0x14f   : > { %1848 = vst [vmem:[#allocation1 + $0x10] ss:$2 sm:$0xff] %v1799_v49  ;;  %v1925_v42 = vrot.slane %v1921_v41, 2  ;;  %v1616_v21 = vunpack.c.l.bf16 %v1576_v52  ;;  %v1678_v51 = vsel %vm1621_vm10, %v1613_v44, -inf  ;;  %v1685_v38 = vsel %vm1621_vm10, %v1614_v15, -inf }
 0x150   : > { %1851 = vst [vmem:[#allocation1 + $0x20] ss:$2 sm:$0xff] %v1802_v34  ;;  %v1679_v18 = vrot.slane %v1678_v51, 4  ;;  %v1686_v54 = vrot.slane %v1685_v38, 4  ;;  %v1692_v55 = vsel %vm1621_vm10, %v1615_v10, -inf  ;;  %v1256_v1 = vadd.f32 %v3181_v35, %v1077_v47 }
 0x151   : > { %1854 = vst [vmem:[#allocation1 + $0x30] ss:$2 sm:$0xff] %v1805_v50  ;;  %v1931_v28 = vsel %vm1621_vm10, %v1921_v41, %v1925_v42  ;;  %v1693_v30 = vrot.slane %v1692_v55, 4  ;;  %v1699_v58 = vsel %vm1621_vm10, %v1616_v21, -inf  ;;  %v1495_v39 = vadd.f32 %v3152_v13, %v3194_v62 }
 0x152   : > { %1945 = vst [vmem:[%s3212_s12] sm:$0x3] %v1931_v28  ;;  %v1680_v48 = vmax.f32 %v1678_v51, %v1679_v18  ;;  %v1687_v60 = vmax.f32 %v1685_v38, %v1686_v54  ;;  %v1700_v61 = vrot.slane %v1699_v58, 4  ;;  %v1373_v4 = vadd.f32 %v1363_v40, %v1256_v1 }
 0x153   : > { %v1694_v11 = vmax.f32 %v1692_v55, %v1693_v30  ;;  %v1503_v59 = vmax.f32 %v1495_v39, 0.0 }
 0x154   : > { %v1681_v63 = vrot.slane %v1680_v48, 2  ;;  %v1688_v27 = vrot.slane %v1687_v60, 2  ;;  %v1701_v2 = vmax.f32 %v1699_v58, %v1700_v61  ;;  %v1846_v56 = vld.sshfl [vmem:[#allocation1] sm:$0xff pattern:$0x75643120]  ;;  %v1484_v5 = vadd.f32 %v1474_v53, %v1373_v4 }
 0x155   : > { %v1695_v3 = vrot.slane %v1694_v11, 2  ;;  %v1885_v16 = vunpack.c.l.b16 %v1846_v56 }
 0x156   : > { %v1682_v9 = vmax.f32 %v1680_v48, %v1681_v63  ;;  %v1689_v46 = vmax.f32 %v1687_v60, %v1688_v27  ;;  %v1702_v35 = vrot.slane %v1701_v2, 2  ;;  %v1849_v47 = vld.sshfl [vmem:[#allocation1 + $0x10] sm:$0xff pattern:$0x75643120]  ;;  %v1496_v62 = vadd.f32 %v3152_v13, %v1484_v5 }
 0x157   : > { %v1696_v14 = vmax.f32 %v1694_v11, %v1695_v3  ;;  %v1852_v6 = vld.sshfl [vmem:[#allocation1 + $0x20] sm:$0xff pattern:$0x75643120]  ;;  %v1886_v12 = vunpack.c.l.b16 %v1849_v47 }
 0x158   : > { %v1683_v22 = vrot.slane %v1682_v9, 1  ;;  %v1690_v32 = vrot.slane %v1689_v46, 1  ;;  %v1703_v23 = vmax.f32 %v1701_v2, %v1702_v35  ;;  %v1855_v43 = vld.sshfl [vmem:[#allocation1 + $0x30] sm:$0xff pattern:$0x75643120]  ;;  %v1887_v24 = vunpack.c.l.b16 %v1852_v6 }
 0x159   : > { %v1697_v25 = vrot.slane %v1696_v14, 1  ;;  %v1888_v17 = vunpack.c.l.b16 %v1855_v43  ;;  %v1903_v8 = vrot.slane %v1886_v12, 7  ;;  %v1504_v26 = vmax.f32 %v1496_v62, 0.0 }
 0x15a   : > { %v1684_v33 = vmax.f32 %v1682_v9, %v1683_v22  ;;  %v1691_v20 = vmax.f32 %v1689_v46, %v1690_v32  ;;  %v1704_v36 = vrot.slane %v1703_v23, 1  ;;  %v1905_v0 = vrot.slane %v1887_v24, 6 }
 0x15b   : > { %v1698_v7 = vmax.f32 %v1696_v14, %v1697_v25  ;;  %v1904_v29 = vsel %vm1541_vm7, %v1903_v8, %v1885_v16  ;;  %v1907_v31 = vrot.slane %v1888_v17, 5  ;;  %v1524_v37 = vmax.f32 %v1503_v59, %v1504_v26 }
 0x15c   : > { %v1705_v57 = vmax.f32 %v1703_v23, %v1704_v36  ;;  %v1742_v13 = vpack.c.bf16 %v1684_v33, %v1684_v33  ;;  %v1743_v19 = vpack.c.bf16 %v1691_v20, %v1691_v20  ;;  %v1906_v45 = vsel %vm1545_vm8, %v1905_v0, %v1904_v29 }
 0x15d   : > { %v1744_v41 = vpack.c.bf16 %v1698_v7, %v1698_v7  ;;  %v1908_v52 = vsel %vm1549_vm9, %v1907_v31, %v1906_v45  ;;  %v1528_v44 = vpack.c.bf16 %v1524_v37, %v1524_v37 }
 0x15e   : > { %v1745_v15 = vpack.c.bf16 %v1705_v57, %v1705_v57  ;;  %v1774_v49 = vrot.slane %v1742_v13, 2  ;;  %v1775_v34 = vrot.slane %v1743_v19, 2  ;;  %v1922_v50 = vpack.c.b16 %v1908_v52, %v1908_v52 }
 0x15f   : > { %v1776_v10 = vrot.slane %v1744_v41, 2  ;;  %v1536_v42 = vrot.slane %v1528_v44, 3 }
 0x160   : > { %v1777_v21 = vrot.slane %v1745_v15, 2  ;;  %v1808_v51 = vsel %vm1621_vm10, %v1742_v13, %v1774_v49  ;;  %v1811_v38 = vsel %vm1621_vm10, %v1743_v19, %v1775_v34  ;;  %v1926_v18 = vrot.slane %v1922_v50, 2 }
 0x161   : > { %v1814_v54 = vsel %vm1621_vm10, %v1744_v41, %v1776_v10  ;;  %1857 = vst [vmem:[#allocation1] ss:$2 sm:$0xff] %v1808_v51  ;;  %v1579_v55 = vsel %vm1537_vm6, %v1528_v44, %v1536_v42  ;;  %v1580_v28 = vsel %vm1541_vm7, %v1528_v44, %v1536_v42  ;;  %v1583_v30 = vsel %vm1545_vm8, %v1528_v44, %v1536_v42 }
 0x162   : > { %v1817_v58 = vsel %vm1621_vm10, %v1745_v15, %v1777_v21  ;;  %1860 = vst [vmem:[#allocation1 + $0x10] ss:$2 sm:$0xff] %v1811_v38  ;;  %v1934_v1 = vsel %vm1621_vm10, %v1922_v50, %v1926_v18  ;;  %v1582_v48 = vrot.slane %v1580_v28, 1  ;;  %v1585_v60 = vrot.slane %v1583_v30, 2 }
 0x163   : > { %1863 = vst [vmem:[#allocation1 + $0x20] ss:$2 sm:$0xff] %v1814_v54  ;;  %v1586_v61 = vsel %vm1549_vm9, %v1528_v44, %v1536_v42  ;;  %v1617_v39 = vunpack.c.l.bf16 %v1579_v55 }
 0x164   : > { %1866 = vst [vmem:[#allocation1 + $0x30] ss:$2 sm:$0xff] %v1817_v58  ;;  %v1588_v40 = vrot.slane %v1586_v61, 3  ;;  %v1618_v11 = vunpack.c.l.bf16 %v1582_v48  ;;  %v1619_v4 = vunpack.c.l.bf16 %v1585_v60 }
 0x165   : > { %1946 = vst [vmem:[%s3212_s12 + $0x2] sm:$0x3] %v1934_v1  ;;  %v1706_v63 = vsel %vm1621_vm10, %v1617_v39, -inf }
 0x166   : > { %v1620_v27 = vunpack.c.l.bf16 %v1588_v40  ;;  %v1707_v2 = vrot.slane %v1706_v63, 4  ;;  %v1713_v56 = vsel %vm1621_vm10, %v1618_v11, -inf  ;;  %v1720_v53 = vsel %vm1621_vm10, %v1619_v4, -inf }
 0x167   : > { %v1714_v3 = vrot.slane %v1713_v56, 4  ;;  %v1721_v5 = vrot.slane %v1720_v53, 4 }
 0x168   : > { %v1708_v9 = vmax.f32 %v1706_v63, %v1707_v2  ;;  %v1727_v46 = vsel %vm1621_vm10, %v1620_v27, -inf  ;;  %v1858_v35 = vld.sshfl [vmem:[#allocation1] sm:$0xff pattern:$0x75643120] }
 0x169   : > { %v1715_v47 = vmax.f32 %v1713_v56, %v1714_v3  ;;  %v1722_v59 = vmax.f32 %v1720_v53, %v1721_v5  ;;  %v1728_v14 = vrot.slane %v1727_v46, 4  ;;  %v1861_v6 = vld.sshfl [vmem:[#allocation1 + $0x10] sm:$0xff pattern:$0x75643120]  ;;  %v1889_v17 = vunpack.c.l.b16 %v1858_v35 }
 0x16a   : > { %v1709_v16 = vrot.slane %v1708_v9, 2  ;;  %v1864_v12 = vld.sshfl [vmem:[#allocation1 + $0x20] sm:$0xff pattern:$0x75643120]  ;;  %v1890_v62 = vunpack.c.l.b16 %v1861_v6 }
 0x16b   : > { %v1716_v22 = vrot.slane %v1715_v47, 2  ;;  %v1723_v32 = vrot.slane %v1722_v59, 2  ;;  %v1729_v23 = vmax.f32 %v1727_v46, %v1728_v14  ;;  %v1867_v43 = vld.sshfl [vmem:[#allocation1 + $0x30] sm:$0xff pattern:$0x75643120]  ;;  %v1891_v24 = vunpack.c.l.b16 %v1864_v12 }
 0x16c   : > { %v1710_v25 = vmax.f32 %v1708_v9, %v1709_v16  ;;  %v1892_v8 = vunpack.c.l.b16 %v1867_v43  ;;  %v1909_v26 = vrot.slane %v1890_v62, 7 }
 0x16d   : > { %v1717_v33 = vmax.f32 %v1715_v47, %v1716_v22  ;;  %v1724_v20 = vmax.f32 %v1722_v59, %v1723_v32  ;;  %v1730_v36 = vrot.slane %v1729_v23, 2  ;;  %v1911_v0 = vrot.slane %v1891_v24, 6 }
 0x16e   : > { %v1711_v7 = vrot.slane %v1710_v25, 1  ;;  %v1910_v29 = vsel %vm1541_vm7, %v1909_v26, %v1889_v17  ;;  %v1913_v31 = vrot.slane %v1892_v8, 5 }
 0x16f   : > { %v1718_v37 = vrot.slane %v1717_v33, 1  ;;  %v1725_v57 = vrot.slane %v1724_v20, 1  ;;  %v1731_v13 = vmax.f32 %v1729_v23, %v1730_v36  ;;  %v1912_v19 = vsel %vm1545_vm8, %v1911_v0, %v1910_v29 }
 0x170   : > { %v1712_v45 = vmax.f32 %v1710_v25, %v1711_v7  ;;  %v1914_v41 = vsel %vm1549_vm9, %v1913_v31, %v1912_v19 }
 0x171   : > { %v1719_v52 = vmax.f32 %v1717_v33, %v1718_v37  ;;  %v1726_v44 = vmax.f32 %v1724_v20, %v1725_v57  ;;  %v1732_v15 = vrot.slane %v1731_v13, 1  ;;  %v1923_v49 = vpack.c.b16 %v1914_v41, %v1914_v41 }
 0x172   : > { %v1746_v34 = vpack.c.bf16 %v1712_v45, %v1712_v45 }
 0x173   : > { %v1733_v50 = vmax.f32 %v1731_v13, %v1732_v15  ;;  %v1747_v10 = vpack.c.bf16 %v1719_v52, %v1719_v52  ;;  %v1748_v42 = vpack.c.bf16 %v1726_v44, %v1726_v44  ;;  %v1927_v21 = vrot.slane %v1923_v49, 2 }
 0x174   : > { %v1778_v51 = vrot.slane %v1746_v34, 2 }
 0x175   : > { %v1749_v38 = vpack.c.bf16 %v1733_v50, %v1733_v50  ;;  %v1779_v18 = vrot.slane %v1747_v10, 2  ;;  %v1780_v54 = vrot.slane %v1748_v42, 2  ;;  %v1937_v55 = vsel %vm1621_vm10, %v1923_v49, %v1927_v21 }
 0x176   : > { %v1820_v28 = vsel %vm1621_vm10, %v1746_v34, %v1778_v51  ;;  %1947 = vst [vmem:[%s3212_s12 + $0x4] sm:$0x3] %v1937_v55 }
 0x177   : > { %v1781_v30 = vrot.slane %v1749_v38, 2  ;;  %v1823_v58 = vsel %vm1621_vm10, %v1747_v10, %v1779_v18  ;;  %v1826_v1 = vsel %vm1621_vm10, %v1748_v42, %v1780_v54  ;;  %1869 = vst [vmem:[#allocation1] ss:$2 sm:$0xff] %v1820_v28 }
 0x178   : > { %1872 = vst [vmem:[#allocation1 + $0x10] ss:$2 sm:$0xff] %v1823_v58 }
 0x179   : > { %v1829_v48 = vsel %vm1621_vm10, %v1749_v38, %v1781_v30  ;;  %1875 = vst [vmem:[#allocation1 + $0x20] ss:$2 sm:$0xff] %v1826_v1 }
 0x17a   : > { %1878 = vst [vmem:[#allocation1 + $0x30] ss:$2 sm:$0xff] %v1829_v48 }
 0x17e   : > { %v1870_v60 = vld.sshfl [vmem:[#allocation1] sm:$0xff pattern:$0x75643120] }
 0x17f   : > { %v1873_v61 = vld.sshfl [vmem:[#allocation1 + $0x10] sm:$0xff pattern:$0x75643120]  ;;  %v1893_v63 = vunpack.c.l.b16 %v1870_v60 }
 0x180   : > { %v1876_v39 = vld.sshfl [vmem:[#allocation1 + $0x20] sm:$0xff pattern:$0x75643120]  ;;  %v1894_v40 = vunpack.c.l.b16 %v1873_v61 }
 0x181   : > { %v1879_v11 = vld.sshfl [vmem:[#allocation1 + $0x30] sm:$0xff pattern:$0x75643120]  ;;  %v1895_v4 = vunpack.c.l.b16 %v1876_v39 }
 0x182   : > { %v1896_v27 = vunpack.c.l.b16 %v1879_v11  ;;  %v1915_v2 = vrot.slane %v1894_v40, 7 }
 0x183   : > { %v1917_v56 = vrot.slane %v1895_v4, 6 }
 0x184   : > { %v1916_v53 = vsel %vm1541_vm7, %v1915_v2, %v1893_v63  ;;  %v1919_v3 = vrot.slane %v1896_v27, 5 }
 0x185   : > { %v1918_v5 = vsel %vm1545_vm8, %v1917_v56, %v1916_v53 }
 0x186   : > { %v1920_v9 = vsel %vm1549_vm9, %v1919_v3, %v1918_v5 }
 0x187   : > { %v1924_v46 = vpack.c.b16 %v1920_v9, %v1920_v9 }
 0x189   : > { %v1928_v35 = vrot.slane %v1924_v46, 2 }
 0x18b   : > { %v1940_v47 = vsel %vm1621_vm10, %v1924_v46, %v1928_v35 }
 0x18c   : > { %1948 = vst [vmem:[%s3212_s12 + $0x6] sm:$0x3] %v1940_v47 }
 0x18d PF: > { %s13_s14 = sadd.s32 1, %s2647_s14   ;;  %s3272_s12 = smov %s2643_s13 }
 0x18e   : > { %p10_p5 = scmp.ge.s32.totalorder %s13_s14, 4   ;;  %s3273_s13 = smov %s3275_s15 }
 0x190   :  { %12 = sbr.rel (!%p10_p5) target bundleno = 2 (0x2), region = 80 }

// kernel: perceptual_vgg_forward.13
= control target key start
LH: loop header
LB: loop body
LE: loop exit
PB: predicated region body
PF: predicated region fallthrough
CT: control target
= control target key end

     0   :  { %s3024_s12 = smov 0   ;;  %s3026_s13 = smov 0   ;;  %s4305_s0 = inlined_call_operand.vmem [shape: bf16[2,6,6,128], index: 0, kind: input, shape index: {}]   ;;  %s4306_s1 = inlined_call_operand.vmem [shape: bf16[9,128,256], index: 1, kind: input, shape index: {}]   ;;  %s4307_s2 = inlined_call_operand.vmem [shape: f32[1,256], index: 2, kind: input, shape index: {}]   ;;  %s4308_s3 = inlined_call_operand.vmem [shape: bf16[2,4,4,256], index: 3, kind: output, shape index: {}]  }
   0x1   :  { %s3028_s14 = smov 0  }
   0x2 LB: > { %s32_s15 = sadd.s32 1, %s2998_s13  ;;  %p2088_p0 = scmp.ge.s32.totalorder %s3002_s14, 1  ;;  %s3002_s14 = sphi %s3028_s14, %s13_s14   ;;  %s2998_s13 = sphi %s3026_s13, %s4320_s13   ;;  %s2994_s12 = sphi %s3024_s12, %s4319_s12  }
   0x3   : > { %p34_p1 = scmp.ge.s32.totalorder %s32_s15, 2  ;;  %p181_p2 = scmp.lt.s32.totalorder %s3002_s14, 3 }
   0x5   : > { %s4322_s15 = smov (%p34_p1, %s32_s15), 0  ;;  %p182_p3 = pnand %p2088_p0, %p181_p2 }
   0x6   : > { %p223_p4 = scmp.lt.s32.totalorder (!%p182_p3), %s2994_s12, 1 }
   0x7   : > { %185 = sbr.rel (%p182_p3) target bundleno = 334 (0x14e), region = 32 }
   0xc   : > { %v2166_v0 = vld [vmem:[%s4306_s1 + $0x1f0] sm:$0xf]  ;;  %v2842_v1 = vld [vmem:[%s4306_s1 + $0x1f4] sm:$0xf0]  ;;  %v2841_v2 = vld [vmem:[%s4306_s1 + $0x1f4] sm:$0xf] }
   0xd   : > { %v2167_v3 = vor.u32 %v2842_v1, %v2166_v0  ;;  %v2168_v4 = vld [vmem:[%s4306_s1 + $0x1f8] sm:$0xf0]  ;;  %v2825_v5 = vld [vmem:[%s4306_s1 + $0x74] sm:$0xf]  ;;  %v2230_v9 = vld [vmem:[%s4306_s1 + $0x70] sm:$0xf] }
   0xe   : > { %v2232_v6 = vld [vmem:[%s4306_s1 + $0x78] sm:$0xf0]  ;;  %v2171_v7 = vor.u32 %v2841_v2, %v2168_v4  ;;  %v2826_v10 = vld [vmem:[%s4306_s1 + $0x74] sm:$0xf0]  ;;  %v2158_v11 = vld [vmem:[%s4306_s1 + $0x1e0] sm:$0xf] }
   0xf   : > { %v2235_v8 = vor.u32 %v2825_v5, %v2232_v6  ;;  %390 = vmatpush.bf16.msra.mxu0 %v2167_v3  ;;  %v2231_v12 = vor.u32 %v2826_v10, %v2230_v9  ;;  %v2840_v13 = vld [vmem:[%s4306_s1 + $0x1e4] sm:$0xf0]  ;;  %v2839_v14 = vld [vmem:[%s4306_s1 + $0x1e4] sm:$0xf]  ;;  %v2160_v15 = vld [vmem:[%s4306_s1 + $0x1e8] sm:$0xf0] }
  0x10   : > { %404 = vmatpush.bf16.msra.mxu1 %v2171_v7  ;;  %v2159_v16 = vor.u32 %v2840_v13, %v2158_v11  ;;  %v2163_v17 = vor.u32 %v2839_v14, %v2160_v15  ;;  %v2823_v18 = vld [vmem:[%s4306_s1 + $0x64] sm:$0xf]  ;;  %v2224_v19 = vld [vmem:[%s4306_s1 + $0x68] sm:$0xf0]  ;;  %v2222_v20 = vld [vmem:[%s4306_s1 + $0x60] sm:$0xf] }
  0x11   : > { %522 = vmatpush.bf16.msra.mxu3 %v2235_v8  ;;  %508 = vmatpush.bf16.msra.mxu2 %v2231_v12  ;;  %v2227_v21 = vor.u32 %v2823_v18, %v2224_v19  ;;  %v2824_v22 = vld [vmem:[%s4306_s1 + $0x64] sm:$0xf0]  ;;  %v2150_v23 = vld [vmem:[%s4306_s1 + $0x1d0] sm:$0xf]  ;;  %v2838_v24 = vld [vmem:[%s4306_s1 + $0x1d4] sm:$0xf0] }
  0x12   : > { %v2223_v25 = vor.u32 %v2824_v22, %v2222_v20  ;;  %v2837_v26 = vld [vmem:[%s4306_s1 + $0x1d4] sm:$0xf]  ;;  %v2152_v27 = vld [vmem:[%s4306_s1 + $0x1d8] sm:$0xf0]  ;;  %v2151_v29 = vor.u32 %v2838_v24, %v2150_v23  ;;  %v2214_v31 = vld [vmem:[%s4306_s1 + $0x50] sm:$0xf] }
  0x13   : > { %v2821_v28 = vld [vmem:[%s4306_s1 + $0x54] sm:$0xf]  ;;  %391 = vmatpush.bf16.msra.mxu0 %v2159_v16  ;;  %v2216_v30 = vld [vmem:[%s4306_s1 + $0x58] sm:$0xf0]  ;;  %v2822_v32 = vld [vmem:[%s4306_s1 + $0x54] sm:$0xf0]  ;;  %v2155_v33 = vor.u32 %v2837_v26, %v2152_v27 }
  0x14   : > { %405 = vmatpush.bf16.msra.mxu1 %v2163_v17  ;;  %v2219_v34 = vor.u32 %v2821_v28, %v2216_v30  ;;  %v2142_v35 = vld [vmem:[%s4306_s1 + $0x1c0] sm:$0xf]  ;;  %v2836_v36 = vld [vmem:[%s4306_s1 + $0x1c4] sm:$0xf0]  ;;  %v2835_v37 = vld [vmem:[%s4306_s1 + $0x1c4] sm:$0xf]  ;;  %v2215_v38 = vor.u32 %v2822_v32, %v2214_v31 }
  0x15   : > { %523 = vmatpush.bf16.msra.mxu3 %v2227_v21  ;;  %509 = vmatpush.bf16.msra.mxu2 %v2223_v25  ;;  %v2144_v39 = vld [vmem:[%s4306_s1 + $0x1c8] sm:$0xf0]  ;;  %v2819_v40 = vld [vmem:[%s4306_s1 + $0x44] sm:$0xf]  ;;  %v2206_v42 = vld [vmem:[%s4306_s1 + $0x40] sm:$0xf]  ;;  %v2143_v44 = vor.u32 %v2836_v36, %v2142_v35 }
  0x16   : > { %v2208_v41 = vld [vmem:[%s4306_s1 + $0x48] sm:$0xf0]  ;;  %v2820_v43 = vld [vmem:[%s4306_s1 + $0x44] sm:$0xf0]  ;;  %v2147_v45 = vor.u32 %v2835_v37, %v2144_v39  ;;  %v2134_v47 = vld [vmem:[%s4306_s1 + $0x1b0] sm:$0xf] }
  0x17   : > { %392 = vmatpush.bf16.msra.mxu0 %v2151_v29  ;;  %v2211_v46 = vor.u32 %v2819_v40, %v2208_v41  ;;  %v2834_v48 = vld [vmem:[%s4306_s1 + $0x1b4] sm:$0xf0]  ;;  %v2833_v49 = vld [vmem:[%s4306_s1 + $0x1b4] sm:$0xf]  ;;  %v2207_v50 = vor.u32 %v2820_v43, %v2206_v42  ;;  %v2136_v51 = vld [vmem:[%s4306_s1 + $0x1b8] sm:$0xf0] }
  0x18   : > { %406 = vmatpush.bf16.msra.mxu1 %v2155_v33  ;;  %v2817_v52 = vld [vmem:[%s4306_s1 + $0x34] sm:$0xf]  ;;  %v2200_v53 = vld [vmem:[%s4306_s1 + $0x38] sm:$0xf0]  ;;  %v2198_v54 = vld [vmem:[%s4306_s1 + $0x30] sm:$0xf]  ;;  %v2135_v56 = vor.u32 %v2834_v48, %v2134_v47  ;;  %v2139_v57 = vor.u32 %v2833_v49, %v2136_v51 }
  0x19   : > { %524 = vmatpush.bf16.msra.mxu3 %v2219_v34  ;;  %510 = vmatpush.bf16.msra.mxu2 %v2215_v38  ;;  %v2818_v55 = vld [vmem:[%s4306_s1 + $0x34] sm:$0xf0]  ;;  %v2203_v58 = vor.u32 %v2817_v52, %v2200_v53  ;;  %v2126_v59 = vld [vmem:[%s4306_s1 + $0x1a0] sm:$0xf]  ;;  %v2832_v60 = vld [vmem:[%s4306_s1 + $0x1a4] sm:$0xf0] }
  0x1a   : > { %v2831_v61 = vld [vmem:[%s4306_s1 + $0x1a4] sm:$0xf]  ;;  %v2199_v62 = vor.u32 %v2818_v55, %v2198_v54  ;;  %v2128_v63 = vld [vmem:[%s4306_s1 + $0x1a8] sm:$0xf0]  ;;  %v2190_v2 = vld [vmem:[%s4306_s1 + $0x20] sm:$0xf]  ;;  %v2127_v4 = vor.u32 %v2832_v60, %v2126_v59 }
  0x1b   : > { %393 = vmatpush.bf16.msra.mxu0 %v2143_v44  ;;  %v2815_v0 = vld [vmem:[%s4306_s1 + $0x24] sm:$0xf]  ;;  %v2192_v1 = vld [vmem:[%s4306_s1 + $0x28] sm:$0xf0]  ;;  %v2816_v3 = vld [vmem:[%s4306_s1 + $0x24] sm:$0xf0]  ;;  %v2131_v5 = vor.u32 %v2831_v61, %v2128_v63 }
  0x1c   : > { %407 = vmatpush.bf16.msra.mxu1 %v2147_v45  ;;  %v2195_v6 = vor.u32 %v2815_v0, %v2192_v1  ;;  %v2118_v7 = vld [vmem:[%s4306_s1 + $0x190] sm:$0xf]  ;;  %v2830_v8 = vld [vmem:[%s4306_s1 + $0x194] sm:$0xf0]  ;;  %v2829_v9 = vld [vmem:[%s4306_s1 + $0x194] sm:$0xf]  ;;  %v2191_v10 = vor.u32 %v2816_v3, %v2190_v2 }
  0x1d   : > { %525 = vmatpush.bf16.msra.mxu3 %v2211_v46  ;;  %511 = vmatpush.bf16.msra.mxu2 %v2207_v50  ;;  %v2120_v11 = vld [vmem:[%s4306_s1 + $0x198] sm:$0xf0]  ;;  %v2813_v12 = vld [vmem:[%s4306_s1 + $0x14] sm:$0xf]  ;;  %v2182_v14 = vld [vmem:[%s4306_s1 + $0x10] sm:$0xf]  ;;  %v2119_v16 = vor.u32 %v2830_v8, %v2118_v7 }
  0x1e   : > { %v2184_v13 = vld [vmem:[%s4306_s1 + $0x18] sm:$0xf0]  ;;  %v2814_v15 = vld [vmem:[%s4306_s1 + $0x14] sm:$0xf0]  ;;  %v2110_v17 = vld [vmem:[%s4306_s1 + $0x180] sm:$0xf]  ;;  %v2123_v19 = vor.u32 %v2829_v9, %v2120_v11 }
  0x1f   : > { %394 = vmatpush.bf16.msra.mxu0 %v2135_v56  ;;  %v2828_v18 = vld [vmem:[%s4306_s1 + $0x184] sm:$0xf0]  ;;  %v2187_v20 = vor.u32 %v2813_v12, %v2184_v13  ;;  %v2827_v21 = vld [vmem:[%s4306_s1 + $0x184] sm:$0xf]  ;;  %v2112_v22 = vld [vmem:[%s4306_s1 + $0x188] sm:$0xf0]  ;;  %v2183_v24 = vor.u32 %v2814_v15, %v2182_v14 }
  0x20   : > { %408 = vmatpush.bf16.msra.mxu1 %v2139_v57  ;;  %v2811_v23 = vld [vmem:[%s4306_s1 + $0x4] sm:$0xf]  ;;  %v2176_v25 = vld [vmem:[%s4306_s1 + $0x8] sm:$0xf0]  ;;  %v2310_v26 = vld [vmem:[%s4306_s1 + $0x370] sm:$0xf]  ;;  %v2111_v31 = vor.u32 %v2828_v18, %v2110_v17  ;;  %v2115_v35 = vor.u32 %v2827_v21, %v2112_v22 }
  0x21   : > { %526 = vmatpush.bf16.msra.mxu3 %v2203_v58  ;;  %512 = vmatpush.bf16.msra.mxu2 %v2199_v62  ;;  %v2858_v27 = vld [vmem:[%s4306_s1 + $0x374] sm:$0xf0]  ;;  %v2857_v28 = vld [vmem:[%s4306_s1 + $0x374] sm:$0xf]  ;;  %v2312_v29 = vld [vmem:[%s4306_s1 + $0x378] sm:$0xf0]  ;;  %v2179_v36 = vor.u32 %v2811_v23, %v2176_v25 }
  0x22   : > { %v2873_v30 = vld [vmem:[%s4306_s1 + $0xf4] sm:$0xf]  ;;  %v2392_v32 = vld [vmem:[%s4306_s1 + $0xf8] sm:$0xf0]  ;;  %v2174_v33 = vld [vmem:[%s4306_s1] sm:$0xf]  ;;  %v2311_v39 = vor.u32 %v2858_v27, %v2310_v26  ;;  %v2315_v40 = vor.u32 %v2857_v28, %v2312_v29 }
  0x23   : > { %395 = vmatpush.bf16.msra.mxu0 %v2127_v4  ;;  %v2812_v34 = vld [vmem:[%s4306_s1 + $0x4] sm:$0xf0]  ;;  %v2390_v37 = vld [vmem:[%s4306_s1 + $0xf0] sm:$0xf]  ;;  %v2874_v38 = vld [vmem:[%s4306_s1 + $0xf4] sm:$0xf0]  ;;  %v2395_v42 = vor.u32 %v2873_v30, %v2392_v32 }
  0x24   : > { %409 = vmatpush.bf16.msra.mxu1 %v2131_v5  ;;  %v2302_v41 = vld [vmem:[%s4306_s1 + $0x360] sm:$0xf]  ;;  %v2175_v43 = vor.u32 %v2812_v34, %v2174_v33  ;;  %v2856_v44 = vld [vmem:[%s4306_s1 + $0x364] sm:$0xf0]  ;;  %v2855_v45 = vld [vmem:[%s4306_s1 + $0x364] sm:$0xf]  ;;  %v2391_v47 = vor.u32 %v2874_v38, %v2390_v37 }
  0x25   : > { %527 = vmatpush.bf16.msra.mxu3 %v2195_v6  ;;  %513 = vmatpush.bf16.msra.mxu2 %v2191_v10  ;;  %v2304_v46 = vld [vmem:[%s4306_s1 + $0x368] sm:$0xf0]  ;;  %v2871_v48 = vld [vmem:[%s4306_s1 + $0xe4] sm:$0xf]  ;;  %v2382_v50 = vld [vmem:[%s4306_s1 + $0xe0] sm:$0xf]  ;;  %v2303_v52 = vor.u32 %v2856_v44, %v2302_v41 }
  0x26   : > { %v2384_v49 = vld [vmem:[%s4306_s1 + $0xe8] sm:$0xf0]  ;;  %v2872_v51 = vld [vmem:[%s4306_s1 + $0xe4] sm:$0xf0]  ;;  %v2307_v53 = vor.u32 %v2855_v45, %v2304_v46  ;;  %v2294_v54 = vld [vmem:[%s4306_s1 + $0x350] sm:$0xf] }
  0x27   : > { %396 = vmatpush.bf16.msra.mxu0 %v2119_v16  ;;  %v2854_v55 = vld [vmem:[%s4306_s1 + $0x354] sm:$0xf0]  ;;  %v2853_v56 = vld [vmem:[%s4306_s1 + $0x354] sm:$0xf]  ;;  %v2387_v57 = vor.u32 %v2871_v48, %v2384_v49  ;;  %v2296_v58 = vld [vmem:[%s4306_s1 + $0x358] sm:$0xf0]  ;;  %v2383_v60 = vor.u32 %v2872_v51, %v2382_v50 }
  0x28   : > { %410 = vmatpush.bf16.msra.mxu1 %v2123_v19  ;;  %v2869_v59 = vld [vmem:[%s4306_s1 + $0xd4] sm:$0xf]  ;;  %s4324_s12 = smov (!%p223_p4, %s2994_s12), 1  ;;  %v2376_v61 = vld [vmem:[%s4306_s1 + $0xd8] sm:$0xf0]  ;;  %v2295_v2 = vor.u32 %v2854_v55, %v2294_v54  ;;  %v2299_v3 = vor.u32 %v2853_v56, %v2296_v58  ;;  %vm739_vm0 = vcmask 1041408  }
  0x29   : > { %528 = vmatpush.bf16.msra.mxu3 %v2187_v20  ;;  %514 = vmatpush.bf16.msra.mxu2 %v2183_v24  ;;  %v2374_v62 = vld [vmem:[%s4306_s1 + $0xd0] sm:$0xf]  ;;  %v2870_v63 = vld [vmem:[%s4306_s1 + $0xd4] sm:$0xf0]  ;;  %v2286_v0 = vld [vmem:[%s4306_s1 + $0x340] sm:$0xf]  ;;  %v2379_v7 = vor.u32 %v2869_v59, %v2376_v61 }
  0x2a   : > { %v2852_v1 = vld [vmem:[%s4306_s1 + $0x344] sm:$0xf0]  ;;  %s2955_s8 = smul.u32 24, %s4324_s12  ;;  %v2851_v4 = vld [vmem:[%s4306_s1 + $0x344] sm:$0xf]  ;;  %v2375_v11 = vor.u32 %v2870_v63, %v2374_v62  ;;  %vm743_vm1 = vcmask 1043458  }
  0x2b   : > { %397 = vmatpush.bf16.msra.mxu0 %v2111_v31  ;;  %v2288_v5 = vld [vmem:[%s4306_s1 + $0x348] sm:$0xf0]  ;;  %v2867_v6 = vld [vmem:[%s4306_s1 + $0xc4] sm:$0xf]  ;;  %v2366_v9 = vld [vmem:[%s4306_s1 + $0xc0] sm:$0xf]  ;;  %v2287_v20 = vor.u32 %v2852_v1, %v2286_v0 }
  0x2c   : > { %411 = vmatpush.bf16.msra.mxu1 %v2115_v35  ;;  %v2368_v8 = vld [vmem:[%s4306_s1 + $0xc8] sm:$0xf0]  ;;  %v2868_v10 = vld [vmem:[%s4306_s1 + $0xc4] sm:$0xf0]  ;;  %s3340_s27 = scalar_lea.vmem %s4305_s0, %s2955_s8  ;;  %v3358_v16 = vld [vmem:[%s4306_s1 + $0x330] sm:$0xf]  ;;  %v2291_v21 = vor.u32 %v2851_v4, %v2288_v5 }
  0x2d   : > { %529 = vmatpush.bf16.msra.mxu3 %v2179_v36  ;;  %515 = vmatpush.bf16.msra.mxu2 %v2175_v43  ;;  %v3343_v12 = vld [vmem:[%s3340_s27 + $0x4] sm:$0x3]  ;;  %v3346_v13 = vld [vmem:[%s3340_s27 + $0x8] sm:$0x3]  ;;  %v3349_v14 = vld [vmem:[%s3340_s27 + $0xc] sm:$0x3]  ;;  %v2371_v24 = vor.u32 %v2867_v6, %v2368_v8  ;;  %v2367_v33 = vor.u32 %v2868_v10, %v2366_v9 }
  0x2e   : > { %v3352_v15 = vld [vmem:[%s3340_s27 + $0x10] sm:$0x3]  ;;  %298 = vst [vmem:[#allocation1] ss:$4 sm:$0xff] %v3343_v12  ;;  %v3363_v17 = vld [vmem:[%s4306_s1 + $0x334] sm:$0xf0] }
  0x2f   : > { %660 = vmatpush.bf16.msrb.mxu0 %v2311_v39  ;;  %v3368_v18 = vld [vmem:[%s4306_s1 + $0x334] sm:$0xf]  ;;  %v3373_v19 = vld [vmem:[%s4306_s1 + $0x338] sm:$0xf0]  ;;  %301 = vst [vmem:[#allocation1 + $0x1] ss:$4 sm:$0xff] %v3346_v13  ;;  %v2279_v45 = vor.u32 %v3363_v17, %v3358_v16 }
  0x30   : > { %674 = vmatpush.bf16.msrb.mxu1 %v2315_v40  ;;  %v3379_v22 = vld [vmem:[%s4306_s1 + $0xb4] sm:$0xf]  ;;  %v3384_v23 = vld [vmem:[%s4306_s1 + $0xb8] sm:$0xf0]  ;;  %304 = vst [vmem:[#allocation1 + $0x2] ss:$4 sm:$0xff] %v3349_v14  ;;  %v2283_v46 = vor.u32 %v3368_v18, %v3373_v19 }
  0x31   : > { %931 = vmatpush.bf16.msrb.mxu3 %v2395_v42  ;;  %917 = vmatpush.bf16.msrb.mxu2 %v2391_v47  ;;  %v3390_v25 = vld [vmem:[%s4306_s1 + $0xb0] sm:$0xf]  ;;  %v3395_v26 = vld [vmem:[%s4306_s1 + $0xb4] sm:$0xf0]  ;;  %v3400_v27 = vld [vmem:[%s4306_s1 + $0x320] sm:$0xf]  ;;  %v2363_v50 = vor.u32 %v3379_v22, %v3384_v23 }
  0x32   : > { %v3405_v28 = vld [vmem:[%s4306_s1 + $0x324] sm:$0xf0]  ;;  %v3410_v29 = vld [vmem:[%s4306_s1 + $0x324] sm:$0xf]  ;;  %v3415_v30 = vld [vmem:[%s4306_s1 + $0x328] sm:$0xf0]  ;;  %v2359_v54 = vor.u32 %v3395_v26, %v3390_v25 }
  0x33   : > { %661 = vmatpush.bf16.msrb.mxu0 %v2303_v52  ;;  %v3420_v31 = vld [vmem:[%s4306_s1 + $0xa4] sm:$0xf]  ;;  %v3425_v32 = vld [vmem:[%s4306_s1 + $0xa8] sm:$0xf0]  ;;  %307 = vst [vmem:[#allocation1 + $0x3] ss:$4 sm:$0xff] %v3352_v15  ;;  %v2271_v55 = vor.u32 %v3405_v28, %v3400_v27  ;;  %v2275_v56 = vor.u32 %v3410_v29, %v3415_v30 }
  0x34   : > { %675 = vmatpush.bf16.msrb.mxu1 %v2307_v53  ;;  %v3431_v34 = vld [vmem:[%s4306_s1 + $0xa0] sm:$0xf]  ;;  %v3436_v35 = vld [vmem:[%s4306_s1 + $0xa4] sm:$0xf0]  ;;  %v3441_v36 = vld [vmem:[%s4306_s1 + $0x310] sm:$0xf] }
  0x35   : > { %932 = vmatpush.bf16.msrb.mxu3 %v2387_v57  ;;  %918 = vmatpush.bf16.msrb.mxu2 %v2383_v60  ;;  %v3446_v37 = vld [vmem:[%s4306_s1 + $0x314] sm:$0xf0]  ;;  %v3451_v38 = vld [vmem:[%s4306_s1 + $0x314] sm:$0xf]  ;;  %v3456_v39 = vld [vmem:[%s4306_s1 + $0x318] sm:$0xf0]  ;;  %v2355_v57 = vor.u32 %v3420_v31, %v3425_v32  ;;  %v2351_v61 = vor.u32 %v3436_v35, %v3431_v34 }
  0x36   : > { %v3461_v40 = vld [vmem:[%s4306_s1 + $0x94] sm:$0xf]  ;;  %v3466_v41 = vld [vmem:[%s4306_s1 + $0x98] sm:$0xf0]  ;;  %v3471_v42 = vld [vmem:[%s4306_s1 + $0x90] sm:$0xf]  ;;  %v2263_v62 = vor.u32 %v3446_v37, %v3441_v36  ;;  %v2267_v63 = vor.u32 %v3451_v38, %v3456_v39 }
  0x37   : > { %662 = vmatpush.bf16.msrb.mxu0 %v2295_v2  ;;  %v3476_v43 = vld [vmem:[%s4306_s1 + $0x94] sm:$0xf0]  ;;  %v3481_v44 = vld [vmem:[%s4306_s1 + $0x300] sm:$0xf]  ;;  %v3490_v47 = vld [vmem:[%s4306_s1 + $0x304] sm:$0xf0]  ;;  %v2347_v0 = vor.u32 %v3461_v40, %v3466_v41 }
  0x38   : > { %676 = vmatpush.bf16.msrb.mxu1 %v2299_v3  ;;  %v3495_v48 = vld [vmem:[%s4306_s1 + $0x304] sm:$0xf]  ;;  %v3500_v49 = vld [vmem:[%s4306_s1 + $0x308] sm:$0xf0]  ;;  %v3517_v53 = vld [vmem:[%s4306_s1 + $0x270] sm:$0xf]  ;;  %v2343_v4 = vor.u32 %v3476_v43, %v3471_v42  ;;  %v2255_v5 = vor.u32 %v3490_v47, %v3481_v44 }
  0x39   : > { %933 = vmatpush.bf16.msrb.mxu3 %v2379_v7  ;;  %919 = vmatpush.bf16.msrb.mxu2 %v2375_v11  ;;  %v3507_v51 = vld [vmem:[%s4306_s1 + $0x84] sm:$0xf]  ;;  %v3512_v52 = vld [vmem:[%s4306_s1 + $0x88] sm:$0xf0]  ;;  %v3530_v58 = vld [vmem:[%s4306_s1 + $0x274] sm:$0xf0]  ;;  %v2259_v6 = vor.u32 %v3495_v48, %v3500_v49 }
  0x3a   : > { %v3535_v59 = vld [vmem:[%s4306_s1 + $0x274] sm:$0xf]  ;;  %v3540_v60 = vld [vmem:[%s4306_s1 + $0x278] sm:$0xf0]  ;;  %v258_v3 = vld [vmem:[%s3340_s27] sm:$0x3]  ;;  %v2339_v11 = vor.u32 %v3507_v51, %v3512_v52  ;;  %v2471_v16 = vor.u32 %v3530_v58, %v3517_v53 }
  0x3b   : > { %663 = vmatpush.bf16.msrb.mxu0 %v2287_v20  ;;  %v3553_v1 = vld [vmem:[%s4306_s1 + $0x3f4] sm:$0xf]  ;;  %v3558_v2 = vld [vmem:[%s4306_s1 + $0x3f8] sm:$0xf0]  ;;  %v708_v7 = vld [vmem:[%s3340_s27] sm:$0x7]  ;;  %v2475_v17 = vor.u32 %v3535_v59, %v3540_v60 }
  0x3c   : > { %677 = vmatpush.bf16.msrb.mxu1 %v2291_v21  ;;  %v709_v8 = vld [vmem:[%s3340_s27 + $0x4] sm:$0x7]  ;;  %v710_v9 = vld [vmem:[%s3340_s27 + $0x8] sm:$0x7]  ;;  %v711_v18 = vld [vmem:[%s3340_s27 + $0xc] sm:$0x7]  ;;  %v2555_v20 = vor.u32 %v3553_v1, %v3558_v2 }
  0x3d   : > { %934 = vmatpush.bf16.msrb.mxu3 %v2371_v24  ;;  %920 = vmatpush.bf16.msrb.mxu2 %v2367_v33  ;;  %v308_v10 = vld.sshfl [vmem:[#allocation1] sm:$0xff pattern:$0x73625140]  ;;  %v735_v19 = vrot.slane %v708_v7, 2  ;;  %v736_v21 = vrot.slane %v709_v8, 2  ;;  %v737_v22 = vrot.slane %v710_v9, 2 }
  0x3e   : > { %412 = vmatmul.bf16.vlgmr.msra.gmra.mxu1 %v308_v10  ;;  %421 = vst [vmem:[#allocation1 + $0x1] ss:$4 sm:$0xff] %v3343_v12  ;;  %398 = vmatmul.bf16.vlgmr.msra.gmra.mxu0 %v308_v10  ;;  %v738_v23 = vrot.slane %v711_v18, 2  ;;  %vm765_vm2 = vsmask.f32 1280  ;;  %vm1376_vm9 = vcmask 1040384  }
  0x3f   : > { %664 = vmatpush.bf16.msrb.mxu0 %v2279_v45  ;;  %423 = vst [vmem:[#allocation1 + $0x2] ss:$4 sm:$0xff] %v3346_v13  ;;  %v742_v24 = vsel %vm739_vm0, %v708_v7, %v735_v19  ;;  %v744_v25 = vsel %vm743_vm1, %v708_v7, %v735_v19  ;;  %vm766_vm3 = vsmask.f32 3336  ;;  %v749_v26 = vsel %vm739_vm0, %v709_v8, %v736_v21  ;;  %v3593_v35 = vld [vmem:[%s4306_s1 + $0x80] sm:$0xf] }
  0x40   : > { %678 = vmatpush.bf16.msrb.mxu1 %v2283_v46  ;;  %425 = vst [vmem:[#allocation1 + $0x3] ss:$4 sm:$0xff] %v3349_v14  ;;  %v746_v12 = vrot.slane %v744_v25, 2  ;;  %v750_v27 = vsel %vm743_vm1, %v709_v8, %v736_v21  ;;  %vm768_vm4 = vsmask.f32 5392  ;;  %v755_v29 = vsel %vm739_vm0, %v710_v9, %v737_v22  ;;  %vm3629_vm6 = vmor %vm765_vm2, %vm766_vm3  ;;  %s2810_s11 = sshll.u32 %s4324_s12, 4 }
  0x41   : > { %935 = vmatpush.bf16.msrb.mxu3 %v2363_v50  ;;  %921 = vmatpush.bf16.msrb.mxu2 %v2359_v54  ;;  %419 = vst [vmem:[#allocation1] ss:$4 sm:$0xff] %v258_v3  ;;  %v752_v28 = vrot.slane %v750_v27, 2  ;;  %v756_v30 = vsel %vm743_vm1, %v710_v9, %v737_v22  ;;  %v761_v31 = vsel %vm739_vm0, %v711_v18, %v738_v23  ;;  %vm770_vm5 = vsmask.f32 7448  ;;  %vm3663_vm7 = vmor %vm3629_vm6, %vm768_vm4  ;;  %s252_s18 = scalar_lea.vmem %s4308_s3, %s2810_s11 }
  0x42   : > { %v758_v32 = vrot.slane %v756_v30, 2  ;;  %v762_v33 = vsel %vm743_vm1, %v711_v18, %v738_v23  ;;  %v772_v34 = vshrl.u32 %v742_v24, 16  ;;  %v3598_v36 = vld [vmem:[%s4306_s1 + $0x84] sm:$0xf0]  ;;  %v775_v38 = vshll.u32 %v742_v24, 16  ;;  %vm3691_vm8 = vmor %vm3663_vm7, %vm770_vm5 }
  0x43   : > { %665 = vmatpush.bf16.msrb.mxu0 %v2271_v55  ;;  %v764_v37 = vrot.slane %v762_v33, 2  ;;  %v3600_v39 = vshll.u32 %v746_v12, 16  ;;  %v785_v45 = vshrl.u32 %v749_v26, 16  ;;  %v788_v50 = vshll.u32 %v749_v26, 16  ;;  %v2462_v7 = vld [vmem:[%s4306_s1 + $0x260] sm:$0xf] }
  0x44   : > { %679 = vmatpush.bf16.msrb.mxu1 %v2275_v56  ;;  %v774_v46 = vrot.slane %v772_v34, 6  ;;  %v3602_v54 = vshll.u32 %v752_v28, 16  ;;  %v798_v55 = vshrl.u32 %v755_v29, 16  ;;  %v2550_v56 = vld [vmem:[%s4306_s1 + $0x3f0] sm:$0xf]  ;;  %v801_v3 = vshll.u32 %v755_v29, 16 }
  0x45   : > { %936 = vmatpush.bf16.msrb.mxu3 %v2355_v57  ;;  %922 = vmatpush.bf16.msrb.mxu2 %v2351_v61  ;;  %v2906_v57 = vld [vmem:[%s4306_s1 + $0x3f4] sm:$0xf0]  ;;  %v777_v61 = vrot.slane %v775_v38, 7  ;;  %v790_v8 = vrot.slane %v788_v50, 7  ;;  %v3618_v18 = vshll.u32 %v758_v32, 16  ;;  %v811_v22 = vshrl.u32 %v761_v31, 16 }
  0x46   : > { %v796_v9 = vrot.slane %v3602_v54, 7  ;;  %v800_v10 = vrot.slane %v798_v55, 6  ;;  %v2888_v40 = vld [vmem:[%s4306_s1 + $0x264] sm:$0xf0]  ;;  %v263_v41 = vld [vmem:[%s3340_s27 + $0x14] sm:$0x3]  ;;  %v2335_v42 = vor.u32 %v3598_v36, %v3593_v35  ;;  %v2551_v26 = vor.u32 %v2906_v57, %v2550_v56 }
  0x47   : > { %666 = vmatpush.bf16.msrb.mxu0 %v2263_v62  ;;  %v783_v62 = vrot.slane %v3600_v39, 7  ;;  %v778_v19 = vor.u32 %v777_v61, %v774_v46  ;;  %v803_v21 = vrot.slane %v801_v3, 7  ;;  %v814_v23 = vshll.u32 %v761_v31, 16  ;;  %v2887_v24 = vld [vmem:[%s4306_s1 + $0x264] sm:$0xf] }
  0x48   : > { %680 = vmatpush.bf16.msrb.mxu1 %v2267_v63  ;;  %v787_v63 = vrot.slane %v785_v45, 6  ;;  %v426_v25 = vld.sshfl [vmem:[#allocation1] sm:$0xff pattern:$0x73625140]  ;;  %v2464_v12 = vld [vmem:[%s4306_s1 + $0x268] sm:$0xf0]  ;;  %v2463_v27 = vor.u32 %v2888_v40, %v2462_v7 }
  0x49   : > { %937 = vmatpush.bf16.msrb.mxu3 %v2347_v0  ;;  %923 = vmatpush.bf16.msrb.mxu2 %v2343_v4  ;;  %v3644_v4 = vshll.u32 %v764_v37, 16  ;;  %570 = vst [vmem:[#allocation1] ss:$4 sm:$0xff] %v3346_v13  ;;  %v804_v44 = vor.u32 %v803_v21, %v800_v10  ;;  %v813_v47 = vrot.slane %v811_v22, 6  ;;  %v2903_v48 = vld [vmem:[%s4306_s1 + $0x3e4] sm:$0xf]  ;;  %v2467_v58 = vor.u32 %v2887_v24, %v2464_v12 }
  0x4a   : > { %v791_v43 = vor.u32 %v790_v8, %v787_v63  ;;  %530 = vmatmul.bf16.vlgmr.msra.gmra.mxu3 %v426_v25  ;;  %516 = vmatmul.bf16.vlgmr.msra.gmra.mxu2 %v426_v25  ;;  %572 = vst [vmem:[#allocation1 + $0x1] ss:$4 sm:$0xff] %v3349_v14  ;;  %v779_v49 = vrot.slane %v778_v19, 2  ;;  %v2544_v14 = vld [vmem:[%s4306_s1 + $0x3e8] sm:$0xf0]  ;;  %vm1377_vm10 = vcmask 1042434  }
  0x4b   : > { %667 = vmatpush.bf16.msrb.mxu0 %v2255_v5  ;;  %v816_v5 = vrot.slane %v814_v23, 7  ;;  %574 = vst [vmem:[#allocation1 + $0x2] ss:$4 sm:$0xff] %v3352_v15  ;;  %v822_v53 = vrot.slane %v3644_v4, 7  ;;  %v2547_v15 = vor.u32 %v2903_v48, %v2544_v14  ;;  %v2904_v59 = vld [vmem:[%s4306_s1 + $0x3e4] sm:$0xf0]  ;;  %vm4059_vm11 = vmor %vm1376_vm9, %vm1377_vm10 }
  0x4c   : > { %681 = vmatpush.bf16.msrb.mxu1 %v2259_v6  ;;  %v809_v6 = vrot.slane %v3618_v18, 7  ;;  %v792_v51 = vrot.slane %v791_v43, 2  ;;  %577 = vst [vmem:[#allocation1 + $0x3] ss:$4 sm:$0xff] %v263_v41  ;;  %v2454_v60 = vld [vmem:[%s4306_s1 + $0x250] sm:$0xf]  ;;  %v784_v50 = vsel %vm3691_vm8, %v779_v49, %v783_v62 }
  0x4d   : > { %938 = vmatpush.bf16.msrb.mxu3 %v2339_v11  ;;  %v817_v52 = vor.u32 %v816_v5, %v813_v47  ;;  %v2542_v11 = vld [vmem:[%s4306_s1 + $0x3e0] sm:$0xf]  ;;  %924 = vmatpush.bf16.msrb.mxu2 %v2335_v42  ;;  %v805_v2 = vrot.slane %v804_v44, 2  ;;  %v2885_v28 = vld [vmem:[%s4306_s1 + $0x254] sm:$0xf]  ;;  %vm1379_vm12 = vcmask 1044484  }
  0x4e   : > { %v2456_v30 = vld [vmem:[%s4306_s1 + $0x258] sm:$0xf0]  ;;  %v2901_v31 = vld [vmem:[%s4306_s1 + $0x3d4] sm:$0xf]  ;;  %v2534_v35 = vld [vmem:[%s4306_s1 + $0x3d0] sm:$0xf]  ;;  %v3745_v39 = vsel %vm3691_vm8, %v792_v51, %v796_v9 }
  0x4f   : > { %1093 = vmatpush.bf16.msra.mxu0 %v2471_v16  ;;  %v818_v16 = vrot.slane %v817_v52, 2  ;;  %v2536_v32 = vld [vmem:[%s4306_s1 + $0x3d8] sm:$0xf0]  ;;  %v2459_v33 = vor.u32 %v2885_v28, %v2456_v30  ;;  %v2902_v36 = vld [vmem:[%s4306_s1 + $0x3d4] sm:$0xf0]  ;;  %v3758_v54 = vsel %vm3691_vm8, %v805_v2, %v809_v6  ;;  %vm1380_vm13 = vmor %vm4059_vm11, %vm1379_vm12  ;;  %vm1381_vm14 = vcmask 1046534  }
  0x50   : > { %1107 = vmatpush.bf16.msra.mxu1 %v2475_v17  ;;  %v2543_v17 = vor.u32 %v2904_v59, %v2542_v11  ;;  %v2539_v34 = vor.u32 %v2901_v31, %v2536_v32  ;;  %v2446_v37 = vld [vmem:[%s4306_s1 + $0x240] sm:$0xf]  ;;  %v2884_v38 = vld [vmem:[%s4306_s1 + $0x244] sm:$0xf0]  ;;  %v2883_v45 = vld [vmem:[%s4306_s1 + $0x244] sm:$0xf]  ;;  %v2535_v55 = vor.u32 %v2902_v36, %v2534_v35 }
  0x51   : > { %1283 = vmatpush.bf16.msra.mxu3 %v2555_v20  ;;  %1269 = vmatpush.bf16.msra.mxu2 %v2551_v26  ;;  %v2886_v20 = vld [vmem:[%s4306_s1 + $0x254] sm:$0xf0]  ;;  %v2448_v46 = vld [vmem:[%s4306_s1 + $0x248] sm:$0xf0]  ;;  %v2899_v56 = vld [vmem:[%s4306_s1 + $0x3c4] sm:$0xf]  ;;  %v2447_v62 = vor.u32 %v2884_v38, %v2446_v37  ;;  %v3765_v40 = vsel %vm3691_vm8, %v818_v16, %v822_v53 }
  0x52   : > { %v2455_v29 = vor.u32 %v2886_v20, %v2454_v60  ;;  %v2528_v57 = vld [vmem:[%s4306_s1 + $0x3c8] sm:$0xf0]  ;;  %v2526_v61 = vld [vmem:[%s4306_s1 + $0x3c0] sm:$0xf]  ;;  %v2900_v63 = vld [vmem:[%s4306_s1 + $0x3c4] sm:$0xf0]  ;;  %v2451_v9 = vor.u32 %v2883_v45, %v2448_v46 }
  0x53   : > { %1094 = vmatpush.bf16.msra.mxu0 %v2463_v27  ;;  %v2438_v3 = vld [vmem:[%s4306_s1 + $0x230] sm:$0xf]  ;;  %v2882_v7 = vld [vmem:[%s4306_s1 + $0x234] sm:$0xf0]  ;;  %v2531_v10 = vor.u32 %v2899_v56, %v2528_v57  ;;  %v2881_v18 = vld [vmem:[%s4306_s1 + $0x234] sm:$0xf]  ;;  %v2527_v19 = vor.u32 %v2900_v63, %v2526_v61 }
  0x54   : > { %1108 = vmatpush.bf16.msra.mxu1 %v2467_v58  ;;  %v578_v8 = vld.sshfl [vmem:[#allocation1] sm:$0xff pattern:$0x73625140]  ;;  %v2440_v41 = vld [vmem:[%s4306_s1 + $0x238] sm:$0xf0]  ;;  %v2439_v22 = vor.u32 %v2882_v7, %v2438_v3  ;;  %vm4124_vm15 = vmor %vm1380_vm13, %vm1381_vm14 }
  0x55   : > { %1284 = vmatpush.bf16.msra.mxu3 %v2547_v15  ;;  %1270 = vmatpush.bf16.msra.mxu2 %v2543_v17  ;;  %825 = vst [vmem:[#allocation1] ss:$4 sm:$0xff] %v784_v50  ;;  %v2897_v0 = vld [vmem:[%s4306_s1 + $0x3b4] sm:$0xf]  ;;  %v2520_v21 = vld [vmem:[%s4306_s1 + $0x3b8] sm:$0xf0]  ;;  %v2443_v25 = vor.u32 %v2881_v18, %v2440_v41 }
  0x56   : > { %682 = vmatmul.bf16.vlgmr.msrb.gmra.mxu1 %v578_v8  ;;  %668 = vmatmul.bf16.vlgmr.msrb.gmra.mxu0 %v578_v8  ;;  %828 = vst [vmem:[#allocation1 + $0x1] ss:$4 sm:$0xff] %v3745_v39  ;;  %v2518_v23 = vld [vmem:[%s4306_s1 + $0x3b0] sm:$0xf]  ;;  %v2898_v24 = vld [vmem:[%s4306_s1 + $0x3b4] sm:$0xf0]  ;;  %v2523_v42 = vor.u32 %v2897_v0, %v2520_v21 }
  0x57   : > { %1095 = vmatpush.bf16.msra.mxu0 %v2455_v29  ;;  %831 = vst [vmem:[#allocation1 + $0x2] ss:$4 sm:$0xff] %v3758_v54  ;;  %v2430_v43 = vld [vmem:[%s4306_s1 + $0x220] sm:$0xf]  ;;  %v2880_v4 = vld [vmem:[%s4306_s1 + $0x224] sm:$0xf0]  ;;  %v2519_v44 = vor.u32 %v2898_v24, %v2518_v23 }
  0x58   : > { %1109 = vmatpush.bf16.msra.mxu1 %v2459_v33  ;;  %834 = vst [vmem:[#allocation1 + $0x3] ss:$4 sm:$0xff] %v3765_v40  ;;  %v2879_v12 = vld [vmem:[%s4306_s1 + $0x224] sm:$0xf]  ;;  %v2432_v47 = vld [vmem:[%s4306_s1 + $0x228] sm:$0xf0]  ;;  %v2431_v48 = vor.u32 %v2880_v4, %v2430_v43 }
  0x59   : > { %1285 = vmatpush.bf16.msra.mxu3 %v2539_v34  ;;  %1271 = vmatpush.bf16.msra.mxu2 %v2535_v55  ;;  %v2895_v5 = vld [vmem:[%s4306_s1 + $0x3a4] sm:$0xf]  ;;  %v2512_v26 = vld [vmem:[%s4306_s1 + $0x3a8] sm:$0xf0]  ;;  %v2510_v13 = vld [vmem:[%s4306_s1 + $0x3a0] sm:$0xf]  ;;  %v2435_v52 = vor.u32 %v2879_v12, %v2432_v47 }
  0x5a   : > { %v2896_v49 = vld [vmem:[%s4306_s1 + $0x3a4] sm:$0xf0]  ;;  %v2422_v6 = vld [vmem:[%s4306_s1 + $0x210] sm:$0xf]  ;;  %v2878_v27 = vld [vmem:[%s4306_s1 + $0x214] sm:$0xf0]  ;;  %v2515_v53 = vor.u32 %v2895_v5, %v2512_v26 }
  0x5b   : > { %1096 = vmatpush.bf16.msra.mxu0 %v2447_v62  ;;  %v2877_v14 = vld [vmem:[%s4306_s1 + $0x214] sm:$0xf]  ;;  %v2424_v51 = vld [vmem:[%s4306_s1 + $0x218] sm:$0xf0]  ;;  %v2502_v15 = vld [vmem:[%s4306_s1 + $0x390] sm:$0xf]  ;;  %v2511_v59 = vor.u32 %v2896_v49, %v2510_v13  ;;  %v2423_v20 = vor.u32 %v2878_v27, %v2422_v6 }
  0x5c   : > { %1110 = vmatpush.bf16.msra.mxu1 %v2451_v9  ;;  %v2893_v58 = vld [vmem:[%s4306_s1 + $0x394] sm:$0xf]  ;;  %v2504_v11 = vld [vmem:[%s4306_s1 + $0x398] sm:$0xf0]  ;;  %v2894_v60 = vld [vmem:[%s4306_s1 + $0x394] sm:$0xf0]  ;;  %v2427_v34 = vor.u32 %v2877_v14, %v2424_v51 }
  0x5d   : > { %1286 = vmatpush.bf16.msra.mxu3 %v2531_v10  ;;  %1272 = vmatpush.bf16.msra.mxu2 %v2527_v19  ;;  %v2414_v2 = vld [vmem:[%s4306_s1 + $0x200] sm:$0xf]  ;;  %v2876_v16 = vld [vmem:[%s4306_s1 + $0x204] sm:$0xf0]  ;;  %v2875_v28 = vld [vmem:[%s4306_s1 + $0x204] sm:$0xf]  ;;  %v2507_v35 = vor.u32 %v2893_v58, %v2504_v11  ;;  %v2503_v38 = vor.u32 %v2894_v60, %v2502_v15 }
  0x5e   : > { %v2416_v29 = vld [vmem:[%s4306_s1 + $0x208] sm:$0xf0]  ;;  %v2891_v30 = vld [vmem:[%s4306_s1 + $0x384] sm:$0xf]  ;;  %v2638_v32 = vld [vmem:[%s4306_s1 + $0x170] sm:$0xf]  ;;  %v2415_v50 = vor.u32 %v2876_v16, %v2414_v2 }
  0x5f   : > { %1097 = vmatpush.bf16.msra.mxu0 %v2439_v22  ;;  %v835_v17 = vld.sshfl [vmem:[#allocation1] sm:$0xff pattern:$0x73625140]  ;;  %v2496_v31 = vld [vmem:[%s4306_s1 + $0x388] sm:$0xf0]  ;;  %v2419_v61 = vor.u32 %v2875_v28, %v2416_v29 }
  0x60   : > { %1111 = vmatpush.bf16.msra.mxu1 %v2443_v25  ;;  %939 = vmatmul.bf16.vlgmr.msrb.gmra.mxu3 %v835_v17  ;;  %1003 = vst [vmem:[#allocation1] ss:$4 sm:$0xff] %v3745_v39  ;;  %v2922_v33 = vld [vmem:[%s4306_s1 + $0x174] sm:$0xf0]  ;;  %v2921_v36 = vld [vmem:[%s4306_s1 + $0x174] sm:$0xf]  ;;  %v2499_v7 = vor.u32 %v2891_v30, %v2496_v31 }
  0x61   : > { %1287 = vmatpush.bf16.msra.mxu3 %v2523_v42  ;;  %1273 = vmatpush.bf16.msra.mxu2 %v2519_v44  ;;  %1005 = vst [vmem:[#allocation1 + $0x1] ss:$4 sm:$0xff] %v3758_v54  ;;  %v2640_v37 = vld [vmem:[%s4306_s1 + $0x178] sm:$0xf0]  ;;  %v2937_v45 = vld [vmem:[%s4306_s1 + $0x2f4] sm:$0xf]  ;;  %v2639_v39 = vor.u32 %v2922_v33, %v2638_v32 }
  0x62   : > { %925 = vmatmul.bf16.vlgmr.msrb.gmra.mxu2 %v835_v17  ;;  %1007 = vst [vmem:[#allocation1 + $0x2] ss:$4 sm:$0xff] %v3765_v40  ;;  %v2722_v46 = vld [vmem:[%s4306_s1 + $0x2f8] sm:$0xf0]  ;;  %v2494_v55 = vld [vmem:[%s4306_s1 + $0x380] sm:$0xf]  ;;  %v2643_v8 = vor.u32 %v2921_v36, %v2640_v37 }
  0x63   : > { %1098 = vmatpush.bf16.msra.mxu0 %v2431_v48  ;;  %v2892_v56 = vld [vmem:[%s4306_s1 + $0x384] sm:$0xf0]  ;;  %v712_v57 = vld [vmem:[%s3340_s27 + $0x10] sm:$0x7]  ;;  %v713_v63 = vld [vmem:[%s3340_s27 + $0x14] sm:$0x7]  ;;  %v2725_v9 = vor.u32 %v2937_v45, %v2722_v46 }
  0x64   : > { %1112 = vmatpush.bf16.msra.mxu1 %v2435_v52  ;;  %v983_v62 = vrot.slane %v712_v57, 2  ;;  %v2720_v3 = vld [vmem:[%s4306_s1 + $0x2f0] sm:$0xf]  ;;  %v1159_v10 = vrot.slane %v713_v63, 2  ;;  %v2938_v18 = vld [vmem:[%s4306_s1 + $0x2f4] sm:$0xf0]  ;;  %v2495_v0 = vor.u32 %v2892_v56, %v2494_v55 }
  0x65   : > { %1288 = vmatpush.bf16.msra.mxu3 %v2515_v53  ;;  %1274 = vmatpush.bf16.msra.mxu2 %v2511_v59  ;;  %v2630_v41 = vld [vmem:[%s4306_s1 + $0x160] sm:$0xf]  ;;  %v2721_v22 = vor.u32 %v2938_v18, %v2720_v3  ;;  %v2920_v23 = vld [vmem:[%s4306_s1 + $0x164] sm:$0xf0]  ;;  %v2919_v24 = vld [vmem:[%s4306_s1 + $0x164] sm:$0xf] }
  0x66   : > { %v986_v19 = vsel %vm739_vm0, %v712_v57, %v983_v62  ;;  %v987_v21 = vsel %vm743_vm1, %v712_v57, %v983_v62  ;;  %v2632_v25 = vld [vmem:[%s4306_s1 + $0x168] sm:$0xf0]  ;;  %v1162_v12 = vsel %vm739_vm0, %v713_v63, %v1159_v10  ;;  %v2935_v44 = vld [vmem:[%s4306_s1 + $0x2e4] sm:$0xf]  ;;  %v1163_v47 = vsel %vm743_vm1, %v713_v63, %v1159_v10  ;;  %v2712_v49 = vld [vmem:[%s4306_s1 + $0x2e0] sm:$0xf] }
  0x67   : > { %1099 = vmatpush.bf16.msra.mxu0 %v2423_v20  ;;  %v989_v42 = vrot.slane %v987_v21, 2  ;;  %v990_v43 = vshrl.u32 %v986_v19, 16  ;;  %v993_v4 = vshll.u32 %v986_v19, 16  ;;  %v1166_v5 = vshrl.u32 %v1162_v12, 16  ;;  %v2714_v13 = vld [vmem:[%s4306_s1 + $0x2e8] sm:$0xf0] }
  0x68   : > { %1113 = vmatpush.bf16.msra.mxu1 %v2427_v34  ;;  %v1169_v26 = vshll.u32 %v1162_v12, 16  ;;  %v2631_v48 = vor.u32 %v2920_v23, %v2630_v41  ;;  %v2936_v51 = vld [vmem:[%s4306_s1 + $0x2e4] sm:$0xf0]  ;;  %v1165_v52 = vrot.slane %v1163_v47, 2  ;;  %v2635_v58 = vor.u32 %v2919_v24, %v2632_v25  ;;  %v2622_v15 = vld [vmem:[%s4306_s1 + $0x150] sm:$0xf] }
  0x69   : > { %1289 = vmatpush.bf16.msra.mxu3 %v2507_v35  ;;  %1275 = vmatpush.bf16.msra.mxu2 %v2503_v38  ;;  %v992_v6 = vrot.slane %v990_v43, 6  ;;  %v995_v27 = vrot.slane %v993_v4, 7  ;;  %v999_v14 = vshll.u32 %v989_v42, 16  ;;  %v1168_v53 = vrot.slane %v1166_v5, 6  ;;  %v2918_v59 = vld [vmem:[%s4306_s1 + $0x154] sm:$0xf0] }
  0x6a   : > { %v2717_v11 = vor.u32 %v2935_v44, %v2714_v13  ;;  %v1171_v16 = vrot.slane %v1169_v26, 7  ;;  %v2917_v17 = vld [vmem:[%s4306_s1 + $0x154] sm:$0xf]  ;;  %v2624_v20 = vld [vmem:[%s4306_s1 + $0x158] sm:$0xf0]  ;;  %v2713_v28 = vor.u32 %v2936_v51, %v2712_v49  ;;  %v2623_v29 = vor.u32 %v2918_v59, %v2622_v15 }
  0x6b   : > { %1100 = vmatpush.bf16.msra.mxu0 %v2415_v50  ;;  %v996_v60 = vor.u32 %v995_v27, %v992_v6  ;;  %v1001_v2 = vrot.slane %v999_v14, 7  ;;  %v2933_v30 = vld [vmem:[%s4306_s1 + $0x2d4] sm:$0xf]  ;;  %v2706_v31 = vld [vmem:[%s4306_s1 + $0x2d8] sm:$0xf0]  ;;  %v1175_v36 = vshll.u32 %v1165_v52, 16  ;;  %v2627_v37 = vor.u32 %v2917_v17, %v2624_v20 }
  0x6c   : > { %1114 = vmatpush.bf16.msra.mxu1 %v2419_v61  ;;  %v2704_v32 = vld [vmem:[%s4306_s1 + $0x2d0] sm:$0xf]  ;;  %v2934_v34 = vld [vmem:[%s4306_s1 + $0x2d4] sm:$0xf0]  ;;  %v2614_v35 = vld [vmem:[%s4306_s1 + $0x140] sm:$0xf]  ;;  %v2709_v38 = vor.u32 %v2933_v30, %v2706_v31  ;;  %v1172_v61 = vor.u32 %v1171_v16, %v1168_v53 }
  0x6d   : > { %1290 = vmatpush.bf16.msra.mxu3 %v2499_v7  ;;  %1276 = vmatpush.bf16.msra.mxu2 %v2495_v0  ;;  %v997_v33 = vrot.slane %v996_v60, 2  ;;  %v2916_v45 = vld [vmem:[%s4306_s1 + $0x144] sm:$0xf0]  ;;  %v2915_v46 = vld [vmem:[%s4306_s1 + $0x144] sm:$0xf] }
  0x6e   : > { %v2616_v55 = vld [vmem:[%s4306_s1 + $0x148] sm:$0xf0]  ;;  %v2931_v56 = vld [vmem:[%s4306_s1 + $0x2c4] sm:$0xf]  ;;  %v2615_v62 = vor.u32 %v2916_v45, %v2614_v35  ;;  %v2696_v63 = vld [vmem:[%s4306_s1 + $0x2c0] sm:$0xf] }
  0x6f   : > { %1492 = vmatpush.bf16.msrb.mxu0 %v2639_v39  ;;  %v1002_v50 = vsel %vm3691_vm8, %v997_v33, %v1001_v2  ;;  %v2698_v57 = vld [vmem:[%s4306_s1 + $0x2c8] sm:$0xf0]  ;;  %v2705_v39 = vor.u32 %v2934_v34, %v2704_v32  ;;  %v2932_v3 = vld [vmem:[%s4306_s1 + $0x2c4] sm:$0xf0]  ;;  %v2619_v7 = vor.u32 %v2915_v46, %v2616_v55  ;;  %v2914_v10 = vld [vmem:[%s4306_s1 + $0x134] sm:$0xf0] }
  0x70   : > { %1506 = vmatpush.bf16.msrb.mxu1 %v2643_v8  ;;  %1010 = vst [vmem:[#allocation1 + $0x3] ss:$4 sm:$0xff] %v1002_v50  ;;  %v2701_v8 = vor.u32 %v2931_v56, %v2698_v57  ;;  %v2913_v18 = vld [vmem:[%s4306_s1 + $0x134] sm:$0xf]  ;;  %v2608_v41 = vld [vmem:[%s4306_s1 + $0x138] sm:$0xf0]  ;;  %v2697_v24 = vor.u32 %v2932_v3, %v2696_v63 }
  0x71   : > { %1674 = vmatpush.bf16.msrb.mxu3 %v2725_v9  ;;  %1660 = vmatpush.bf16.msrb.mxu2 %v2721_v22  ;;  %v2606_v9 = vld [vmem:[%s4306_s1 + $0x130] sm:$0xf]  ;;  %v2929_v0 = vld [vmem:[%s4306_s1 + $0x2b4] sm:$0xf]  ;;  %v2690_v19 = vld [vmem:[%s4306_s1 + $0x2b8] sm:$0xf0]  ;;  %v2611_v12 = vor.u32 %v2913_v18, %v2608_v41 }
  0x72   : > { %v1173_v21 = vrot.slane %v1172_v61, 2  ;;  %v1177_v22 = vrot.slane %v1175_v36, 7  ;;  %v2688_v23 = vld [vmem:[%s4306_s1 + $0x2b0] sm:$0xf]  ;;  %v2607_v25 = vor.u32 %v2914_v10, %v2606_v9  ;;  %v2930_v42 = vld [vmem:[%s4306_s1 + $0x2b4] sm:$0xf0]  ;;  %v2693_v44 = vor.u32 %v2929_v0, %v2690_v19 }
  0x73   : > { %1493 = vmatpush.bf16.msrb.mxu0 %v2631_v48  ;;  %v2598_v43 = vld [vmem:[%s4306_s1 + $0x120] sm:$0xf]  ;;  %v2912_v4 = vld [vmem:[%s4306_s1 + $0x124] sm:$0xf0]  ;;  %v2911_v47 = vld [vmem:[%s4306_s1 + $0x124] sm:$0xf]  ;;  %v2689_v1 = vor.u32 %v2930_v42, %v2688_v23 }
  0x74   : > { %1507 = vmatpush.bf16.msrb.mxu1 %v2635_v58  ;;  %v2600_v5 = vld [vmem:[%s4306_s1 + $0x128] sm:$0xf0]  ;;  %v2927_v26 = vld [vmem:[%s4306_s1 + $0x2a4] sm:$0xf]  ;;  %v1178_v49 = vsel %vm3691_vm8, %v1173_v21, %v1177_v22  ;;  %v2680_v6 = vld [vmem:[%s4306_s1 + $0x2a0] sm:$0xf]  ;;  %v2599_v51 = vor.u32 %v2912_v4, %v2598_v43 }
  0x75   : > { %1675 = vmatpush.bf16.msrb.mxu3 %v2717_v11  ;;  %1661 = vmatpush.bf16.msrb.mxu2 %v2713_v28  ;;  %v2682_v13 = vld [vmem:[%s4306_s1 + $0x2a8] sm:$0xf0]  ;;  %v2928_v27 = vld [vmem:[%s4306_s1 + $0x2a4] sm:$0xf0]  ;;  %v2590_v14 = vld [vmem:[%s4306_s1 + $0x110] sm:$0xf]  ;;  %v2603_v15 = vor.u32 %v2911_v47, %v2600_v5 }
  0x76   : > { %v2909_v52 = vld [vmem:[%s4306_s1 + $0x114] sm:$0xf]  ;;  %v2592_v53 = vld [vmem:[%s4306_s1 + $0x118] sm:$0xf0]  ;;  %v4037_v11 = vld [vmem:[%s4306_s1 + $0x290] sm:$0xf]  ;;  %v2685_v59 = vor.u32 %v2927_v26, %v2682_v13  ;;  %v2681_v31 = vor.u32 %v2928_v27, %v2680_v6 }
  0x77   : > { %1494 = vmatpush.bf16.msrb.mxu0 %v2623_v29  ;;  %v1011_v48 = vld.sshfl [vmem:[#allocation1] sm:$0xff pattern:$0x73625140]  ;;  %v2925_v58 = vld [vmem:[%s4306_s1 + $0x294] sm:$0xf]  ;;  %v2595_v36 = vor.u32 %v2909_v52, %v2592_v53 }
  0x78   : > { %1508 = vmatpush.bf16.msrb.mxu1 %v2627_v37  ;;  %1179 = vst [vmem:[#allocation1] ss:$4 sm:$0xff] %v3758_v54  ;;  %1101 = vmatmul.bf16.vlgmr.msra.gmra.mxu0 %v1011_v48  ;;  %v2910_v54 = vld [vmem:[%s4306_s1 + $0x114] sm:$0xf0]  ;;  %v4047_v2 = vld [vmem:[%s4306_s1 + $0x100] sm:$0xf] }
  0x79   : > { %1676 = vmatpush.bf16.msrb.mxu3 %v2709_v38  ;;  %1662 = vmatpush.bf16.msrb.mxu2 %v2705_v39  ;;  %1181 = vst [vmem:[#allocation1 + $0x1] ss:$4 sm:$0xff] %v3765_v40  ;;  %v2674_v40 = vld [vmem:[%s4306_s1 + $0x298] sm:$0xf0]  ;;  %v4042_v60 = vld [vmem:[%s4306_s1 + $0x294] sm:$0xf0]  ;;  %v2591_v32 = vor.u32 %v2910_v54, %v2590_v14 }
  0x7a   : > { %1115 = vmatmul.bf16.vlgmr.msra.gmra.mxu1 %v1011_v48  ;;  %1183 = vst [vmem:[#allocation1 + $0x2] ss:$4 sm:$0xff] %v1002_v50  ;;  %v2908_v16 = vld [vmem:[%s4306_s1 + $0x104] sm:$0xf0]  ;;  %v4055_v17 = vld [vmem:[%s4306_s1 + $0x104] sm:$0xf]  ;;  %v2677_v37 = vor.u32 %v2925_v58, %v2674_v40  ;;  %v2673_v38 = vor.u32 %v4042_v60, %v4037_v11 }
  0x7b   : > { %1495 = vmatpush.bf16.msrb.mxu0 %v2615_v62  ;;  %1186 = vst [vmem:[#allocation1 + $0x3] ss:$4 sm:$0xff] %v1178_v49  ;;  %v4066_v28 = vld [vmem:[%s4306_s1 + $0x108] sm:$0xf0]  ;;  %v4071_v29 = vld [vmem:[%s4306_s1 + $0x284] sm:$0xf]  ;;  %v2583_v55 = vor.u32 %v2908_v16, %v4047_v2 }
  0x7c   : > { %1509 = vmatpush.bf16.msrb.mxu1 %v2619_v7  ;;  %v4076_v30 = vld [vmem:[%s4306_s1 + $0x288] sm:$0xf0]  ;;  %v4081_v33 = vld [vmem:[%s4306_s1 + $0x470] sm:$0xf]  ;;  %v2954_v34 = vld [vmem:[%s4306_s1 + $0x474] sm:$0xf0]  ;;  %v2587_v56 = vor.u32 %v4055_v17, %v4066_v28 }
  0x7d   : > { %1677 = vmatpush.bf16.msrb.mxu3 %v2701_v8  ;;  %1663 = vmatpush.bf16.msrb.mxu2 %v2697_v24  ;;  %v2953_v35 = vld [vmem:[%s4306_s1 + $0x474] sm:$0xf]  ;;  %v2804_v45 = vld [vmem:[%s4306_s1 + $0x478] sm:$0xf0]  ;;  %v4097_v46 = vld [vmem:[%s4306_s1 + $0x280] sm:$0xf]  ;;  %v2669_v57 = vor.u32 %v4071_v29, %v4076_v30  ;;  %v2803_v61 = vor.u32 %v2954_v34, %v4081_v33 }
  0x7e   : > { %v4102_v50 = vld [vmem:[%s4306_s1 + $0x284] sm:$0xf0]  ;;  %v1317_v39 = vld [vmem:[%s3340_s27] sm:$0x6]  ;;  %v1318_v62 = vld [vmem:[%s3340_s27 + $0x4] sm:$0x6]  ;;  %v2807_v10 = vor.u32 %v2953_v35, %v2804_v45 }
  0x7f   : > { %1496 = vmatpush.bf16.msrb.mxu0 %v2607_v25  ;;  %v1319_v63 = vld [vmem:[%s3340_s27 + $0x8] sm:$0x6]  ;;  %v1320_v3 = vld [vmem:[%s3340_s27 + $0xc] sm:$0x6]  ;;  %v1344_v7 = vrot.slane %v1317_v39, 2  ;;  %v1345_v8 = vrot.slane %v1318_v62, 2  ;;  %v2665_v18 = vor.u32 %v4102_v50, %v4097_v46 }
  0x80   : > { %1510 = vmatpush.bf16.msrb.mxu1 %v2611_v12  ;;  %v1346_v9 = vrot.slane %v1319_v63, 2  ;;  %v1347_v41 = vrot.slane %v1320_v3, 2  ;;  %v1321_v4 = vld [vmem:[%s3340_s27 + $0x10] sm:$0x6]  ;;  %v2794_v12 = vld [vmem:[%s4306_s1 + $0x460] sm:$0xf] }
  0x81   : > { %1678 = vmatpush.bf16.msrb.mxu3 %v2693_v44  ;;  %1664 = vmatpush.bf16.msrb.mxu2 %v2689_v1  ;;  %v1350_v19 = vsel %vm739_vm0, %v1317_v39, %v1344_v7  ;;  %v1352_v21 = vsel %vm743_vm1, %v1317_v39, %v1344_v7  ;;  %v1357_v22 = vsel %vm739_vm0, %v1318_v62, %v1345_v8  ;;  %v2952_v48 = vld [vmem:[%s4306_s1 + $0x464] sm:$0xf0]  ;;  %v2951_v13 = vld [vmem:[%s4306_s1 + $0x464] sm:$0xf]  ;;  %v2796_v54 = vld [vmem:[%s4306_s1 + $0x468] sm:$0xf0] }
  0x82   : > { %v1187_v0 = vld.sshfl [vmem:[#allocation1] sm:$0xff pattern:$0x73625140]  ;;  %v1359_v23 = vsel %vm743_vm1, %v1318_v62, %v1345_v8  ;;  %v1364_v24 = vsel %vm739_vm0, %v1319_v63, %v1346_v9  ;;  %v1366_v25 = vsel %vm743_vm1, %v1319_v63, %v1346_v9  ;;  %v2572_v43 = vrot.slane %v1350_v19, 9  ;;  %v2786_v40 = vld [vmem:[%s4306_s1 + $0x450] sm:$0xf] }
  0x83   : > { %1497 = vmatpush.bf16.msrb.mxu0 %v2599_v51  ;;  %1291 = vmatmul.bf16.vlgmr.msra.gmra.mxu3 %v1187_v0  ;;  %v1371_v44 = vsel %vm739_vm0, %v1320_v3, %v1347_v41  ;;  %v1373_v47 = vsel %vm743_vm1, %v1320_v3, %v1347_v41  ;;  %v2573_v5 = vrot.slane %v1352_v21, 9  ;;  %v2574_v26 = vrot.slane %v1357_v22, 9  ;;  %v2950_v11 = vld [vmem:[%s4306_s1 + $0x454] sm:$0xf0]  ;;  %v2949_v2 = vld [vmem:[%s4306_s1 + $0x454] sm:$0xf] }
  0x84   : > { %1511 = vmatpush.bf16.msrb.mxu1 %v2603_v15  ;;  %1277 = vmatmul.bf16.vlgmr.msra.gmra.mxu2 %v1187_v0  ;;  %v2575_v49 = vrot.slane %v1359_v23, 9  ;;  %v2576_v6 = vrot.slane %v1364_v24, 9  ;;  %v2577_v27 = vrot.slane %v1366_v25, 9  ;;  %v2578_v14 = vrot.slane %v1371_v44, 9  ;;  %v2788_v16 = vld [vmem:[%s4306_s1 + $0x458] sm:$0xf0] }
  0x85   : > { %1679 = vmatpush.bf16.msrb.mxu3 %v2685_v59  ;;  %1665 = vmatpush.bf16.msrb.mxu2 %v2681_v31  ;;  %v1386_v1 = vsel %vm4124_vm15, %v2572_v43, %v2573_v5  ;;  %v2579_v51 = vrot.slane %v1373_v47, 9  ;;  %v1558_v52 = vrot.slane %v1321_v4, 2  ;;  %v2795_v59 = vor.u32 %v2952_v48, %v2794_v12  ;;  %v2778_v30 = vld [vmem:[%s4306_s1 + $0x440] sm:$0xf]  ;;  %v2948_v31 = vld [vmem:[%s4306_s1 + $0x444] sm:$0xf0] }
  0x86   : > { %v1390_v53 = vsel %vm4124_vm15, %v2574_v26, %v2575_v49  ;;  %v4149_v58 = vsel %vm4124_vm15, %v2576_v6, %v2577_v27  ;;  %1400 = vst [vmem:[#allocation1] ss:$4 sm:$0xff] %v1386_v1  ;;  %v2799_v60 = vor.u32 %v2951_v13, %v2796_v54  ;;  %v2787_v28 = vor.u32 %v2950_v11, %v2786_v40  ;;  %v2780_v33 = vld [vmem:[%s4306_s1 + $0x448] sm:$0xf0]  ;;  %v1322_v45 = vld [vmem:[%s3340_s27 + $0x14] sm:$0x6] }
  0x87   : > { %1498 = vmatpush.bf16.msrb.mxu0 %v2591_v32  ;;  %v4159_v15 = vsel %vm4124_vm15, %v2578_v14, %v2579_v51  ;;  %1403 = vst [vmem:[#allocation1 + $0x1] ss:$4 sm:$0xff] %v1390_v53  ;;  %v1561_v17 = vsel %vm739_vm0, %v1321_v4, %v1558_v52  ;;  %v1563_v20 = vsel %vm743_vm1, %v1321_v4, %v1558_v52  ;;  %v2947_v32 = vld [vmem:[%s4306_s1 + $0x444] sm:$0xf]  ;;  %v2946_v46 = vld [vmem:[%s4306_s1 + $0x434] sm:$0xf0] }
  0x88   : > { %1512 = vmatpush.bf16.msrb.mxu1 %v2595_v36  ;;  %1406 = vst [vmem:[#allocation1 + $0x2] ss:$4 sm:$0xff] %v4149_v58  ;;  %v2791_v29 = vor.u32 %v2949_v2, %v2788_v16  ;;  %v2660_v34 = vrot.slane %v1561_v17, 9  ;;  %v2661_v35 = vrot.slane %v1563_v20, 9  ;;  %v2779_v36 = vor.u32 %v2948_v31, %v2778_v30  ;;  %v2945_v50 = vld [vmem:[%s4306_s1 + $0x434] sm:$0xf] }
  0x89   : > { %1680 = vmatpush.bf16.msrb.mxu3 %v2677_v37  ;;  %1666 = vmatpush.bf16.msrb.mxu2 %v2673_v38  ;;  %1409 = vst [vmem:[#allocation1 + $0x3] ss:$4 sm:$0xff] %v4159_v15  ;;  %v2783_v37 = vor.u32 %v2947_v32, %v2780_v33  ;;  %v2770_v38 = vld [vmem:[%s4306_s1 + $0x430] sm:$0xf]  ;;  %v2762_v63 = vld [vmem:[%s4306_s1 + $0x420] sm:$0xf] }
  0x8a   : > { %v2771_v39 = vor.u32 %v2946_v46, %v2770_v38  ;;  %v2944_v3 = vld [vmem:[%s4306_s1 + $0x424] sm:$0xf0]  ;;  %v2943_v7 = vld [vmem:[%s4306_s1 + $0x424] sm:$0xf]  ;;  %v2764_v8 = vld [vmem:[%s4306_s1 + $0x428] sm:$0xf0] }
  0x8b   : > { %1499 = vmatpush.bf16.msrb.mxu0 %v2583_v55  ;;  %v2772_v55 = vld [vmem:[%s4306_s1 + $0x438] sm:$0xf0]  ;;  %v2767_v41 = vor.u32 %v2943_v7, %v2764_v8  ;;  %v2754_v0 = vld [vmem:[%s4306_s1 + $0x410] sm:$0xf]  ;;  %v2942_v19 = vld [vmem:[%s4306_s1 + $0x414] sm:$0xf0] }
  0x8c   : > { %1513 = vmatpush.bf16.msrb.mxu1 %v2587_v56  ;;  %v2775_v62 = vor.u32 %v2945_v50, %v2772_v55  ;;  %v2941_v21 = vld [vmem:[%s4306_s1 + $0x414] sm:$0xf]  ;;  %v2756_v22 = vld [vmem:[%s4306_s1 + $0x418] sm:$0xf0]  ;;  %v2755_v25 = vor.u32 %v2942_v19, %v2754_v0  ;;  %v2746_v4 = vld [vmem:[%s4306_s1 + $0x400] sm:$0xf] }
  0x8d   : > { %1681 = vmatpush.bf16.msrb.mxu3 %v2669_v57  ;;  %1667 = vmatpush.bf16.msrb.mxu2 %v2665_v18  ;;  %v1569_v57 = vsel %vm4124_vm15, %v2660_v34, %v2661_v35  ;;  %v2763_v18 = vor.u32 %v2944_v3, %v2762_v63  ;;  %v2759_v43 = vor.u32 %v2941_v21, %v2756_v22  ;;  %v2940_v12 = vld [vmem:[%s4306_s1 + $0x404] sm:$0xf0]  ;;  %v2939_v44 = vld [vmem:[%s4306_s1 + $0x404] sm:$0xf]  ;;  %v2748_v5 = vld [vmem:[%s4306_s1 + $0x408] sm:$0xf0] }
  0x8e   : > { %v2747_v48 = vor.u32 %v2940_v12, %v2746_v4  ;;  %v2751_v13 = vor.u32 %v2939_v44, %v2748_v5 }
  0x8f   : > { %1828 = vmatpush.bf16.msra.mxu0 %v2803_v61  ;;  %v1726_v61 = vrot.slane %v1322_v45, 2 }
  0x90   : > { %1842 = vmatpush.bf16.msra.mxu1 %v2807_v10  ;;  %v1410_v56 = vld.sshfl [vmem:[#allocation1] sm:$0xff pattern:$0x73625140] }
  0x91   : > { %1514 = vmatmul.bf16.vlgmr.msrb.gmra.mxu1 %v1410_v56  ;;  %1570 = vst [vmem:[#allocation1] ss:$4 sm:$0xff] %v1390_v53  ;;  %1500 = vmatmul.bf16.vlgmr.msrb.gmra.mxu0 %v1410_v56  ;;  %v1729_v9 = vsel %vm739_vm0, %v1322_v45, %v1726_v61  ;;  %v1731_v10 = vsel %vm743_vm1, %v1322_v45, %v1726_v61  ;;  %vm542_vm1 = vcmask 1043456  }
  0x92   : > { %1572 = vst [vmem:[#allocation1 + $0x1] ss:$4 sm:$0xff] %v4149_v58  ;;  %v2742_v23 = vrot.slane %v1729_v9, 9  ;;  %v2743_v24 = vrot.slane %v1731_v10, 9 }
  0x93   : > { %1829 = vmatpush.bf16.msra.mxu0 %v2795_v59  ;;  %1574 = vst [vmem:[#allocation1 + $0x2] ss:$4 sm:$0xff] %v4159_v15 }
  0x94   : > { %1843 = vmatpush.bf16.msra.mxu1 %v2799_v60  ;;  %1577 = vst [vmem:[#allocation1 + $0x3] ss:$4 sm:$0xff] %v1569_v57  ;;  %v1737_v26 = vsel %vm4124_vm15, %v2742_v23, %v2743_v24 }
  0x97   : > { %1830 = vmatpush.bf16.msra.mxu0 %v2787_v28 }
  0x98   : > { %1844 = vmatpush.bf16.msra.mxu1 %v2791_v29 }
  0x9b   : > { %1831 = vmatpush.bf16.msra.mxu0 %v2779_v36  ;;  %v1578_v47 = vld.sshfl [vmem:[#allocation1] sm:$0xff pattern:$0x73625140] }
  0x9c   : > { %1845 = vmatpush.bf16.msra.mxu1 %v2783_v37  ;;  %1682 = vmatmul.bf16.vlgmr.msrb.gmra.mxu3 %v1578_v47  ;;  %1738 = vst [vmem:[#allocation1] ss:$4 sm:$0xff] %v4149_v58 }
  0x9d   : > { %1668 = vmatmul.bf16.vlgmr.msrb.gmra.mxu2 %v1578_v47  ;;  %1740 = vst [vmem:[#allocation1 + $0x1] ss:$4 sm:$0xff] %v4159_v15 }
  0x9e   : > { %1742 = vst [vmem:[#allocation1 + $0x2] ss:$4 sm:$0xff] %v1569_v57 }
  0x9f   : > { %1832 = vmatpush.bf16.msra.mxu0 %v2771_v39  ;;  %1745 = vst [vmem:[#allocation1 + $0x3] ss:$4 sm:$0xff] %v1737_v26 }
  0xa0   : > { %1846 = vmatpush.bf16.msra.mxu1 %v2775_v62 }
  0xa3   : > { %1833 = vmatpush.bf16.msra.mxu0 %v2763_v18 }
  0xa4   : > { %1847 = vmatpush.bf16.msra.mxu1 %v2767_v41 }
  0xa6   : > { %v1746_v49 = vld.sshfl [vmem:[#allocation1] sm:$0xff pattern:$0x73625140] }
  0xa7   : > { %1834 = vmatpush.bf16.msra.mxu0 %v2755_v25 }
  0xa8   : > { %1848 = vmatpush.bf16.msra.mxu1 %v2759_v43 }
  0xab   : > { %1835 = vmatpush.bf16.msra.mxu0 %v2747_v48 }
  0xac   : > { %1849 = vmatpush.bf16.msra.mxu1 %v2751_v13  ;;  %v1876_v13 = vld [vmem:[%s4307_s2] sm:$0x3] }
  0xae   : > { %1836 = vmatmul.bf16.vlgmr.msra.gmra.mxu0 %v1746_v49 }
  0xaf   : > { %1850 = vmatmul.bf16.vlgmr.msra.gmra.mxu1 %v1746_v49 }
  0xbb   : > { %v413_v6 = vpop.f32.mrf.mxu1  ;;  %v399_v27 = vpop.f32.mrf.mxu0 }
  0xc3   : > { %v415_v14 = vpop.f32.mrf.mxu1  ;;  %v401_v54 = vpop.f32.mrf.mxu0 }
  0xcd   : > { %v531_v1 = vpop.f32.mrf.mxu3  ;;  %v517_v42 = vpop.f32.mrf.mxu2 }
  0xce   : > { %v532_v29 = vadd.f32 %v531_v1, %v413_v6  ;;  %v518_v33 = vadd.f32 %v517_v42, %v399_v27 }
  0xd0   : > { %v540_v32 = vrot.slane %v532_v29, 4 }
  0xd2   : > { %v544_v46 = vsel %vm542_vm1, %v540_v32, %v518_v33  ;;  %v543_v57 = vsel %vm542_vm1, %v518_v33, %v540_v32 }
  0xd3   : > { %v683_v51 = vpop.f32.mrf.mxu1  ;;  %v669_v52 = vpop.f32.mrf.mxu0  ;;  %v545_v9 = vrot.slane %v544_v46, 4 }
  0xd4   : > { %v692_v35 = vrot.slane %v683_v51, 4 }
  0xd5   : > { %v533_v53 = vpop.f32.mrf.mxu3  ;;  %v519_v58 = vpop.f32.mrf.mxu2 }
  0xd6   : > { %v534_v34 = vadd.f32 %v533_v53, %v415_v14  ;;  %v520_v55 = vadd.f32 %v519_v58, %v401_v54  ;;  %v695_v56 = vsel %vm542_vm1, %v692_v35, %v669_v52  ;;  %v694_v39 = vsel %vm542_vm1, %v669_v52, %v692_v35 }
  0xd7   : > { %v696_v10 = vrot.slane %v695_v56, 4  ;;  %v704_v19 = vadd.f32 %v694_v39, %v543_v57 }
  0xd8   : > { %v541_v50 = vrot.slane %v534_v34, 4  ;;  %v1878_v34 = vperm.slane %v1876_v13, 0 }
  0xd9   : > { %v705_v44 = vadd.f32 %v696_v10, %v545_v9 }
  0xda   : > { %v547_v18 = vsel %vm542_vm1, %v541_v50, %v520_v55  ;;  %v546_v25 = vsel %vm542_vm1, %v520_v55, %v541_v50 }
  0xdb   : > { %v685_v40 = vpop.f32.mrf.mxu1  ;;  %v671_v11 = vpop.f32.mrf.mxu0  ;;  %v548_v12 = vrot.slane %v547_v18, 4 }
  0xdc   : > { %v693_v45 = vrot.slane %v685_v40, 4 }
  0xde   : > { %v698_v63 = vsel %vm542_vm1, %v693_v45, %v671_v11  ;;  %v697_v41 = vsel %vm542_vm1, %v671_v11, %v693_v45 }
  0xdf   : > { %v699_v22 = vrot.slane %v698_v63, 4  ;;  %v706_v47 = vadd.f32 %v697_v41, %v546_v25 }
  0xe1   : > { %v707_v42 = vadd.f32 %v699_v22, %v548_v12 }
  0xe3   : > { %v940_v15 = vpop.f32.mrf.mxu3 }
  0xe4   : > { %v949_v38 = vrot.slane %v940_v15, 4  ;;  %v1879_v15 = vperm.slane %v1876_v13, 1 }
  0xe5   : > { %v926_v59 = vpop.f32.mrf.mxu2 }
  0xe6   : > { %v952_v62 = vsel %vm542_vm1, %v949_v38, %v926_v59  ;;  %v951_v24 = vsel %vm542_vm1, %v926_v59, %v949_v38  ;;  %v1880_v45 = vrot.slane %v1879_v15, 4 }
  0xe7   : > { %v953_v21 = vrot.slane %v952_v62, 4  ;;  %v961_v54 = vadd.f32 %v951_v24, %v704_v19 }
  0xe8   : > { %v1881_v19 = vsel %vm542_vm1, %v1878_v34, %v1880_v45 }
  0xe9   : > { %v962_v1 = vadd.f32 %v953_v21, %v705_v44 }
  0xeb   : > { %v942_v16 = vpop.f32.mrf.mxu3 }
  0xec   : > { %v950_v3 = vrot.slane %v942_v16, 4 }
  0xed   : > { %v928_v17 = vpop.f32.mrf.mxu2 }
  0xee   : > { %v955_v43 = vsel %vm542_vm1, %v950_v3, %v928_v17  ;;  %v954_v5 = vsel %vm542_vm1, %v928_v17, %v950_v3 }
  0xef   : > { %v956_v51 = vrot.slane %v955_v43, 4  ;;  %v963_v59 = vadd.f32 %v954_v5, %v706_v47 }
  0xf5   : > { %v1102_v2 = vpop.f32.mrf.mxu0 }
  0xf7   : > { %v1116_v60 = vpop.f32.mrf.mxu1 }
  0xf8   : > { %v1125_v61 = vrot.slane %v1116_v60, 4 }
  0xfa   : > { %v1128_v23 = vsel %vm542_vm1, %v1125_v61, %v1102_v2  ;;  %v1127_v49 = vsel %vm542_vm1, %v1102_v2, %v1125_v61  ;;  %v964_v61 = vadd.f32 %v956_v51, %v707_v42 }
  0xfb   : > { %v1129_v6 = vrot.slane %v1128_v23, 4  ;;  %v1137_v60 = vadd.f32 %v1127_v49, %v961_v54 }
  0xfd   : > { %v4244_v28 = vpop.f32.mrf.mxu0  ;;  %v1138_v17 = vadd.f32 %v1129_v6, %v962_v1 }
  0xff   : > { %v4242_v20 = vpop.f32.mrf.mxu1 }
 0x100   : > { %v1126_v27 = vrot.slane %v4242_v20, 4 }
 0x102   : > { %v1130_v20 = vsel %vm542_vm1, %v4244_v28, %v1126_v27  ;;  %v1131_v29 = vsel %vm542_vm1, %v1126_v27, %v4244_v28 }
 0x103   : > { %v1132_v28 = vrot.slane %v1131_v29, 4  ;;  %v1139_v39 = vadd.f32 %v1130_v20, %v963_v59 }
 0x105   : > { %v1140_v25 = vadd.f32 %v1132_v28, %v964_v61 }
 0x106   : > { %v1292_v30 = vpop.f32.mrf.mxu3 }
 0x107   : > { %v1278_v31 = vpop.f32.mrf.mxu2  ;;  %v1301_v0 = vrot.slane %v1292_v30, 4 }
 0x109   : > { %v1304_v14 = vsel %vm542_vm1, %v1301_v0, %v1278_v31  ;;  %v1303_v52 = vsel %vm542_vm1, %v1278_v31, %v1301_v0 }
 0x10a   : > { %v1305_v2 = vrot.slane %v1304_v14, 4  ;;  %v1313_v31 = vadd.f32 %v1303_v52, %v1137_v60 }
 0x10c   : > { %v1314_v46 = vadd.f32 %v1305_v2, %v1138_v17 }
 0x10e   : > { %v1515_v36 = vpop.f32.mrf.mxu1  ;;  %v1501_v37 = vpop.f32.mrf.mxu0 }
 0x10f   : > { %v4252_v7 = vpop.f32.mrf.mxu3  ;;  %v1280_v8 = vpop.f32.mrf.mxu2  ;;  %v1524_v4 = vrot.slane %v1515_v36, 4 }
 0x110   : > { %v1302_v53 = vrot.slane %v4252_v7, 4 }
 0x111   : > { %v1527_v58 = vsel %vm542_vm1, %v1524_v4, %v1501_v37  ;;  %v1526_v30 = vsel %vm542_vm1, %v1501_v37, %v1524_v4 }
 0x112   : > { %v1528_v32 = vrot.slane %v1527_v58, 4  ;;  %v1307_v35 = vsel %vm542_vm1, %v1302_v53, %v1280_v8  ;;  %v1536_v50 = vadd.f32 %v1526_v30, %v1313_v31  ;;  %v1306_v62 = vsel %vm542_vm1, %v1280_v8, %v1302_v53 }
 0x113   : > { %v1308_v63 = vrot.slane %v1307_v35, 4  ;;  %v1315_v43 = vadd.f32 %v1306_v62, %v1139_v39 }
 0x114   : > { %v1537_v3 = vadd.f32 %v1528_v32, %v1314_v46 }
 0x115   : > { %v1316_v5 = vadd.f32 %v1308_v63, %v1140_v25 }
 0x116   : > { %v1517_v26 = vpop.f32.mrf.mxu1  ;;  %v1503_v48 = vpop.f32.mrf.mxu0 }
 0x117   : > { %v1525_v36 = vrot.slane %v1517_v26, 4 }
 0x119   : > { %v1530_v9 = vsel %vm542_vm1, %v1525_v36, %v1503_v48  ;;  %v1529_v8 = vsel %vm542_vm1, %v1503_v48, %v1525_v36 }
 0x11a   : > { %v1531_v4 = vrot.slane %v1530_v9, 4  ;;  %v1538_v13 = vadd.f32 %v1529_v8, %v1315_v43 }
 0x11c   : > { %v1539_v1 = vadd.f32 %v1531_v4, %v1316_v5 }
 0x11f   : > { %v1683_v40 = vpop.f32.mrf.mxu3 }
 0x120   : > { %v1669_v11 = vpop.f32.mrf.mxu2  ;;  %v1692_v16 = vrot.slane %v1683_v40, 4 }
 0x122   : > { %v1695_v33 = vsel %vm542_vm1, %v1692_v16, %v1669_v11  ;;  %v1694_v38 = vsel %vm542_vm1, %v1669_v11, %v1692_v16 }
 0x123   : > { %v1696_v55 = vrot.slane %v1695_v33, 4  ;;  %v1704_v7 = vadd.f32 %v1694_v38, %v1536_v50 }
 0x125   : > { %v1705_v21 = vadd.f32 %v1696_v55, %v1537_v3 }
 0x127   : > { %v1685_v10 = vpop.f32.mrf.mxu3 }
 0x128   : > { %v1671_v18 = vpop.f32.mrf.mxu2  ;;  %v1693_v22 = vrot.slane %v1685_v10, 4 }
 0x12a   : > { %v1698_v12 = vsel %vm542_vm1, %v1693_v22, %v1671_v18  ;;  %v1697_v26 = vsel %vm542_vm1, %v1671_v18, %v1693_v22 }
 0x12b   : > { %v1837_v56 = vpop.f32.mrf.mxu0  ;;  %v1699_v49 = vrot.slane %v1698_v12, 4  ;;  %v1706_v42 = vadd.f32 %v1697_v26, %v1538_v13 }
 0x12c   : > { %v1851_v57 = vpop.f32.mrf.mxu1 }
 0x12d   : > { %v1860_v37 = vrot.slane %v1851_v57, 4  ;;  %v1707_v58 = vadd.f32 %v1699_v49, %v1539_v1 }
 0x12f   : > { %v1862_v41 = vsel %vm542_vm1, %v1837_v56, %v1860_v37  ;;  %v1863_v0 = vsel %vm542_vm1, %v1860_v37, %v1837_v56 }
 0x130   : > { %v1864_v23 = vrot.slane %v1863_v0, 4  ;;  %v1872_v24 = vadd.f32 %v1862_v41, %v1704_v7 }
 0x132   : > { %v1873_v44 = vadd.f32 %v1864_v23, %v1705_v21  ;;  %v1883_v47 = vadd.f32 %v1881_v19, %v1872_v24 }
 0x133   : > { %v1839_v48 = vpop.f32.mrf.mxu0 }
 0x134   : > { %v1884_v6 = vadd.f32 %v1881_v19, %v1873_v44  ;;  %v1887_v27 = vmax.f32 %v1883_v47, 0.0  ;;  %v1853_v14 = vpop.f32.mrf.mxu1 }
 0x135   : > { %v1861_v54 = vrot.slane %v1853_v14, 4 }
 0x136   : > { %v1888_v51 = vmax.f32 %v1884_v6, 0.0  ;;  %1895 = vst [vmem:[#allocation1] ss:$2 sm:$0xff] %v1887_v27 }
 0x137   : > { %v1865_v52 = vsel %vm542_vm1, %v1839_v48, %v1861_v54  ;;  %v1866_v53 = vsel %vm542_vm1, %v1861_v54, %v1839_v48 }
 0x138   : > { %1899 = vst [vmem:[#allocation1 + $0x10] ss:$2 sm:$0xff] %v1888_v51  ;;  %v1867_v40 = vrot.slane %v1866_v53, 4  ;;  %v1874_v11 = vadd.f32 %v1865_v52, %v1706_v42 }
 0x13a   : > { %v1875_v15 = vadd.f32 %v1867_v40, %v1707_v58  ;;  %v1885_v59 = vadd.f32 %v1881_v19, %v1874_v11 }
 0x13c   : > { %v1886_v60 = vadd.f32 %v1881_v19, %v1875_v15  ;;  %v1889_v2 = vmax.f32 %v1885_v59, 0.0 }
 0x13d   : > { %v1896_v16 = vld.sshfl [vmem:[#allocation1] sm:$0xff pattern:$0x75316420]  ;;  %v1897_v17 = vld.sshfl [vmem:[#allocation1 + $0x8] sm:$0xff pattern:$0x75316420] }
 0x13e   : > { %v1890_v20 = vmax.f32 %v1886_v60, 0.0  ;;  %1903 = vst [vmem:[#allocation1 + $0x20] ss:$2 sm:$0xff] %v1889_v2  ;;  %v1918_v29 = vpack.c.bf16 %v1897_v17, %v1896_v16 }
 0x13f   : > { %v1900_v30 = vld.sshfl [vmem:[#allocation1 + $0x10] sm:$0xff pattern:$0x75316420]  ;;  %v1901_v31 = vld.sshfl [vmem:[#allocation1 + $0x18] sm:$0xff pattern:$0x75316420] }
 0x140   : > { %v1919_v32 = vpack.c.bf16 %v1901_v31, %v1900_v30  ;;  %1907 = vst [vmem:[#allocation1 + $0x30] ss:$2 sm:$0xff] %v1890_v20  ;;  %v1926_v33 = vrot.slane %v1918_v29, 2 }
 0x142   : > { %v1927_v34 = vrot.slane %v1919_v32, 2  ;;  %v1932_v35 = vsel %vm739_vm0, %v1918_v29, %v1926_v33 }
 0x143   : > { %1946 = vst [vmem:[%s252_s18] sm:$0xf] %v1932_v35 }
 0x144   : > { %v1935_v36 = vsel %vm739_vm0, %v1919_v32, %v1927_v34 }
 0x145   : > { %v1904_v38 = vld.sshfl [vmem:[#allocation1 + $0x20] sm:$0xff pattern:$0x75316420]  ;;  %v1905_v45 = vld.sshfl [vmem:[#allocation1 + $0x28] sm:$0xff pattern:$0x75316420] }
 0x146   : > { %v1920_v46 = vpack.c.bf16 %v1905_v45, %v1904_v38  ;;  %1947 = vst [vmem:[%s252_s18 + $0x4] sm:$0xf] %v1935_v36 }
 0x147   : > { %v1908_v50 = vld.sshfl [vmem:[#allocation1 + $0x30] sm:$0xff pattern:$0x75316420]  ;;  %v1909_v55 = vld.sshfl [vmem:[#allocation1 + $0x38] sm:$0xff pattern:$0x75316420] }
 0x148   : > { %v1921_v56 = vpack.c.bf16 %v1909_v55, %v1908_v50  ;;  %v1928_v57 = vrot.slane %v1920_v46, 2 }
 0x14a   : > { %v1929_v61 = vrot.slane %v1921_v56, 2  ;;  %v1938_v28 = vsel %vm739_vm0, %v1920_v46, %v1928_v57 }
 0x14b   : > { %1948 = vst [vmem:[%s252_s18 + $0x8] sm:$0xf] %v1938_v28 }
 0x14c   : > { %v1941_v39 = vsel %vm739_vm0, %v1921_v56, %v1929_v61 }
 0x14d   : > { %1949 = vst [vmem:[%s252_s18 + $0xc] sm:$0xf] %v1941_v39 }
 0x14e PF: > { %s13_s14 = sadd.s32 1, %s3002_s14   ;;  %s4319_s12 = smov %s2998_s13 }
 0x14f   : > { %p10_p5 = scmp.ge.s32.totalorder %s13_s14, 4   ;;  %s4320_s13 = smov %s4322_s15 }
 0x151   :  { %12 = sbr.rel (!%p10_p5) target bundleno = 2 (0x2), region = 107 }

</bundles_post_ra>
